<compile_context>
chip_gen: v7x
topology: tpu7x:2x2x1
jax: 0.10.0
libtpu: 0.0.40
codegen_flags: <defaults>
</compile_context>

<pallas_src>
import re

import jax
import jax.numpy as jnp
from jax.experimental import pallas as pl
from jax.experimental.pallas import tpu as pltpu

LEAKY_SLOPE = 0.01   # PyTorch nn.LeakyReLU default negative_slope
LANE = 128           # TPU lane width


def _round_up(x, m):
    return ((x + m - 1) // m) * m


def _tpu_generation():
    """Best-effort TPU generation from device_kind; falls back to 6."""
    try:
        kind = jax.devices()[0].device_kind
        m = re.search(r"(\d+)", kind)
        if m:
            return int(m.group(1))
    except Exception:
        pass
    return 6


# ----------------------------------------------------------------------------
# Parameter padding / packing
# ----------------------------------------------------------------------------

def _pad_params(params):
    """Zero-pad every layer's feature dims up to a multiple of 128 lanes.

    Padding W columns / b entries with zeros makes the padded pre-activation
    lanes exactly zero (LeakyReLU(0) == 0), and padding the next layer's W
    rows with zeros keeps them inert, so results are unchanged.
    Returns a list of (W_padded bf16 (in_p, out_p), b_padded f32 (out_p,)).
    """
    padded = []
    d_in_p = _round_up(params[0][0].shape[0], LANE)
    for (w, b) in params:
        d_in, d_out = w.shape
        d_out_p = _round_up(d_out, LANE)
        wp = jnp.zeros((d_in_p, d_out_p), w.dtype).at[:d_in, :d_out].set(w)
        bp = jnp.zeros((d_out_p,), jnp.float32).at[:d_out].set(
            b.reshape(-1).astype(jnp.float32))
        padded.append((wp, bp))
        d_in_p = d_out_p
    return padded


def _pack_params(padded):
    """Pack biases into one (n_layers, max_out) f32 array and all 128x128
    weights into one stacked (n_small, 128, 128) array; other weights are
    kept as individual operands.  Returns a static per-layer plan."""
    n = len(padded)
    max_dout = max(w.shape[1] for w, _ in padded)
    bias_pack = jnp.zeros((n, max_dout), jnp.float32)
    for i, (_, bp) in enumerate(padded):
        bias_pack = bias_pack.at[i, :bp.shape[0]].set(bp)

    plan = []       # per layer: ("big", idx_into_big) or ("small", slot)
    big_ws = []
    small_ws = []
    for w, _ in padded:
        if w.shape == (LANE, LANE):
            plan.append(("small", len(small_ws)))
            small_ws.append(w)
        else:
            plan.append(("big", len(big_ws)))
            big_ws.append(w)
    w_small = jnp.stack(small_ws) if small_ws else None
    out_dims = [w.shape[1] for w, _ in padded]
    return big_ws, w_small, bias_pack, plan, out_dims


# ----------------------------------------------------------------------------
# Kernel
# ----------------------------------------------------------------------------

def _make_ae_kernel(plan, out_dims, n_big, has_small):
    """Build the fused 12-layer MLP kernel for one batch tile.

    Ref order: (x, big_w..., [w_small_pack], bias_pack, out).
    Matmuls run on the MXU with bf16 operands / f32 accumulation; LeakyReLU
    is a VPU mul+max; inter-layer activations are carried in bf16.
    """
    n_layers = len(plan)

    def kernel(x_ref, *refs):
        out_ref = refs[-1]
        big_refs = refs[:n_big]
        idx = n_big
        w_small_ref = refs[idx] if has_small else None
        if has_small:
            idx += 1
        bias_ref = refs[idx]

        h = x_ref[...].astype(jnp.bfloat16)
        for li in range(n_layers):
            kind, slot = plan[li]
            if kind == "big":
                w = big_refs[slot][...]          # bf16 (in_p, out_p), resident
            else:
                w = w_small_ref[slot]            # bf16 (128, 128), static index
            d_out = out_dims[li]
            b = bias_ref[li:li + 1, :d_out]      # f32 (1, d_out), static slice
            acc = jnp.dot(h, w, preferred_element_type=jnp.float32) + b
            acc = jnp.maximum(acc, LEAKY_SLOPE * acc)      # LeakyReLU
            if li < n_layers - 1:
                h = acc.astype(jnp.bfloat16)     # bf16 inter-layer carry
            else:
                h = acc                          # last layer: cast once below
        out_ref[...] = h.astype(out_ref.dtype)

    return kernel


# ----------------------------------------------------------------------------
# Wrapper
# ----------------------------------------------------------------------------

def _choose_tile_b(B, dtype):
    """Generation- and dtype-aware batch tile size."""
    # sublane alignment: 8 for 4-byte, 16 for 2-byte, 32 for 1-byte dtypes
    sub = max(8, 32 // jnp.dtype(dtype).itemsize)
    gen = _tpu_generation()
    if gen <= 5:
        pref = 128                      # v5e: 128x128 MXU, 1 TC
    elif B >= 1024:
        pref = 512
    else:
        pref = 256                      # fills v6e/v7x 256-wide MXU
    tile_b = min(pref, _round_up(max(B, sub), sub))
    # v7x has 2 TensorCores: ensure the "parallel" grid axis has >= 2 steps
    # (skip for tiny batches where the kernel is pure weight-DMA latency).
    if gen >= 7 and B >= 64 and _round_up(B, tile_b) // tile_b < 2:
        tile_b = _round_up(-(-B // 2), sub)
    return tile_b


def ae_forward(x, params):
    """Run the fused AE kernel.

    x      : (batch, inputs) array
    params : list of 12 (W, b) tuples, W:(in,out) bf16, b:(1,out) f32
    """
    B, d_in = x.shape
    d_out = params[-1][0].shape[1]

    padded = _pad_params(params)
    d_in_p = padded[0][0].shape[0]
    d_out_p = padded[-1][0].shape[1]

    big_ws, w_small, bias_pack, plan, out_dims = _pack_params(padded)
    n_big = len(big_ws)
    has_small = w_small is not None

    tile_b = _choose_tile_b(B, x.dtype)
    b_pad = _round_up(B, tile_b)
    grid = (b_pad // tile_b,)

    x_p = jnp.zeros((b_pad, d_in_p), x.dtype).at[:B, :d_in].set(x)

    # x / out tiles stream along the batch grid axis; weight & bias operands
    # use constant block indices so they are DMA'd once and stay VMEM-resident
    # across all grid steps.
    operands = [x_p]
    in_specs = [pl.BlockSpec((tile_b, d_in_p), lambda i: (i, 0))]
    for w in big_ws:
        operands.append(w)
        in_specs.append(pl.BlockSpec(w.shape, lambda i: (0, 0)))
    if has_small:
        operands.append(w_small)
        in_specs.append(pl.BlockSpec(w_small.shape, lambda i: (0, 0, 0)))
    operands.append(bias_pack)
    in_specs.append(pl.BlockSpec(bias_pack.shape, lambda i: (0, 0)))

    out_spec = pl.BlockSpec((tile_b, d_out_p), lambda i: (i, 0))
    out_shape = jax.ShapeDtypeStruct((b_pad, d_out_p), x.dtype)

    flops = 2 * b_pad * sum(w.shape[0] * w.shape[1] for w, _ in padded)
    bytes_accessed = (
        x_p.size * x_p.dtype.itemsize
        + b_pad * d_out_p * x.dtype.itemsize
        + sum(w.size * w.dtype.itemsize for w, _ in padded)
        + bias_pack.size * bias_pack.dtype.itemsize
    )

    kernel = _make_ae_kernel(plan, out_dims, n_big, has_small)

    fn = pl.pallas_call(
        kernel,
        out_shape=out_shape,
        grid=grid,
        in_specs=in_specs,
        out_specs=out_spec,
        compiler_params=pltpu.CompilerParams(
            dimension_semantics=("parallel",),
        ),
        cost_estimate=pl.CostEstimate(
            flops=int(flops),
            transcendentals=0,
            bytes_accessed=int(bytes_accessed),
        ),
    )
    out = fn(*operands)
    return out[:B, :d_out]


# ----------------------------------------------------------------------------
# Params init + plain-JAX reference
# ----------------------------------------------------------------------------

def init_ae_params(inputs, key, w_dtype=jnp.bfloat16):
    """Deterministic init matching nn.Linear's U(-1/sqrt(in), 1/sqrt(in)).

    Weights are stored in bf16 (fed directly to the MXU); biases stay f32.
    """
    enc_dims = [inputs, 512, 256, 128, 64, 32, 16]
    dec_dims = [16, 32, 64, 128, 256, 512, inputs]
    dims = list(zip(enc_dims[:-1], enc_dims[1:])) + list(
        zip(dec_dims[:-1], dec_dims[1:]))
    params = []
    for (d_in, d_out) in dims:
        key, kw, kb = jax.random.split(key, 3)
        bound = 1.0 / (d_in ** 0.5)
        w = jax.random.uniform(kw, (d_in, d_out), jnp.float32, -bound, bound)
        b = jax.random.uniform(kb, (1, d_out), jnp.float32, -bound, bound)
        params.append((w.astype(w_dtype), b))
    return params


def ae_reference(x, params):
    """Plain-JAX reference mirroring the kernel math (bf16 operands,
    f32 accumulate, bf16 inter-layer carry)."""
    h = x.astype(jnp.bfloat16)
    n = len(params)
    for i, (w, b) in enumerate(params):
        acc = jnp.dot(h, w, preferred_element_type=jnp.float32) \
            + b.astype(jnp.float32)
        acc = jnp.maximum(acc, LEAKY_SLOPE * acc)
        h = acc.astype(jnp.bfloat16) if i < n - 1 else acc
    return h.astype(x.dtype)


if __name__ == "__main__":
    key = jax.random.PRNGKey(0)
    batch, inputs = 256, 128

    key, kx = jax.random.split(key)
    x = jax.random.normal(kx, (batch, inputs), jnp.float32)
    params = init_ae_params(inputs, key)

    out = ae_forward(x, params)
    out = jax.block_until_ready(out)

    ref = ae_reference(x, params)
    assert out.shape == (batch, inputs), out.shape
    max_err = float(jnp.max(jnp.abs(out - ref)))
    assert jnp.allclose(out, ref, atol=3e-3, rtol=3e-2), max_err
    print("KERNEL_OK")
</pallas_src>

<mosaic_0001>
module attributes {stable_mosaic.version = 11 : i64} {
  func.func @kernel(%arg0: i32, %arg1: memref<256x128xf32, #tpu.memory_space<vmem>>, %arg2: memref<128x512xbf16, #tpu.memory_space<vmem>>, %arg3: memref<512x256xbf16, #tpu.memory_space<vmem>>, %arg4: memref<256x128xbf16, #tpu.memory_space<vmem>>, %arg5: memref<128x256xbf16, #tpu.memory_space<vmem>>, %arg6: memref<256x512xbf16, #tpu.memory_space<vmem>>, %arg7: memref<512x128xbf16, #tpu.memory_space<vmem>>, %arg8: memref<6x128x128xbf16, #tpu.memory_space<vmem>>, %arg9: memref<12x512xf32, #tpu.memory_space<vmem>>, %arg10: memref<256x128xf32, #tpu.memory_space<vmem>>) attributes {dimension_semantics = [#tpu.dimension_semantics<parallel>], iteration_bounds = array<i64: 1>, scalar_prefetch = 0 : i64, scratch_operands = 0 : i64, tpu.core_type = #tpu.core_type<tc>, window_params = [{transform_indices = @transform_0, window_bounds = array<i64: 256, 128>}, {pipeline_mode = #tpu.pipeline_mode<synchronous>, transform_indices = @transform_1, window_bounds = array<i64: 128, 512>}, {pipeline_mode = #tpu.pipeline_mode<synchronous>, transform_indices = @transform_2, window_bounds = array<i64: 512, 256>}, {pipeline_mode = #tpu.pipeline_mode<synchronous>, transform_indices = @transform_3, window_bounds = array<i64: 256, 128>}, {pipeline_mode = #tpu.pipeline_mode<synchronous>, transform_indices = @transform_4, window_bounds = array<i64: 128, 256>}, {pipeline_mode = #tpu.pipeline_mode<synchronous>, transform_indices = @transform_5, window_bounds = array<i64: 256, 512>}, {pipeline_mode = #tpu.pipeline_mode<synchronous>, transform_indices = @transform_6, window_bounds = array<i64: 512, 128>}, {pipeline_mode = #tpu.pipeline_mode<synchronous>, transform_indices = @transform_7, window_bounds = array<i64: 6, 128, 128>}, {pipeline_mode = #tpu.pipeline_mode<synchronous>, transform_indices = @transform_8, window_bounds = array<i64: 12, 512>}, {transform_indices = @transform_9, window_bounds = array<i64: 256, 128>}]} {
    %c0 = arith.constant 0 : index
    %c0_0 = arith.constant 0 : index
    %0 = vector.load %arg1[%c0, %c0_0] : memref<256x128xf32, #tpu.memory_space<vmem>>, vector<256x128xf32>
    %1 = arith.truncf %0 : vector<256x128xf32> to vector<256x128xbf16>
    %c0_1 = arith.constant 0 : index
    %c0_2 = arith.constant 0 : index
    %2 = vector.load %arg2[%c0_1, %c0_2] : memref<128x512xbf16, #tpu.memory_space<vmem>>, vector<128x512xbf16>
    %c0_3 = arith.constant 0 : index
    %c0_4 = arith.constant 0 : index
    %3 = vector.load %arg9[%c0_3, %c0_4] : memref<12x512xf32, #tpu.memory_space<vmem>>, vector<1x512xf32>
    %cst = arith.constant dense<0.000000e+00> : vector<256x512xf32>
    %4 = tpu.matmul %1, %2, %cst {dimension_numbers = #tpu.dot_dimension_numbers<[1], [0], [0], [1], [0, 0, 1, 1], [], []>} : vector<256x128xbf16>, vector<128x512xbf16>, vector<256x512xf32> -> vector<256x512xf32>
    %5 = vector.broadcast %3 : vector<1x512xf32> to vector<256x512xf32>
    %6 = arith.addf %4, %5 : vector<256x512xf32>
    %cst_5 = arith.constant 0.00999999977 : f32
    %7 = vector.broadcast %cst_5 : f32 to vector<256x512xf32>
    %8 = arith.mulf %7, %6 : vector<256x512xf32>
    %9 = arith.maximumf %6, %8 : vector<256x512xf32>
    %10 = arith.truncf %9 : vector<256x512xf32> to vector<256x512xbf16>
    %c0_6 = arith.constant 0 : index
    %c0_7 = arith.constant 0 : index
    %11 = vector.load %arg3[%c0_6, %c0_7] : memref<512x256xbf16, #tpu.memory_space<vmem>>, vector<512x256xbf16>
    %c1 = arith.constant 1 : index
    %c0_8 = arith.constant 0 : index
    %12 = vector.load %arg9[%c1, %c0_8] : memref<12x512xf32, #tpu.memory_space<vmem>>, vector<1x256xf32>
    %cst_9 = arith.constant dense<0.000000e+00> : vector<256x256xf32>
    %13 = tpu.matmul %10, %11, %cst_9 {dimension_numbers = #tpu.dot_dimension_numbers<[1], [0], [0], [1], [0, 0, 1, 1], [], []>} : vector<256x512xbf16>, vector<512x256xbf16>, vector<256x256xf32> -> vector<256x256xf32>
    %14 = vector.broadcast %12 : vector<1x256xf32> to vector<256x256xf32>
    %15 = arith.addf %13, %14 : vector<256x256xf32>
    %cst_10 = arith.constant 0.00999999977 : f32
    %16 = vector.broadcast %cst_10 : f32 to vector<256x256xf32>
    %17 = arith.mulf %16, %15 : vector<256x256xf32>
    %18 = arith.maximumf %15, %17 : vector<256x256xf32>
    %19 = arith.truncf %18 : vector<256x256xf32> to vector<256x256xbf16>
    %c0_11 = arith.constant 0 : index
    %c0_12 = arith.constant 0 : index
    %20 = vector.load %arg4[%c0_11, %c0_12] : memref<256x128xbf16, #tpu.memory_space<vmem>>, vector<256x128xbf16>
    %c2 = arith.constant 2 : index
    %c0_13 = arith.constant 0 : index
    %21 = vector.load %arg9[%c2, %c0_13] : memref<12x512xf32, #tpu.memory_space<vmem>>, vector<1x128xf32>
    %cst_14 = arith.constant dense<0.000000e+00> : vector<256x128xf32>
    %22 = tpu.matmul %19, %20, %cst_14 {dimension_numbers = #tpu.dot_dimension_numbers<[1], [0], [0], [1], [0, 0, 1, 1], [], []>} : vector<256x256xbf16>, vector<256x128xbf16>, vector<256x128xf32> -> vector<256x128xf32>
    %23 = vector.broadcast %21 : vector<1x128xf32> to vector<256x128xf32>
    %24 = arith.addf %22, %23 : vector<256x128xf32>
    %cst_15 = arith.constant 0.00999999977 : f32
    %25 = vector.broadcast %cst_15 : f32 to vector<256x128xf32>
    %26 = arith.mulf %25, %24 : vector<256x128xf32>
    %27 = arith.maximumf %24, %26 : vector<256x128xf32>
    %28 = arith.truncf %27 : vector<256x128xf32> to vector<256x128xbf16>
    %c0_16 = arith.constant 0 : index
    %c0_17 = arith.constant 0 : index
    %c0_18 = arith.constant 0 : index
    %29 = vector.load %arg8[%c0_16, %c0_17, %c0_18] : memref<6x128x128xbf16, #tpu.memory_space<vmem>>, vector<1x128x128xbf16>
    %30 = vector.shape_cast %29 : vector<1x128x128xbf16> to vector<128x128xbf16>
    %c3 = arith.constant 3 : index
    %c0_19 = arith.constant 0 : index
    %31 = vector.load %arg9[%c3, %c0_19] : memref<12x512xf32, #tpu.memory_space<vmem>>, vector<1x128xf32>
    %cst_20 = arith.constant dense<0.000000e+00> : vector<256x128xf32>
    %32 = tpu.matmul %28, %30, %cst_20 {dimension_numbers = #tpu.dot_dimension_numbers<[1], [0], [0], [1], [0, 0, 1, 1], [], []>} : vector<256x128xbf16>, vector<128x128xbf16>, vector<256x128xf32> -> vector<256x128xf32>
    %33 = vector.broadcast %31 : vector<1x128xf32> to vector<256x128xf32>
    %34 = arith.addf %32, %33 : vector<256x128xf32>
    %cst_21 = arith.constant 0.00999999977 : f32
    %35 = vector.broadcast %cst_21 : f32 to vector<256x128xf32>
    %36 = arith.mulf %35, %34 : vector<256x128xf32>
    %37 = arith.maximumf %34, %36 : vector<256x128xf32>
    %38 = arith.truncf %37 : vector<256x128xf32> to vector<256x128xbf16>
    %c1_22 = arith.constant 1 : index
    %c0_23 = arith.constant 0 : index
    %c0_24 = arith.constant 0 : index
    %39 = vector.load %arg8[%c1_22, %c0_23, %c0_24] : memref<6x128x128xbf16, #tpu.memory_space<vmem>>, vector<1x128x128xbf16>
    %40 = vector.shape_cast %39 : vector<1x128x128xbf16> to vector<128x128xbf16>
    %c4 = arith.constant 4 : index
    %c0_25 = arith.constant 0 : index
    %41 = vector.load %arg9[%c4, %c0_25] : memref<12x512xf32, #tpu.memory_space<vmem>>, vector<1x128xf32>
    %cst_26 = arith.constant dense<0.000000e+00> : vector<256x128xf32>
    %42 = tpu.matmul %38, %40, %cst_26 {dimension_numbers = #tpu.dot_dimension_numbers<[1], [0], [0], [1], [0, 0, 1, 1], [], []>} : vector<256x128xbf16>, vector<128x128xbf16>, vector<256x128xf32> -> vector<256x128xf32>
    %43 = vector.broadcast %41 : vector<1x128xf32> to vector<256x128xf32>
    %44 = arith.addf %42, %43 : vector<256x128xf32>
    %cst_27 = arith.constant 0.00999999977 : f32
    %45 = vector.broadcast %cst_27 : f32 to vector<256x128xf32>
    %46 = arith.mulf %45, %44 : vector<256x128xf32>
    %47 = arith.maximumf %44, %46 : vector<256x128xf32>
    %48 = arith.truncf %47 : vector<256x128xf32> to vector<256x128xbf16>
    %c2_28 = arith.constant 2 : index
    %c0_29 = arith.constant 0 : index
    %c0_30 = arith.constant 0 : index
    %49 = vector.load %arg8[%c2_28, %c0_29, %c0_30] : memref<6x128x128xbf16, #tpu.memory_space<vmem>>, vector<1x128x128xbf16>
    %50 = vector.shape_cast %49 : vector<1x128x128xbf16> to vector<128x128xbf16>
    %c5 = arith.constant 5 : index
    %c0_31 = arith.constant 0 : index
    %51 = vector.load %arg9[%c5, %c0_31] : memref<12x512xf32, #tpu.memory_space<vmem>>, vector<1x128xf32>
    %cst_32 = arith.constant dense<0.000000e+00> : vector<256x128xf32>
    %52 = tpu.matmul %48, %50, %cst_32 {dimension_numbers = #tpu.dot_dimension_numbers<[1], [0], [0], [1], [0, 0, 1, 1], [], []>} : vector<256x128xbf16>, vector<128x128xbf16>, vector<256x128xf32> -> vector<256x128xf32>
    %53 = vector.broadcast %51 : vector<1x128xf32> to vector<256x128xf32>
    %54 = arith.addf %52, %53 : vector<256x128xf32>
    %cst_33 = arith.constant 0.00999999977 : f32
    %55 = vector.broadcast %cst_33 : f32 to vector<256x128xf32>
    %56 = arith.mulf %55, %54 : vector<256x128xf32>
    %57 = arith.maximumf %54, %56 : vector<256x128xf32>
    %58 = arith.truncf %57 : vector<256x128xf32> to vector<256x128xbf16>
    %c3_34 = arith.constant 3 : index
    %c0_35 = arith.constant 0 : index
    %c0_36 = arith.constant 0 : index
    %59 = vector.load %arg8[%c3_34, %c0_35, %c0_36] : memref<6x128x128xbf16, #tpu.memory_space<vmem>>, vector<1x128x128xbf16>
    %60 = vector.shape_cast %59 : vector<1x128x128xbf16> to vector<128x128xbf16>
    %c6 = arith.constant 6 : index
    %c0_37 = arith.constant 0 : index
    %61 = vector.load %arg9[%c6, %c0_37] : memref<12x512xf32, #tpu.memory_space<vmem>>, vector<1x128xf32>
    %cst_38 = arith.constant dense<0.000000e+00> : vector<256x128xf32>
    %62 = tpu.matmul %58, %60, %cst_38 {dimension_numbers = #tpu.dot_dimension_numbers<[1], [0], [0], [1], [0, 0, 1, 1], [], []>} : vector<256x128xbf16>, vector<128x128xbf16>, vector<256x128xf32> -> vector<256x128xf32>
    %63 = vector.broadcast %61 : vector<1x128xf32> to vector<256x128xf32>
    %64 = arith.addf %62, %63 : vector<256x128xf32>
    %cst_39 = arith.constant 0.00999999977 : f32
    %65 = vector.broadcast %cst_39 : f32 to vector<256x128xf32>
    %66 = arith.mulf %65, %64 : vector<256x128xf32>
    %67 = arith.maximumf %64, %66 : vector<256x128xf32>
    %68 = arith.truncf %67 : vector<256x128xf32> to vector<256x128xbf16>
    %c4_40 = arith.constant 4 : index
    %c0_41 = arith.constant 0 : index
    %c0_42 = arith.constant 0 : index
    %69 = vector.load %arg8[%c4_40, %c0_41, %c0_42] : memref<6x128x128xbf16, #tpu.memory_space<vmem>>, vector<1x128x128xbf16>
    %70 = vector.shape_cast %69 : vector<1x128x128xbf16> to vector<128x128xbf16>
    %c7 = arith.constant 7 : index
    %c0_43 = arith.constant 0 : index
    %71 = vector.load %arg9[%c7, %c0_43] : memref<12x512xf32, #tpu.memory_space<vmem>>, vector<1x128xf32>
    %cst_44 = arith.constant dense<0.000000e+00> : vector<256x128xf32>
    %72 = tpu.matmul %68, %70, %cst_44 {dimension_numbers = #tpu.dot_dimension_numbers<[1], [0], [0], [1], [0, 0, 1, 1], [], []>} : vector<256x128xbf16>, vector<128x128xbf16>, vector<256x128xf32> -> vector<256x128xf32>
    %73 = vector.broadcast %71 : vector<1x128xf32> to vector<256x128xf32>
    %74 = arith.addf %72, %73 : vector<256x128xf32>
    %cst_45 = arith.constant 0.00999999977 : f32
    %75 = vector.broadcast %cst_45 : f32 to vector<256x128xf32>
    %76 = arith.mulf %75, %74 : vector<256x128xf32>
    %77 = arith.maximumf %74, %76 : vector<256x128xf32>
    %78 = arith.truncf %77 : vector<256x128xf32> to vector<256x128xbf16>
    %c5_46 = arith.constant 5 : index
    %c0_47 = arith.constant 0 : index
    %c0_48 = arith.constant 0 : index
    %79 = vector.load %arg8[%c5_46, %c0_47, %c0_48] : memref<6x128x128xbf16, #tpu.memory_space<vmem>>, vector<1x128x128xbf16>
    %80 = vector.shape_cast %79 : vector<1x128x128xbf16> to vector<128x128xbf16>
    %c8 = arith.constant 8 : index
    %c0_49 = arith.constant 0 : index
    %81 = vector.load %arg9[%c8, %c0_49] : memref<12x512xf32, #tpu.memory_space<vmem>>, vector<1x128xf32>
    %cst_50 = arith.constant dense<0.000000e+00> : vector<256x128xf32>
    %82 = tpu.matmul %78, %80, %cst_50 {dimension_numbers = #tpu.dot_dimension_numbers<[1], [0], [0], [1], [0, 0, 1, 1], [], []>} : vector<256x128xbf16>, vector<128x128xbf16>, vector<256x128xf32> -> vector<256x128xf32>
    %83 = vector.broadcast %81 : vector<1x128xf32> to vector<256x128xf32>
    %84 = arith.addf %82, %83 : vector<256x128xf32>
    %cst_51 = arith.constant 0.00999999977 : f32
    %85 = vector.broadcast %cst_51 : f32 to vector<256x128xf32>
    %86 = arith.mulf %85, %84 : vector<256x128xf32>
    %87 = arith.maximumf %84, %86 : vector<256x128xf32>
    %88 = arith.truncf %87 : vector<256x128xf32> to vector<256x128xbf16>
    %c0_52 = arith.constant 0 : index
    %c0_53 = arith.constant 0 : index
    %89 = vector.load %arg5[%c0_52, %c0_53] : memref<128x256xbf16, #tpu.memory_space<vmem>>, vector<128x256xbf16>
    %c9 = arith.constant 9 : index
    %c0_54 = arith.constant 0 : index
    %90 = vector.load %arg9[%c9, %c0_54] : memref<12x512xf32, #tpu.memory_space<vmem>>, vector<1x256xf32>
    %cst_55 = arith.constant dense<0.000000e+00> : vector<256x256xf32>
    %91 = tpu.matmul %88, %89, %cst_55 {dimension_numbers = #tpu.dot_dimension_numbers<[1], [0], [0], [1], [0, 0, 1, 1], [], []>} : vector<256x128xbf16>, vector<128x256xbf16>, vector<256x256xf32> -> vector<256x256xf32>
    %92 = vector.broadcast %90 : vector<1x256xf32> to vector<256x256xf32>
    %93 = arith.addf %91, %92 : vector<256x256xf32>
    %cst_56 = arith.constant 0.00999999977 : f32
    %94 = vector.broadcast %cst_56 : f32 to vector<256x256xf32>
    %95 = arith.mulf %94, %93 : vector<256x256xf32>
    %96 = arith.maximumf %93, %95 : vector<256x256xf32>
    %97 = arith.truncf %96 : vector<256x256xf32> to vector<256x256xbf16>
    %c0_57 = arith.constant 0 : index
    %c0_58 = arith.constant 0 : index
    %98 = vector.load %arg6[%c0_57, %c0_58] : memref<256x512xbf16, #tpu.memory_space<vmem>>, vector<256x512xbf16>
    %c10 = arith.constant 10 : index
    %c0_59 = arith.constant 0 : index
    %99 = vector.load %arg9[%c10, %c0_59] : memref<12x512xf32, #tpu.memory_space<vmem>>, vector<1x512xf32>
    %cst_60 = arith.constant dense<0.000000e+00> : vector<256x512xf32>
    %100 = tpu.matmul %97, %98, %cst_60 {dimension_numbers = #tpu.dot_dimension_numbers<[1], [0], [0], [1], [0, 0, 1, 1], [], []>} : vector<256x256xbf16>, vector<256x512xbf16>, vector<256x512xf32> -> vector<256x512xf32>
    %101 = vector.broadcast %99 : vector<1x512xf32> to vector<256x512xf32>
    %102 = arith.addf %100, %101 : vector<256x512xf32>
    %cst_61 = arith.constant 0.00999999977 : f32
    %103 = vector.broadcast %cst_61 : f32 to vector<256x512xf32>
    %104 = arith.mulf %103, %102 : vector<256x512xf32>
    %105 = arith.maximumf %102, %104 : vector<256x512xf32>
    %106 = arith.truncf %105 : vector<256x512xf32> to vector<256x512xbf16>
    %c0_62 = arith.constant 0 : index
    %c0_63 = arith.constant 0 : index
    %107 = vector.load %arg7[%c0_62, %c0_63] : memref<512x128xbf16, #tpu.memory_space<vmem>>, vector<512x128xbf16>
    %c11 = arith.constant 11 : index
    %c0_64 = arith.constant 0 : index
    %108 = vector.load %arg9[%c11, %c0_64] : memref<12x512xf32, #tpu.memory_space<vmem>>, vector<1x128xf32>
    %cst_65 = arith.constant dense<0.000000e+00> : vector<256x128xf32>
    %109 = tpu.matmul %106, %107, %cst_65 {dimension_numbers = #tpu.dot_dimension_numbers<[1], [0], [0], [1], [0, 0, 1, 1], [], []>} : vector<256x512xbf16>, vector<512x128xbf16>, vector<256x128xf32> -> vector<256x128xf32>
    %110 = vector.broadcast %108 : vector<1x128xf32> to vector<256x128xf32>
    %111 = arith.addf %109, %110 : vector<256x128xf32>
    %cst_66 = arith.constant 0.00999999977 : f32
    %112 = vector.broadcast %cst_66 : f32 to vector<256x128xf32>
    %113 = arith.mulf %112, %111 : vector<256x128xf32>
    %114 = arith.maximumf %111, %113 : vector<256x128xf32>
    %c0_67 = arith.constant 0 : index
    %c0_68 = arith.constant 0 : index
    %115 = vector.load %arg10[%c0_67, %c0_68] : memref<256x128xf32, #tpu.memory_space<vmem>>, vector<256x128xf32>
    tpu.vector_store %arg10[%c0_67, %c0_68], %114 {strides = array<i32>} : memref<256x128xf32, #tpu.memory_space<vmem>>, vector<256x128xf32>,
    return
  }
  func.func @transform_0(%arg0: i32) -> (i32, i32) {
    %c0_i32 = arith.constant 0 : i32
    %c0_i32_0 = arith.constant 0 : i32
    return %arg0, %c0_i32 : i32, i32
  }
  func.func @transform_1(%arg0: i32) -> (i32, i32) {
    %c0_i32 = arith.constant 0 : i32
    %c0_i32_0 = arith.constant 0 : i32
    %c0_i32_1 = arith.constant 0 : i32
    return %c0_i32, %c0_i32_0 : i32, i32
  }
  func.func @transform_2(%arg0: i32) -> (i32, i32) {
    %c0_i32 = arith.constant 0 : i32
    %c0_i32_0 = arith.constant 0 : i32
    %c0_i32_1 = arith.constant 0 : i32
    return %c0_i32, %c0_i32_0 : i32, i32
  }
  func.func @transform_3(%arg0: i32) -> (i32, i32) {
    %c0_i32 = arith.constant 0 : i32
    %c0_i32_0 = arith.constant 0 : i32
    %c0_i32_1 = arith.constant 0 : i32
    return %c0_i32, %c0_i32_0 : i32, i32
  }
  func.func @transform_4(%arg0: i32) -> (i32, i32) {
    %c0_i32 = arith.constant 0 : i32
    %c0_i32_0 = arith.constant 0 : i32
    %c0_i32_1 = arith.constant 0 : i32
    return %c0_i32, %c0_i32_0 : i32, i32
  }
  func.func @transform_5(%arg0: i32) -> (i32, i32) {
    %c0_i32 = arith.constant 0 : i32
    %c0_i32_0 = arith.constant 0 : i32
    %c0_i32_1 = arith.constant 0 : i32
    return %c0_i32, %c0_i32_0 : i32, i32
  }
  func.func @transform_6(%arg0: i32) -> (i32, i32) {
    %c0_i32 = arith.constant 0 : i32
    %c0_i32_0 = arith.constant 0 : i32
    %c0_i32_1 = arith.constant 0 : i32
    return %c0_i32, %c0_i32_0 : i32, i32
  }
  func.func @transform_7(%arg0: i32) -> (i32, i32, i32) {
    %c0_i32 = arith.constant 0 : i32
    %c0_i32_0 = arith.constant 0 : i32
    %c0_i32_1 = arith.constant 0 : i32
    %c0_i32_2 = arith.constant 0 : i32
    return %c0_i32, %c0_i32_0, %c0_i32_1 : i32, i32, i32
  }
  func.func @transform_8(%arg0: i32) -> (i32, i32) {
    %c0_i32 = arith.constant 0 : i32
    %c0_i32_0 = arith.constant 0 : i32
    %c0_i32_1 = arith.constant 0 : i32
    return %c0_i32, %c0_i32_0 : i32, i32
  }
  func.func @transform_9(%arg0: i32) -> (i32, i32) {
    %c0_i32 = arith.constant 0 : i32
    %c0_i32_0 = arith.constant 0 : i32
    return %arg0, %c0_i32 : i32, i32
  }
}

</mosaic_0001>

<bundles_post_ra>
// kernel: tpu_custom_call.1
= control target key start
LH: loop header
LB: loop body
LE: loop exit
PB: predicated region body
PF: predicated region fallthrough
CT: control target
= control target key end

     0   :  { %14 = vsyncpa [#allocation3], 0  ;;  %s9505_s0 = inlined_call_operand.hbm [shape: f32[256,128], index: 0, kind: input, shape index: {}]   ;;  %s9506_s1 = inlined_call_operand.hbm [shape: bf16[128,512], index: 1, kind: input, shape index: {}]   ;;  %s9507_s2 = inlined_call_operand.hbm [shape: bf16[512,256], index: 2, kind: input, shape index: {}]   ;;  %s9508_s3 = inlined_call_operand.hbm [shape: bf16[256,128], index: 3, kind: input, shape index: {}]   ;;  %s9509_s4 = inlined_call_operand.hbm [shape: bf16[128,256], index: 4, kind: input, shape index: {}]   ;;  %s9510_s5 = inlined_call_operand.hbm [shape: bf16[256,512], index: 5, kind: input, shape index: {}]   ;;  %s9511_s6 = inlined_call_operand.hbm [shape: bf16[512,128], index: 6, kind: input, shape index: {}]   ;;  %s9512_s7 = inlined_call_operand.hbm [shape: bf16[6,128,128], index: 7, kind: input, shape index: {}]   ;;  %s9513_s8 = inlined_call_operand.hbm [shape: f32[12,512], index: 8, kind: input, shape index: {}]   ;;  %s9514_s9 = inlined_call_operand.hbm [shape: f32[256,128], index: 9, kind: output, shape index: {}]  }
   0x1   :  { %15 = vsyncpa [#allocation6], 0 }
   0x2   :  { %16 = vsyncpa [#allocation9], 0 }
   0x3   :  { %17 = vsyncpa [#allocation12], 0 }
   0x4   :  { %18 = vsyncpa [#allocation15], 0 }
   0x5   :  { %19 = vsyncpa [#allocation4], 0  ;;  %s8344_s30 = smov [#allocation5]   ;;  %s8112_s13 = scalar_lea.hbm %s9506_s1, 4096 }
   0x6   :  { %s37_s10 = sshll.u32 %s8344_s30, 4  ;;  %p8113_p0 = scmp.ne.s32.totalorder %s9506_s1, %s8112_s13  ;;  %s38_s10 = int_to_ptr.vmem [resolvable:$true] %s37_s10 }
   0x7   :  { %p8116_p1 = scmp.lt.u32.totalorder %s8112_s13, %s9506_s1 }
   0x9   :  { %p8118_p2 = pnand %p8116_p1, %p8113_p0 }
   0xb   :  { %8121 = shalt.err (!%p8118_p2)
}
   0xc   :  { %s8122_s18 = scalar_lea.vmem %s38_s10, 4096  ;;  %p8127_p4 = scmp.lt.s32.totalorder %s38_s10, %s38_s10 }
   0xd   :  { %p8123_p3 = scmp.ne.s32.totalorder %s38_s10, %s8122_s18  ;;  %p8128_p5 = scmp.lt.s32.totalorder %s8122_s18, %s8122_s18 }
   0xf   :  { %p8129_p6 = por %p8128_p5, %p8127_p4 }
  0x11   :  { %p8130_p7 = pnand %p8129_p6, %p8123_p3 }
  0x13   :  { %8133 = shalt.err (!%p8130_p7)
}
  0x14   :  { %s8345_s19 = smov 256   ;;  %s8346_s20 = smov 16  }
  0x15   :  { %43 = dma.hbm_to_vmem [thread:$0]  %s9506_s1, 4096, %s38_s10, [#allocation6], %s8345_s19, %s8345_s19, %s8346_s20  }
  0x16   :  { %s8347_s23 = smov [#allocation8]   ;;  %s8134_s27 = scalar_lea.hbm %s9508_s3, 2048 }
  0x17   :  { %s61_s24 = sshll.u32 %s8347_s23, 4  ;;  %p8135_p8 = scmp.ne.s32.totalorder %s9508_s3, %s8134_s27  ;;  %s62_s24 = int_to_ptr.vmem [resolvable:$true] %s61_s24 }
  0x18   :  { %p8138_p9 = scmp.lt.u32.totalorder %s8134_s27, %s9508_s3 }
  0x1a   :  { %p8140_p10 = pnand %p8138_p9, %p8135_p8 }
  0x1c   :  { %8143 = shalt.err (!%p8140_p10)
}
  0x1d   :  { %s8144_s12 = scalar_lea.vmem %s62_s24, 2048  ;;  %p8149_p12 = scmp.lt.s32.totalorder %s62_s24, %s62_s24 }
  0x1e   :  { %p8145_p11 = scmp.ne.s32.totalorder %s62_s24, %s8144_s12  ;;  %p8150_p13 = scmp.lt.s32.totalorder %s8144_s12, %s8144_s12 }
  0x20   :  { %p8151_p0 = por %p8150_p13, %p8149_p12 }
  0x22   :  { %p8152_p1 = pnand %p8151_p0, %p8145_p11 }
  0x24   :  { %8155 = shalt.err (!%p8152_p1)
}
  0x25   :  { %s8348_s1 = smov 64   ;;  %s8349_s10 = smov 4  }
  0x26   :  { %67 = dma.hbm_to_vmem [thread:$0]  %s9508_s3, 2048, %s62_s24, [#allocation9], %s8348_s1, %s8348_s1, %s8349_s10  }
  0x27   :  { %s8350_s15 = smov [#allocation11]   ;;  %s8351_s17 = smov [#allocation14]  }
  0x28   :  { %s85_s16 = sshll.u32 %s8350_s15, 4  ;;  %s109_s18 = sshll.u32 %s8351_s17, 4  ;;  %s86_s16 = int_to_ptr.vmem [resolvable:$true] %s85_s16  ;;  %s8443_s18 = int_to_ptr.vmem [resolvable:$true] %s109_s18 }
  0x29   :  { %s8156_s23 = scalar_lea.hbm %s9510_s5, 8192 }
  0x2a   :  { %p8157_p2 = scmp.ne.s32.totalorder %s9510_s5, %s8156_s23  ;;  %p8160_p3 = scmp.lt.u32.totalorder %s8156_s23, %s9510_s5 }
  0x2c   :  { %p8162_p4 = pnand %p8160_p3, %p8157_p2 }
  0x2e   :  { %8165 = shalt.err (!%p8162_p4)
}
  0x2f   :  { %s8166_s3 = scalar_lea.vmem %s86_s16, 8192  ;;  %p8171_p6 = scmp.lt.s32.totalorder %s86_s16, %s86_s16 }
  0x30   :  { %p8167_p5 = scmp.ne.s32.totalorder %s86_s16, %s8166_s3  ;;  %p8172_p7 = scmp.lt.s32.totalorder %s8166_s3, %s8166_s3 }
  0x32   :  { %p8173_p8 = por %p8172_p7, %p8171_p6 }
  0x34   :  { %p8174_p9 = pnand %p8173_p8, %p8167_p5 }
  0x36   :  { %8177 = shalt.err (!%p8174_p9)
}
  0x37   :  { %91 = dma.hbm_to_vmem [thread:$0]  %s9510_s5, 8192, %s86_s16, [#allocation12], %s8345_s19, %s8345_s19, %s8346_s20  }
  0x38   :  { %s8178_s12 = scalar_lea.hbm %s9512_s7, 6144 }
  0x39   :  { %p8179_p10 = scmp.ne.s32.totalorder %s9512_s7, %s8178_s12  ;;  %p8182_p11 = scmp.lt.u32.totalorder %s8178_s12, %s9512_s7 }
  0x3b   :  { %p8184_p12 = pnand %p8182_p11, %p8179_p10 }
  0x3d   :  { %8187 = shalt.err (!%p8184_p12)
}
  0x3e   :  { %s8188_s21 = scalar_lea.vmem %s8443_s18, 6144  ;;  %p8193_p0 = scmp.lt.s32.totalorder %s8443_s18, %s8443_s18 }
  0x3f   :  { %p8189_p13 = scmp.ne.s32.totalorder %s8443_s18, %s8188_s21  ;;  %p8194_p1 = scmp.lt.s32.totalorder %s8188_s21, %s8188_s21 }
  0x41   :  { %p8195_p2 = por %p8194_p1, %p8193_p0 }
  0x43   :  { %p8196_p3 = pnand %p8195_p2, %p8189_p13 }
  0x45   :  { %8199 = shalt.err (!%p8196_p3)
}
  0x46   :  { %115 = dma.hbm_to_vmem [thread:$0]  %s9512_s7, 6144, %s8443_s18, [#allocation15], %s8348_s1, %s8348_s1, %s8349_s10  }
  0x47   :  { %s8352_s20 = smov [#allocation2]   ;;  %s8200_s25 = scalar_lea.hbm %s9505_s0, 4096 }
  0x48   :  { %s25_s16 = sshll.u32 %s8352_s20, 4  ;;  %p8201_p4 = scmp.ne.s32.totalorder %s9505_s0, %s8200_s25  ;;  %s26_s16 = int_to_ptr.vmem [resolvable:$true] %s25_s16 }
  0x49   :  { %p8204_p5 = scmp.lt.u32.totalorder %s8200_s25, %s9505_s0 }
  0x4b   :  { %p8206_p6 = pnand %p8204_p5, %p8201_p4 }
  0x4d   :  { %8209 = shalt.err (!%p8206_p6)
}
  0x4e   :  { %s8210_s24 = scalar_lea.vmem %s26_s16, 4096  ;;  %p8215_p8 = scmp.lt.s32.totalorder %s26_s16, %s26_s16 }
  0x4f   :  { %p8211_p7 = scmp.ne.s32.totalorder %s26_s16, %s8210_s24  ;;  %p8216_p9 = scmp.lt.s32.totalorder %s8210_s24, %s8210_s24 }
  0x51   :  { %p8217_p10 = por %p8216_p9, %p8215_p8 }
  0x53   :  { %p8218_p11 = pnand %p8217_p10, %p8211_p7 }
  0x55   :  { %8221 = shalt.err (!%p8218_p11)
}
  0x56   :  { %s8353_s7 = smov 128   ;;  %s8354_s18 = smov 8  }
  0x57   :  { %31 = dma.hbm_to_vmem [thread:$0]  %s9505_s0, 4096, %s26_s16, [#allocation3], %s8353_s7, %s8353_s7, %s8354_s18  }
  0x58   :  { %s8355_s11 = smov [#allocation7]   ;;  %s8356_s13 = smov [#allocation10]  }
  0x59   :  { %s49_s12 = sshll.u32 %s8355_s11, 4  ;;  %s73_s14 = sshll.u32 %s8356_s13, 4  ;;  %s50_s12 = int_to_ptr.vmem [resolvable:$true] %s49_s12  ;;  %s74_s14 = int_to_ptr.vmem [resolvable:$true] %s73_s14 }
  0x5a   :  { %s8222_s21 = scalar_lea.hbm %s9507_s2, 8192 }
  0x5b   :  { %p8223_p12 = scmp.ne.s32.totalorder %s9507_s2, %s8222_s21  ;;  %p8226_p13 = scmp.lt.u32.totalorder %s8222_s21, %s9507_s2 }
  0x5d   :  { %p8228_p0 = pnand %p8226_p13, %p8223_p12 }
  0x5f   :  { %8231 = shalt.err (!%p8228_p0)
}
  0x60   :  { %s8232_s0 = scalar_lea.vmem %s50_s12, 8192  ;;  %p8237_p2 = scmp.lt.s32.totalorder %s50_s12, %s50_s12 }
  0x61   :  { %p8233_p1 = scmp.ne.s32.totalorder %s50_s12, %s8232_s0  ;;  %p8238_p3 = scmp.lt.s32.totalorder %s8232_s0, %s8232_s0 }
  0x63   :  { %p8239_p4 = por %p8238_p3, %p8237_p2 }
  0x65   :  { %p8240_p5 = pnand %p8239_p4, %p8233_p1 }
  0x67   :  { %8243 = shalt.err (!%p8240_p5)
}
  0x68   :  { %55 = dma.hbm_to_vmem [thread:$0]  %s9507_s2, 8192, %s50_s12, [#allocation6], %s8353_s7, %s8353_s7, %s8354_s18  }
  0x69   :  { %s8244_s27 = scalar_lea.hbm %s9509_s4, 2048 }
  0x6a   :  { %p8245_p6 = scmp.ne.s32.totalorder %s9509_s4, %s8244_s27  ;;  %p8248_p7 = scmp.lt.u32.totalorder %s8244_s27, %s9509_s4 }
  0x6c   :  { %p8250_p8 = pnand %p8248_p7, %p8245_p6 }
  0x6e   :  { %8253 = shalt.err (!%p8250_p8)
}
  0x6f   :  { %s8254_s30 = scalar_lea.vmem %s74_s14, 2048  ;;  %p8259_p10 = scmp.lt.s32.totalorder %s74_s14, %s74_s14 }
  0x70   :  { %p8255_p9 = scmp.ne.s32.totalorder %s74_s14, %s8254_s30  ;;  %p8260_p11 = scmp.lt.s32.totalorder %s8254_s30, %s8254_s30 }
  0x72   :  { %p8261_p12 = por %p8260_p11, %p8259_p10 }
  0x74   :  { %p8262_p13 = pnand %p8261_p12, %p8255_p9 }
  0x76   :  { %8265 = shalt.err (!%p8262_p13)
}
  0x77   :  { %79 = dma.hbm_to_vmem [thread:$0]  %s9509_s4, 2048, %s74_s14, [#allocation9], %s8353_s7, %s8353_s7, %s8354_s18  }
  0x78   :  { %s8357_s12 = smov [#allocation13]   ;;  %s8358_s15 = smov [#allocation16]  }
  0x79   :  { %s97_s13 = sshll.u32 %s8357_s12, 4  ;;  %s121_s17 = sshll.u32 %s8358_s15, 4  ;;  %s98_s13 = int_to_ptr.vmem [resolvable:$true] %s97_s13  ;;  %s122_s17 = int_to_ptr.vmem [resolvable:$true] %s121_s17 }
  0x7a   :  { %s8266_s19 = scalar_lea.hbm %s9511_s6, 4096 }
  0x7b   :  { %p8267_p0 = scmp.ne.s32.totalorder %s9511_s6, %s8266_s19  ;;  %p8270_p1 = scmp.lt.u32.totalorder %s8266_s19, %s9511_s6 }
  0x7d   :  { %p8272_p2 = pnand %p8270_p1, %p8267_p0 }
  0x7f   :  { %8275 = shalt.err (!%p8272_p2)
}
  0x80   :  { %s8276_s4 = scalar_lea.vmem %s98_s13, 4096  ;;  %p8281_p4 = scmp.lt.s32.totalorder %s98_s13, %s98_s13 }
  0x81   :  { %p8277_p3 = scmp.ne.s32.totalorder %s98_s13, %s8276_s4  ;;  %p8282_p5 = scmp.lt.s32.totalorder %s8276_s4, %s8276_s4 }
  0x83   :  { %p8283_p6 = por %p8282_p5, %p8281_p4 }
  0x85   :  { %p8284_p7 = pnand %p8283_p6, %p8277_p3 }
  0x87   :  { %8287 = shalt.err (!%p8284_p7)
}
  0x88   :  { %103 = dma.hbm_to_vmem [thread:$0]  %s9511_s6, 4096, %s98_s13, [#allocation12], %s8348_s1, %s8348_s1, %s8349_s10  }
  0x89   :  { %s8288_s27 = scalar_lea.hbm %s9513_s8, 1024 }
  0x8a   :  { %p8289_p8 = scmp.ne.s32.totalorder %s9513_s8, %s8288_s27  ;;  %p8292_p9 = scmp.lt.u32.totalorder %s8288_s27, %s9513_s8 }
  0x8c   :  { %p8294_p10 = pnand %p8292_p9, %p8289_p8 }
  0x8e   :  { %8297 = shalt.err (!%p8294_p10)
}
  0x8f   :  { %s8298_s30 = scalar_lea.vmem %s122_s17, 1024  ;;  %p8303_p12 = scmp.lt.s32.totalorder %s122_s17, %s122_s17 }
  0x90   :  { %p8299_p11 = scmp.ne.s32.totalorder %s122_s17, %s8298_s30  ;;  %p8304_p13 = scmp.lt.s32.totalorder %s8298_s30, %s8298_s30 }
  0x92   :  { %p8305_p0 = por %p8304_p13, %p8303_p12 }
  0x94   :  { %p8306_p1 = pnand %p8305_p0, %p8299_p11 }
  0x96   :  { %8309 = shalt.err (!%p8306_p1)
}
  0x97   :  { %s8359_s6 = smov 512   ;;  %s8360_s1 = smov 32  }
  0x98   :  { %127 = dma.hbm_to_vmem [thread:$0]  %s9513_s8, 1024, %s122_s17, [#allocation15], %s8359_s6, %s8359_s6, %s8360_s1  }
  0x99   :  { %8332 = dma.done.wait [#allocation3], 4096  }
  0x9a   :  { %8333 = vsyncadd [#allocation3], 4294963200 }
  0x9b   :  { %8334 = dma.done.wait [#allocation6], 12288  }
  0x9c   :  { %8335 = vsyncadd [#allocation6], 4294955008 }
  0x9d   :  { %8336 = dma.done.wait [#allocation9], 4096  }
  0x9e   :  { %8337 = vsyncadd [#allocation9], 4294963200 }
  0x9f   :  { %8338 = dma.done.wait [#allocation12], 12288  }
  0xa0   :  { %8339 = vsyncadd [#allocation12], 4294955008 }
  0xa1   :  { %8340 = dma.done.wait [#allocation15], 7168  }
  0xa2   :  { %8341 = vsyncadd [#allocation15], 4294960128  ;;  %v8361_v0 = vmov 0   ;;  %v7752_v1 = vld [vmem:[#allocation5 + $0x4] ss:$16 sps:$4 sm:$0xff]   ;;  %v157_v18 = vld [vmem:[#allocation2 + $0x8] sm:$0xff] }
  0xa3   :  { %450 = vmatprep.mubr.bf16.mxu0 %v8361_v0  ;;  %530 = vmatprep.mubr.bf16.mxu1 %v8361_v0  ;;  %v7754_v2 = vld [vmem:[#allocation5] ss:$16 sps:$4 sm:$0xff]   ;;  %v7755_v3 = vld [vmem:[#allocation5 + $0x24] ss:$16 sps:$4 sm:$0xff]   ;;  %v173_v20 = vld [vmem:[#allocation2 + $0x88] sm:$0xff]  ;;  %s8362_s8 = smov [#allocation17]  }
  0xa4   :  { %418 = vmatprep.subr.bf16.mxu0 %v7752_v1  ;;  %7589 = vmatprep.subr.bf16.mxu1 %v7752_v1  ;;  %v7757_v4 = vld [vmem:[#allocation5 + $0x20] ss:$16 sps:$4 sm:$0xff]   ;;  %v7758_v5 = vld [vmem:[#allocation5 + $0x44] ss:$16 sps:$4 sm:$0xff]   ;;  %v7778_v21 = vld [vmem:[#allocation5 + $0xc] ss:$16 sps:$4 sm:$0xff]  }
  0xa5   :  { %419 = vmatpush1.bf16.msra.mxu0 %v7754_v2  ;;  %7597 = vmatpush1.bf16.msra.mxu1 %v7754_v2  ;;  %v7760_v6 = vld [vmem:[#allocation5 + $0x40] ss:$16 sps:$4 sm:$0xff]   ;;  %v7761_v7 = vld [vmem:[#allocation5 + $0x64] ss:$16 sps:$4 sm:$0xff]   ;;  %v7776_v24 = vld [vmem:[#allocation5 + $0x8] ss:$16 sps:$4 sm:$0xff]  }
  0xa6   :  { %420 = vmatprep.subr.bf16.mxu0 %v7755_v3  ;;  %7590 = vmatprep.subr.bf16.mxu1 %v7755_v3  ;;  %v7763_v8 = vld [vmem:[#allocation5 + $0x60] ss:$16 sps:$4 sm:$0xff]   ;;  %v7764_v9 = vld [vmem:[#allocation5 + $0x84] ss:$16 sps:$4 sm:$0xff]   ;;  %v7781_v25 = vld [vmem:[#allocation5 + $0x2c] ss:$16 sps:$4 sm:$0xff]  }
  0xa7   :  { %v7766_v10 = vld [vmem:[#allocation5 + $0x80] ss:$16 sps:$4 sm:$0xff]   ;;  %v7767_v11 = vld [vmem:[#allocation5 + $0xa4] ss:$16 sps:$4 sm:$0xff]   ;;  %v159_v27 = vld [vmem:[#allocation2 + $0x18] sm:$0xff]  ;;  %s6533_s11 = sshll.u32 %s8362_s8, 4  ;;  %s6534_s11 = int_to_ptr.vmem [resolvable:$true] %s6533_s11 }
  0xa8   :  { %v7769_v12 = vld [vmem:[#allocation5 + $0xa0] ss:$16 sps:$4 sm:$0xff]   ;;  %v7770_v13 = vld [vmem:[#allocation5 + $0xc4] ss:$16 sps:$4 sm:$0xff]   ;;  %v175_v30 = vld [vmem:[#allocation2 + $0x98] sm:$0xff]  ;;  %s8310_s12 = scalar_lea.vmem %s6534_s11, 4096  ;;  %p8315_p3 = scmp.lt.s32.totalorder %s6534_s11, %s6534_s11 }
  0xa9   :  { %421 = vmatpush1.bf16.msra.mxu0 %v7757_v4  ;;  %7598 = vmatpush1.bf16.msra.mxu1 %v7757_v4  ;;  %v7772_v14 = vld [vmem:[#allocation5 + $0xc0] ss:$16 sps:$4 sm:$0xff]   ;;  %v7773_v15 = vld [vmem:[#allocation5 + $0xe4] ss:$16 sps:$4 sm:$0xff]   ;;  %v7779_v32 = vld [vmem:[#allocation5 + $0x28] ss:$16 sps:$4 sm:$0xff]   ;;  %p8311_p2 = scmp.ne.s32.totalorder %s6534_s11, %s8310_s12  ;;  %p8316_p4 = scmp.lt.s32.totalorder %s8310_s12, %s8310_s12 }
  0xaa   :  { %422 = vmatprep.subr.bf16.mxu0 %v7758_v5  ;;  %7591 = vmatprep.subr.bf16.mxu1 %v7758_v5  ;;  %v7775_v16 = vld [vmem:[#allocation5 + $0xe0] ss:$16 sps:$4 sm:$0xff]   ;;  %v7802_v29 = vld [vmem:[#allocation7 + $0x4] ss:$8 sps:$4 sm:$0xff]   ;;  %v7805_v33 = vld [vmem:[#allocation7 + $0x14] ss:$8 sps:$4 sm:$0xff]  }
  0xab   :  { %v156_v17 = vld [vmem:[#allocation2] sm:$0xff]  ;;  %v158_v26 = vld [vmem:[#allocation2 + $0x10] sm:$0xff]  ;;  %v7784_v34 = vld [vmem:[#allocation5 + $0x4c] ss:$16 sps:$4 sm:$0xff]   ;;  %p8317_p5 = por %p8316_p4, %p8315_p3 }
  0xac   :  { %v172_v19 = vld [vmem:[#allocation2 + $0x80] sm:$0xff]  ;;  %v8554_v22 = vpack.c.bf16 %v157_v18, %v156_v17  ;;  %v174_v28 = vld [vmem:[#allocation2 + $0x90] sm:$0xff]  ;;  %v8562_v35 = vpack.c.bf16 %v159_v27, %v158_v26  ;;  %v7782_v37 = vld [vmem:[#allocation5 + $0x48] ss:$16 sps:$4 sm:$0xff]  }
  0xad   :  { %423 = vmatpush1.bf16.msra.mxu0 %v7760_v6  ;;  %7599 = vmatpush1.bf16.msra.mxu1 %v7760_v6  ;;  %v8556_v23 = vpack.c.bf16 %v173_v20, %v172_v19  ;;  %v7800_v31 = vld [vmem:[#allocation7] ss:$8 sps:$4 sm:$0xff]   ;;  %v8564_v36 = vpack.c.bf16 %v175_v30, %v174_v28  ;;  %v7787_v38 = vld [vmem:[#allocation5 + $0x6c] ss:$16 sps:$4 sm:$0xff]   ;;  %v7803_v39 = vld [vmem:[#allocation7 + $0x10] ss:$8 sps:$4 sm:$0xff]   ;;  %p8318_p6 = pnand %p8317_p5, %p8311_p2 }
  0xae   :  { %424 = vmatprep.subr.bf16.mxu0 %v7761_v7  ;;  %7592 = vmatprep.subr.bf16.mxu1 %v7761_v7  ;;  %v160_v40 = vld [vmem:[#allocation2 + $0x20] sm:$0xff]  ;;  %v161_v41 = vld [vmem:[#allocation2 + $0x28] sm:$0xff]  ;;  %v7811_v48 = vld [vmem:[#allocation7 + $0x34] ss:$8 sps:$4 sm:$0xff]  }
  0xaf   :  { %v7808_v42 = vld [vmem:[#allocation7 + $0x24] ss:$8 sps:$4 sm:$0xff]   ;;  %v7785_v45 = vld [vmem:[#allocation5 + $0x68] ss:$16 sps:$4 sm:$0xff]   ;;  %v8570_v49 = vpack.c.bf16 %v161_v41, %v160_v40  ;;  %v162_v55 = vld [vmem:[#allocation2 + $0x30] sm:$0xff] }
  0xb0   :  { %v176_v43 = vld [vmem:[#allocation2 + $0xa0] sm:$0xff]  ;;  %v177_v44 = vld [vmem:[#allocation2 + $0xa8] sm:$0xff]  ;;  %v7809_v52 = vld [vmem:[#allocation7 + $0x30] ss:$8 sps:$4 sm:$0xff]  }
  0xb1   :  { %425 = vmatpush1.bf16.msra.mxu0 %v7763_v8  ;;  %7600 = vmatpush1.bf16.msra.mxu1 %v7763_v8  ;;  %v7790_v46 = vld [vmem:[#allocation5 + $0x8c] ss:$16 sps:$4 sm:$0xff]   ;;  %v7806_v47 = vld [vmem:[#allocation7 + $0x20] ss:$8 sps:$4 sm:$0xff]   ;;  %v8572_v50 = vpack.c.bf16 %v177_v44, %v176_v43  ;;  %v178_v57 = vld [vmem:[#allocation2 + $0xb0] sm:$0xff] }
  0xb2   :  { %426 = vmatprep.subr.bf16.mxu0 %v7764_v9  ;;  %7593 = vmatprep.subr.bf16.mxu1 %v7764_v9  ;;  %v7788_v51 = vld [vmem:[#allocation5 + $0x88] ss:$16 sps:$4 sm:$0xff]   ;;  %v7793_v53 = vld [vmem:[#allocation5 + $0xac] ss:$16 sps:$4 sm:$0xff]   ;;  %v164_v6 = vld [vmem:[#allocation2 + $0x40] sm:$0xff] }
  0xb3   :  { %v7814_v54 = vld [vmem:[#allocation7 + $0x44] ss:$8 sps:$4 sm:$0xff]   ;;  %v163_v56 = vld [vmem:[#allocation2 + $0x38] sm:$0xff]  ;;  %v7812_v61 = vld [vmem:[#allocation7 + $0x40] ss:$8 sps:$4 sm:$0xff]  }
  0xb4   :  { %v179_v58 = vld [vmem:[#allocation2 + $0xb8] sm:$0xff]  ;;  %v8578_v63 = vpack.c.bf16 %v163_v56, %v162_v55  ;;  %v7820_v5 = vld [vmem:[#allocation7 + $0x64] ss:$8 sps:$4 sm:$0xff]   ;;  %v166_v17 = vld [vmem:[#allocation2 + $0x50] sm:$0xff] }
  0xb5   :  { %427 = vmatpush1.bf16.msra.mxu0 %v7766_v10  ;;  %7601 = vmatpush1.bf16.msra.mxu1 %v7766_v10  ;;  %v7791_v59 = vld [vmem:[#allocation5 + $0xa8] ss:$16 sps:$4 sm:$0xff]   ;;  %v7796_v60 = vld [vmem:[#allocation5 + $0xcc] ss:$16 sps:$4 sm:$0xff]   ;;  %v8580_v1 = vpack.c.bf16 %v179_v58, %v178_v57  ;;  %v180_v8 = vld [vmem:[#allocation2 + $0xc0] sm:$0xff] }
  0xb6   :  { %428 = vmatprep.subr.bf16.mxu0 %v7767_v11  ;;  %7594 = vmatprep.subr.bf16.mxu1 %v7767_v11  ;;  %v7817_v62 = vld [vmem:[#allocation7 + $0x54] ss:$8 sps:$4 sm:$0xff]   ;;  %v7794_v2 = vld [vmem:[#allocation5 + $0xc8] ss:$16 sps:$4 sm:$0xff]   ;;  %v7832_v28 = vld [vmem:[#allocation7 + $0xa4] ss:$8 sps:$4 sm:$0xff]  }
  0xb7   :  { %v7815_v3 = vld [vmem:[#allocation7 + $0x50] ss:$8 sps:$4 sm:$0xff]   ;;  %v7799_v4 = vld [vmem:[#allocation5 + $0xec] ss:$16 sps:$4 sm:$0xff]   ;;  %v7818_v11 = vld [vmem:[#allocation7 + $0x60] ss:$8 sps:$4 sm:$0xff]  }
  0xb8   :  { %v165_v7 = vld [vmem:[#allocation2 + $0x48] sm:$0xff]  ;;  %v167_v18 = vld [vmem:[#allocation2 + $0x58] sm:$0xff]  ;;  %v182_v19 = vld [vmem:[#allocation2 + $0xd0] sm:$0xff] }
  0xb9   :  { %429 = vmatpush1.bf16.msra.mxu0 %v7769_v12  ;;  %7602 = vmatpush1.bf16.msra.mxu1 %v7769_v12  ;;  %v181_v9 = vld [vmem:[#allocation2 + $0xc8] sm:$0xff]  ;;  %v7823_v12 = vld [vmem:[#allocation7 + $0x74] ss:$8 sps:$4 sm:$0xff]   ;;  %v7827_v27 = vld [vmem:[#allocation7 + $0x90] ss:$8 sps:$4 sm:$0xff]  }
  0xba   :  { %430 = vmatprep.subr.bf16.mxu0 %v7770_v13  ;;  %7595 = vmatprep.subr.bf16.mxu1 %v7770_v13  ;;  %v7797_v10 = vld [vmem:[#allocation5 + $0xe8] ss:$16 sps:$4 sm:$0xff]   ;;  %v8586_v13 = vpack.c.bf16 %v165_v7, %v164_v6  ;;  %v7838_v40 = vld [vmem:[#allocation7 + $0xc4] ss:$8 sps:$4 sm:$0xff]   ;;  %v170_v41 = vld [vmem:[#allocation2 + $0x70] sm:$0xff] }
  0xbb   :  { %v183_v20 = vld [vmem:[#allocation2 + $0xd8] sm:$0xff]  ;;  %v169_v30 = vld [vmem:[#allocation2 + $0x68] sm:$0xff]  ;;  %v186_v43 = vld [vmem:[#allocation2 + $0xf0] sm:$0xff] }
  0xbc   :  { %v8596_v26 = vpack.c.bf16 %v183_v20, %v182_v19  ;;  %v187_v44 = vld [vmem:[#allocation2 + $0xf8] sm:$0xff] }
  0xbd   :  { %431 = vmatpush1.bf16.msra.mxu0 %v7772_v14  ;;  %7603 = vmatpush1.bf16.msra.mxu1 %v7772_v14  ;;  %v8588_v14 = vpack.c.bf16 %v181_v9, %v180_v8 }
  0xbe   :  { %432 = vmatprep.subr.bf16.mxu0 %v7773_v15  ;;  %7596 = vmatprep.subr.bf16.mxu1 %v7773_v15  ;;  %v7821_v15 = vld [vmem:[#allocation7 + $0x70] ss:$8 sps:$4 sm:$0xff]  }
  0xc1   :  { %433 = vmatpush1.bf16.msra.mxu0 %v7775_v16  ;;  %7604 = vmatpush1.bf16.msra.mxu1 %v7775_v16  ;;  %v7826_v16 = vld [vmem:[#allocation7 + $0x84] ss:$8 sps:$4 sm:$0xff]  }
  0xc2   :  { %611 = vmatprep.subr.bf16.mxu1 %v7778_v21  ;;  %1521 = vmatprep.subr.bf16.mxu0 %v7802_v29  ;;  %v7824_v21 = vld [vmem:[#allocation7 + $0x80] ss:$8 sps:$4 sm:$0xff]  }
  0xc3   :  { %v168_v29 = vld [vmem:[#allocation2 + $0x60] sm:$0xff] }
  0xc4   :  { %451 = vmatmul.mubr.bf16.vlgmr.msra.gmra.mrb[0].mxu0 %v8554_v22  ;;  %531 = vmatmul.mubr.bf16.vlgmr.msra.gmra.mrb[0].mxu1 %v8556_v23 }
  0xc5   :  { %460 = vmatprep.mubr.bf16.mxu0 %v8361_v0  ;;  %612 = vmatpush1.bf16.msra.mxu1 %v7776_v24  ;;  %v7829_v24 = vld [vmem:[#allocation7 + $0x94] ss:$8 sps:$4 sm:$0xff]  }
  0xc6   :  { %540 = vmatprep.mubr.bf16.mxu1 %v8361_v0  ;;  %613 = vmatprep.subr.bf16.mxu1 %v7781_v25  ;;  %v8594_v25 = vpack.c.bf16 %v167_v18, %v166_v17 }
  0xc7   :  { %1522 = vmatpush1.bf16.msra.mxu0 %v7800_v31  ;;  %v184_v31 = vld [vmem:[#allocation2 + $0xe0] sm:$0xff] }
  0xc8   :  { %1523 = vmatprep.subr.bf16.mxu0 %v7805_v33  ;;  %v7830_v33 = vld [vmem:[#allocation7 + $0xa0] ss:$8 sps:$4 sm:$0xff]  }
  0xc9   :  { %614 = vmatpush1.bf16.msra.mxu1 %v7779_v32  ;;  %v185_v32 = vld [vmem:[#allocation2 + $0xe8] sm:$0xff] }
  0xca   :  { %615 = vmatprep.subr.bf16.mxu1 %v7784_v34  ;;  %v7835_v34 = vld [vmem:[#allocation7 + $0xb4] ss:$8 sps:$4 sm:$0xff]  }
  0xcb   :  { %1524 = vmatpush1.bf16.msra.mxu0 %v7803_v39  ;;  %v7833_v39 = vld [vmem:[#allocation7 + $0xb0] ss:$8 sps:$4 sm:$0xff]  }
  0xcc   :  { %461 = vmatmul.mubr.bf16.gmra.mrb[4].mxu0 %v8562_v35  ;;  %541 = vmatmul.mubr.bf16.gmra.mrb[4].mxu1 %v8564_v36 }
  0xcd   :  { %470 = vmatprep.mubr.bf16.mxu0 %v8361_v0  ;;  %550 = vmatprep.mubr.bf16.mxu1 %v8361_v0 }
  0xce   :  { %616 = vmatpush1.bf16.msra.mxu1 %v7782_v37  ;;  %1525 = vmatprep.subr.bf16.mxu0 %v7808_v42  ;;  %v194_v37 = vpack.c.bf16 %v169_v30, %v168_v29  ;;  %v171_v42 = vld [vmem:[#allocation2 + $0x78] sm:$0xff] }
  0xcf   :  { %617 = vmatprep.subr.bf16.mxu1 %v7787_v38  ;;  %1526 = vmatpush1.bf16.msra.mxu0 %v7806_v47  ;;  %v8602_v38 = vpack.c.bf16 %v185_v32, %v184_v31  ;;  %v203_v47 = vpack.c.bf16 %v187_v44, %v186_v43  ;;  %v7853_v43 = vld [vmem:[#allocation7 + $0x114] ss:$8 sps:$4 sm:$0xff]  }
  0xd0   :  { %1527 = vmatprep.subr.bf16.mxu0 %v7811_v48  ;;  %v7841_v48 = vld [vmem:[#allocation7 + $0xd4] ss:$8 sps:$4 sm:$0xff]  }
  0xd2   :  { %618 = vmatpush1.bf16.msra.mxu1 %v7785_v45  ;;  %v7836_v45 = vld [vmem:[#allocation7 + $0xc0] ss:$8 sps:$4 sm:$0xff]  }
  0xd3   :  { %619 = vmatprep.subr.bf16.mxu1 %v7790_v46  ;;  %1528 = vmatpush1.bf16.msra.mxu0 %v7809_v52  ;;  %v195_v46 = vpack.c.bf16 %v171_v42, %v170_v41  ;;  %v7844_v52 = vld [vmem:[#allocation7 + $0xe4] ss:$8 sps:$4 sm:$0xff]   ;;  %v7848_v42 = vld [vmem:[#allocation7 + $0x100] ss:$8 sps:$4 sm:$0xff]  }
  0xd4   :  { %471 = vmatmul.mubr.bf16.gmra.mrb[8].mxu0 %v8570_v49  ;;  %551 = vmatmul.mubr.bf16.gmra.mrb[8].mxu1 %v8572_v50 }
  0xd5   :  { %480 = vmatprep.mubr.bf16.mxu0 %v8361_v0  ;;  %560 = vmatprep.mubr.bf16.mxu1 %v8361_v0 }
  0xd6   :  { %620 = vmatpush1.bf16.msra.mxu1 %v7788_v51  ;;  %1529 = vmatprep.subr.bf16.mxu0 %v7814_v54  ;;  %v7839_v51 = vld [vmem:[#allocation7 + $0xd0] ss:$8 sps:$4 sm:$0xff]  }
  0xd7   :  { %621 = vmatprep.subr.bf16.mxu1 %v7793_v53  ;;  %1530 = vmatpush1.bf16.msra.mxu0 %v7812_v61  ;;  %v7842_v53 = vld [vmem:[#allocation7 + $0xe0] ss:$8 sps:$4 sm:$0xff]  }
  0xd8   :  { %1531 = vmatprep.subr.bf16.mxu0 %v7817_v62  ;;  %v8641_v54 = vld [vmem:[#allocation16] ss:$8 sm:$0xf] }
  0xda   :  { %622 = vmatpush1.bf16.msra.mxu1 %v7791_v59 }
  0xdb   :  { %623 = vmatprep.subr.bf16.mxu1 %v7796_v60  ;;  %1532 = vmatpush1.bf16.msra.mxu0 %v7815_v3 }
  0xdc   :  { %481 = vmatmul.mubr.bf16.gmra.mrb[12].mxu0 %v8578_v63  ;;  %561 = vmatmul.mubr.bf16.gmra.mrb[12].mxu1 %v8580_v1 }
  0xdd   :  { %490 = vmatprep.mubr.bf16.mxu0 %v8361_v0  ;;  %570 = vmatprep.mubr.bf16.mxu1 %v8361_v0 }
  0xde   :  { %624 = vmatpush1.bf16.msra.mxu1 %v7794_v2  ;;  %1533 = vmatprep.subr.bf16.mxu0 %v7820_v5 }
  0xdf   :  { %625 = vmatprep.subr.bf16.mxu1 %v7799_v4  ;;  %1534 = vmatpush1.bf16.msra.mxu0 %v7818_v11 }
  0xe0   :  { %1535 = vmatprep.subr.bf16.mxu0 %v7823_v12 }
  0xe2   :  { %626 = vmatpush1.bf16.msra.mxu1 %v7797_v10 }
  0xe3   :  { %1536 = vmatpush1.bf16.msra.mxu0 %v7821_v15 }
  0xe4   :  { %491 = vmatmul.mubr.bf16.gmra.mrb[16].mxu0 %v8586_v13  ;;  %571 = vmatmul.mubr.bf16.gmra.mrb[16].mxu1 %v8588_v14 }
  0xe5   :  { %500 = vmatprep.mubr.bf16.mxu0 %v8361_v0  ;;  %580 = vmatprep.mubr.bf16.mxu1 %v8361_v0 }
  0xe6   :  { %1537 = vmatprep.subr.bf16.mxu0 %v7826_v16 }
  0xe7   :  { %1538 = vmatpush1.bf16.msra.mxu0 %v7824_v21 }
  0xe8   :  { %1539 = vmatprep.subr.bf16.mxu0 %v7829_v24 }
  0xeb   :  { %1540 = vmatpush1.bf16.msra.mxu0 %v7827_v27 }
  0xec   :  { %501 = vmatmul.mubr.bf16.gmra.mrb[20].mxu0 %v8594_v25  ;;  %581 = vmatmul.mubr.bf16.gmra.mrb[20].mxu1 %v8596_v26 }
  0xed   :  { %510 = vmatprep.mubr.bf16.mxu0 %v8361_v0  ;;  %590 = vmatprep.mubr.bf16.mxu1 %v8361_v0 }
  0xee   :  { %1541 = vmatprep.subr.bf16.mxu0 %v7832_v28 }
  0xef   :  { %1542 = vmatpush1.bf16.msra.mxu0 %v7830_v33 }
  0xf0   :  { %1543 = vmatprep.subr.bf16.mxu0 %v7835_v34 }
  0xf3   :  { %1544 = vmatpush1.bf16.msra.mxu0 %v7833_v39 }
  0xf4   :  { %511 = vmatmul.mubr.bf16.gmra.mrb[24].mxu0 %v194_v37  ;;  %591 = vmatmul.mubr.bf16.gmra.mrb[24].mxu1 %v8602_v38 }
  0xf5   :  { %520 = vmatprep.mubr.bf16.mxu0 %v8361_v0  ;;  %600 = vmatprep.mubr.bf16.mxu1 %v8361_v0 }
  0xf6   :  { %1545 = vmatprep.subr.bf16.mxu0 %v7838_v40 }
  0xf7   :  { %1546 = vmatpush1.bf16.msra.mxu0 %v7836_v45 }
  0xf8   :  { %1547 = vmatprep.subr.bf16.mxu0 %v7841_v48 }
  0xfb   :  { %1548 = vmatpush1.bf16.msra.mxu0 %v7839_v51 }
  0xfc   :  { %521 = vmatmul.mubr.bf16.gmra.mrb[28].mxu0 %v195_v46  ;;  %601 = vmatmul.mubr.bf16.gmra.mrb[28].mxu1 %v203_v47 }
  0xfd   :  { %643 = vmatprep.mubr.bf16.mxu1 %v8361_v0  ;;  %1549 = vmatprep.subr.bf16.mxu0 %v7844_v52 }
  0xff   :  { %1550 = vmatpush1.bf16.msra.mxu0 %v7842_v53 }
 0x104   :  { %644 = vmatmul.mubr.bf16.vlgmr.msra.gmra.mrb[32].mxu1 %v8554_v22  ;;  %v7847_v22 = vld [vmem:[#allocation7 + $0xf4] ss:$8 sps:$4 sm:$0xff]  }
 0x105   :  { %653 = vmatprep.mubr.bf16.mxu1 %v8361_v0  ;;  %1551 = vmatprep.subr.bf16.mxu0 %v7847_v22 }
 0x10c   :  { %654 = vmatmul.mubr.bf16.gmra.mrb[36].mxu1 %v8562_v35  ;;  %v7845_v35 = vld [vmem:[#allocation7 + $0xf0] ss:$8 sps:$4 sm:$0xff]  }
 0x10d   :  { %663 = vmatprep.mubr.bf16.mxu1 %v8361_v0  ;;  %1552 = vmatpush1.bf16.msra.mxu0 %v7845_v35 }
 0x114   :  { %664 = vmatmul.mubr.bf16.gmra.mrb[40].mxu1 %v8570_v49  ;;  %v7850_v49 = vld [vmem:[#allocation7 + $0x104] ss:$8 sps:$4 sm:$0xff]  }
 0x115   :  { %673 = vmatprep.mubr.bf16.mxu1 %v8361_v0  ;;  %1714 = vmatprep.subr.bf16.mxu0 %v7850_v49 }
 0x11c   :  { %674 = vmatmul.mubr.bf16.gmra.mrb[44].mxu1 %v8578_v63 }
 0x11d   :  { %683 = vmatprep.mubr.bf16.mxu1 %v8361_v0 }
 0x124   :  { %684 = vmatmul.mubr.bf16.gmra.mrb[48].mxu1 %v8586_v13 }
 0x125   :  { %693 = vmatprep.mubr.bf16.mxu1 %v8361_v0 }
 0x12c   :  { %694 = vmatmul.mubr.bf16.gmra.mrb[52].mxu1 %v8594_v25 }
 0x12d   :  { %703 = vmatprep.mubr.bf16.mxu1 %v8361_v0 }
 0x134   :  { %704 = vmatmul.mubr.bf16.gmra.mrb[56].mxu1 %v194_v37 }
 0x135   :  { %713 = vmatprep.mubr.bf16.mxu1 %v8361_v0 }
 0x13c   :  { %714 = vmatmul.mubr.bf16.gmra.mrb[60].mxu1 %v195_v46 }
 0x13d   :  { %723 = vmatprep.mubr.bf16.mxu1 %v8361_v0 }
 0x144   :  { %724 = vmatmul.mubr.bf16.gmra.mrb[64].mxu1 %v8556_v23  ;;  %v238_v23 = vlaneseq }
 0x145   :  { %733 = vmatprep.mubr.bf16.mxu1 %v8361_v0 }
 0x14c   :  { %734 = vmatmul.mubr.bf16.gmra.mrb[68].mxu1 %v8564_v36  ;;  %v8636_v36 = vshrl.u32 %v238_v23, 7 }
 0x14d   :  { %743 = vmatprep.mubr.bf16.mxu1 %v8361_v0 }
 0x14e   :  { %v8644_v55 = vsub.s32 1, %v8636_v36 }
 0x150   :  { %v8652_v57 = vrot.slane %v8641_v54, %v8644_v55 }
 0x154   :  { %744 = vmatmul.mubr.bf16.gmra.mrb[72].mxu1 %v8572_v50  ;;  %v8639_v50 = vsub.s32 0, %v8636_v36 }
 0x155   :  { %753 = vmatprep.mubr.bf16.mxu1 %v8361_v0 }
 0x156   :  { %v8648_v56 = vrot.slane %v8641_v54, %v8639_v50 }
 0x15c   :  { %754 = vmatmul.mubr.bf16.gmra.mrb[76].mxu1 %v8580_v1 }
 0x15d   :  { %763 = vmatprep.mubr.bf16.mxu1 %v8361_v0 }
 0x164   :  { %764 = vmatmul.mubr.bf16.gmra.mrb[80].mxu1 %v8588_v14 }
 0x165   :  { %773 = vmatprep.mubr.bf16.mxu1 %v8361_v0 }
 0x16c   :  { %774 = vmatmul.mubr.bf16.gmra.mrb[84].mxu1 %v8596_v26 }
 0x16d   :  { %783 = vmatprep.mubr.bf16.mxu1 %v8361_v0 }
 0x174   :  { %784 = vmatmul.mubr.bf16.gmra.mrb[88].mxu1 %v8602_v38 }
 0x175   :  { %793 = vmatprep.mubr.bf16.mxu1 %v8361_v0 }
 0x17c   :  { %794 = vmatmul.mubr.bf16.gmra.mrb[92].mxu1 %v203_v47 }
 0x197   :  { %v452_v58 = vpop.f32.mrb[0].mxu0  ;;  %v532_v59 = vpop.f32.mrb[0].mxu1 }
 0x198   :  { %v453_v60 = vadd.f32 %v452_v58, %v8648_v56  ;;  %v454_v61 = vpop.f32.mrb[1].mxu0  ;;  %v533_v62 = vadd.f32 %v532_v59, %v8648_v56  ;;  %v534_v63 = vpop.f32.mrb[1].mxu1 }
 0x199   :  { %v455_v1 = vadd.f32 %v454_v61, %v8652_v57  ;;  %v456_v2 = vpop.f32.mrb[2].mxu0  ;;  %v535_v3 = vadd.f32 %v534_v63, %v8652_v57  ;;  %v536_v4 = vpop.f32.mrb[2].mxu1  ;;  %v7851_v63 = vld [vmem:[#allocation7 + $0x110] ss:$8 sps:$4 sm:$0xff]  }
 0x19a   :  { %v804_v5 = vmul.f32 0.01, %v453_v60  ;;  %v457_v6 = vadd.f32 %v456_v2, %v8648_v56  ;;  %v458_v7 = vpop.f32.mrb[3].mxu0  ;;  %v868_v8 = vmul.f32 0.01, %v533_v62  ;;  %v537_v9 = vadd.f32 %v536_v4, %v8648_v56  ;;  %v538_v10 = vpop.f32.mrb[3].mxu1 }
 0x19b   :  { %v805_v11 = vmul.f32 0.01, %v455_v1  ;;  %v459_v12 = vadd.f32 %v458_v7, %v8652_v57  ;;  %v869_v13 = vmul.f32 0.01, %v535_v3  ;;  %v539_v14 = vadd.f32 %v538_v10, %v8652_v57 }
 0x19c   :  { %v808_v15 = vmul.f32 0.01, %v457_v6  ;;  %v996_v16 = vmax.f32 %v533_v62, %v868_v8  ;;  %v872_v17 = vmul.f32 0.01, %v537_v9  ;;  %v932_v21 = vmax.f32 %v453_v60, %v804_v5  ;;  %v7856_v5 = vld [vmem:[#allocation7 + $0x124] ss:$8 sps:$4 sm:$0xff]  }
 0x19d   :  { %v809_v18 = vmul.f32 0.01, %v459_v12  ;;  %v997_v19 = vmax.f32 %v535_v3, %v869_v13  ;;  %v873_v20 = vmul.f32 0.01, %v539_v14  ;;  %v933_v26 = vmax.f32 %v455_v1, %v805_v11 }
 0x19e   :  { %v936_v24 = vmax.f32 %v457_v6, %v808_v15  ;;  %v1000_v25 = vmax.f32 %v537_v9, %v872_v17 }
 0x19f   :  { %v937_v27 = vmax.f32 %v459_v12, %v809_v18  ;;  %v462_v28 = vpop.f32.mrb[4].mxu0  ;;  %v1001_v29 = vmax.f32 %v539_v14, %v873_v20  ;;  %v542_v30 = vpop.f32.mrb[4].mxu1 }
 0x1a0   :  { %v1060_v31 = vpack.c.bf16 %v936_v24, %v932_v21  ;;  %v463_v32 = vadd.f32 %v462_v28, %v8648_v56  ;;  %v464_v33 = vpop.f32.mrb[5].mxu0  ;;  %v543_v34 = vadd.f32 %v542_v30, %v8648_v56  ;;  %v544_v37 = vpop.f32.mrb[5].mxu1  ;;  %v8664_v38 = vpack.c.bf16 %v1000_v25, %v996_v16  ;;  %v7854_v21 = vld [vmem:[#allocation7 + $0x120] ss:$8 sps:$4 sm:$0xff]   ;;  %v7859_v24 = vld [vmem:[#allocation7 + $0x134] ss:$8 sps:$4 sm:$0xff]  }
 0x1a1   :  { %v465_v39 = vadd.f32 %v464_v33, %v8652_v57  ;;  %v466_v40 = vpop.f32.mrb[6].mxu0  ;;  %v1061_v41 = vpack.c.bf16 %v937_v27, %v933_v26  ;;  %v545_v44 = vadd.f32 %v544_v37, %v8652_v57  ;;  %v546_v45 = vpop.f32.mrb[6].mxu1  ;;  %v8668_v46 = vpack.c.bf16 %v1001_v29, %v997_v19 }
 0x1a2   :  { %v812_v47 = vmul.f32 0.01, %v463_v32  ;;  %v467_v48 = vadd.f32 %v466_v40, %v8648_v56  ;;  %v468_v51 = vpop.f32.mrb[7].mxu0  ;;  %v876_v52 = vmul.f32 0.01, %v543_v34  ;;  %v547_v53 = vadd.f32 %v546_v45, %v8648_v56  ;;  %v548_v22 = vpop.f32.mrb[7].mxu1 }
 0x1a3   :  { %v813_v35 = vmul.f32 0.01, %v465_v39  ;;  %v469_v49 = vadd.f32 %v468_v51, %v8652_v57  ;;  %1553 = vmatprep.mubr.bf16.mxu0 %v1061_v41  ;;  %v877_v23 = vmul.f32 0.01, %v545_v44  ;;  %v549_v58 = vadd.f32 %v548_v22, %v8652_v57  ;;  %v7857_v45 = vld [vmem:[#allocation7 + $0x130] ss:$8 sps:$4 sm:$0xff]  }
 0x1a4   :  { %v816_v59 = vmul.f32 0.01, %v467_v48  ;;  %1554 = vmatmul.mubr.bf16.vlgmr.msra.gmra.mrb[32].mxu0 %v1060_v31  ;;  %v1004_v60 = vmax.f32 %v543_v34, %v876_v52  ;;  %v880_v61 = vmul.f32 0.01, %v547_v53  ;;  %v940_v3 = vmax.f32 %v463_v32, %v812_v47 }
 0x1a5   :  { %v817_v62 = vmul.f32 0.01, %v469_v49  ;;  %1715 = vmatpush1.bf16.msra.mxu0 %v7848_v42  ;;  %v1005_v1 = vmax.f32 %v545_v44, %v877_v23  ;;  %v881_v2 = vmul.f32 0.01, %v549_v58  ;;  %v941_v7 = vmax.f32 %v465_v39, %v813_v35 }
 0x1a6   :  { %v944_v4 = vmax.f32 %v467_v48, %v816_v59  ;;  %1716 = vmatprep.subr.bf16.mxu0 %v7853_v43  ;;  %v1008_v6 = vmax.f32 %v547_v53, %v880_v61  ;;  %v7862_v53 = vld [vmem:[#allocation7 + $0x144] ss:$8 sps:$4 sm:$0xff]  }
 0x1a7   :  { %v945_v8 = vmax.f32 %v469_v49, %v817_v62  ;;  %v472_v9 = vpop.f32.mrb[8].mxu0  ;;  %v1009_v10 = vmax.f32 %v549_v58, %v881_v2  ;;  %v552_v11 = vpop.f32.mrb[8].mxu1 }
 0x1a8   :  { %v473_v12 = vadd.f32 %v472_v9, %v8648_v56  ;;  %v474_v13 = vpop.f32.mrb[9].mxu0  ;;  %v1064_v14 = vpack.c.bf16 %v944_v4, %v940_v3  ;;  %v553_v15 = vadd.f32 %v552_v11, %v8648_v56  ;;  %v554_v16 = vpop.f32.mrb[9].mxu1  ;;  %v8676_v17 = vpack.c.bf16 %v1008_v6, %v1004_v60  ;;  %v7860_v6 = vld [vmem:[#allocation7 + $0x140] ss:$8 sps:$4 sm:$0xff]  }
 0x1a9   :  { %v475_v18 = vadd.f32 %v474_v13, %v8652_v57  ;;  %v476_v19 = vpop.f32.mrb[10].mxu0  ;;  %v1065_v20 = vpack.c.bf16 %v945_v8, %v941_v7  ;;  %1717 = vmatpush1.bf16.msra.mxu0 %v7851_v63  ;;  %v555_v25 = vadd.f32 %v554_v16, %v8652_v57  ;;  %v556_v26 = vpop.f32.mrb[10].mxu1  ;;  %v8680_v27 = vpack.c.bf16 %v1009_v10, %v1005_v1  ;;  %v7865_v7 = vld [vmem:[#allocation7 + $0x154] ss:$8 sps:$4 sm:$0xff]  }
 0x1aa   :  { %v820_v28 = vmul.f32 0.01, %v473_v12  ;;  %v477_v29 = vadd.f32 %v476_v19, %v8648_v56  ;;  %v478_v30 = vpop.f32.mrb[11].mxu0  ;;  %1718 = vmatprep.subr.bf16.mxu0 %v7856_v5  ;;  %v884_v31 = vmul.f32 0.01, %v553_v15  ;;  %v557_v32 = vadd.f32 %v556_v26, %v8648_v56  ;;  %v558_v33 = vpop.f32.mrb[11].mxu1 }
 0x1ab   :  { %v821_v34 = vmul.f32 0.01, %v475_v18  ;;  %v479_v37 = vadd.f32 %v478_v30, %v8652_v57  ;;  %1563 = vmatprep.mubr.bf16.mxu0 %v1065_v20  ;;  %v885_v39 = vmul.f32 0.01, %v555_v25  ;;  %v559_v40 = vadd.f32 %v558_v33, %v8652_v57 }
 0x1ac   :  { %v824_v41 = vmul.f32 0.01, %v477_v29  ;;  %1564 = vmatmul.mubr.bf16.gmra.mrb[36].mxu0 %v1064_v14  ;;  %v1012_v42 = vmax.f32 %v553_v15, %v884_v31  ;;  %v888_v43 = vmul.f32 0.01, %v557_v32  ;;  %v948_v51 = vmax.f32 %v473_v12, %v820_v28 }
 0x1ad   :  { %v825_v44 = vmul.f32 0.01, %v479_v37  ;;  %1719 = vmatpush1.bf16.msra.mxu0 %v7854_v21  ;;  %v1013_v47 = vmax.f32 %v555_v25, %v885_v39  ;;  %v889_v48 = vmul.f32 0.01, %v559_v40  ;;  %v949_v35 = vmax.f32 %v475_v18, %v821_v34  ;;  %v7868_v34 = vld [vmem:[#allocation7 + $0x164] ss:$8 sps:$4 sm:$0xff]  }
 0x1ae   :  { %v952_v52 = vmax.f32 %v477_v29, %v824_v41  ;;  %1720 = vmatprep.subr.bf16.mxu0 %v7859_v24  ;;  %v1016_v22 = vmax.f32 %v557_v32, %v888_v43  ;;  %v7863_v29 = vld [vmem:[#allocation7 + $0x150] ss:$8 sps:$4 sm:$0xff]  }
 0x1af   :  { %v953_v49 = vmax.f32 %v479_v37, %v825_v44  ;;  %v482_v23 = vpop.f32.mrb[12].mxu0  ;;  %v1017_v58 = vmax.f32 %v559_v40, %v889_v48  ;;  %v562_v59 = vpop.f32.mrb[12].mxu1 }
 0x1b0   :  { %v483_v60 = vadd.f32 %v482_v23, %v8648_v56  ;;  %v484_v61 = vpop.f32.mrb[13].mxu0  ;;  %v1068_v62 = vpack.c.bf16 %v952_v52, %v948_v51  ;;  %v563_v63 = vadd.f32 %v562_v59, %v8648_v56  ;;  %v564_v1 = vpop.f32.mrb[13].mxu1  ;;  %v8688_v2 = vpack.c.bf16 %v1016_v22, %v1012_v42  ;;  %v7871_v23 = vld [vmem:[#allocation7 + $0x174] ss:$8 sps:$4 sm:$0xff]  }
 0x1b1   :  { %v485_v3 = vadd.f32 %v484_v61, %v8652_v57  ;;  %v486_v4 = vpop.f32.mrb[14].mxu0  ;;  %v1069_v5 = vpack.c.bf16 %v953_v49, %v949_v35  ;;  %1721 = vmatpush1.bf16.msra.mxu0 %v7857_v45  ;;  %v565_v8 = vadd.f32 %v564_v1, %v8652_v57  ;;  %v566_v9 = vpop.f32.mrb[14].mxu1  ;;  %v8692_v10 = vpack.c.bf16 %v1017_v58, %v1013_v47  ;;  %v7866_v49 = vld [vmem:[#allocation7 + $0x160] ss:$8 sps:$4 sm:$0xff]  }
 0x1b2   :  { %v828_v11 = vmul.f32 0.01, %v483_v60  ;;  %v487_v12 = vadd.f32 %v486_v4, %v8648_v56  ;;  %v488_v13 = vpop.f32.mrb[15].mxu0  ;;  %1722 = vmatprep.subr.bf16.mxu0 %v7862_v53  ;;  %v892_v14 = vmul.f32 0.01, %v563_v63  ;;  %v567_v15 = vadd.f32 %v566_v9, %v8648_v56  ;;  %v568_v16 = vpop.f32.mrb[15].mxu1 }
 0x1b3   :  { %v829_v18 = vmul.f32 0.01, %v485_v3  ;;  %v489_v19 = vadd.f32 %v488_v13, %v8652_v57  ;;  %1573 = vmatprep.mubr.bf16.mxu0 %v1069_v5  ;;  %v893_v20 = vmul.f32 0.01, %v565_v8  ;;  %v569_v21 = vadd.f32 %v568_v16, %v8652_v57 }
 0x1b4   :  { %v832_v24 = vmul.f32 0.01, %v487_v12  ;;  %1574 = vmatmul.mubr.bf16.gmra.mrb[40].mxu0 %v1068_v62  ;;  %v1020_v25 = vmax.f32 %v563_v63, %v892_v14  ;;  %v896_v26 = vmul.f32 0.01, %v567_v15  ;;  %v956_v32 = vmax.f32 %v483_v60, %v828_v11  ;;  %v7869_v14 = vld [vmem:[#allocation7 + $0x170] ss:$8 sps:$4 sm:$0xff]  }
 0x1b5   :  { %v833_v28 = vmul.f32 0.01, %v489_v19  ;;  %1723 = vmatpush1.bf16.msra.mxu0 %v7860_v6  ;;  %v1021_v30 = vmax.f32 %v565_v8, %v893_v20  ;;  %v897_v31 = vmul.f32 0.01, %v569_v21  ;;  %v957_v39 = vmax.f32 %v485_v3, %v829_v18  ;;  %v7874_v20 = vld [vmem:[#allocation7 + $0x184] ss:$8 sps:$4 sm:$0xff]  }
 0x1b6   :  { %v960_v33 = vmax.f32 %v487_v12, %v832_v24  ;;  %1724 = vmatprep.subr.bf16.mxu0 %v7865_v7  ;;  %v1024_v37 = vmax.f32 %v567_v15, %v896_v26 }
 0x1b7   :  { %v961_v40 = vmax.f32 %v489_v19, %v833_v28  ;;  %v492_v41 = vpop.f32.mrb[16].mxu0  ;;  %v1025_v42 = vmax.f32 %v569_v21, %v897_v31  ;;  %v572_v43 = vpop.f32.mrb[16].mxu1 }
 0x1b8   :  { %v493_v44 = vadd.f32 %v492_v41, %v8648_v56  ;;  %v494_v45 = vpop.f32.mrb[17].mxu0  ;;  %v1072_v47 = vpack.c.bf16 %v960_v33, %v956_v32  ;;  %v573_v48 = vadd.f32 %v572_v43, %v8648_v56  ;;  %v574_v51 = vpop.f32.mrb[17].mxu1  ;;  %v8700_v52 = vpack.c.bf16 %v1024_v37, %v1020_v25  ;;  %v7877_v43 = vld [vmem:[#allocation7 + $0x194] ss:$8 sps:$4 sm:$0xff]  }
 0x1b9   :  { %v495_v53 = vadd.f32 %v494_v45, %v8652_v57  ;;  %v496_v22 = vpop.f32.mrb[18].mxu0  ;;  %v1073_v35 = vpack.c.bf16 %v961_v40, %v957_v39  ;;  %1725 = vmatpush1.bf16.msra.mxu0 %v7863_v29  ;;  %v575_v58 = vadd.f32 %v574_v51, %v8652_v57  ;;  %v576_v59 = vpop.f32.mrb[18].mxu1  ;;  %v8704_v60 = vpack.c.bf16 %v1025_v42, %v1021_v30  ;;  %v7872_v42 = vld [vmem:[#allocation7 + $0x180] ss:$8 sps:$4 sm:$0xff]  }
 0x1ba   :  { %v836_v61 = vmul.f32 0.01, %v493_v44  ;;  %v497_v62 = vadd.f32 %v496_v22, %v8648_v56  ;;  %v498_v63 = vpop.f32.mrb[19].mxu0  ;;  %1726 = vmatprep.subr.bf16.mxu0 %v7868_v34  ;;  %v900_v1 = vmul.f32 0.01, %v573_v48  ;;  %v577_v3 = vadd.f32 %v576_v59, %v8648_v56  ;;  %v578_v4 = vpop.f32.mrb[19].mxu1 }
 0x1bb   :  { %v837_v5 = vmul.f32 0.01, %v495_v53  ;;  %v499_v6 = vadd.f32 %v498_v63, %v8652_v57  ;;  %1583 = vmatprep.mubr.bf16.mxu0 %v1073_v35  ;;  %v901_v7 = vmul.f32 0.01, %v575_v58  ;;  %v579_v8 = vadd.f32 %v578_v4, %v8652_v57  ;;  %v7875_v4 = vld [vmem:[#allocation7 + $0x190] ss:$8 sps:$4 sm:$0xff]  }
 0x1bc   :  { %v840_v9 = vmul.f32 0.01, %v497_v62  ;;  %1584 = vmatmul.mubr.bf16.gmra.mrb[44].mxu0 %v1072_v47  ;;  %v1028_v11 = vmax.f32 %v573_v48, %v900_v1  ;;  %v904_v12 = vmul.f32 0.01, %v577_v3  ;;  %v964_v18 = vmax.f32 %v493_v44, %v836_v61 }
 0x1bd   :  { %v841_v13 = vmul.f32 0.01, %v499_v6  ;;  %1727 = vmatpush1.bf16.msra.mxu0 %v7866_v49  ;;  %v1029_v15 = vmax.f32 %v575_v58, %v901_v7  ;;  %v905_v16 = vmul.f32 0.01, %v579_v8  ;;  %v965_v24 = vmax.f32 %v495_v53, %v837_v5 }
 0x1be   :  { %v968_v19 = vmax.f32 %v497_v62, %v840_v9  ;;  %1728 = vmatprep.subr.bf16.mxu0 %v7871_v23  ;;  %v1032_v21 = vmax.f32 %v577_v3, %v904_v12  ;;  %v7880_v9 = vld [vmem:[#allocation7 + $0x1a4] ss:$8 sps:$4 sm:$0xff]  }
 0x1bf   :  { %v969_v25 = vmax.f32 %v499_v6, %v841_v13  ;;  %v502_v26 = vpop.f32.mrb[20].mxu0  ;;  %v1033_v28 = vmax.f32 %v579_v8, %v905_v16  ;;  %v582_v29 = vpop.f32.mrb[20].mxu1 }
 0x1c0   :  { %v503_v30 = vadd.f32 %v502_v26, %v8648_v56  ;;  %v504_v31 = vpop.f32.mrb[21].mxu0  ;;  %v1076_v32 = vpack.c.bf16 %v968_v19, %v964_v18  ;;  %v583_v33 = vadd.f32 %v582_v29, %v8648_v56  ;;  %v584_v34 = vpop.f32.mrb[21].mxu1  ;;  %v8712_v37 = vpack.c.bf16 %v1032_v21, %v1028_v11 }
 0x1c1   :  { %v505_v39 = vadd.f32 %v504_v31, %v8652_v57  ;;  %v506_v40 = vpop.f32.mrb[22].mxu0  ;;  %v1077_v41 = vpack.c.bf16 %v969_v25, %v965_v24  ;;  %1729 = vmatpush1.bf16.msra.mxu0 %v7869_v14  ;;  %v585_v44 = vadd.f32 %v584_v34, %v8652_v57  ;;  %v586_v45 = vpop.f32.mrb[22].mxu1  ;;  %v8716_v47 = vpack.c.bf16 %v1033_v28, %v1029_v15  ;;  %v7883_v31 = vld [vmem:[#allocation7 + $0x1b4] ss:$8 sps:$4 sm:$0xff]  }
 0x1c2   :  { %v844_v48 = vmul.f32 0.01, %v503_v30  ;;  %v507_v51 = vadd.f32 %v506_v40, %v8648_v56  ;;  %v508_v53 = vpop.f32.mrb[23].mxu0  ;;  %1730 = vmatprep.subr.bf16.mxu0 %v7874_v20  ;;  %v908_v22 = vmul.f32 0.01, %v583_v33  ;;  %v587_v35 = vadd.f32 %v586_v45, %v8648_v56  ;;  %v588_v49 = vpop.f32.mrb[23].mxu1 }
 0x1c3   :  { %v845_v23 = vmul.f32 0.01, %v505_v39  ;;  %v509_v58 = vadd.f32 %v508_v53, %v8652_v57  ;;  %1593 = vmatprep.mubr.bf16.mxu0 %v1077_v41  ;;  %v909_v59 = vmul.f32 0.01, %v585_v44  ;;  %v589_v61 = vadd.f32 %v588_v49, %v8652_v57 }
 0x1c4   :  { %v848_v62 = vmul.f32 0.01, %v507_v51  ;;  %1594 = vmatmul.mubr.bf16.gmra.mrb[48].mxu0 %v1076_v32  ;;  %v1036_v63 = vmax.f32 %v583_v33, %v908_v22  ;;  %v912_v1 = vmul.f32 0.01, %v587_v35  ;;  %v972_v7 = vmax.f32 %v503_v30, %v844_v48  ;;  %v7878_v30 = vld [vmem:[#allocation7 + $0x1a0] ss:$8 sps:$4 sm:$0xff]  }
 0x1c5   :  { %v849_v3 = vmul.f32 0.01, %v509_v58  ;;  %1731 = vmatpush1.bf16.msra.mxu0 %v7872_v42  ;;  %v1037_v5 = vmax.f32 %v585_v44, %v909_v59  ;;  %v913_v6 = vmul.f32 0.01, %v589_v61  ;;  %v973_v12 = vmax.f32 %v505_v39, %v845_v23 }
 0x1c6   :  { %v976_v8 = vmax.f32 %v507_v51, %v848_v62  ;;  %1732 = vmatprep.subr.bf16.mxu0 %v7877_v43  ;;  %v1040_v11 = vmax.f32 %v587_v35, %v912_v1  ;;  %v7886_v1 = vld [vmem:[#allocation7 + $0x1c4] ss:$8 sps:$4 sm:$0xff]  }
 0x1c7   :  { %v977_v13 = vmax.f32 %v509_v58, %v849_v3  ;;  %v512_v14 = vpop.f32.mrb[24].mxu0  ;;  %v1041_v15 = vmax.f32 %v589_v61, %v913_v6  ;;  %v592_v16 = vpop.f32.mrb[24].mxu1  ;;  %v7881_v58 = vld [vmem:[#allocation7 + $0x1b0] ss:$8 sps:$4 sm:$0xff]  }
 0x1c8   :  { %v513_v18 = vadd.f32 %v512_v14, %v8648_v56  ;;  %v514_v19 = vpop.f32.mrb[25].mxu0  ;;  %v1080_v20 = vpack.c.bf16 %v976_v8, %v972_v7  ;;  %v593_v21 = vadd.f32 %v592_v16, %v8648_v56  ;;  %v594_v24 = vpop.f32.mrb[25].mxu1  ;;  %v8724_v25 = vpack.c.bf16 %v1040_v11, %v1036_v63 }
 0x1c9   :  { %v515_v26 = vadd.f32 %v514_v19, %v8652_v57  ;;  %v516_v28 = vpop.f32.mrb[26].mxu0  ;;  %v1081_v29 = vpack.c.bf16 %v977_v13, %v973_v12  ;;  %1733 = vmatpush1.bf16.msra.mxu0 %v7875_v4  ;;  %v595_v32 = vadd.f32 %v594_v24, %v8652_v57  ;;  %v596_v33 = vpop.f32.mrb[26].mxu1  ;;  %v8728_v34 = vpack.c.bf16 %v1041_v15, %v1037_v5  ;;  %v7884_v24 = vld [vmem:[#allocation7 + $0x1c0] ss:$8 sps:$4 sm:$0xff]  }
 0x1ca   :  { %v852_v39 = vmul.f32 0.01, %v513_v18  ;;  %v517_v40 = vadd.f32 %v516_v28, %v8648_v56  ;;  %v518_v41 = vpop.f32.mrb[27].mxu0  ;;  %1734 = vmatprep.subr.bf16.mxu0 %v7880_v9  ;;  %v916_v42 = vmul.f32 0.01, %v593_v21  ;;  %v597_v43 = vadd.f32 %v596_v33, %v8648_v56  ;;  %v598_v44 = vpop.f32.mrb[27].mxu1 }
 0x1cb   :  { %v853_v45 = vmul.f32 0.01, %v515_v26  ;;  %v519_v48 = vadd.f32 %v518_v41, %v8652_v57  ;;  %1603 = vmatprep.mubr.bf16.mxu0 %v1081_v29  ;;  %v917_v51 = vmul.f32 0.01, %v595_v32  ;;  %v599_v53 = vadd.f32 %v598_v44, %v8652_v57  ;;  %v7889_v28 = vld [vmem:[#allocation7 + $0x1d4] ss:$8 sps:$4 sm:$0xff]  }
 0x1cc   :  { %v856_v22 = vmul.f32 0.01, %v517_v40  ;;  %1604 = vmatmul.mubr.bf16.gmra.mrb[52].mxu0 %v1080_v20  ;;  %v1044_v35 = vmax.f32 %v593_v21, %v916_v42  ;;  %v920_v49 = vmul.f32 0.01, %v597_v43  ;;  %v980_v62 = vmax.f32 %v513_v18, %v852_v39 }
 0x1cd   :  { %v857_v23 = vmul.f32 0.01, %v519_v48  ;;  %1735 = vmatpush1.bf16.msra.mxu0 %v7878_v30  ;;  %v1045_v59 = vmax.f32 %v595_v32, %v917_v51  ;;  %v921_v61 = vmul.f32 0.01, %v599_v53  ;;  %v248_v4 = vsub.s32 2, %v8636_v36 }
 0x1ce   :  { %v984_v63 = vmax.f32 %v517_v40, %v856_v22  ;;  %1736 = vmatprep.subr.bf16.mxu0 %v7883_v31  ;;  %v1048_v3 = vmax.f32 %v597_v43, %v920_v49  ;;  %v981_v5 = vmax.f32 %v515_v26, %v853_v45  ;;  %v252_v11 = vsub.s32 3, %v8636_v36  ;;  %v7887_v49 = vld [vmem:[#allocation7 + $0x1d0] ss:$8 sps:$4 sm:$0xff]  }
 0x1cf   :  { %v985_v6 = vmax.f32 %v519_v48, %v857_v23  ;;  %v522_v7 = vpop.f32.mrb[28].mxu0  ;;  %v1049_v8 = vmax.f32 %v599_v53, %v921_v61  ;;  %v602_v9 = vpop.f32.mrb[28].mxu1  ;;  %v8751_v22 = vrot.slane %v8641_v54, %v248_v4 }
 0x1d0   :  { %v523_v12 = vadd.f32 %v522_v7, %v8648_v56  ;;  %v524_v13 = vpop.f32.mrb[29].mxu0  ;;  %v1084_v14 = vpack.c.bf16 %v984_v63, %v980_v62  ;;  %v603_v15 = vadd.f32 %v602_v9, %v8648_v56  ;;  %v604_v16 = vpop.f32.mrb[29].mxu1  ;;  %v8738_v18 = vpack.c.bf16 %v1048_v3, %v1044_v35  ;;  %v7892_v62 = vld [vmem:[#allocation7 + $0x1e4] ss:$8 sps:$4 sm:$0xff]  }
 0x1d1   :  { %v525_v19 = vadd.f32 %v524_v13, %v8652_v57  ;;  %v526_v20 = vpop.f32.mrb[30].mxu0  ;;  %v1085_v21 = vpack.c.bf16 %v985_v6, %v981_v5  ;;  %1737 = vmatpush1.bf16.msra.mxu0 %v7881_v58  ;;  %v605_v26 = vadd.f32 %v604_v16, %v8652_v57  ;;  %v606_v29 = vpop.f32.mrb[30].mxu1  ;;  %v8742_v30 = vpack.c.bf16 %v1049_v8, %v1045_v59 }
 0x1d2   :  { %v860_v31 = vmul.f32 0.01, %v523_v12  ;;  %v527_v32 = vadd.f32 %v526_v20, %v8648_v56  ;;  %v528_v33 = vpop.f32.mrb[31].mxu0  ;;  %1738 = vmatprep.subr.bf16.mxu0 %v7886_v1  ;;  %v924_v39 = vmul.f32 0.01, %v603_v15  ;;  %v607_v40 = vadd.f32 %v606_v29, %v8648_v56  ;;  %v608_v41 = vpop.f32.mrb[31].mxu1 }
 0x1d3   :  { %v861_v42 = vmul.f32 0.01, %v525_v19  ;;  %v529_v43 = vadd.f32 %v528_v33, %v8652_v57  ;;  %1613 = vmatprep.mubr.bf16.mxu0 %v1085_v21  ;;  %v925_v44 = vmul.f32 0.01, %v605_v26  ;;  %v609_v45 = vadd.f32 %v608_v41, %v8652_v57  ;;  %v7895_v21 = vld [vmem:[#allocation7 + $0x1f4] ss:$8 sps:$4 sm:$0xff]  }
 0x1d4   :  { %v864_v48 = vmul.f32 0.01, %v527_v32  ;;  %1614 = vmatmul.mubr.bf16.gmra.mrb[56].mxu0 %v1084_v14  ;;  %v1052_v51 = vmax.f32 %v603_v15, %v924_v39  ;;  %v928_v53 = vmul.f32 0.01, %v607_v40  ;;  %v8756_v58 = vrot.slane %v8641_v54, %v252_v11  ;;  %v7890_v14 = vld [vmem:[#allocation7 + $0x1e0] ss:$8 sps:$4 sm:$0xff]  }
 0x1d5   :  { %v865_v35 = vmul.f32 0.01, %v529_v43  ;;  %1739 = vmatpush1.bf16.msra.mxu0 %v7884_v24  ;;  %v1053_v56 = vmax.f32 %v605_v26, %v925_v44  ;;  %v929_v23 = vmul.f32 0.01, %v609_v45  ;;  %v988_v57 = vmax.f32 %v523_v12, %v860_v31  ;;  %v7893_v33 = vld [vmem:[#allocation7 + $0x1f0] ss:$8 sps:$4 sm:$0xff]  }
 0x1d6   :  { %v992_v59 = vmax.f32 %v527_v32, %v864_v48  ;;  %1740 = vmatprep.subr.bf16.mxu0 %v7889_v28  ;;  %v1056_v61 = vmax.f32 %v607_v40, %v928_v53  ;;  %v989_v63 = vmax.f32 %v525_v19, %v861_v42 }
 0x1d7   :  { %v993_v1 = vmax.f32 %v529_v43, %v865_v35  ;;  %v1057_v3 = vmax.f32 %v609_v45, %v929_v23  ;;  %v645_v5 = vpop.f32.mrb[32].mxu1 }
 0x1d8   :  { %v1088_v6 = vpack.c.bf16 %v992_v59, %v988_v57  ;;  %v646_v7 = vadd.f32 %v645_v5, %v8751_v22  ;;  %v647_v8 = vpop.f32.mrb[33].mxu1  ;;  %v8759_v9 = vpack.c.bf16 %v1056_v61, %v1052_v51 }
 0x1d9   :  { %v1089_v13 = vpack.c.bf16 %v993_v1, %v989_v63  ;;  %1741 = vmatpush1.bf16.msra.mxu0 %v7887_v49  ;;  %v648_v54 = vadd.f32 %v647_v8, %v8756_v58  ;;  %v649_v12 = vpop.f32.mrb[34].mxu1  ;;  %v8762_v15 = vpack.c.bf16 %v1057_v3, %v1053_v56 }
 0x1da   :  { %v806_v16 = vmul.f32 0.01, %v646_v7  ;;  %1742 = vmatprep.subr.bf16.mxu0 %v7892_v62  ;;  %v650_v19 = vadd.f32 %v649_v12, %v8751_v22  ;;  %v651_v20 = vpop.f32.mrb[35].mxu1 }
 0x1db   :  { %1623 = vmatprep.mubr.bf16.mxu0 %v1089_v13  ;;  %v807_v24 = vmul.f32 0.01, %v648_v54  ;;  %v652_v26 = vadd.f32 %v651_v20, %v8756_v58 }
 0x1dc   :  { %1624 = vmatmul.mubr.bf16.gmra.mrb[60].mxu0 %v1088_v6  ;;  %v934_v28 = vmax.f32 %v646_v7, %v806_v16  ;;  %v810_v29 = vmul.f32 0.01, %v650_v19 }
 0x1dd   :  { %1633 = vmatprep.mubr.bf16.mxu0 %v8668_v46  ;;  %v935_v31 = vmax.f32 %v648_v54, %v807_v24  ;;  %1743 = vmatpush1.bf16.msra.mxu0 %v7890_v14  ;;  %v811_v32 = vmul.f32 0.01, %v652_v26 }
 0x1de   :  { %v938_v39 = vmax.f32 %v650_v19, %v810_v29  ;;  %1744 = vmatprep.subr.bf16.mxu0 %v7895_v21 }
 0x1df   :  { %v939_v40 = vmax.f32 %v652_v26, %v811_v32  ;;  %v655_v41 = vpop.f32.mrb[36].mxu1 }
 0x1e0   :  { %v8767_v42 = vpack.c.bf16 %v938_v39, %v934_v28  ;;  %v656_v43 = vadd.f32 %v655_v41, %v8751_v22  ;;  %v657_v44 = vpop.f32.mrb[37].mxu1 }
 0x1e1   :  { %v658_v45 = vadd.f32 %v657_v44, %v8756_v58  ;;  %v659_v48 = vpop.f32.mrb[38].mxu1  ;;  %1745 = vmatpush1.bf16.msra.mxu0 %v7893_v33  ;;  %v8771_v51 = vpack.c.bf16 %v939_v40, %v935_v31 }
 0x1e2   :  { %v814_v46 = vmul.f32 0.01, %v656_v43  ;;  %v660_v53 = vadd.f32 %v659_v48, %v8751_v22  ;;  %v661_v35 = vpop.f32.mrb[39].mxu1 }
 0x1e3   :  { %v815_v56 = vmul.f32 0.01, %v658_v45  ;;  %v662_v49 = vadd.f32 %v661_v35, %v8756_v58 }
 0x1e4   :  { %1634 = vmatmul.mubr.bf16.gmra.mrb[64].mxu0 %v8664_v38  ;;  %v942_v23 = vmax.f32 %v656_v43, %v814_v46  ;;  %v818_v57 = vmul.f32 0.01, %v660_v53 }
 0x1e5   :  { %1643 = vmatprep.mubr.bf16.mxu0 %v8680_v27  ;;  %v943_v59 = vmax.f32 %v658_v45, %v815_v56  ;;  %v819_v61 = vmul.f32 0.01, %v662_v49 }
 0x1e6   :  { %v946_v62 = vmax.f32 %v660_v53, %v818_v57 }
 0x1e7   :  { %v947_v63 = vmax.f32 %v662_v49, %v819_v61  ;;  %v665_v1 = vpop.f32.mrb[40].mxu1 }
 0x1e8   :  { %v666_v3 = vadd.f32 %v665_v1, %v8751_v22  ;;  %v667_v5 = vpop.f32.mrb[41].mxu1  ;;  %v8778_v6 = vpack.c.bf16 %v946_v62, %v942_v23 }
 0x1e9   :  { %v668_v7 = vadd.f32 %v667_v5, %v8756_v58  ;;  %v669_v8 = vpop.f32.mrb[42].mxu1  ;;  %v8781_v13 = vpack.c.bf16 %v947_v63, %v943_v59 }
 0x1ea   :  { %v822_v38 = vmul.f32 0.01, %v666_v3  ;;  %v670_v54 = vadd.f32 %v669_v8, %v8751_v22  ;;  %v671_v14 = vpop.f32.mrb[43].mxu1 }
 0x1eb   :  { %v823_v27 = vmul.f32 0.01, %v668_v7  ;;  %v672_v12 = vadd.f32 %v671_v14, %v8756_v58  ;;  %v7896_v14 = vld [vmem:[#allocation8 + $0x40] sm:$0xff]  }
 0x1ec   :  { %1644 = vmatmul.mubr.bf16.gmra.mrb[68].mxu0 %v8676_v17  ;;  %v950_v16 = vmax.f32 %v666_v3, %v822_v38  ;;  %v826_v19 = vmul.f32 0.01, %v670_v54  ;;  %6821 = vmatprep.subr.bf16.mxu1 %v7896_v14 }
 0x1ed   :  { %1653 = vmatprep.mubr.bf16.mxu0 %v8692_v10  ;;  %v951_v20 = vmax.f32 %v668_v7, %v823_v27  ;;  %v827_v21 = vmul.f32 0.01, %v672_v12 }
 0x1ee   :  { %v954_v24 = vmax.f32 %v670_v54, %v826_v19 }
 0x1ef   :  { %v955_v26 = vmax.f32 %v672_v12, %v827_v21  ;;  %v675_v28 = vpop.f32.mrb[44].mxu1 }
 0x1f0   :  { %v676_v29 = vadd.f32 %v675_v28, %v8751_v22  ;;  %v677_v31 = vpop.f32.mrb[45].mxu1  ;;  %v8788_v32 = vpack.c.bf16 %v954_v24, %v950_v16 }
 0x1f1   :  { %v678_v33 = vadd.f32 %v677_v31, %v8756_v58  ;;  %v679_v39 = vpop.f32.mrb[46].mxu1  ;;  %v8791_v40 = vpack.c.bf16 %v955_v26, %v951_v20 }
 0x1f2   :  { %v830_v17 = vmul.f32 0.01, %v676_v29  ;;  %v680_v41 = vadd.f32 %v679_v39, %v8751_v22  ;;  %v681_v43 = vpop.f32.mrb[47].mxu1 }
 0x1f3   :  { %v831_v10 = vmul.f32 0.01, %v678_v33  ;;  %v682_v44 = vadd.f32 %v681_v43, %v8756_v58 }
 0x1f4   :  { %1654 = vmatmul.mubr.bf16.gmra.mrb[72].mxu0 %v8688_v2  ;;  %v958_v45 = vmax.f32 %v676_v29, %v830_v17  ;;  %v834_v48 = vmul.f32 0.01, %v680_v41 }
 0x1f5   :  { %1663 = vmatprep.mubr.bf16.mxu0 %v8704_v60  ;;  %v959_v46 = vmax.f32 %v678_v33, %v831_v10  ;;  %v835_v53 = vmul.f32 0.01, %v682_v44 }
 0x1f6   :  { %v962_v35 = vmax.f32 %v680_v41, %v834_v48  ;;  %v7897_v41 = vld [vmem:[#allocation8] sm:$0xff]  }
 0x1f7   :  { %v963_v56 = vmax.f32 %v682_v44, %v835_v53  ;;  %v685_v49 = vpop.f32.mrb[48].mxu1  ;;  %6822 = vmatpush3.bf16.msra.mxu1 %v7897_v41 }
 0x1f8   :  { %v686_v23 = vadd.f32 %v685_v49, %v8751_v22  ;;  %v687_v57 = vpop.f32.mrb[49].mxu1  ;;  %v8798_v59 = vpack.c.bf16 %v962_v35, %v958_v45 }
 0x1f9   :  { %v688_v61 = vadd.f32 %v687_v57, %v8756_v58  ;;  %v689_v62 = vpop.f32.mrb[50].mxu1  ;;  %v8801_v63 = vpack.c.bf16 %v963_v56, %v959_v46 }
 0x1fa   :  { %v838_v2 = vmul.f32 0.01, %v686_v23  ;;  %v690_v1 = vadd.f32 %v689_v62, %v8751_v22  ;;  %v691_v3 = vpop.f32.mrb[51].mxu1 }
 0x1fb   :  { %v839_v60 = vmul.f32 0.01, %v688_v61  ;;  %v692_v5 = vadd.f32 %v691_v3, %v8756_v58 }
 0x1fc   :  { %1664 = vmatmul.mubr.bf16.gmra.mrb[76].mxu0 %v8700_v52  ;;  %v966_v7 = vmax.f32 %v686_v23, %v838_v2  ;;  %v842_v8 = vmul.f32 0.01, %v690_v1 }
 0x1fd   :  { %1673 = vmatprep.mubr.bf16.mxu0 %v8716_v47  ;;  %v967_v38 = vmax.f32 %v688_v61, %v839_v60  ;;  %v843_v54 = vmul.f32 0.01, %v692_v5 }
 0x1fe   :  { %v970_v27 = vmax.f32 %v690_v1, %v842_v8 }
 0x1ff   :  { %v971_v12 = vmax.f32 %v692_v5, %v843_v54  ;;  %v695_v16 = vpop.f32.mrb[52].mxu1  ;;  %v7898_v5 = vld [vmem:[#allocation8 + $0x48] sm:$0xff]  }
 0x200   :  { %v696_v19 = vadd.f32 %v695_v16, %v8751_v22  ;;  %v697_v20 = vpop.f32.mrb[53].mxu1  ;;  %v8808_v21 = vpack.c.bf16 %v970_v27, %v966_v7  ;;  %6823 = vmatprep.subr.bf16.mxu1 %v7898_v5 }
 0x201   :  { %v698_v24 = vadd.f32 %v697_v20, %v8756_v58  ;;  %v699_v26 = vpop.f32.mrb[54].mxu1  ;;  %v8811_v52 = vpack.c.bf16 %v971_v12, %v967_v38 }
 0x202   :  { %v846_v28 = vmul.f32 0.01, %v696_v19  ;;  %v700_v47 = vadd.f32 %v699_v26, %v8751_v22  ;;  %v701_v29 = vpop.f32.mrb[55].mxu1 }
 0x203   :  { %v847_v31 = vmul.f32 0.01, %v698_v24  ;;  %v702_v33 = vadd.f32 %v701_v29, %v8756_v58  ;;  %v7899_v29 = vld [vmem:[#allocation8 + $0x8] sm:$0xff]  }
 0x204   :  { %1674 = vmatmul.mubr.bf16.gmra.mrb[80].mxu0 %v8712_v37  ;;  %v974_v39 = vmax.f32 %v696_v19, %v846_v28  ;;  %v850_v17 = vmul.f32 0.01, %v700_v47  ;;  %6824 = vmatpush3.bf16.msra.mxu1 %v7899_v29  ;;  %v7906_v29 = vld [vmem:[#allocation8 + $0x68] sm:$0xff]  }
 0x205   :  { %1683 = vmatprep.mubr.bf16.mxu0 %v8728_v34  ;;  %v975_v43 = vmax.f32 %v698_v24, %v847_v31  ;;  %v851_v10 = vmul.f32 0.01, %v702_v33 }
 0x206   :  { %v978_v44 = vmax.f32 %v700_v47, %v850_v17 }
 0x207   :  { %v979_v45 = vmax.f32 %v702_v33, %v851_v10  ;;  %v705_v48 = vpop.f32.mrb[56].mxu1 }
 0x208   :  { %v706_v46 = vadd.f32 %v705_v48, %v8751_v22  ;;  %v707_v53 = vpop.f32.mrb[57].mxu1  ;;  %v8818_v35 = vpack.c.bf16 %v978_v44, %v974_v39 }
 0x209   :  { %v708_v56 = vadd.f32 %v707_v53, %v8756_v58  ;;  %v709_v49 = vpop.f32.mrb[58].mxu1  ;;  %v8821_v37 = vpack.c.bf16 %v979_v45, %v975_v43 }
 0x20a   :  { %v854_v23 = vmul.f32 0.01, %v706_v46  ;;  %v710_v57 = vadd.f32 %v709_v49, %v8751_v22  ;;  %v711_v34 = vpop.f32.mrb[59].mxu1 }
 0x20b   :  { %v855_v61 = vmul.f32 0.01, %v708_v56  ;;  %v712_v62 = vadd.f32 %v711_v34, %v8756_v58  ;;  %v7900_v34 = vld [vmem:[#allocation8 + $0x50] sm:$0xff]  }
 0x20c   :  { %1684 = vmatmul.mubr.bf16.gmra.mrb[84].mxu0 %v8724_v25  ;;  %v982_v2 = vmax.f32 %v706_v46, %v854_v23  ;;  %v858_v1 = vmul.f32 0.01, %v710_v57  ;;  %6825 = vmatprep.subr.bf16.mxu1 %v7900_v34  ;;  %v7909_v34 = vld [vmem:[#allocation8 + $0x30] sm:$0xff]  }
 0x20d   :  { %1693 = vmatprep.mubr.bf16.mxu0 %v8742_v30  ;;  %v983_v3 = vmax.f32 %v708_v56, %v855_v61  ;;  %v859_v60 = vmul.f32 0.01, %v712_v62  ;;  %v7901_v61 = vld [vmem:[#allocation8 + $0x10] sm:$0xff]  }
 0x20e   :  { %v986_v7 = vmax.f32 %v710_v57, %v858_v1  ;;  %6826 = vmatpush3.bf16.msra.mxu1 %v7901_v61 }
 0x20f   :  { %v987_v8 = vmax.f32 %v712_v62, %v859_v60  ;;  %v715_v38 = vpop.f32.mrb[60].mxu1  ;;  %v7902_v62 = vld [vmem:[#allocation8 + $0x58] sm:$0xff]  }
 0x210   :  { %v716_v54 = vadd.f32 %v715_v38, %v8751_v22  ;;  %v717_v14 = vpop.f32.mrb[61].mxu1  ;;  %v8828_v27 = vpack.c.bf16 %v986_v7, %v982_v2  ;;  %v7903_v7 = vld [vmem:[#allocation8 + $0x18] sm:$0xff]   ;;  %6827 = vmatprep.subr.bf16.mxu1 %v7902_v62 }
 0x211   :  { %v718_v12 = vadd.f32 %v717_v14, %v8756_v58  ;;  %v719_v16 = vpop.f32.mrb[62].mxu1  ;;  %v8831_v25 = vpack.c.bf16 %v987_v8, %v983_v3 }
 0x212   :  { %v862_v19 = vmul.f32 0.01, %v716_v54  ;;  %v720_v30 = vadd.f32 %v719_v16, %v8751_v22  ;;  %v721_v20 = vpop.f32.mrb[63].mxu1  ;;  %6828 = vmatpush3.bf16.msra.mxu1 %v7903_v7 }
 0x213   :  { %v863_v24 = vmul.f32 0.01, %v718_v12  ;;  %v722_v26 = vadd.f32 %v721_v20, %v8756_v58 }
 0x214   :  { %1694 = vmatmul.mubr.bf16.gmra.mrb[88].mxu0 %v8738_v18  ;;  %v990_v28 = vmax.f32 %v716_v54, %v862_v19  ;;  %v866_v47 = vmul.f32 0.01, %v720_v30 }
 0x215   :  { %1703 = vmatprep.mubr.bf16.mxu0 %v8762_v15  ;;  %v991_v31 = vmax.f32 %v718_v12, %v863_v24  ;;  %v867_v33 = vmul.f32 0.01, %v722_v26 }
 0x216   :  { %v994_v39 = vmax.f32 %v720_v30, %v866_v47 }
 0x217   :  { %v995_v17 = vmax.f32 %v722_v26, %v867_v33  ;;  %v725_v41 = vpop.f32.mrb[64].mxu1  ;;  %v7905_v26 = vld [vmem:[#allocation8 + $0x20] sm:$0xff]  }
 0x218   :  { %v726_v43 = vadd.f32 %v725_v41, %v8751_v22  ;;  %v727_v10 = vpop.f32.mrb[65].mxu1  ;;  %v8838_v44 = vpack.c.bf16 %v994_v39, %v990_v28 }
 0x219   :  { %v728_v45 = vadd.f32 %v727_v10, %v8756_v58  ;;  %v729_v48 = vpop.f32.mrb[66].mxu1  ;;  %v8841_v18 = vpack.c.bf16 %v995_v17, %v991_v31 }
 0x21a   :  { %v870_v46 = vmul.f32 0.01, %v726_v43  ;;  %v730_v53 = vadd.f32 %v729_v48, %v8751_v22  ;;  %v731_v15 = vpop.f32.mrb[67].mxu1 }
 0x21b   :  { %v871_v56 = vmul.f32 0.01, %v728_v45  ;;  %v732_v49 = vadd.f32 %v731_v15, %v8756_v58 }
 0x21c   :  { %1704 = vmatmul.mubr.bf16.gmra.mrb[92].mxu0 %v8759_v9  ;;  %v998_v23 = vmax.f32 %v726_v43, %v870_v46  ;;  %v874_v57 = vmul.f32 0.01, %v730_v53  ;;  %v7904_v9 = vld [vmem:[#allocation8 + $0x60] sm:$0xff]   ;;  %v7907_v43 = vld [vmem:[#allocation8 + $0x28] sm:$0xff]  }
 0x21d   :  { %1746 = vmatprep.mubr.bf16.mxu0 %v8771_v51  ;;  %v999_v2 = vmax.f32 %v728_v45, %v871_v56  ;;  %v875_v1 = vmul.f32 0.01, %v732_v49  ;;  %6829 = vmatprep.subr.bf16.mxu1 %v7904_v9 }
 0x21e   :  { %v1002_v3 = vmax.f32 %v730_v53, %v874_v57  ;;  %6830 = vmatpush3.bf16.msra.mxu1 %v7905_v26 }
 0x21f   :  { %v1003_v60 = vmax.f32 %v732_v49, %v875_v1  ;;  %v735_v5 = vpop.f32.mrb[68].mxu1  ;;  %6831 = vmatprep.subr.bf16.mxu1 %v7906_v29 }
 0x220   :  { %v736_v8 = vadd.f32 %v735_v5, %v8751_v22  ;;  %v737_v38 = vpop.f32.mrb[69].mxu1  ;;  %v8848_v54 = vpack.c.bf16 %v1002_v3, %v998_v23 }
 0x221   :  { %v738_v14 = vadd.f32 %v737_v38, %v8756_v58  ;;  %v739_v12 = vpop.f32.mrb[70].mxu1  ;;  %v8851_v16 = vpack.c.bf16 %v1003_v60, %v999_v2  ;;  %v7910_v2 = vld [vmem:[#allocation8 + $0x78] sm:$0xff]  }
 0x222   :  { %v878_v51 = vmul.f32 0.01, %v736_v8  ;;  %v740_v19 = vadd.f32 %v739_v12, %v8751_v22  ;;  %v741_v30 = vpop.f32.mrb[71].mxu1  ;;  %6832 = vmatpush3.bf16.msra.mxu1 %v7907_v43 }
 0x223   :  { %v879_v20 = vmul.f32 0.01, %v738_v14  ;;  %v742_v24 = vadd.f32 %v741_v30, %v8756_v58 }
 0x224   :  { %1747 = vmatmul.mubr.bf16.vlgmr.msra.gmra.mrb[32].mxu0 %v8767_v42  ;;  %v1006_v28 = vmax.f32 %v736_v8, %v878_v51  ;;  %v882_v47 = vmul.f32 0.01, %v740_v19  ;;  %v7908_v42 = vld [vmem:[#allocation8 + $0x70] sm:$0xff]   ;;  %v7911_v8 = vld [vmem:[#allocation8 + $0x38] sm:$0xff]  }
 0x225   :  { %1756 = vmatprep.mubr.bf16.mxu0 %v8781_v13  ;;  %v1007_v31 = vmax.f32 %v738_v14, %v879_v20  ;;  %v883_v33 = vmul.f32 0.01, %v742_v24  ;;  %6833 = vmatprep.subr.bf16.mxu1 %v7908_v42 }
 0x226   :  { %v1010_v39 = vmax.f32 %v740_v19, %v882_v47  ;;  %6834 = vmatpush3.bf16.msra.mxu1 %v7909_v34 }
 0x227   :  { %v1011_v17 = vmax.f32 %v742_v24, %v883_v33  ;;  %v745_v41 = vpop.f32.mrb[72].mxu1  ;;  %6835 = vmatprep.subr.bf16.mxu1 %v7910_v2 }
 0x228   :  { %v746_v10 = vadd.f32 %v745_v41, %v8751_v22  ;;  %v747_v45 = vpop.f32.mrb[73].mxu1  ;;  %v8858_v48 = vpack.c.bf16 %v1010_v39, %v1006_v28 }
 0x229   :  { %v748_v46 = vadd.f32 %v747_v45, %v8756_v58  ;;  %v749_v53 = vpop.f32.mrb[74].mxu1  ;;  %v8861_v15 = vpack.c.bf16 %v1011_v17, %v1007_v31 }
 0x22a   :  { %v886_v13 = vmul.f32 0.01, %v746_v10  ;;  %v750_v56 = vadd.f32 %v749_v53, %v8751_v22  ;;  %v751_v49 = vpop.f32.mrb[75].mxu1  ;;  %6836 = vmatpush3.bf16.msra.mxu1 %v7911_v8 }
 0x22b   :  { %v887_v23 = vmul.f32 0.01, %v748_v46  ;;  %v752_v57 = vadd.f32 %v751_v49, %v8756_v58 }
 0x22c   :  { %1757 = vmatmul.mubr.bf16.gmra.mrb[36].mxu0 %v8778_v6  ;;  %v1014_v61 = vmax.f32 %v746_v10, %v886_v13  ;;  %v890_v62 = vmul.f32 0.01, %v750_v56 }
 0x22d   :  { %1766 = vmatprep.mubr.bf16.mxu0 %v8791_v40  ;;  %v1015_v1 = vmax.f32 %v748_v46, %v887_v23  ;;  %v891_v3 = vmul.f32 0.01, %v752_v57 }
 0x22e   :  { %v1018_v60 = vmax.f32 %v750_v56, %v890_v62 }
 0x22f   :  { %v1019_v5 = vmax.f32 %v752_v57, %v891_v3  ;;  %v755_v7 = vpop.f32.mrb[76].mxu1 }
 0x230   :  { %v756_v38 = vadd.f32 %v755_v7, %v8751_v22  ;;  %v757_v9 = vpop.f32.mrb[77].mxu1  ;;  %v8868_v14 = vpack.c.bf16 %v1018_v60, %v1014_v61 }
 0x231   :  { %v758_v6 = vadd.f32 %v757_v9, %v8756_v58  ;;  %v759_v12 = vpop.f32.mrb[78].mxu1  ;;  %v8871_v51 = vpack.c.bf16 %v1019_v5, %v1015_v1 }
 0x232   :  { %v894_v19 = vmul.f32 0.01, %v756_v38  ;;  %v760_v40 = vadd.f32 %v759_v12, %v8751_v22  ;;  %v761_v30 = vpop.f32.mrb[79].mxu1 }
 0x233   :  { %v895_v20 = vmul.f32 0.01, %v758_v6  ;;  %v762_v24 = vadd.f32 %v761_v30, %v8756_v58 }
 0x234   :  { %1767 = vmatmul.mubr.bf16.gmra.mrb[40].mxu0 %v8788_v32  ;;  %v1022_v26 = vmax.f32 %v756_v38, %v894_v19  ;;  %v898_v28 = vmul.f32 0.01, %v760_v40 }
 0x235   :  { %1776 = vmatprep.mubr.bf16.mxu0 %v8801_v63  ;;  %v1023_v47 = vmax.f32 %v758_v6, %v895_v20  ;;  %v899_v29 = vmul.f32 0.01, %v762_v24 }
 0x236   :  { %v1026_v31 = vmax.f32 %v760_v40, %v898_v28 }
 0x237   :  { %v1027_v33 = vmax.f32 %v762_v24, %v899_v29  ;;  %v765_v39 = vpop.f32.mrb[80].mxu1 }
 0x238   :  { %v766_v17 = vadd.f32 %v765_v39, %v8751_v22  ;;  %v767_v41 = vpop.f32.mrb[81].mxu1  ;;  %v8878_v43 = vpack.c.bf16 %v1026_v31, %v1022_v26 }
 0x239   :  { %v768_v10 = vadd.f32 %v767_v41, %v8756_v58  ;;  %v769_v45 = vpop.f32.mrb[82].mxu1  ;;  %v8881_v42 = vpack.c.bf16 %v1027_v33, %v1023_v47 }
 0x23a   :  { %v902_v32 = vmul.f32 0.01, %v766_v17  ;;  %v770_v46 = vadd.f32 %v769_v45, %v8751_v22  ;;  %v771_v53 = vpop.f32.mrb[83].mxu1 }
 0x23b   :  { %v903_v63 = vmul.f32 0.01, %v768_v10  ;;  %v772_v13 = vadd.f32 %v771_v53, %v8756_v58 }
 0x23c   :  { %1777 = vmatmul.mubr.bf16.gmra.mrb[44].mxu0 %v8798_v59  ;;  %v1030_v56 = vmax.f32 %v766_v17, %v902_v32  ;;  %v906_v49 = vmul.f32 0.01, %v770_v46 }
 0x23d   :  { %1786 = vmatprep.mubr.bf16.mxu0 %v8811_v52  ;;  %v1031_v23 = vmax.f32 %v768_v10, %v903_v63  ;;  %v907_v57 = vmul.f32 0.01, %v772_v13 }
 0x23e   :  { %v1034_v34 = vmax.f32 %v770_v46, %v906_v49 }
 0x23f   :  { %v1035_v61 = vmax.f32 %v772_v13, %v907_v57  ;;  %v775_v62 = vpop.f32.mrb[84].mxu1 }
 0x240   :  { %v776_v2 = vadd.f32 %v775_v62, %v8751_v22  ;;  %v777_v1 = vpop.f32.mrb[85].mxu1  ;;  %v8888_v3 = vpack.c.bf16 %v1034_v34, %v1030_v56 }
 0x241   :  { %v778_v60 = vadd.f32 %v777_v1, %v8756_v58  ;;  %v779_v5 = vpop.f32.mrb[86].mxu1  ;;  %v8891_v7 = vpack.c.bf16 %v1035_v61, %v1031_v23 }
 0x242   :  { %v910_v59 = vmul.f32 0.01, %v776_v2  ;;  %v780_v8 = vadd.f32 %v779_v5, %v8751_v22  ;;  %v781_v38 = vpop.f32.mrb[87].mxu1 }
 0x243   :  { %v911_v52 = vmul.f32 0.01, %v778_v60  ;;  %v782_v9 = vadd.f32 %v781_v38, %v8756_v58 }
 0x244   :  { %1787 = vmatmul.mubr.bf16.gmra.mrb[48].mxu0 %v8808_v21  ;;  %v1038_v6 = vmax.f32 %v776_v2, %v910_v59  ;;  %v914_v12 = vmul.f32 0.01, %v780_v8 }
 0x245   :  { %1796 = vmatprep.mubr.bf16.mxu0 %v8821_v37  ;;  %v1039_v19 = vmax.f32 %v778_v60, %v911_v52  ;;  %v915_v40 = vmul.f32 0.01, %v782_v9 }
 0x246   :  { %v1042_v30 = vmax.f32 %v780_v8, %v914_v12 }
 0x247   :  { %v1043_v20 = vmax.f32 %v782_v9, %v915_v40  ;;  %v785_v24 = vpop.f32.mrb[88].mxu1 }
 0x248   :  { %v786_v26 = vadd.f32 %v785_v24, %v8751_v22  ;;  %v787_v28 = vpop.f32.mrb[89].mxu1  ;;  %v1114_v47 = vpack.c.bf16 %v1042_v30, %v1038_v6 }
 0x249   :  { %v788_v29 = vadd.f32 %v787_v28, %v8756_v58  ;;  %v789_v31 = vpop.f32.mrb[90].mxu1  ;;  %v1115_v33 = vpack.c.bf16 %v1043_v20, %v1039_v19 }
 0x24a   :  { %v918_v39 = vmul.f32 0.01, %v786_v26  ;;  %v790_v21 = vadd.f32 %v789_v31, %v8751_v22  ;;  %v791_v17 = vpop.f32.mrb[91].mxu1 }
 0x24b   :  { %v919_v41 = vmul.f32 0.01, %v788_v29  ;;  %v792_v37 = vadd.f32 %v791_v17, %v8756_v58 }
 0x24c   :  { %1797 = vmatmul.mubr.bf16.gmra.mrb[52].mxu0 %v8818_v35  ;;  %v1046_v10 = vmax.f32 %v786_v26, %v918_v39  ;;  %v922_v45 = vmul.f32 0.01, %v790_v21 }
 0x24d   :  { %1806 = vmatprep.mubr.bf16.mxu0 %v8831_v25  ;;  %v1047_v32 = vmax.f32 %v788_v29, %v919_v41  ;;  %v923_v46 = vmul.f32 0.01, %v792_v37  ;;  %v7913_v41 = vld [vmem:[#allocation14 + $0x8] sm:$0xff]  }
 0x24e   :  { %v1050_v53 = vmax.f32 %v790_v21, %v922_v45 }
 0x24f   :  { %v1051_v63 = vmax.f32 %v792_v37, %v923_v46  ;;  %v795_v13 = vpop.f32.mrb[92].mxu1 }
 0x250   :  { %v796_v56 = vadd.f32 %v795_v13, %v8751_v22  ;;  %v797_v49 = vpop.f32.mrb[93].mxu1  ;;  %v1118_v23 = vpack.c.bf16 %v1050_v53, %v1046_v10 }
 0x251   :  { %v798_v57 = vadd.f32 %v797_v49, %v8756_v58  ;;  %v799_v34 = vpop.f32.mrb[94].mxu1  ;;  %v1119_v61 = vpack.c.bf16 %v1051_v63, %v1047_v32  ;;  %v7914_v63 = vld [vmem:[#allocation14 + $0x10] sm:$0xff]  }
 0x252   :  { %v926_v62 = vmul.f32 0.01, %v796_v56  ;;  %v800_v35 = vadd.f32 %v799_v34, %v8751_v22  ;;  %v801_v2 = vpop.f32.mrb[95].mxu1  ;;  %v7912_v22 = vld [vmem:[#allocation14] sm:$0xff]  }
 0x253   :  { %v927_v1 = vmul.f32 0.01, %v798_v57  ;;  %v802_v25 = vadd.f32 %v801_v2, %v8756_v58  ;;  %v1189_v58 = vld [vmem:[#allocation16 + $0x1] ss:$8 sm:$0x3]  ;;  %7301 = vmatprep.subr.bf16.mxu1 %v7912_v22 }
 0x254   :  { %1807 = vmatmul.mubr.bf16.gmra.mrb[56].mxu0 %v8828_v27  ;;  %v1054_v60 = vmax.f32 %v796_v56, %v926_v62  ;;  %v930_v5 = vmul.f32 0.01, %v800_v35  ;;  %v8921_v27 = vrot.slane %v1189_v58, %v8639_v50 }
 0x255   :  { %1816 = vmatprep.mubr.bf16.mxu0 %v8841_v18  ;;  %v1055_v59 = vmax.f32 %v798_v57, %v927_v1  ;;  %v931_v8 = vmul.f32 0.01, %v802_v25 }
 0x256   :  { %v1058_v38 = vmax.f32 %v800_v35, %v930_v5 }
 0x257   :  { %v1059_v52 = vmax.f32 %v802_v25, %v931_v8 }
 0x258   :  { %v1122_v9 = vpack.c.bf16 %v1058_v38, %v1054_v60  ;;  %v7915_v60 = vld [vmem:[#allocation14 + $0x18] sm:$0xff]  }
 0x259   :  { %v1123_v6 = vpack.c.bf16 %v1059_v52, %v1055_v59 }
 0x25c   :  { %1817 = vmatmul.mubr.bf16.gmra.mrb[60].mxu0 %v8838_v44  ;;  %v8924_v44 = vrot.slane %v1189_v58, %v8644_v55 }
 0x25d   :  { %1826 = vmatprep.mubr.bf16.mxu0 %v8851_v16 }
 0x264   :  { %1827 = vmatmul.mubr.bf16.gmra.mrb[64].mxu0 %v8848_v54 }
 0x265   :  { %1836 = vmatprep.mubr.bf16.mxu0 %v8861_v15 }
 0x26c   :  { %1837 = vmatmul.mubr.bf16.gmra.mrb[68].mxu0 %v8858_v48 }
 0x26d   :  { %1846 = vmatprep.mubr.bf16.mxu0 %v8871_v51 }
 0x274   :  { %1847 = vmatmul.mubr.bf16.gmra.mrb[72].mxu0 %v8868_v14 }
 0x275   :  { %1856 = vmatprep.mubr.bf16.mxu0 %v8881_v42 }
 0x27c   :  { %1857 = vmatmul.mubr.bf16.gmra.mrb[76].mxu0 %v8878_v43 }
 0x27d   :  { %1866 = vmatprep.mubr.bf16.mxu0 %v8891_v7 }
 0x284   :  { %1867 = vmatmul.mubr.bf16.gmra.mrb[80].mxu0 %v8888_v3 }
 0x285   :  { %1876 = vmatprep.mubr.bf16.mxu0 %v1115_v33 }
 0x28c   :  { %1877 = vmatmul.mubr.bf16.gmra.mrb[84].mxu0 %v1114_v47 }
 0x28d   :  { %1886 = vmatprep.mubr.bf16.mxu0 %v1119_v61 }
 0x294   :  { %1887 = vmatmul.mubr.bf16.gmra.mrb[88].mxu0 %v1118_v23 }
 0x295   :  { %1896 = vmatprep.mubr.bf16.mxu0 %v1123_v6  ;;  %v7916_v6 = vld [vmem:[#allocation14 + $0x20] sm:$0xff]  }
 0x29c   :  { %1897 = vmatmul.mubr.bf16.gmra.mrb[92].mxu0 %v1122_v9 }
 0x2f7   :  { %v1748_v18 = vpop.f32.mrb[32].mxu0 }
 0x2f8   :  { %v7605_v54 = vadd.f32 %v1748_v18, %v8921_v27  ;;  %v1750_v16 = vpop.f32.mrb[33].mxu0 }
 0x2f9   :  { %v7606_v48 = vadd.f32 %v1750_v16, %v8924_v44  ;;  %v1752_v15 = vpop.f32.mrb[34].mxu0 }
 0x2fa   :  { %v1907_v14 = vmul.f32 0.01, %v7605_v54  ;;  %v7607_v51 = vadd.f32 %v1752_v15, %v8921_v27  ;;  %v1754_v43 = vpop.f32.mrb[35].mxu0 }
 0x2fb   :  { %v1908_v42 = vmul.f32 0.01, %v7606_v48  ;;  %v7608_v3 = vadd.f32 %v1754_v43, %v8924_v44 }
 0x2fc   :  { %v1909_v7 = vmul.f32 0.01, %v7607_v51  ;;  %v1971_v19 = vmax.f32 %v7605_v54, %v1907_v14 }
 0x2fd   :  { %v1910_v12 = vmul.f32 0.01, %v7608_v3  ;;  %v1972_v30 = vmax.f32 %v7606_v48, %v1908_v42 }
 0x2fe   :  { %v1973_v40 = vmax.f32 %v7607_v51, %v1909_v7  ;;  %v7917_v7 = vld [vmem:[#allocation14 + $0x28] sm:$0xff]  }
 0x2ff   :  { %v1974_v20 = vmax.f32 %v7608_v3, %v1910_v12  ;;  %v1758_v24 = vpop.f32.mrb[36].mxu0 }
 0x300   :  { %v2035_v26 = vpack.c.bf16 %v1973_v40, %v1971_v19  ;;  %v7609_v28 = vadd.f32 %v1758_v24, %v8921_v27  ;;  %v1760_v47 = vpop.f32.mrb[37].mxu0 }
 0x301   :  { %v7610_v29 = vadd.f32 %v1760_v47, %v8924_v44  ;;  %v1762_v31 = vpop.f32.mrb[38].mxu0  ;;  %v2036_v33 = vpack.c.bf16 %v1974_v20, %v1972_v30 }
 0x302   :  { %v1911_v39 = vmul.f32 0.01, %v7609_v28  ;;  %v7611_v21 = vadd.f32 %v1762_v31, %v8921_v27  ;;  %v1764_v17 = vpop.f32.mrb[39].mxu0 }
 0x303   :  { %v1912_v37 = vmul.f32 0.01, %v7610_v29  ;;  %v7612_v10 = vadd.f32 %v1764_v17, %v8924_v44  ;;  %2228 = vmatprep.mubr.bf16.mxu1 %v2036_v33 }
 0x304   :  { %v1913_v45 = vmul.f32 0.01, %v7611_v21  ;;  %2229 = vmatmul.mubr.bf16.vlgmr.msra.gmra.mrb[96].mxu1 %v2035_v26  ;;  %v1975_v46 = vmax.f32 %v7609_v28, %v1911_v39  ;;  %v7918_v26 = vld [vmem:[#allocation14 + $0x30] sm:$0xff]  }
 0x305   :  { %v1914_v32 = vmul.f32 0.01, %v7612_v10  ;;  %7302 = vmatpush3.bf16.msra.mxu1 %v7912_v22  ;;  %v1976_v13 = vmax.f32 %v7610_v29, %v1912_v37 }
 0x306   :  { %v1977_v53 = vmax.f32 %v7611_v21, %v1913_v45  ;;  %7303 = vmatprep.subr.bf16.mxu1 %v7913_v41 }
 0x307   :  { %v1978_v56 = vmax.f32 %v7612_v10, %v1914_v32  ;;  %v1768_v49 = vpop.f32.mrb[40].mxu0 }
 0x308   :  { %v7613_v23 = vadd.f32 %v1768_v49, %v8921_v27  ;;  %v1770_v57 = vpop.f32.mrb[41].mxu0  ;;  %v2037_v34 = vpack.c.bf16 %v1977_v53, %v1975_v46 }
 0x309   :  { %v7614_v61 = vadd.f32 %v1770_v57, %v8924_v44  ;;  %v1772_v62 = vpop.f32.mrb[42].mxu0  ;;  %v2038_v35 = vpack.c.bf16 %v1978_v56, %v1976_v13  ;;  %7304 = vmatpush3.bf16.msra.mxu1 %v7913_v41 }
 0x30a   :  { %v1915_v2 = vmul.f32 0.01, %v7613_v23  ;;  %v7615_v1 = vadd.f32 %v1772_v62, %v8921_v27  ;;  %v1774_v25 = vpop.f32.mrb[43].mxu0  ;;  %7305 = vmatprep.subr.bf16.mxu1 %v7914_v63 }
 0x30b   :  { %v1916_v5 = vmul.f32 0.01, %v7614_v61  ;;  %v7616_v59 = vadd.f32 %v1774_v25, %v8924_v44  ;;  %2236 = vmatprep.mubr.bf16.mxu1 %v2038_v35 }
 0x30c   :  { %v1917_v8 = vmul.f32 0.01, %v7615_v1  ;;  %2237 = vmatmul.mubr.bf16.gmra.mrb[100].mxu1 %v2037_v34  ;;  %v1979_v52 = vmax.f32 %v7613_v23, %v1915_v2 }
 0x30d   :  { %v1918_v38 = vmul.f32 0.01, %v7616_v59  ;;  %7306 = vmatpush3.bf16.msra.mxu1 %v7914_v63  ;;  %v1980_v22 = vmax.f32 %v7614_v61, %v1916_v5 }
 0x30e   :  { %v1981_v9 = vmax.f32 %v7615_v1, %v1917_v8  ;;  %7307 = vmatprep.subr.bf16.mxu1 %v7915_v60 }
 0x30f   :  { %v1982_v58 = vmax.f32 %v7616_v59, %v1918_v38  ;;  %v1778_v18 = vpop.f32.mrb[44].mxu0 }
 0x310   :  { %v7617_v54 = vadd.f32 %v1778_v18, %v8921_v27  ;;  %v1780_v16 = vpop.f32.mrb[45].mxu0  ;;  %v2039_v48 = vpack.c.bf16 %v1981_v9, %v1979_v52 }
 0x311   :  { %v7618_v15 = vadd.f32 %v1780_v16, %v8924_v44  ;;  %v1782_v14 = vpop.f32.mrb[46].mxu0  ;;  %v2040_v51 = vpack.c.bf16 %v1982_v58, %v1980_v22  ;;  %7308 = vmatpush3.bf16.msra.mxu1 %v7915_v60 }
 0x312   :  { %v1919_v43 = vmul.f32 0.01, %v7617_v54  ;;  %v7619_v42 = vadd.f32 %v1782_v14, %v8921_v27  ;;  %v1784_v3 = vpop.f32.mrb[47].mxu0  ;;  %7309 = vmatprep.subr.bf16.mxu1 %v7916_v6 }
 0x313   :  { %v1920_v12 = vmul.f32 0.01, %v7618_v15  ;;  %v7620_v19 = vadd.f32 %v1784_v3, %v8924_v44  ;;  %2244 = vmatprep.mubr.bf16.mxu1 %v2040_v51 }
 0x314   :  { %v1921_v40 = vmul.f32 0.01, %v7619_v42  ;;  %2245 = vmatmul.mubr.bf16.gmra.mrb[104].mxu1 %v2039_v48  ;;  %v1983_v20 = vmax.f32 %v7617_v54, %v1919_v43 }
 0x315   :  { %v1922_v30 = vmul.f32 0.01, %v7620_v19  ;;  %7310 = vmatpush3.bf16.msra.mxu1 %v7916_v6  ;;  %v1984_v28 = vmax.f32 %v7618_v15, %v1920_v12 }
 0x316   :  { %v1985_v24 = vmax.f32 %v7619_v42, %v1921_v40  ;;  %7311 = vmatprep.subr.bf16.mxu1 %v7917_v7 }
 0x317   :  { %v1986_v47 = vmax.f32 %v7620_v19, %v1922_v30  ;;  %v1788_v29 = vpop.f32.mrb[48].mxu0 }
 0x318   :  { %v7621_v31 = vadd.f32 %v1788_v29, %v8921_v27  ;;  %v1790_v33 = vpop.f32.mrb[49].mxu0  ;;  %v2041_v39 = vpack.c.bf16 %v1985_v24, %v1983_v20 }
 0x319   :  { %v7622_v21 = vadd.f32 %v1790_v33, %v8924_v44  ;;  %v1792_v17 = vpop.f32.mrb[50].mxu0  ;;  %v2042_v41 = vpack.c.bf16 %v1986_v47, %v1984_v28  ;;  %7312 = vmatpush3.bf16.msra.mxu1 %v7917_v7 }
 0x31a   :  { %v1923_v37 = vmul.f32 0.01, %v7621_v31  ;;  %v7623_v10 = vadd.f32 %v1792_v17, %v8921_v27  ;;  %v1794_v45 = vpop.f32.mrb[51].mxu0  ;;  %7313 = vmatprep.subr.bf16.mxu1 %v7918_v26 }
 0x31b   :  { %v1924_v32 = vmul.f32 0.01, %v7622_v21  ;;  %v7624_v46 = vadd.f32 %v1794_v45, %v8924_v44  ;;  %2252 = vmatprep.mubr.bf16.mxu1 %v2042_v41 }
 0x31c   :  { %v1925_v53 = vmul.f32 0.01, %v7623_v10  ;;  %2253 = vmatmul.mubr.bf16.gmra.mrb[108].mxu1 %v2041_v39  ;;  %v1987_v13 = vmax.f32 %v7621_v31, %v1923_v37 }
 0x31d   :  { %v1926_v63 = vmul.f32 0.01, %v7624_v46  ;;  %7314 = vmatpush3.bf16.msra.mxu1 %v7918_v26  ;;  %v1988_v49 = vmax.f32 %v7622_v21, %v1924_v32 }
 0x31e   :  { %v1989_v56 = vmax.f32 %v7623_v10, %v1925_v53 }
 0x31f   :  { %v1990_v23 = vmax.f32 %v7624_v46, %v1926_v63  ;;  %v1798_v57 = vpop.f32.mrb[52].mxu0 }
 0x320   :  { %v7625_v34 = vadd.f32 %v1798_v57, %v8921_v27  ;;  %v1800_v61 = vpop.f32.mrb[53].mxu0  ;;  %v2043_v62 = vpack.c.bf16 %v1989_v56, %v1987_v13 }
 0x321   :  { %v7626_v35 = vadd.f32 %v1800_v61, %v8924_v44  ;;  %v1802_v2 = vpop.f32.mrb[54].mxu0  ;;  %v2044_v1 = vpack.c.bf16 %v1990_v23, %v1988_v49 }
 0x322   :  { %v1927_v25 = vmul.f32 0.01, %v7625_v34  ;;  %v7627_v60 = vadd.f32 %v1802_v2, %v8921_v27  ;;  %v1804_v5 = vpop.f32.mrb[55].mxu0 }
 0x323   :  { %v1928_v59 = vmul.f32 0.01, %v7626_v35  ;;  %v7628_v8 = vadd.f32 %v1804_v5, %v8924_v44  ;;  %2260 = vmatprep.mubr.bf16.mxu1 %v2044_v1 }
 0x324   :  { %v1929_v38 = vmul.f32 0.01, %v7627_v60  ;;  %2261 = vmatmul.mubr.bf16.gmra.mrb[112].mxu1 %v2043_v62  ;;  %v1991_v9 = vmax.f32 %v7625_v34, %v1927_v25 }
 0x325   :  { %v1930_v52 = vmul.f32 0.01, %v7628_v8  ;;  %v1992_v22 = vmax.f32 %v7626_v35, %v1928_v59 }
 0x326   :  { %v1993_v6 = vmax.f32 %v7627_v60, %v1929_v38 }
 0x327   :  { %v1994_v58 = vmax.f32 %v7628_v8, %v1930_v52  ;;  %v1808_v18 = vpop.f32.mrb[56].mxu0 }
 0x328   :  { %v7629_v54 = vadd.f32 %v1808_v18, %v8921_v27  ;;  %v1810_v16 = vpop.f32.mrb[57].mxu0  ;;  %v2045_v48 = vpack.c.bf16 %v1993_v6, %v1991_v9 }
 0x329   :  { %v7630_v15 = vadd.f32 %v1810_v16, %v8924_v44  ;;  %v1812_v14 = vpop.f32.mrb[58].mxu0  ;;  %v2046_v51 = vpack.c.bf16 %v1994_v58, %v1992_v22 }
 0x32a   :  { %v1931_v43 = vmul.f32 0.01, %v7629_v54  ;;  %v7631_v42 = vadd.f32 %v1812_v14, %v8921_v27  ;;  %v1814_v3 = vpop.f32.mrb[59].mxu0 }
 0x32b   :  { %v1932_v7 = vmul.f32 0.01, %v7630_v15  ;;  %v7632_v12 = vadd.f32 %v1814_v3, %v8924_v44  ;;  %2268 = vmatprep.mubr.bf16.mxu1 %v2046_v51 }
 0x32c   :  { %v1933_v19 = vmul.f32 0.01, %v7631_v42  ;;  %2269 = vmatmul.mubr.bf16.gmra.mrb[116].mxu1 %v2045_v48  ;;  %v1995_v30 = vmax.f32 %v7629_v54, %v1931_v43 }
 0x32d   :  { %v1934_v40 = vmul.f32 0.01, %v7632_v12  ;;  %v1996_v24 = vmax.f32 %v7630_v15, %v1932_v7 }
 0x32e   :  { %v1997_v20 = vmax.f32 %v7631_v42, %v1933_v19 }
 0x32f   :  { %v1998_v26 = vmax.f32 %v7632_v12, %v1934_v40  ;;  %v1818_v28 = vpop.f32.mrb[60].mxu0 }
 0x330   :  { %v7633_v47 = vadd.f32 %v1818_v28, %v8921_v27  ;;  %v1820_v29 = vpop.f32.mrb[61].mxu0  ;;  %v2047_v31 = vpack.c.bf16 %v1997_v20, %v1995_v30 }
 0x331   :  { %v7634_v33 = vadd.f32 %v1820_v29, %v8924_v44  ;;  %v1822_v39 = vpop.f32.mrb[62].mxu0  ;;  %v2048_v21 = vpack.c.bf16 %v1998_v26, %v1996_v24 }
 0x332   :  { %v1935_v17 = vmul.f32 0.01, %v7633_v47  ;;  %v7635_v41 = vadd.f32 %v1822_v39, %v8921_v27  ;;  %v1824_v37 = vpop.f32.mrb[63].mxu0 }
 0x333   :  { %v1936_v10 = vmul.f32 0.01, %v7634_v33  ;;  %v7636_v45 = vadd.f32 %v1824_v37, %v8924_v44  ;;  %2276 = vmatprep.mubr.bf16.mxu1 %v2048_v21 }
 0x334   :  { %v1937_v32 = vmul.f32 0.01, %v7635_v41  ;;  %2277 = vmatmul.mubr.bf16.gmra.mrb[120].mxu1 %v2047_v31  ;;  %v1999_v53 = vmax.f32 %v7633_v47, %v1935_v17 }
 0x335   :  { %v1938_v46 = vmul.f32 0.01, %v7636_v45  ;;  %v2000_v13 = vmax.f32 %v7634_v33, %v1936_v10 }
 0x336   :  { %v2001_v63 = vmax.f32 %v7635_v41, %v1937_v32 }
 0x337   :  { %v2002_v56 = vmax.f32 %v7636_v45, %v1938_v46  ;;  %v1828_v49 = vpop.f32.mrb[64].mxu0 }
 0x338   :  { %v7637_v23 = vadd.f32 %v1828_v49, %v8921_v27  ;;  %v1830_v57 = vpop.f32.mrb[65].mxu0  ;;  %v2049_v34 = vpack.c.bf16 %v2001_v63, %v1999_v53 }
 0x339   :  { %v7638_v61 = vadd.f32 %v1830_v57, %v8924_v44  ;;  %v1832_v62 = vpop.f32.mrb[66].mxu0  ;;  %v2050_v35 = vpack.c.bf16 %v2002_v56, %v2000_v13 }
 0x33a   :  { %v1939_v2 = vmul.f32 0.01, %v7637_v23  ;;  %v7639_v1 = vadd.f32 %v1832_v62, %v8921_v27  ;;  %v1834_v25 = vpop.f32.mrb[67].mxu0 }
 0x33b   :  { %v1940_v60 = vmul.f32 0.01, %v7638_v61  ;;  %v7640_v5 = vadd.f32 %v1834_v25, %v8924_v44  ;;  %2284 = vmatprep.mubr.bf16.mxu1 %v2050_v35 }
 0x33c   :  { %v1941_v59 = vmul.f32 0.01, %v7639_v1  ;;  %2285 = vmatmul.mubr.bf16.gmra.mrb[124].mxu1 %v2049_v34  ;;  %v2003_v38 = vmax.f32 %v7637_v23, %v1939_v2 }
 0x33d   :  { %v1942_v8 = vmul.f32 0.01, %v7640_v5  ;;  %v2004_v9 = vmax.f32 %v7638_v61, %v1940_v60 }
 0x33e   :  { %v2005_v52 = vmax.f32 %v7639_v1, %v1941_v59 }
 0x33f   :  { %v2006_v6 = vmax.f32 %v7640_v5, %v1942_v8  ;;  %v1838_v22 = vpop.f32.mrb[68].mxu0 }
 0x340   :  { %v7641_v58 = vadd.f32 %v1838_v22, %v8921_v27  ;;  %v1840_v18 = vpop.f32.mrb[69].mxu0  ;;  %v2051_v54 = vpack.c.bf16 %v2005_v52, %v2003_v38 }
 0x341   :  { %v7642_v16 = vadd.f32 %v1840_v18, %v8924_v44  ;;  %v1842_v48 = vpop.f32.mrb[70].mxu0  ;;  %v2052_v15 = vpack.c.bf16 %v2006_v6, %v2004_v9 }
 0x342   :  { %v1943_v14 = vmul.f32 0.01, %v7641_v58  ;;  %v7643_v51 = vadd.f32 %v1842_v48, %v8921_v27  ;;  %v1844_v43 = vpop.f32.mrb[71].mxu0 }
 0x343   :  { %v1944_v42 = vmul.f32 0.01, %v7642_v16  ;;  %v7644_v3 = vadd.f32 %v1844_v43, %v8924_v44  ;;  %2292 = vmatprep.mubr.bf16.mxu1 %v2052_v15 }
 0x344   :  { %v1945_v7 = vmul.f32 0.01, %v7643_v51  ;;  %2293 = vmatmul.mubr.bf16.gmra.mrb[128].mxu1 %v2051_v54  ;;  %v2007_v19 = vmax.f32 %v7641_v58, %v1943_v14 }
 0x345   :  { %v1946_v12 = vmul.f32 0.01, %v7644_v3  ;;  %v2008_v30 = vmax.f32 %v7642_v16, %v1944_v42 }
 0x346   :  { %v2009_v40 = vmax.f32 %v7643_v51, %v1945_v7 }
 0x347   :  { %v2010_v20 = vmax.f32 %v7644_v3, %v1946_v12  ;;  %v1848_v24 = vpop.f32.mrb[72].mxu0 }
 0x348   :  { %v7645_v26 = vadd.f32 %v1848_v24, %v8921_v27  ;;  %v1850_v28 = vpop.f32.mrb[73].mxu0  ;;  %v2053_v47 = vpack.c.bf16 %v2009_v40, %v2007_v19 }
 0x349   :  { %v7646_v29 = vadd.f32 %v1850_v28, %v8924_v44  ;;  %v1852_v31 = vpop.f32.mrb[74].mxu0  ;;  %v2054_v33 = vpack.c.bf16 %v2010_v20, %v2008_v30  ;;  %v7919_v20 = vld [vmem:[#allocation14 + $0x38] sm:$0xff]  }
 0x34a   :  { %v1947_v39 = vmul.f32 0.01, %v7645_v26  ;;  %v7647_v21 = vadd.f32 %v1852_v31, %v8921_v27  ;;  %v1854_v17 = vpop.f32.mrb[75].mxu0  ;;  %7315 = vmatprep.subr.bf16.mxu1 %v7919_v20 }
 0x34b   :  { %v1948_v41 = vmul.f32 0.01, %v7646_v29  ;;  %v7648_v37 = vadd.f32 %v1854_v17, %v8924_v44  ;;  %2300 = vmatprep.mubr.bf16.mxu1 %v2054_v33  ;;  %7316 = vmatpush3.bf16.msra.mxu1 %v7919_v20 }
 0x34c   :  { %v1949_v10 = vmul.f32 0.01, %v7647_v21  ;;  %2301 = vmatmul.mubr.bf16.gmra.mrb[132].mxu1 %v2053_v47  ;;  %v2011_v32 = vmax.f32 %v7645_v26, %v1947_v39 }
 0x34d   :  { %v1950_v45 = vmul.f32 0.01, %v7648_v37  ;;  %v2012_v53 = vmax.f32 %v7646_v29, %v1948_v41 }
 0x34e   :  { %v2013_v46 = vmax.f32 %v7647_v21, %v1949_v10 }
 0x34f   :  { %v2014_v63 = vmax.f32 %v7648_v37, %v1950_v45  ;;  %v1858_v13 = vpop.f32.mrb[76].mxu0 }
 0x350   :  { %v7649_v56 = vadd.f32 %v1858_v13, %v8921_v27  ;;  %v1860_v49 = vpop.f32.mrb[77].mxu0  ;;  %v2055_v23 = vpack.c.bf16 %v2013_v46, %v2011_v32 }
 0x351   :  { %v7650_v57 = vadd.f32 %v1860_v49, %v8924_v44  ;;  %v1862_v34 = vpop.f32.mrb[78].mxu0  ;;  %v2056_v61 = vpack.c.bf16 %v2014_v63, %v2012_v53 }
 0x352   :  { %v1951_v62 = vmul.f32 0.01, %v7649_v56  ;;  %v7651_v35 = vadd.f32 %v1862_v34, %v8921_v27  ;;  %v1864_v2 = vpop.f32.mrb[79].mxu0 }
 0x353   :  { %v1952_v1 = vmul.f32 0.01, %v7650_v57  ;;  %v7652_v25 = vadd.f32 %v1864_v2, %v8924_v44  ;;  %2308 = vmatprep.mubr.bf16.mxu1 %v2056_v61 }
 0x354   :  { %v1953_v60 = vmul.f32 0.01, %v7651_v35  ;;  %2309 = vmatmul.mubr.bf16.gmra.mrb[136].mxu1 %v2055_v23  ;;  %v2015_v59 = vmax.f32 %v7649_v56, %v1951_v62 }
 0x355   :  { %v1954_v5 = vmul.f32 0.01, %v7652_v25  ;;  %v2016_v38 = vmax.f32 %v7650_v57, %v1952_v1 }
 0x356   :  { %v2017_v8 = vmax.f32 %v7651_v35, %v1953_v60 }
 0x357   :  { %v2018_v52 = vmax.f32 %v7652_v25, %v1954_v5  ;;  %v1868_v9 = vpop.f32.mrb[80].mxu0 }
 0x358   :  { %v7653_v6 = vadd.f32 %v1868_v9, %v8921_v27  ;;  %v1870_v22 = vpop.f32.mrb[81].mxu0  ;;  %v2057_v58 = vpack.c.bf16 %v2017_v8, %v2015_v59 }
 0x359   :  { %v7654_v18 = vadd.f32 %v1870_v22, %v8924_v44  ;;  %v1872_v54 = vpop.f32.mrb[82].mxu0  ;;  %v2058_v16 = vpack.c.bf16 %v2018_v52, %v2016_v38 }
 0x35a   :  { %v1955_v48 = vmul.f32 0.01, %v7653_v6  ;;  %v7655_v15 = vadd.f32 %v1872_v54, %v8921_v27  ;;  %v1874_v14 = vpop.f32.mrb[83].mxu0 }
 0x35b   :  { %v1956_v51 = vmul.f32 0.01, %v7654_v18  ;;  %v7656_v43 = vadd.f32 %v1874_v14, %v8924_v44  ;;  %2316 = vmatprep.mubr.bf16.mxu1 %v2058_v16 }
 0x35c   :  { %v1957_v42 = vmul.f32 0.01, %v7655_v15  ;;  %2317 = vmatmul.mubr.bf16.gmra.mrb[140].mxu1 %v2057_v58  ;;  %v2019_v7 = vmax.f32 %v7653_v6, %v1955_v48 }
 0x35d   :  { %v1958_v3 = vmul.f32 0.01, %v7656_v43  ;;  %v2020_v19 = vmax.f32 %v7654_v18, %v1956_v51 }
 0x35e   :  { %v2021_v12 = vmax.f32 %v7655_v15, %v1957_v42 }
 0x35f   :  { %v2022_v40 = vmax.f32 %v7656_v43, %v1958_v3  ;;  %v1878_v30 = vpop.f32.mrb[84].mxu0 }
 0x360   :  { %v7657_v24 = vadd.f32 %v1878_v30, %v8921_v27  ;;  %v1880_v26 = vpop.f32.mrb[85].mxu0  ;;  %v2059_v28 = vpack.c.bf16 %v2021_v12, %v2019_v7 }
 0x361   :  { %v7658_v47 = vadd.f32 %v1880_v26, %v8924_v44  ;;  %v1882_v29 = vpop.f32.mrb[86].mxu0  ;;  %v2060_v31 = vpack.c.bf16 %v2022_v40, %v2020_v19 }
 0x362   :  { %v1959_v33 = vmul.f32 0.01, %v7657_v24  ;;  %v7659_v39 = vadd.f32 %v1882_v29, %v8921_v27  ;;  %v1884_v21 = vpop.f32.mrb[87].mxu0 }
 0x363   :  { %v1960_v17 = vmul.f32 0.01, %v7658_v47  ;;  %v7660_v41 = vadd.f32 %v1884_v21, %v8924_v44  ;;  %2324 = vmatprep.mubr.bf16.mxu1 %v2060_v31 }
 0x364   :  { %v1961_v37 = vmul.f32 0.01, %v7659_v39  ;;  %2325 = vmatmul.mubr.bf16.gmra.mrb[144].mxu1 %v2059_v28  ;;  %v2023_v45 = vmax.f32 %v7657_v24, %v1959_v33  ;;  %v8990_v24 = vld [vmem:[#allocation16 + $0x2] ss:$0 sm:$0xff] }
 0x365   :  { %v1962_v10 = vmul.f32 0.01, %v7660_v41  ;;  %v2024_v46 = vmax.f32 %v7658_v47, %v1960_v17 }
 0x366   :  { %v2025_v32 = vmax.f32 %v7659_v39, %v1961_v37  ;;  %v7920_v39 = vld [vmem:[#allocation14 + $0x40] sm:$0xff]  }
 0x367   :  { %v2026_v53 = vmax.f32 %v7660_v41, %v1962_v10  ;;  %v1888_v63 = vpop.f32.mrb[88].mxu0  ;;  %7349 = vmatprep.subr.bf16.mxu1 %v7920_v39 }
 0x368   :  { %v7661_v13 = vadd.f32 %v1888_v63, %v8921_v27  ;;  %v1890_v56 = vpop.f32.mrb[89].mxu0  ;;  %v2061_v49 = vpack.c.bf16 %v2025_v32, %v2023_v45 }
 0x369   :  { %v7662_v23 = vadd.f32 %v1890_v56, %v8924_v44  ;;  %v1892_v57 = vpop.f32.mrb[90].mxu0  ;;  %v2062_v34 = vpack.c.bf16 %v2026_v53, %v2024_v46 }
 0x36a   :  { %v1963_v61 = vmul.f32 0.01, %v7661_v13  ;;  %v7663_v62 = vadd.f32 %v1892_v57, %v8921_v27  ;;  %v1894_v35 = vpop.f32.mrb[91].mxu0 }
 0x36b   :  { %v1964_v2 = vmul.f32 0.01, %v7662_v23  ;;  %v7664_v1 = vadd.f32 %v1894_v35, %v8924_v44  ;;  %2332 = vmatprep.mubr.bf16.mxu1 %v2062_v34 }
 0x36c   :  { %v1965_v25 = vmul.f32 0.01, %v7663_v62  ;;  %2333 = vmatmul.mubr.bf16.gmra.mrb[148].mxu1 %v2061_v49  ;;  %v2027_v5 = vmax.f32 %v7661_v13, %v1963_v61 }
 0x36d   :  { %v1966_v60 = vmul.f32 0.01, %v7664_v1  ;;  %v2028_v8 = vmax.f32 %v7662_v23, %v1964_v2 }
 0x36e   :  { %v2029_v59 = vmax.f32 %v7663_v62, %v1965_v25 }
 0x36f   :  { %v2030_v38 = vmax.f32 %v7664_v1, %v1966_v60  ;;  %v1898_v52 = vpop.f32.mrb[92].mxu0 }
 0x370   :  { %v7665_v9 = vadd.f32 %v1898_v52, %v8921_v27  ;;  %v1900_v6 = vpop.f32.mrb[93].mxu0  ;;  %v2063_v22 = vpack.c.bf16 %v2029_v59, %v2027_v5  ;;  %v7921_v59 = vld [vmem:[#allocation14 + $0x48] sm:$0xff]  }
 0x371   :  { %v7666_v58 = vadd.f32 %v1900_v6, %v8924_v44  ;;  %v1902_v18 = vpop.f32.mrb[94].mxu0  ;;  %v2064_v54 = vpack.c.bf16 %v2030_v38, %v2028_v8  ;;  %v7922_v6 = vld [vmem:[#allocation14 + $0x50] sm:$0xff]  }
 0x372   :  { %v1967_v16 = vmul.f32 0.01, %v7665_v9  ;;  %v7667_v48 = vadd.f32 %v1902_v18, %v8921_v27  ;;  %v1904_v15 = vpop.f32.mrb[95].mxu0 }
 0x373   :  { %v1968_v14 = vmul.f32 0.01, %v7666_v58  ;;  %v7668_v51 = vadd.f32 %v1904_v15, %v8924_v44  ;;  %2340 = vmatprep.mubr.bf16.mxu1 %v2064_v54 }
 0x374   :  { %v1969_v43 = vmul.f32 0.01, %v7667_v48  ;;  %2341 = vmatmul.mubr.bf16.gmra.mrb[152].mxu1 %v2063_v22  ;;  %v2031_v3 = vmax.f32 %v7665_v9, %v1967_v16 }
 0x375   :  { %v1970_v42 = vmul.f32 0.01, %v7668_v51  ;;  %v2032_v12 = vmax.f32 %v7666_v58, %v1968_v14 }
 0x376   :  { %v2033_v7 = vmax.f32 %v7667_v48, %v1969_v43  ;;  %v7923_v43 = vld [vmem:[#allocation14 + $0x58] sm:$0xff]  }
 0x377   :  { %v2034_v19 = vmax.f32 %v7668_v51, %v1970_v42 }
 0x378   :  { %v2065_v40 = vpack.c.bf16 %v2033_v7, %v2031_v3 }
 0x379   :  { %v2066_v30 = vpack.c.bf16 %v2034_v19, %v2032_v12  ;;  %v7924_v19 = vld [vmem:[#allocation14 + $0x60] sm:$0xff]  }
 0x37b   :  { %2348 = vmatprep.mubr.bf16.mxu1 %v2066_v30 }
 0x37c   :  { %2349 = vmatmul.mubr.bf16.gmra.mrb[156].mxu1 %v2065_v40 }
 0x3d7   :  { %v6837_v20 = vpop.f32.mrb[96].mxu1 }
 0x3d8   :  { %v6838_v27 = vpop.f32.mrb[97].mxu1 }
 0x3d9   :  { %v6839_v26 = vadd.f32 %v6838_v27, %v6837_v20  ;;  %v6840_v28 = vpop.f32.mrb[98].mxu1 }
 0x3da   :  { %v6841_v47 = vpop.f32.mrb[99].mxu1 }
 0x3db   :  { %v2231_v44 = vadd.f32 %v6839_v26, %v8990_v24  ;;  %v6842_v29 = vadd.f32 %v6841_v47, %v6840_v28 }
 0x3dd   :  { %v2357_v31 = vmul.f32 0.01, %v2231_v44  ;;  %v2234_v33 = vadd.f32 %v6842_v29, %v8990_v24 }
 0x3df   :  { %v2358_v21 = vmul.f32 0.01, %v2234_v33  ;;  %v6843_v17 = vpop.f32.mrb[100].mxu1  ;;  %v2389_v45 = vmax.f32 %v2231_v44, %v2357_v31  ;;  %v7925_v31 = vld [vmem:[#allocation14 + $0x68] sm:$0xff]  }
 0x3e0   :  { %v6844_v41 = vpop.f32.mrb[101].mxu1 }
 0x3e1   :  { %v6845_v37 = vadd.f32 %v6844_v41, %v6843_v17  ;;  %v6846_v10 = vpop.f32.mrb[102].mxu1  ;;  %v2390_v32 = vmax.f32 %v2234_v33, %v2358_v21  ;;  %v7926_v41 = vld [vmem:[#allocation14 + $0x70] sm:$0xff]  }
 0x3e2   :  { %v6847_v46 = vpop.f32.mrb[103].mxu1 }
 0x3e3   :  { %v2239_v53 = vadd.f32 %v6845_v37, %v8990_v24  ;;  %v6848_v63 = vadd.f32 %v6847_v46, %v6846_v10  ;;  %v2421_v13 = vpack.c.bf16 %v2390_v32, %v2389_v45 }
 0x3e5   :  { %v2359_v56 = vmul.f32 0.01, %v2239_v53  ;;  %v2242_v49 = vadd.f32 %v6848_v63, %v8990_v24  ;;  %7317 = vmatprep.mubr.bf16.mxu1 %v2421_v13 }
 0x3e7   :  { %v2360_v23 = vmul.f32 0.01, %v2242_v49  ;;  %v6849_v57 = vpop.f32.mrb[104].mxu1  ;;  %v2391_v61 = vmax.f32 %v2239_v53, %v2359_v56 }
 0x3e8   :  { %v6850_v34 = vpop.f32.mrb[105].mxu1 }
 0x3e9   :  { %v2392_v62 = vmax.f32 %v2242_v49, %v2360_v23  ;;  %v6851_v35 = vadd.f32 %v6850_v34, %v6849_v57  ;;  %v6852_v2 = vpop.f32.mrb[106].mxu1 }
 0x3ea   :  { %v6853_v1 = vpop.f32.mrb[107].mxu1 }
 0x3eb   :  { %v2422_v25 = vpack.c.bf16 %v2392_v62, %v2391_v61  ;;  %v2247_v60 = vadd.f32 %v6851_v35, %v8990_v24  ;;  %v6854_v5 = vadd.f32 %v6853_v1, %v6852_v2 }
 0x3ed   :  { %v2361_v8 = vmul.f32 0.01, %v2247_v60  ;;  %v2250_v38 = vadd.f32 %v6854_v5, %v8990_v24  ;;  %7318 = vmatmul.mubr.bf16.vlgmr.msra.gmra.mrb[160].mxu1 %v2422_v25 }
 0x3ee   :  { %7350 = vmatpush3.bf16.msra.mxu1 %v7920_v39 }
 0x3ef   :  { %v2362_v52 = vmul.f32 0.01, %v2250_v38  ;;  %v6855_v9 = vpop.f32.mrb[108].mxu1  ;;  %7351 = vmatprep.subr.bf16.mxu1 %v7921_v59  ;;  %v2393_v54 = vmax.f32 %v2247_v60, %v2361_v8 }
 0x3f0   :  { %v6856_v22 = vpop.f32.mrb[109].mxu1 }
 0x3f1   :  { %v6857_v58 = vadd.f32 %v6856_v22, %v6855_v9  ;;  %v6858_v18 = vpop.f32.mrb[110].mxu1  ;;  %v2394_v16 = vmax.f32 %v2250_v38, %v2362_v52 }
 0x3f2   :  { %v6859_v48 = vpop.f32.mrb[111].mxu1  ;;  %7352 = vmatpush3.bf16.msra.mxu1 %v7921_v59 }
 0x3f3   :  { %v2255_v15 = vadd.f32 %v6857_v58, %v8990_v24  ;;  %v6860_v14 = vadd.f32 %v6859_v48, %v6858_v18  ;;  %v2423_v51 = vpack.c.bf16 %v2394_v16, %v2393_v54  ;;  %7353 = vmatprep.subr.bf16.mxu1 %v7922_v6 }
 0x3f5   :  { %v2363_v42 = vmul.f32 0.01, %v2255_v15  ;;  %v2258_v3 = vadd.f32 %v6860_v14, %v8990_v24  ;;  %7321 = vmatprep.mubr.bf16.mxu1 %v2423_v51 }
 0x3f6   :  { %7354 = vmatpush3.bf16.msra.mxu1 %v7922_v6 }
 0x3f7   :  { %v2364_v7 = vmul.f32 0.01, %v2258_v3  ;;  %v6861_v12 = vpop.f32.mrb[112].mxu1  ;;  %7355 = vmatprep.subr.bf16.mxu1 %v7923_v43  ;;  %v2395_v27 = vmax.f32 %v2255_v15, %v2363_v42 }
 0x3f8   :  { %v6862_v40 = vpop.f32.mrb[113].mxu1 }
 0x3f9   :  { %v6863_v30 = vadd.f32 %v6862_v40, %v6861_v12  ;;  %v6864_v20 = vpop.f32.mrb[114].mxu1  ;;  %v2396_v26 = vmax.f32 %v2258_v3, %v2364_v7 }
 0x3fa   :  { %v6865_v28 = vpop.f32.mrb[115].mxu1  ;;  %7356 = vmatpush3.bf16.msra.mxu1 %v7923_v43 }
 0x3fb   :  { %v2263_v47 = vadd.f32 %v6863_v30, %v8990_v24  ;;  %v6866_v44 = vadd.f32 %v6865_v28, %v6864_v20  ;;  %v2424_v29 = vpack.c.bf16 %v2396_v26, %v2395_v27  ;;  %7357 = vmatprep.subr.bf16.mxu1 %v7924_v19 }
 0x3fd   :  { %v2365_v33 = vmul.f32 0.01, %v2263_v47  ;;  %v2266_v39 = vadd.f32 %v6866_v44, %v8990_v24  ;;  %7322 = vmatmul.mubr.bf16.gmra.mrb[164].mxu1 %v2424_v29 }
 0x3fe   :  { %7358 = vmatpush3.bf16.msra.mxu1 %v7924_v19 }
 0x3ff   :  { %v2366_v21 = vmul.f32 0.01, %v2266_v39  ;;  %v6867_v17 = vpop.f32.mrb[116].mxu1  ;;  %7359 = vmatprep.subr.bf16.mxu1 %v7925_v31  ;;  %v2397_v32 = vmax.f32 %v2263_v47, %v2365_v33 }
 0x400   :  { %v6868_v37 = vpop.f32.mrb[117].mxu1 }
 0x401   :  { %v6869_v10 = vadd.f32 %v6868_v37, %v6867_v17  ;;  %v6870_v45 = vpop.f32.mrb[118].mxu1  ;;  %v2398_v46 = vmax.f32 %v2266_v39, %v2366_v21 }
 0x402   :  { %v6871_v53 = vpop.f32.mrb[119].mxu1  ;;  %7360 = vmatpush3.bf16.msra.mxu1 %v7925_v31 }
 0x403   :  { %v2271_v63 = vadd.f32 %v6869_v10, %v8990_v24  ;;  %v6872_v13 = vadd.f32 %v6871_v53, %v6870_v45  ;;  %v2425_v56 = vpack.c.bf16 %v2398_v46, %v2397_v32  ;;  %7361 = vmatprep.subr.bf16.mxu1 %v7926_v41 }
 0x405   :  { %v2367_v49 = vmul.f32 0.01, %v2271_v63  ;;  %v2274_v23 = vadd.f32 %v6872_v13, %v8990_v24  ;;  %7325 = vmatprep.mubr.bf16.mxu1 %v2425_v56 }
 0x406   :  { %7362 = vmatpush3.bf16.msra.mxu1 %v7926_v41 }
 0x407   :  { %v2368_v57 = vmul.f32 0.01, %v2274_v23  ;;  %v6873_v34 = vpop.f32.mrb[120].mxu1  ;;  %v2399_v2 = vmax.f32 %v2271_v63, %v2367_v49 }
 0x408   :  { %v6874_v61 = vpop.f32.mrb[121].mxu1 }
 0x409   :  { %v6875_v62 = vadd.f32 %v6874_v61, %v6873_v34  ;;  %v6876_v35 = vpop.f32.mrb[122].mxu1  ;;  %v2400_v1 = vmax.f32 %v2274_v23, %v2368_v57 }
 0x40a   :  { %v6877_v25 = vpop.f32.mrb[123].mxu1 }
 0x40b   :  { %v2279_v60 = vadd.f32 %v6875_v62, %v8990_v24  ;;  %v6878_v5 = vadd.f32 %v6877_v25, %v6876_v35  ;;  %v2426_v59 = vpack.c.bf16 %v2400_v1, %v2399_v2 }
 0x40d   :  { %v2369_v8 = vmul.f32 0.01, %v2279_v60  ;;  %v2282_v38 = vadd.f32 %v6878_v5, %v8990_v24  ;;  %7326 = vmatmul.mubr.bf16.gmra.mrb[168].mxu1 %v2426_v59 }
 0x40f   :  { %v2370_v52 = vmul.f32 0.01, %v2282_v38  ;;  %v6879_v9 = vpop.f32.mrb[124].mxu1  ;;  %v2401_v18 = vmax.f32 %v2279_v60, %v2369_v8 }
 0x410   :  { %v6880_v6 = vpop.f32.mrb[125].mxu1 }
 0x411   :  { %v6881_v22 = vadd.f32 %v6880_v6, %v6879_v9  ;;  %v6882_v58 = vpop.f32.mrb[126].mxu1  ;;  %v2402_v54 = vmax.f32 %v2282_v38, %v2370_v52 }
 0x412   :  { %v6883_v16 = vpop.f32.mrb[127].mxu1 }
 0x413   :  { %v2287_v48 = vadd.f32 %v6881_v22, %v8990_v24  ;;  %v6884_v15 = vadd.f32 %v6883_v16, %v6882_v58  ;;  %v2427_v14 = vpack.c.bf16 %v2402_v54, %v2401_v18 }
 0x415   :  { %v2371_v51 = vmul.f32 0.01, %v2287_v48  ;;  %v2290_v43 = vadd.f32 %v6884_v15, %v8990_v24  ;;  %7329 = vmatprep.mubr.bf16.mxu1 %v2427_v14 }
 0x417   :  { %v2372_v42 = vmul.f32 0.01, %v2290_v43  ;;  %v6885_v3 = vpop.f32.mrb[128].mxu1  ;;  %v2403_v40 = vmax.f32 %v2287_v48, %v2371_v51 }
 0x418   :  { %v6886_v7 = vpop.f32.mrb[129].mxu1 }
 0x419   :  { %v6887_v12 = vadd.f32 %v6886_v7, %v6885_v3  ;;  %v6888_v19 = vpop.f32.mrb[130].mxu1  ;;  %v2404_v30 = vmax.f32 %v2290_v43, %v2372_v42 }
 0x41a   :  { %v6889_v20 = vpop.f32.mrb[131].mxu1 }
 0x41b   :  { %v2295_v27 = vadd.f32 %v6887_v12, %v8990_v24  ;;  %v6890_v26 = vadd.f32 %v6889_v20, %v6888_v19  ;;  %v2428_v28 = vpack.c.bf16 %v2404_v30, %v2403_v40 }
 0x41d   :  { %v2373_v47 = vmul.f32 0.01, %v2295_v27  ;;  %v2298_v44 = vadd.f32 %v6890_v26, %v8990_v24  ;;  %7330 = vmatmul.mubr.bf16.gmra.mrb[172].mxu1 %v2428_v28 }
 0x41f   :  { %v2374_v29 = vmul.f32 0.01, %v2298_v44  ;;  %v6891_v31 = vpop.f32.mrb[132].mxu1  ;;  %v2405_v17 = vmax.f32 %v2295_v27, %v2373_v47 }
 0x420   :  { %v6892_v33 = vpop.f32.mrb[133].mxu1 }
 0x421   :  { %v6893_v39 = vadd.f32 %v6892_v33, %v6891_v31  ;;  %v6894_v21 = vpop.f32.mrb[134].mxu1  ;;  %v2406_v41 = vmax.f32 %v2298_v44, %v2374_v29 }
 0x422   :  { %v6895_v37 = vpop.f32.mrb[135].mxu1 }
 0x423   :  { %v2303_v10 = vadd.f32 %v6893_v39, %v8990_v24  ;;  %v6896_v45 = vadd.f32 %v6895_v37, %v6894_v21  ;;  %v2429_v32 = vpack.c.bf16 %v2406_v41, %v2405_v17 }
 0x425   :  { %v2375_v46 = vmul.f32 0.01, %v2303_v10  ;;  %v2306_v53 = vadd.f32 %v6896_v45, %v8990_v24  ;;  %7333 = vmatprep.mubr.bf16.mxu1 %v2429_v32  ;;  %v7927_v32 = vld [vmem:[#allocation14 + $0x78] sm:$0xff]  }
 0x426   :  { %7363 = vmatprep.subr.bf16.mxu1 %v7927_v32 }
 0x427   :  { %v2376_v63 = vmul.f32 0.01, %v2306_v53  ;;  %v6897_v13 = vpop.f32.mrb[136].mxu1  ;;  %v2407_v57 = vmax.f32 %v2303_v10, %v2375_v46  ;;  %7364 = vmatpush3.bf16.msra.mxu1 %v7927_v32 }
 0x428   :  { %v6898_v56 = vpop.f32.mrb[137].mxu1 }
 0x429   :  { %v6899_v49 = vadd.f32 %v6898_v56, %v6897_v13  ;;  %v6900_v23 = vpop.f32.mrb[138].mxu1  ;;  %v2408_v34 = vmax.f32 %v2306_v53, %v2376_v63 }
 0x42a   :  { %v6901_v61 = vpop.f32.mrb[139].mxu1 }
 0x42b   :  { %v2311_v62 = vadd.f32 %v6899_v49, %v8990_v24  ;;  %v6902_v35 = vadd.f32 %v6901_v61, %v6900_v23  ;;  %v2430_v2 = vpack.c.bf16 %v2408_v34, %v2407_v57 }
 0x42d   :  { %v2377_v1 = vmul.f32 0.01, %v2311_v62  ;;  %v2314_v25 = vadd.f32 %v6902_v35, %v8990_v24  ;;  %7334 = vmatmul.mubr.bf16.gmra.mrb[176].mxu1 %v2430_v2 }
 0x42f   :  { %v2378_v60 = vmul.f32 0.01, %v2314_v25  ;;  %v6903_v5 = vpop.f32.mrb[140].mxu1  ;;  %v2409_v52 = vmax.f32 %v2311_v62, %v2377_v1 }
 0x430   :  { %v6904_v59 = vpop.f32.mrb[141].mxu1 }
 0x431   :  { %v6905_v8 = vadd.f32 %v6904_v59, %v6903_v5  ;;  %v6906_v38 = vpop.f32.mrb[142].mxu1  ;;  %v2410_v9 = vmax.f32 %v2314_v25, %v2378_v60 }
 0x432   :  { %v6907_v6 = vpop.f32.mrb[143].mxu1 }
 0x433   :  { %v2319_v22 = vadd.f32 %v6905_v8, %v8990_v24  ;;  %v6908_v58 = vadd.f32 %v6907_v6, %v6906_v38  ;;  %v2431_v18 = vpack.c.bf16 %v2410_v9, %v2409_v52 }
 0x435   :  { %v2379_v54 = vmul.f32 0.01, %v2319_v22  ;;  %v2322_v16 = vadd.f32 %v6908_v58, %v8990_v24  ;;  %7337 = vmatprep.mubr.bf16.mxu1 %v2431_v18 }
 0x437   :  { %v2380_v48 = vmul.f32 0.01, %v2322_v16  ;;  %v6909_v15 = vpop.f32.mrb[144].mxu1  ;;  %v2411_v42 = vmax.f32 %v2319_v22, %v2379_v54 }
 0x438   :  { %v6910_v14 = vpop.f32.mrb[145].mxu1 }
 0x439   :  { %v6911_v51 = vadd.f32 %v6910_v14, %v6909_v15  ;;  %v6912_v43 = vpop.f32.mrb[146].mxu1  ;;  %v2412_v3 = vmax.f32 %v2322_v16, %v2380_v48  ;;  %v7928_v48 = vld [vmem:[#allocation14 + $0x80] sm:$0xff]   ;;  %v7929_v15 = vld [vmem:[#allocation14 + $0x88] sm:$0xff]   ;;  %v7930_v14 = vld [vmem:[#allocation14 + $0x90] sm:$0xff]  }
 0x43a   :  { %v6913_v7 = vpop.f32.mrb[147].mxu1  ;;  %7397 = vmatprep.subr.bf16.mxu0 %v7928_v48 }
 0x43b   :  { %v2327_v12 = vadd.f32 %v6911_v51, %v8990_v24  ;;  %v6914_v19 = vadd.f32 %v6913_v7, %v6912_v43  ;;  %v2432_v40 = vpack.c.bf16 %v2412_v3, %v2411_v42  ;;  %7398 = vmatpush3.bf16.msra.mxu0 %v7928_v48  ;;  %v9024_v51 = vld [vmem:[#allocation16 + $0x3] ss:$0 sm:$0xff]  ;;  %v7931_v42 = vld [vmem:[#allocation14 + $0x98] sm:$0xff]  }
 0x43c   :  { %7399 = vmatprep.subr.bf16.mxu0 %v7929_v15 }
 0x43d   :  { %v2381_v30 = vmul.f32 0.01, %v2327_v12  ;;  %v2330_v20 = vadd.f32 %v6914_v19, %v8990_v24  ;;  %7338 = vmatmul.mubr.bf16.gmra.mrb[180].mxu1 %v2432_v40 }
 0x43f   :  { %v2382_v27 = vmul.f32 0.01, %v2330_v20  ;;  %v6915_v26 = vpop.f32.mrb[148].mxu1  ;;  %v2413_v29 = vmax.f32 %v2327_v12, %v2381_v30  ;;  %7400 = vmatpush3.bf16.msra.mxu0 %v7929_v15 }
 0x440   :  { %v6916_v28 = vpop.f32.mrb[149].mxu1  ;;  %7401 = vmatprep.subr.bf16.mxu0 %v7930_v14 }
 0x441   :  { %v6917_v47 = vadd.f32 %v6916_v28, %v6915_v26  ;;  %v6918_v44 = vpop.f32.mrb[150].mxu1  ;;  %v2414_v31 = vmax.f32 %v2330_v20, %v2382_v27  ;;  %v7932_v26 = vld [vmem:[#allocation14 + $0xa0] sm:$0xff]  }
 0x442   :  { %v6919_v33 = vpop.f32.mrb[151].mxu1 }
 0x443   :  { %v2335_v39 = vadd.f32 %v6917_v47, %v8990_v24  ;;  %v6920_v21 = vadd.f32 %v6919_v33, %v6918_v44  ;;  %v2433_v17 = vpack.c.bf16 %v2414_v31, %v2413_v29  ;;  %7402 = vmatpush3.bf16.msra.mxu0 %v7930_v14 }
 0x444   :  { %7403 = vmatprep.subr.bf16.mxu0 %v7931_v42 }
 0x445   :  { %v2383_v41 = vmul.f32 0.01, %v2335_v39  ;;  %v2338_v37 = vadd.f32 %v6920_v21, %v8990_v24  ;;  %7341 = vmatprep.mubr.bf16.mxu1 %v2433_v17 }
 0x447   :  { %v2384_v10 = vmul.f32 0.01, %v2338_v37  ;;  %v6921_v45 = vpop.f32.mrb[152].mxu1  ;;  %v2415_v13 = vmax.f32 %v2335_v39, %v2383_v41  ;;  %7404 = vmatpush3.bf16.msra.mxu0 %v7931_v42  ;;  %v7933_v39 = vld [vmem:[#allocation14 + $0xa8] sm:$0xff]   ;;  %v7934_v41 = vld [vmem:[#allocation14 + $0xb0] sm:$0xff]  }
 0x448   :  { %v6922_v46 = vpop.f32.mrb[153].mxu1  ;;  %7405 = vmatprep.subr.bf16.mxu0 %v7932_v26 }
 0x449   :  { %v6923_v53 = vadd.f32 %v6922_v46, %v6921_v45  ;;  %v6924_v63 = vpop.f32.mrb[154].mxu1  ;;  %v2416_v56 = vmax.f32 %v2338_v37, %v2384_v10  ;;  %v7935_v10 = vld [vmem:[#allocation14 + $0xb8] sm:$0xff]  }
 0x44a   :  { %v6925_v49 = vpop.f32.mrb[155].mxu1 }
 0x44b   :  { %v2343_v23 = vadd.f32 %v6923_v53, %v8990_v24  ;;  %v6926_v57 = vadd.f32 %v6925_v49, %v6924_v63  ;;  %v2434_v34 = vpack.c.bf16 %v2416_v56, %v2415_v13  ;;  %7406 = vmatpush3.bf16.msra.mxu0 %v7932_v26 }
 0x44c   :  { %7407 = vmatprep.subr.bf16.mxu0 %v7933_v39 }
 0x44d   :  { %v2385_v61 = vmul.f32 0.01, %v2343_v23  ;;  %v2346_v62 = vadd.f32 %v6926_v57, %v8990_v24  ;;  %7342 = vmatmul.mubr.bf16.gmra.mrb[184].mxu1 %v2434_v34 }
 0x44f   :  { %v2386_v35 = vmul.f32 0.01, %v2346_v62  ;;  %v6927_v2 = vpop.f32.mrb[156].mxu1  ;;  %v2417_v5 = vmax.f32 %v2343_v23, %v2385_v61  ;;  %7408 = vmatpush3.bf16.msra.mxu0 %v7933_v39 }
 0x450   :  { %v6928_v1 = vpop.f32.mrb[157].mxu1  ;;  %7409 = vmatprep.subr.bf16.mxu0 %v7934_v41 }
 0x451   :  { %v6929_v25 = vadd.f32 %v6928_v1, %v6927_v2  ;;  %v6930_v60 = vpop.f32.mrb[158].mxu1  ;;  %v2418_v59 = vmax.f32 %v2346_v62, %v2386_v35 }
 0x452   :  { %v6931_v8 = vpop.f32.mrb[159].mxu1 }
 0x453   :  { %v2351_v38 = vadd.f32 %v6929_v25, %v8990_v24  ;;  %v6932_v52 = vadd.f32 %v6931_v8, %v6930_v60  ;;  %v2435_v9 = vpack.c.bf16 %v2418_v59, %v2417_v5  ;;  %7410 = vmatpush3.bf16.msra.mxu0 %v7934_v41 }
 0x454   :  { %7411 = vmatprep.subr.bf16.mxu0 %v7935_v10 }
 0x455   :  { %v2387_v6 = vmul.f32 0.01, %v2351_v38  ;;  %v2354_v22 = vadd.f32 %v6932_v52, %v8990_v24  ;;  %7345 = vmatprep.mubr.bf16.mxu1 %v2435_v9 }
 0x457   :  { %v2388_v58 = vmul.f32 0.01, %v2354_v22  ;;  %v2419_v18 = vmax.f32 %v2351_v38, %v2387_v6  ;;  %7412 = vmatpush3.bf16.msra.mxu0 %v7935_v10 }
 0x459   :  { %v2420_v54 = vmax.f32 %v2354_v22, %v2388_v58 }
 0x45b   :  { %v2436_v16 = vpack.c.bf16 %v2420_v54, %v2419_v18 }
 0x45d   :  { %7346 = vmatmul.mubr.bf16.gmra.mrb[188].mxu1 %v2436_v16 }
 0x4c0   :  { %v7319_v43 = vpop.f32.mrb[160].mxu1 }
 0x4c1   :  { %v2545_v24 = vadd.f32 %v7319_v43, %v9024_v51  ;;  %v2536_v3 = vpop.f32.mrb[161].mxu1 }
 0x4c2   :  { %v2537_v7 = vadd.f32 %v2536_v3, %v9024_v51  ;;  %v7320_v12 = vpop.f32.mrb[162].mxu1 }
 0x4c3   :  { %v2665_v19 = vmul.f32 0.01, %v2545_v24  ;;  %v2548_v40 = vadd.f32 %v7320_v12, %v9024_v51  ;;  %v2539_v30 = vpop.f32.mrb[163].mxu1 }
 0x4c4   :  { %v2663_v20 = vmul.f32 0.01, %v2537_v7  ;;  %v2540_v27 = vadd.f32 %v2539_v30, %v9024_v51 }
 0x4c5   :  { %v2666_v28 = vmul.f32 0.01, %v2548_v40  ;;  %v2697_v44 = vmax.f32 %v2545_v24, %v2665_v19 }
 0x4c6   :  { %v2664_v47 = vmul.f32 0.01, %v2540_v27  ;;  %v2695_v31 = vmax.f32 %v2537_v7, %v2663_v20 }
 0x4c7   :  { %v2698_v29 = vmax.f32 %v2548_v40, %v2666_v28 }
 0x4c8   :  { %v2696_v33 = vmax.f32 %v2540_v27, %v2664_v47 }
 0x4c9   :  { %v2728_v21 = vpack.c.bf16 %v2698_v29, %v2697_v44 }
 0x4ca   :  { %v2727_v17 = vpack.c.bf16 %v2696_v33, %v2695_v31 }
 0x4cc   :  { %7365 = vmatprep.mubr.bf16.mxu1 %v2727_v17 }
 0x4cd   :  { %7366 = vmatmul.mubr.bf16.vlgmr.msra.gmra.mrb[192].mxu1 %v2728_v21 }
 0x4d0   :  { %v7323_v37 = vpop.f32.mrb[164].mxu1 }
 0x4d1   :  { %v2561_v45 = vadd.f32 %v7323_v37, %v9024_v51  ;;  %v2552_v32 = vpop.f32.mrb[165].mxu1 }
 0x4d2   :  { %v2553_v46 = vadd.f32 %v2552_v32, %v9024_v51  ;;  %v7324_v53 = vpop.f32.mrb[166].mxu1 }
 0x4d3   :  { %v2669_v63 = vmul.f32 0.01, %v2561_v45  ;;  %v2564_v13 = vadd.f32 %v7324_v53, %v9024_v51  ;;  %v2555_v56 = vpop.f32.mrb[167].mxu1 }
 0x4d4   :  { %v2667_v49 = vmul.f32 0.01, %v2553_v46  ;;  %v2556_v23 = vadd.f32 %v2555_v56, %v9024_v51 }
 0x4d5   :  { %v2670_v57 = vmul.f32 0.01, %v2564_v13  ;;  %v2701_v61 = vmax.f32 %v2561_v45, %v2669_v63 }
 0x4d6   :  { %v2668_v34 = vmul.f32 0.01, %v2556_v23  ;;  %v2699_v35 = vmax.f32 %v2553_v46, %v2667_v49 }
 0x4d7   :  { %v2702_v62 = vmax.f32 %v2564_v13, %v2670_v57 }
 0x4d8   :  { %v2700_v2 = vmax.f32 %v2556_v23, %v2668_v34 }
 0x4d9   :  { %v2730_v1 = vpack.c.bf16 %v2702_v62, %v2701_v61 }
 0x4da   :  { %v2729_v25 = vpack.c.bf16 %v2700_v2, %v2699_v35 }
 0x4dc   :  { %7369 = vmatprep.mubr.bf16.mxu1 %v2729_v25 }
 0x4dd   :  { %7370 = vmatmul.mubr.bf16.gmra.mrb[196].mxu1 %v2730_v1 }
 0x4e0   :  { %v7327_v60 = vpop.f32.mrb[168].mxu1 }
 0x4e1   :  { %v2577_v5 = vadd.f32 %v7327_v60, %v9024_v51  ;;  %v2568_v59 = vpop.f32.mrb[169].mxu1 }
 0x4e2   :  { %v2569_v8 = vadd.f32 %v2568_v59, %v9024_v51  ;;  %v7328_v38 = vpop.f32.mrb[170].mxu1 }
 0x4e3   :  { %v2673_v52 = vmul.f32 0.01, %v2577_v5  ;;  %v2580_v9 = vadd.f32 %v7328_v38, %v9024_v51  ;;  %v2571_v6 = vpop.f32.mrb[171].mxu1 }
 0x4e4   :  { %v2671_v22 = vmul.f32 0.01, %v2569_v8  ;;  %v2572_v58 = vadd.f32 %v2571_v6, %v9024_v51 }
 0x4e5   :  { %v2674_v18 = vmul.f32 0.01, %v2580_v9  ;;  %v2705_v16 = vmax.f32 %v2577_v5, %v2673_v52 }
 0x4e6   :  { %v2672_v54 = vmul.f32 0.01, %v2572_v58  ;;  %v2703_v15 = vmax.f32 %v2569_v8, %v2671_v22 }
 0x4e7   :  { %v2706_v48 = vmax.f32 %v2580_v9, %v2674_v18 }
 0x4e8   :  { %v2704_v14 = vmax.f32 %v2572_v58, %v2672_v54 }
 0x4e9   :  { %v2732_v43 = vpack.c.bf16 %v2706_v48, %v2705_v16 }
 0x4ea   :  { %v2731_v42 = vpack.c.bf16 %v2704_v14, %v2703_v15 }
 0x4ec   :  { %7373 = vmatprep.mubr.bf16.mxu1 %v2731_v42 }
 0x4ed   :  { %7374 = vmatmul.mubr.bf16.gmra.mrb[200].mxu1 %v2732_v43 }
 0x4f0   :  { %v7331_v24 = vpop.f32.mrb[172].mxu1 }
 0x4f1   :  { %v2593_v3 = vadd.f32 %v7331_v24, %v9024_v51  ;;  %v2584_v7 = vpop.f32.mrb[173].mxu1 }
 0x4f2   :  { %v2585_v12 = vadd.f32 %v2584_v7, %v9024_v51  ;;  %v7332_v19 = vpop.f32.mrb[174].mxu1 }
 0x4f3   :  { %v2677_v40 = vmul.f32 0.01, %v2593_v3  ;;  %v2596_v30 = vadd.f32 %v7332_v19, %v9024_v51  ;;  %v2587_v20 = vpop.f32.mrb[175].mxu1 }
 0x4f4   :  { %v2675_v27 = vmul.f32 0.01, %v2585_v12  ;;  %v2588_v26 = vadd.f32 %v2587_v20, %v9024_v51 }
 0x4f5   :  { %v2678_v28 = vmul.f32 0.01, %v2596_v30  ;;  %v2709_v44 = vmax.f32 %v2593_v3, %v2677_v40 }
 0x4f6   :  { %v2676_v47 = vmul.f32 0.01, %v2588_v26  ;;  %v2707_v31 = vmax.f32 %v2585_v12, %v2675_v27 }
 0x4f7   :  { %v2710_v29 = vmax.f32 %v2596_v30, %v2678_v28 }
 0x4f8   :  { %v2708_v33 = vmax.f32 %v2588_v26, %v2676_v47 }
 0x4f9   :  { %v2734_v39 = vpack.c.bf16 %v2710_v29, %v2709_v44 }
 0x4fa   :  { %v2733_v21 = vpack.c.bf16 %v2708_v33, %v2707_v31 }
 0x4fc   :  { %7377 = vmatprep.mubr.bf16.mxu1 %v2733_v21 }
 0x4fd   :  { %7378 = vmatmul.mubr.bf16.gmra.mrb[204].mxu1 %v2734_v39 }
 0x500   :  { %v7335_v17 = vpop.f32.mrb[176].mxu1 }
 0x501   :  { %v2609_v41 = vadd.f32 %v7335_v17, %v9024_v51  ;;  %v2600_v37 = vpop.f32.mrb[177].mxu1 }
 0x502   :  { %v2601_v10 = vadd.f32 %v2600_v37, %v9024_v51  ;;  %v7336_v45 = vpop.f32.mrb[178].mxu1 }
 0x503   :  { %v2681_v32 = vmul.f32 0.01, %v2609_v41  ;;  %v2612_v46 = vadd.f32 %v7336_v45, %v9024_v51  ;;  %v2603_v53 = vpop.f32.mrb[179].mxu1 }
 0x504   :  { %v2679_v63 = vmul.f32 0.01, %v2601_v10  ;;  %v2604_v13 = vadd.f32 %v2603_v53, %v9024_v51 }
 0x505   :  { %v2682_v56 = vmul.f32 0.01, %v2612_v46  ;;  %v2713_v23 = vmax.f32 %v2609_v41, %v2681_v32 }
 0x506   :  { %v2680_v49 = vmul.f32 0.01, %v2604_v13  ;;  %v2711_v34 = vmax.f32 %v2601_v10, %v2679_v63 }
 0x507   :  { %v2714_v57 = vmax.f32 %v2612_v46, %v2682_v56 }
 0x508   :  { %v2712_v61 = vmax.f32 %v2604_v13, %v2680_v49 }
 0x509   :  { %v2736_v62 = vpack.c.bf16 %v2714_v57, %v2713_v23 }
 0x50a   :  { %v2735_v35 = vpack.c.bf16 %v2712_v61, %v2711_v34  ;;  %v7936_v61 = vld [vmem:[#allocation14 + $0xc0] sm:$0xff]  }
 0x50b   :  { %7445 = vmatprep.subr.bf16.mxu1 %v7936_v61 }
 0x50c   :  { %7381 = vmatprep.mubr.bf16.mxu1 %v2735_v35  ;;  %v9058_v35 = vld [vmem:[#allocation16 + $0x4] ss:$0 sm:$0xff]  ;;  %7446 = vmatpush3.bf16.msra.mxu1 %v7936_v61 }
 0x50d   :  { %7382 = vmatmul.mubr.bf16.gmra.mrb[208].mxu1 %v2736_v62  ;;  %v7937_v62 = vld [vmem:[#allocation14 + $0xc8] sm:$0xff]  }
 0x50e   :  { %7447 = vmatprep.subr.bf16.mxu1 %v7937_v62 }
 0x510   :  { %v7339_v2 = vpop.f32.mrb[180].mxu1  ;;  %7448 = vmatpush3.bf16.msra.mxu1 %v7937_v62 }
 0x511   :  { %v2625_v1 = vadd.f32 %v7339_v2, %v9024_v51  ;;  %v2616_v25 = vpop.f32.mrb[181].mxu1 }
 0x512   :  { %v2617_v60 = vadd.f32 %v2616_v25, %v9024_v51  ;;  %v7340_v5 = vpop.f32.mrb[182].mxu1  ;;  %v7938_v25 = vld [vmem:[#allocation14 + $0xd0] sm:$0xff]  }
 0x513   :  { %v2685_v59 = vmul.f32 0.01, %v2625_v1  ;;  %v2628_v8 = vadd.f32 %v7340_v5, %v9024_v51  ;;  %v2619_v38 = vpop.f32.mrb[183].mxu1  ;;  %7449 = vmatprep.subr.bf16.mxu1 %v7938_v25 }
 0x514   :  { %v2683_v52 = vmul.f32 0.01, %v2617_v60  ;;  %v2620_v9 = vadd.f32 %v2619_v38, %v9024_v51  ;;  %7450 = vmatpush3.bf16.msra.mxu1 %v7938_v25 }
 0x515   :  { %v2686_v6 = vmul.f32 0.01, %v2628_v8  ;;  %v2717_v58 = vmax.f32 %v2625_v1, %v2685_v59 }
 0x516   :  { %v2684_v22 = vmul.f32 0.01, %v2620_v9  ;;  %v2715_v54 = vmax.f32 %v2617_v60, %v2683_v52 }
 0x517   :  { %v2718_v18 = vmax.f32 %v2628_v8, %v2686_v6 }
 0x518   :  { %v2716_v16 = vmax.f32 %v2620_v9, %v2684_v22  ;;  %v7939_v22 = vld [vmem:[#allocation14 + $0xd8] sm:$0xff]  }
 0x519   :  { %v2738_v48 = vpack.c.bf16 %v2718_v18, %v2717_v58  ;;  %7451 = vmatprep.subr.bf16.mxu1 %v7939_v22 }
 0x51a   :  { %v2737_v15 = vpack.c.bf16 %v2716_v16, %v2715_v54  ;;  %7452 = vmatpush3.bf16.msra.mxu1 %v7939_v22 }
 0x51c   :  { %7385 = vmatprep.mubr.bf16.mxu1 %v2737_v15 }
 0x51d   :  { %7386 = vmatmul.mubr.bf16.gmra.mrb[212].mxu1 %v2738_v48 }
 0x520   :  { %v7343_v14 = vpop.f32.mrb[184].mxu1 }
 0x521   :  { %v2641_v43 = vadd.f32 %v7343_v14, %v9024_v51  ;;  %v2632_v42 = vpop.f32.mrb[185].mxu1  ;;  %v7940_v14 = vld [vmem:[#allocation14 + $0xe0] sm:$0xff]  }
 0x522   :  { %v2633_v24 = vadd.f32 %v2632_v42, %v9024_v51  ;;  %v7344_v3 = vpop.f32.mrb[186].mxu1  ;;  %7453 = vmatprep.subr.bf16.mxu1 %v7940_v14  ;;  %v7941_v42 = vld [vmem:[#allocation14 + $0xe8] sm:$0xff]  }
 0x523   :  { %v2689_v7 = vmul.f32 0.01, %v2641_v43  ;;  %v2644_v12 = vadd.f32 %v7344_v3, %v9024_v51  ;;  %v2635_v19 = vpop.f32.mrb[187].mxu1  ;;  %7454 = vmatpush3.bf16.msra.mxu1 %v7940_v14 }
 0x524   :  { %v2687_v40 = vmul.f32 0.01, %v2633_v24  ;;  %v2636_v30 = vadd.f32 %v2635_v19, %v9024_v51  ;;  %7455 = vmatprep.subr.bf16.mxu1 %v7941_v42 }
 0x525   :  { %v2690_v20 = vmul.f32 0.01, %v2644_v12  ;;  %v2721_v26 = vmax.f32 %v2641_v43, %v2689_v7 }
 0x526   :  { %v2688_v27 = vmul.f32 0.01, %v2636_v30  ;;  %v2719_v47 = vmax.f32 %v2633_v24, %v2687_v40 }
 0x527   :  { %v2722_v28 = vmax.f32 %v2644_v12, %v2690_v20  ;;  %v7942_v12 = vld [vmem:[#allocation14 + $0xf0] sm:$0xff]   ;;  %7456 = vmatpush3.bf16.msra.mxu1 %v7941_v42 }
 0x528   :  { %v2720_v44 = vmax.f32 %v2636_v30, %v2688_v27  ;;  %7457 = vmatprep.subr.bf16.mxu1 %v7942_v12 }
 0x529   :  { %v2740_v29 = vpack.c.bf16 %v2722_v28, %v2721_v26 }
 0x52a   :  { %v2739_v31 = vpack.c.bf16 %v2720_v44, %v2719_v47 }
 0x52b   :  { %7458 = vmatpush3.bf16.msra.mxu1 %v7942_v12 }
 0x52c   :  { %7389 = vmatprep.mubr.bf16.mxu1 %v2739_v31 }
 0x52d   :  { %7390 = vmatmul.mubr.bf16.gmra.mrb[216].mxu1 %v2740_v29 }
 0x530   :  { %v7347_v33 = vpop.f32.mrb[188].mxu1 }
 0x531   :  { %v2657_v39 = vadd.f32 %v7347_v33, %v9024_v51  ;;  %v2648_v21 = vpop.f32.mrb[189].mxu1 }
 0x532   :  { %v2649_v17 = vadd.f32 %v2648_v21, %v9024_v51  ;;  %v7348_v41 = vpop.f32.mrb[190].mxu1 }
 0x533   :  { %v2693_v37 = vmul.f32 0.01, %v2657_v39  ;;  %v2660_v10 = vadd.f32 %v7348_v41, %v9024_v51  ;;  %v2651_v45 = vpop.f32.mrb[191].mxu1 }
 0x534   :  { %v2691_v32 = vmul.f32 0.01, %v2649_v17  ;;  %v2652_v46 = vadd.f32 %v2651_v45, %v9024_v51 }
 0x535   :  { %v2694_v53 = vmul.f32 0.01, %v2660_v10  ;;  %v2725_v13 = vmax.f32 %v2657_v39, %v2693_v37 }
 0x536   :  { %v2692_v63 = vmul.f32 0.01, %v2652_v46  ;;  %v2723_v49 = vmax.f32 %v2649_v17, %v2691_v32 }
 0x537   :  { %v2726_v56 = vmax.f32 %v2660_v10, %v2694_v53 }
 0x538   :  { %v2724_v23 = vmax.f32 %v2652_v46, %v2692_v63 }
 0x539   :  { %v2742_v57 = vpack.c.bf16 %v2726_v56, %v2725_v13 }
 0x53a   :  { %v2741_v34 = vpack.c.bf16 %v2724_v23, %v2723_v49 }
 0x53c   :  { %7393 = vmatprep.mubr.bf16.mxu1 %v2741_v34 }
 0x53d   :  { %7394 = vmatmul.mubr.bf16.gmra.mrb[220].mxu1 %v2742_v57 }
 0x5a0   :  { %v7367_v2 = vpop.f32.mrb[192].mxu1 }
 0x5a1   :  { %v2852_v1 = vadd.f32 %v7367_v2, %v9058_v35  ;;  %v2843_v51 = vpop.f32.mrb[193].mxu1 }
 0x5a2   :  { %v2844_v60 = vadd.f32 %v2843_v51, %v9058_v35  ;;  %v7368_v5 = vpop.f32.mrb[194].mxu1 }
 0x5a3   :  { %v2972_v59 = vmul.f32 0.01, %v2852_v1  ;;  %v2855_v8 = vadd.f32 %v7368_v5, %v9058_v35  ;;  %v2846_v38 = vpop.f32.mrb[195].mxu1 }
 0x5a4   :  { %v2970_v52 = vmul.f32 0.01, %v2844_v60  ;;  %v2847_v9 = vadd.f32 %v2846_v38, %v9058_v35 }
 0x5a5   :  { %v2973_v6 = vmul.f32 0.01, %v2855_v8  ;;  %v3004_v18 = vmax.f32 %v2852_v1, %v2972_v59 }
 0x5a6   :  { %v2971_v58 = vmul.f32 0.01, %v2847_v9  ;;  %v3002_v16 = vmax.f32 %v2844_v60, %v2970_v52 }
 0x5a7   :  { %v3005_v54 = vmax.f32 %v2855_v8, %v2973_v6 }
 0x5a8   :  { %v3003_v48 = vmax.f32 %v2847_v9, %v2971_v58 }
 0x5a9   :  { %v3035_v15 = vpack.c.bf16 %v3005_v54, %v3004_v18 }
 0x5aa   :  { %v3034_v43 = vpack.c.bf16 %v3003_v48, %v3002_v16 }
 0x5ac   :  { %7413 = vmatprep.mubr.bf16.mxu0 %v3034_v43 }
 0x5ad   :  { %7414 = vmatmul.mubr.bf16.vlgmr.msra.gmra.mrb[96].mxu0 %v3035_v15 }
 0x5b0   :  { %v7371_v24 = vpop.f32.mrb[196].mxu1 }
 0x5b1   :  { %v2868_v3 = vadd.f32 %v7371_v24, %v9058_v35  ;;  %v2859_v7 = vpop.f32.mrb[197].mxu1 }
 0x5b2   :  { %v2860_v19 = vadd.f32 %v2859_v7, %v9058_v35  ;;  %v7372_v40 = vpop.f32.mrb[198].mxu1 }
 0x5b3   :  { %v2976_v30 = vmul.f32 0.01, %v2868_v3  ;;  %v2871_v20 = vadd.f32 %v7372_v40, %v9058_v35  ;;  %v2862_v27 = vpop.f32.mrb[199].mxu1 }
 0x5b4   :  { %v2974_v26 = vmul.f32 0.01, %v2860_v19  ;;  %v2863_v28 = vadd.f32 %v2862_v27, %v9058_v35 }
 0x5b5   :  { %v2977_v47 = vmul.f32 0.01, %v2871_v20  ;;  %v3008_v29 = vmax.f32 %v2868_v3, %v2976_v30 }
 0x5b6   :  { %v2975_v44 = vmul.f32 0.01, %v2863_v28  ;;  %v3006_v33 = vmax.f32 %v2860_v19, %v2974_v26 }
 0x5b7   :  { %v3009_v31 = vmax.f32 %v2871_v20, %v2977_v47 }
 0x5b8   :  { %v3007_v39 = vmax.f32 %v2863_v28, %v2975_v44 }
 0x5b9   :  { %v3037_v21 = vpack.c.bf16 %v3009_v31, %v3008_v29 }
 0x5ba   :  { %v3036_v17 = vpack.c.bf16 %v3007_v39, %v3006_v33 }
 0x5bc   :  { %7417 = vmatprep.mubr.bf16.mxu0 %v3036_v17 }
 0x5bd   :  { %7418 = vmatmul.mubr.bf16.gmra.mrb[100].mxu0 %v3037_v21 }
 0x5c0   :  { %v7375_v41 = vpop.f32.mrb[200].mxu1 }
 0x5c1   :  { %v2884_v37 = vadd.f32 %v7375_v41, %v9058_v35  ;;  %v2875_v10 = vpop.f32.mrb[201].mxu1 }
 0x5c2   :  { %v2876_v45 = vadd.f32 %v2875_v10, %v9058_v35  ;;  %v7376_v32 = vpop.f32.mrb[202].mxu1 }
 0x5c3   :  { %v2980_v46 = vmul.f32 0.01, %v2884_v37  ;;  %v2887_v53 = vadd.f32 %v7376_v32, %v9058_v35  ;;  %v2878_v63 = vpop.f32.mrb[203].mxu1 }
 0x5c4   :  { %v2978_v13 = vmul.f32 0.01, %v2876_v45  ;;  %v2879_v56 = vadd.f32 %v2878_v63, %v9058_v35 }
 0x5c5   :  { %v2981_v49 = vmul.f32 0.01, %v2887_v53  ;;  %v3012_v57 = vmax.f32 %v2884_v37, %v2980_v46 }
 0x5c6   :  { %v2979_v23 = vmul.f32 0.01, %v2879_v56  ;;  %v3010_v61 = vmax.f32 %v2876_v45, %v2978_v13 }
 0x5c7   :  { %v3013_v34 = vmax.f32 %v2887_v53, %v2981_v49 }
 0x5c8   :  { %v3011_v62 = vmax.f32 %v2879_v56, %v2979_v23 }
 0x5c9   :  { %v3039_v2 = vpack.c.bf16 %v3013_v34, %v3012_v57 }
 0x5ca   :  { %v3038_v1 = vpack.c.bf16 %v3011_v62, %v3010_v61 }
 0x5cc   :  { %7421 = vmatprep.mubr.bf16.mxu0 %v3038_v1 }
 0x5cd   :  { %7422 = vmatmul.mubr.bf16.gmra.mrb[104].mxu0 %v3039_v2 }
 0x5d0   :  { %v7379_v51 = vpop.f32.mrb[204].mxu1 }
 0x5d1   :  { %v2900_v25 = vadd.f32 %v7379_v51, %v9058_v35  ;;  %v2891_v60 = vpop.f32.mrb[205].mxu1 }
 0x5d2   :  { %v2892_v5 = vadd.f32 %v2891_v60, %v9058_v35  ;;  %v7380_v59 = vpop.f32.mrb[206].mxu1 }
 0x5d3   :  { %v2984_v8 = vmul.f32 0.01, %v2900_v25  ;;  %v2903_v38 = vadd.f32 %v7380_v59, %v9058_v35  ;;  %v2894_v52 = vpop.f32.mrb[207].mxu1 }
 0x5d4   :  { %v2982_v9 = vmul.f32 0.01, %v2892_v5  ;;  %v2895_v6 = vadd.f32 %v2894_v52, %v9058_v35 }
 0x5d5   :  { %v2985_v22 = vmul.f32 0.01, %v2903_v38  ;;  %v3016_v18 = vmax.f32 %v2900_v25, %v2984_v8 }
 0x5d6   :  { %v2983_v58 = vmul.f32 0.01, %v2895_v6  ;;  %v3014_v16 = vmax.f32 %v2892_v5, %v2982_v9 }
 0x5d7   :  { %v3017_v54 = vmax.f32 %v2903_v38, %v2985_v22 }
 0x5d8   :  { %v3015_v48 = vmax.f32 %v2895_v6, %v2983_v58  ;;  %v7943_v58 = vld [vmem:[#allocation14 + $0xf8] sm:$0xff]  }
 0x5d9   :  { %v3041_v15 = vpack.c.bf16 %v3017_v54, %v3016_v18  ;;  %7459 = vmatprep.subr.bf16.mxu1 %v7943_v58 }
 0x5da   :  { %v3040_v14 = vpack.c.bf16 %v3015_v48, %v3014_v16  ;;  %7460 = vmatpush3.bf16.msra.mxu1 %v7943_v58 }
 0x5dc   :  { %7425 = vmatprep.mubr.bf16.mxu0 %v3040_v14 }
 0x5dd   :  { %7426 = vmatmul.mubr.bf16.gmra.mrb[108].mxu0 %v3041_v15 }
 0x5e0   :  { %v7383_v43 = vpop.f32.mrb[208].mxu1 }
 0x5e1   :  { %v2916_v42 = vadd.f32 %v7383_v43, %v9058_v35  ;;  %v2907_v24 = vpop.f32.mrb[209].mxu1 }
 0x5e2   :  { %v2908_v3 = vadd.f32 %v2907_v24, %v9058_v35  ;;  %v7384_v7 = vpop.f32.mrb[210].mxu1 }
 0x5e3   :  { %v2988_v12 = vmul.f32 0.01, %v2916_v42  ;;  %v2919_v19 = vadd.f32 %v7384_v7, %v9058_v35  ;;  %v2910_v40 = vpop.f32.mrb[211].mxu1 }
 0x5e4   :  { %v2986_v30 = vmul.f32 0.01, %v2908_v3  ;;  %v2911_v20 = vadd.f32 %v2910_v40, %v9058_v35 }
 0x5e5   :  { %v2989_v27 = vmul.f32 0.01, %v2919_v19  ;;  %v3020_v28 = vmax.f32 %v2916_v42, %v2988_v12 }
 0x5e6   :  { %v2987_v26 = vmul.f32 0.01, %v2911_v20  ;;  %v3018_v44 = vmax.f32 %v2908_v3, %v2986_v30 }
 0x5e7   :  { %v3021_v47 = vmax.f32 %v2919_v19, %v2989_v27 }
 0x5e8   :  { %v3019_v29 = vmax.f32 %v2911_v20, %v2987_v26 }
 0x5e9   :  { %v3043_v31 = vpack.c.bf16 %v3021_v47, %v3020_v28 }
 0x5ea   :  { %v3042_v33 = vpack.c.bf16 %v3019_v29, %v3018_v44 }
 0x5ec   :  { %7429 = vmatprep.mubr.bf16.mxu0 %v3042_v33  ;;  %v7945_v33 = vld [vmem:[#allocation14 + $0x108] sm:$0xff]  }
 0x5ed   :  { %7430 = vmatmul.mubr.bf16.gmra.mrb[112].mxu0 %v3043_v31  ;;  %v7944_v31 = vld [vmem:[#allocation14 + $0x100] sm:$0xff]  }
 0x5ee   :  { %7493 = vmatprep.subr.bf16.mxu0 %v7944_v31 }
 0x5ef   :  { %7494 = vmatpush3.bf16.msra.mxu0 %v7944_v31 }
 0x5f0   :  { %v7387_v39 = vpop.f32.mrb[212].mxu1  ;;  %7495 = vmatprep.subr.bf16.mxu0 %v7945_v33 }
 0x5f1   :  { %v2932_v21 = vadd.f32 %v7387_v39, %v9058_v35  ;;  %v2923_v17 = vpop.f32.mrb[213].mxu1  ;;  %v9092_v39 = vld [vmem:[#allocation16 + $0x5] ss:$0 sm:$0xff] }
 0x5f2   :  { %v2924_v41 = vadd.f32 %v2923_v17, %v9058_v35  ;;  %v7388_v37 = vpop.f32.mrb[214].mxu1 }
 0x5f3   :  { %v2992_v10 = vmul.f32 0.01, %v2932_v21  ;;  %v2935_v45 = vadd.f32 %v7388_v37, %v9058_v35  ;;  %v2926_v32 = vpop.f32.mrb[215].mxu1  ;;  %7496 = vmatpush3.bf16.msra.mxu0 %v7945_v33 }
 0x5f4   :  { %v2990_v46 = vmul.f32 0.01, %v2924_v41  ;;  %v2927_v53 = vadd.f32 %v2926_v32, %v9058_v35 }
 0x5f5   :  { %v2993_v63 = vmul.f32 0.01, %v2935_v45  ;;  %v3024_v56 = vmax.f32 %v2932_v21, %v2992_v10 }
 0x5f6   :  { %v2991_v13 = vmul.f32 0.01, %v2927_v53  ;;  %v3022_v23 = vmax.f32 %v2924_v41, %v2990_v46  ;;  %v7946_v41 = vld [vmem:[#allocation14 + $0x110] sm:$0xff]  }
 0x5f7   :  { %v3025_v49 = vmax.f32 %v2935_v45, %v2993_v63  ;;  %7497 = vmatprep.subr.bf16.mxu0 %v7946_v41 }
 0x5f8   :  { %v3023_v57 = vmax.f32 %v2927_v53, %v2991_v13  ;;  %7498 = vmatpush3.bf16.msra.mxu0 %v7946_v41 }
 0x5f9   :  { %v3045_v34 = vpack.c.bf16 %v3025_v49, %v3024_v56  ;;  %v7947_v56 = vld [vmem:[#allocation14 + $0x118] sm:$0xff]  }
 0x5fa   :  { %v3044_v61 = vpack.c.bf16 %v3023_v57, %v3022_v23  ;;  %7499 = vmatprep.subr.bf16.mxu0 %v7947_v56 }
 0x5fc   :  { %7433 = vmatprep.mubr.bf16.mxu0 %v3044_v61  ;;  %7500 = vmatpush3.bf16.msra.mxu0 %v7947_v56 }
 0x5fd   :  { %7434 = vmatmul.mubr.bf16.gmra.mrb[116].mxu0 %v3045_v34 }
 0x600   :  { %v7391_v62 = vpop.f32.mrb[216].mxu1 }
 0x601   :  { %v2948_v2 = vadd.f32 %v7391_v62, %v9058_v35  ;;  %v2939_v1 = vpop.f32.mrb[217].mxu1 }
 0x602   :  { %v2940_v51 = vadd.f32 %v2939_v1, %v9058_v35  ;;  %v7392_v25 = vpop.f32.mrb[218].mxu1 }
 0x603   :  { %v2996_v60 = vmul.f32 0.01, %v2948_v2  ;;  %v2951_v5 = vadd.f32 %v7392_v25, %v9058_v35  ;;  %v2942_v59 = vpop.f32.mrb[219].mxu1 }
 0x604   :  { %v2994_v8 = vmul.f32 0.01, %v2940_v51  ;;  %v2943_v38 = vadd.f32 %v2942_v59, %v9058_v35  ;;  %v7950_v59 = vld [vmem:[#allocation14 + $0x130] sm:$0xff]  }
 0x605   :  { %v2997_v52 = vmul.f32 0.01, %v2951_v5  ;;  %v3028_v6 = vmax.f32 %v2948_v2, %v2996_v60  ;;  %v7948_v2 = vld [vmem:[#allocation14 + $0x120] sm:$0xff]  }
 0x606   :  { %v2995_v9 = vmul.f32 0.01, %v2943_v38  ;;  %v3026_v18 = vmax.f32 %v2940_v51, %v2994_v8  ;;  %7501 = vmatprep.subr.bf16.mxu0 %v7948_v2  ;;  %v7949_v51 = vld [vmem:[#allocation14 + $0x128] sm:$0xff]  }
 0x607   :  { %v3029_v22 = vmax.f32 %v2951_v5, %v2997_v52  ;;  %7502 = vmatpush3.bf16.msra.mxu0 %v7948_v2 }
 0x608   :  { %v3027_v54 = vmax.f32 %v2943_v38, %v2995_v9  ;;  %7503 = vmatprep.subr.bf16.mxu0 %v7949_v51 }
 0x609   :  { %v3047_v16 = vpack.c.bf16 %v3029_v22, %v3028_v6 }
 0x60a   :  { %v3046_v48 = vpack.c.bf16 %v3027_v54, %v3026_v18 }
 0x60b   :  { %7504 = vmatpush3.bf16.msra.mxu0 %v7949_v51 }
 0x60c   :  { %7437 = vmatprep.mubr.bf16.mxu0 %v3046_v48  ;;  %7505 = vmatprep.subr.bf16.mxu0 %v7950_v59 }
 0x60d   :  { %7438 = vmatmul.mubr.bf16.gmra.mrb[120].mxu0 %v3047_v16 }
 0x60f   :  { %7506 = vmatpush3.bf16.msra.mxu0 %v7950_v59 }
 0x610   :  { %v7395_v15 = vpop.f32.mrb[220].mxu1 }
 0x611   :  { %v2964_v14 = vadd.f32 %v7395_v15, %v9058_v35  ;;  %v2955_v43 = vpop.f32.mrb[221].mxu1 }
 0x612   :  { %v2956_v42 = vadd.f32 %v2955_v43, %v9058_v35  ;;  %v7396_v24 = vpop.f32.mrb[222].mxu1 }
 0x613   :  { %v3000_v3 = vmul.f32 0.01, %v2964_v14  ;;  %v2967_v7 = vadd.f32 %v7396_v24, %v9058_v35  ;;  %v2958_v12 = vpop.f32.mrb[223].mxu1 }
 0x614   :  { %v2998_v19 = vmul.f32 0.01, %v2956_v42  ;;  %v2959_v40 = vadd.f32 %v2958_v12, %v9058_v35 }
 0x615   :  { %v3001_v30 = vmul.f32 0.01, %v2967_v7  ;;  %v3032_v27 = vmax.f32 %v2964_v14, %v3000_v3 }
 0x616   :  { %v2999_v20 = vmul.f32 0.01, %v2959_v40  ;;  %v3030_v28 = vmax.f32 %v2956_v42, %v2998_v19 }
 0x617   :  { %v3033_v26 = vmax.f32 %v2967_v7, %v3001_v30 }
 0x618   :  { %v3031_v47 = vmax.f32 %v2959_v40, %v2999_v20 }
 0x619   :  { %v3049_v44 = vpack.c.bf16 %v3033_v26, %v3032_v27 }
 0x61a   :  { %v3048_v29 = vpack.c.bf16 %v3031_v47, %v3030_v28 }
 0x61c   :  { %7441 = vmatprep.mubr.bf16.mxu0 %v3048_v29 }
 0x61d   :  { %7442 = vmatmul.mubr.bf16.gmra.mrb[124].mxu0 %v3049_v44 }
 0x680   :  { %v7415_v21 = vpop.f32.mrb[96].mxu0 }
 0x681   :  { %v3159_v17 = vadd.f32 %v7415_v21, %v9092_v39  ;;  %v3150_v35 = vpop.f32.mrb[97].mxu0 }
 0x682   :  { %v3151_v37 = vadd.f32 %v3150_v35, %v9092_v39  ;;  %v7416_v10 = vpop.f32.mrb[98].mxu0 }
 0x683   :  { %v3279_v45 = vmul.f32 0.01, %v3159_v17  ;;  %v3162_v32 = vadd.f32 %v7416_v10, %v9092_v39  ;;  %v3153_v46 = vpop.f32.mrb[99].mxu0 }
 0x684   :  { %v3277_v53 = vmul.f32 0.01, %v3151_v37  ;;  %v3154_v63 = vadd.f32 %v3153_v46, %v9092_v39 }
 0x685   :  { %v3280_v13 = vmul.f32 0.01, %v3162_v32  ;;  %v3311_v23 = vmax.f32 %v3159_v17, %v3279_v45 }
 0x686   :  { %v3278_v49 = vmul.f32 0.01, %v3154_v63  ;;  %v3309_v34 = vmax.f32 %v3151_v37, %v3277_v53 }
 0x687   :  { %v3312_v57 = vmax.f32 %v3162_v32, %v3280_v13 }
 0x688   :  { %v3310_v61 = vmax.f32 %v3154_v63, %v3278_v49 }
 0x689   :  { %v3342_v62 = vpack.c.bf16 %v3312_v57, %v3311_v23 }
 0x68a   :  { %v3341_v1 = vpack.c.bf16 %v3310_v61, %v3309_v34 }
 0x68c   :  { %7461 = vmatprep.mubr.bf16.mxu1 %v3341_v1 }
 0x68d   :  { %7462 = vmatmul.mubr.bf16.vlgmr.msra.gmra.mrb[224].mxu1 %v3342_v62 }
 0x690   :  { %v7419_v25 = vpop.f32.mrb[100].mxu0 }
 0x691   :  { %v3175_v60 = vadd.f32 %v7419_v25, %v9092_v39  ;;  %v3166_v5 = vpop.f32.mrb[101].mxu0 }
 0x692   :  { %v3167_v8 = vadd.f32 %v3166_v5, %v9092_v39  ;;  %v7420_v38 = vpop.f32.mrb[102].mxu0 }
 0x693   :  { %v3283_v52 = vmul.f32 0.01, %v3175_v60  ;;  %v3178_v9 = vadd.f32 %v7420_v38, %v9092_v39  ;;  %v3169_v6 = vpop.f32.mrb[103].mxu0 }
 0x694   :  { %v3281_v22 = vmul.f32 0.01, %v3167_v8  ;;  %v3170_v58 = vadd.f32 %v3169_v6, %v9092_v39 }
 0x695   :  { %v3284_v18 = vmul.f32 0.01, %v3178_v9  ;;  %v3315_v16 = vmax.f32 %v3175_v60, %v3283_v52 }
 0x696   :  { %v3282_v54 = vmul.f32 0.01, %v3170_v58  ;;  %v3313_v15 = vmax.f32 %v3167_v8, %v3281_v22 }
 0x697   :  { %v3316_v48 = vmax.f32 %v3178_v9, %v3284_v18 }
 0x698   :  { %v3314_v14 = vmax.f32 %v3170_v58, %v3282_v54 }
 0x699   :  { %v3344_v43 = vpack.c.bf16 %v3316_v48, %v3315_v16 }
 0x69a   :  { %v3343_v42 = vpack.c.bf16 %v3314_v14, %v3313_v15 }
 0x69c   :  { %7465 = vmatprep.mubr.bf16.mxu1 %v3343_v42 }
 0x69d   :  { %7466 = vmatmul.mubr.bf16.gmra.mrb[228].mxu1 %v3344_v43 }
 0x6a0   :  { %v7423_v24 = vpop.f32.mrb[104].mxu0 }
 0x6a1   :  { %v3191_v3 = vadd.f32 %v7423_v24, %v9092_v39  ;;  %v3182_v7 = vpop.f32.mrb[105].mxu0 }
 0x6a2   :  { %v3183_v12 = vadd.f32 %v3182_v7, %v9092_v39  ;;  %v7424_v19 = vpop.f32.mrb[106].mxu0 }
 0x6a3   :  { %v3287_v40 = vmul.f32 0.01, %v3191_v3  ;;  %v3194_v30 = vadd.f32 %v7424_v19, %v9092_v39  ;;  %v3185_v20 = vpop.f32.mrb[107].mxu0 }
 0x6a4   :  { %v3285_v27 = vmul.f32 0.01, %v3183_v12  ;;  %v3186_v26 = vadd.f32 %v3185_v20, %v9092_v39 }
 0x6a5   :  { %v3288_v28 = vmul.f32 0.01, %v3194_v30  ;;  %v3319_v44 = vmax.f32 %v3191_v3, %v3287_v40 }
 0x6a6   :  { %v3286_v47 = vmul.f32 0.01, %v3186_v26  ;;  %v3317_v31 = vmax.f32 %v3183_v12, %v3285_v27 }
 0x6a7   :  { %v3320_v29 = vmax.f32 %v3194_v30, %v3288_v28 }
 0x6a8   :  { %v3318_v33 = vmax.f32 %v3186_v26, %v3286_v47 }
 0x6a9   :  { %v3346_v21 = vpack.c.bf16 %v3320_v29, %v3319_v44 }
 0x6aa   :  { %v3345_v17 = vpack.c.bf16 %v3318_v33, %v3317_v31 }
 0x6ac   :  { %7469 = vmatprep.mubr.bf16.mxu1 %v3345_v17 }
 0x6ad   :  { %7470 = vmatmul.mubr.bf16.gmra.mrb[232].mxu1 %v3346_v21 }
 0x6b0   :  { %v7427_v35 = vpop.f32.mrb[108].mxu0 }
 0x6b1   :  { %v3207_v41 = vadd.f32 %v7427_v35, %v9092_v39  ;;  %v3198_v37 = vpop.f32.mrb[109].mxu0 }
 0x6b2   :  { %v3199_v10 = vadd.f32 %v3198_v37, %v9092_v39  ;;  %v7428_v45 = vpop.f32.mrb[110].mxu0 }
 0x6b3   :  { %v3291_v32 = vmul.f32 0.01, %v3207_v41  ;;  %v3210_v46 = vadd.f32 %v7428_v45, %v9092_v39  ;;  %v3201_v53 = vpop.f32.mrb[111].mxu0 }
 0x6b4   :  { %v3289_v63 = vmul.f32 0.01, %v3199_v10  ;;  %v3202_v13 = vadd.f32 %v3201_v53, %v9092_v39 }
 0x6b5   :  { %v3292_v56 = vmul.f32 0.01, %v3210_v46  ;;  %v3323_v23 = vmax.f32 %v3207_v41, %v3291_v32 }
 0x6b6   :  { %v3290_v49 = vmul.f32 0.01, %v3202_v13  ;;  %v3321_v34 = vmax.f32 %v3199_v10, %v3289_v63 }
 0x6b7   :  { %v3324_v57 = vmax.f32 %v3210_v46, %v3292_v56 }
 0x6b8   :  { %v3322_v61 = vmax.f32 %v3202_v13, %v3290_v49  ;;  %v7951_v49 = vld [vmem:[#allocation14 + $0x138] sm:$0xff]  }
 0x6b9   :  { %v3348_v62 = vpack.c.bf16 %v3324_v57, %v3323_v23  ;;  %7507 = vmatprep.subr.bf16.mxu0 %v7951_v49 }
 0x6ba   :  { %v3347_v2 = vpack.c.bf16 %v3322_v61, %v3321_v34  ;;  %7508 = vmatpush3.bf16.msra.mxu0 %v7951_v49 }
 0x6bc   :  { %7473 = vmatprep.mubr.bf16.mxu1 %v3347_v2 }
 0x6bd   :  { %7474 = vmatmul.mubr.bf16.gmra.mrb[236].mxu1 %v3348_v62 }
 0x6c0   :  { %v7431_v1 = vpop.f32.mrb[112].mxu0 }
 0x6c1   :  { %v3223_v51 = vadd.f32 %v7431_v1, %v9092_v39  ;;  %v3214_v25 = vpop.f32.mrb[113].mxu0 }
 0x6c2   :  { %v3215_v60 = vadd.f32 %v3214_v25, %v9092_v39  ;;  %v7432_v5 = vpop.f32.mrb[114].mxu0 }
 0x6c3   :  { %v3295_v59 = vmul.f32 0.01, %v3223_v51  ;;  %v3226_v8 = vadd.f32 %v7432_v5, %v9092_v39  ;;  %v3217_v38 = vpop.f32.mrb[115].mxu0 }
 0x6c4   :  { %v3293_v52 = vmul.f32 0.01, %v3215_v60  ;;  %v3218_v9 = vadd.f32 %v3217_v38, %v9092_v39 }
 0x6c5   :  { %v3296_v6 = vmul.f32 0.01, %v3226_v8  ;;  %v3327_v58 = vmax.f32 %v3223_v51, %v3295_v59 }
 0x6c6   :  { %v3294_v22 = vmul.f32 0.01, %v3218_v9  ;;  %v3325_v54 = vmax.f32 %v3215_v60, %v3293_v52 }
 0x6c7   :  { %v3328_v18 = vmax.f32 %v3226_v8, %v3296_v6 }
 0x6c8   :  { %v3326_v16 = vmax.f32 %v3218_v9, %v3294_v22 }
 0x6c9   :  { %v3350_v48 = vpack.c.bf16 %v3328_v18, %v3327_v58 }
 0x6ca   :  { %v3349_v15 = vpack.c.bf16 %v3326_v16, %v3325_v54 }
 0x6cc   :  { %7477 = vmatprep.mubr.bf16.mxu1 %v3349_v15  ;;  %v7953_v15 = vld [vmem:[#allocation14 + $0x148] sm:$0xff]  }
 0x6cd   :  { %7478 = vmatmul.mubr.bf16.gmra.mrb[240].mxu1 %v3350_v48  ;;  %v7952_v48 = vld [vmem:[#allocation14 + $0x140] sm:$0xff]  }
 0x6ce   :  { %7541 = vmatprep.subr.bf16.mxu1 %v7952_v48 }
 0x6cf   :  { %7542 = vmatpush3.bf16.msra.mxu1 %v7952_v48 }
 0x6d0   :  { %v7435_v14 = vpop.f32.mrb[116].mxu0  ;;  %7543 = vmatprep.subr.bf16.mxu1 %v7953_v15 }
 0x6d1   :  { %v3239_v43 = vadd.f32 %v7435_v14, %v9092_v39  ;;  %v3230_v42 = vpop.f32.mrb[117].mxu0  ;;  %v9126_v14 = vld [vmem:[#allocation16 + $0x6] ss:$0 sm:$0xff] }
 0x6d2   :  { %v3231_v24 = vadd.f32 %v3230_v42, %v9092_v39  ;;  %v7436_v3 = vpop.f32.mrb[118].mxu0 }
 0x6d3   :  { %v3299_v7 = vmul.f32 0.01, %v3239_v43  ;;  %v3242_v12 = vadd.f32 %v7436_v3, %v9092_v39  ;;  %v3233_v19 = vpop.f32.mrb[119].mxu0  ;;  %7544 = vmatpush3.bf16.msra.mxu1 %v7953_v15 }
 0x6d4   :  { %v3297_v40 = vmul.f32 0.01, %v3231_v24  ;;  %v3234_v30 = vadd.f32 %v3233_v19, %v9092_v39 }
 0x6d5   :  { %v3300_v20 = vmul.f32 0.01, %v3242_v12  ;;  %v3331_v26 = vmax.f32 %v3239_v43, %v3299_v7 }
 0x6d6   :  { %v3298_v27 = vmul.f32 0.01, %v3234_v30  ;;  %v3329_v47 = vmax.f32 %v3231_v24, %v3297_v40  ;;  %v7954_v24 = vld [vmem:[#allocation14 + $0x150] sm:$0xff]  }
 0x6d7   :  { %v3332_v28 = vmax.f32 %v3242_v12, %v3300_v20  ;;  %7545 = vmatprep.subr.bf16.mxu1 %v7954_v24 }
 0x6d8   :  { %v3330_v44 = vmax.f32 %v3234_v30, %v3298_v27  ;;  %7546 = vmatpush3.bf16.msra.mxu1 %v7954_v24 }
 0x6d9   :  { %v3352_v29 = vpack.c.bf16 %v3332_v28, %v3331_v26  ;;  %v7955_v26 = vld [vmem:[#allocation14 + $0x158] sm:$0xff]  }
 0x6da   :  { %v3351_v31 = vpack.c.bf16 %v3330_v44, %v3329_v47  ;;  %7547 = vmatprep.subr.bf16.mxu1 %v7955_v26 }
 0x6dc   :  { %7481 = vmatprep.mubr.bf16.mxu1 %v3351_v31  ;;  %7548 = vmatpush3.bf16.msra.mxu1 %v7955_v26 }
 0x6dd   :  { %7482 = vmatmul.mubr.bf16.gmra.mrb[244].mxu1 %v3352_v29 }
 0x6e0   :  { %v7439_v33 = vpop.f32.mrb[120].mxu0 }
 0x6e1   :  { %v3255_v21 = vadd.f32 %v7439_v33, %v9092_v39  ;;  %v3246_v17 = vpop.f32.mrb[121].mxu0 }
 0x6e2   :  { %v3247_v35 = vadd.f32 %v3246_v17, %v9092_v39  ;;  %v7440_v41 = vpop.f32.mrb[122].mxu0 }
 0x6e3   :  { %v3303_v37 = vmul.f32 0.01, %v3255_v21  ;;  %v3258_v10 = vadd.f32 %v7440_v41, %v9092_v39  ;;  %v3249_v45 = vpop.f32.mrb[123].mxu0 }
 0x6e4   :  { %v3301_v32 = vmul.f32 0.01, %v3247_v35  ;;  %v3250_v46 = vadd.f32 %v3249_v45, %v9092_v39  ;;  %v7958_v45 = vld [vmem:[#allocation14 + $0x170] sm:$0xff]  }
 0x6e5   :  { %v3304_v53 = vmul.f32 0.01, %v3258_v10  ;;  %v3335_v13 = vmax.f32 %v3255_v21, %v3303_v37  ;;  %v7956_v21 = vld [vmem:[#allocation14 + $0x160] sm:$0xff]  }
 0x6e6   :  { %v3302_v63 = vmul.f32 0.01, %v3250_v46  ;;  %v3333_v23 = vmax.f32 %v3247_v35, %v3301_v32  ;;  %7549 = vmatprep.subr.bf16.mxu1 %v7956_v21  ;;  %v7957_v35 = vld [vmem:[#allocation14 + $0x168] sm:$0xff]  }
 0x6e7   :  { %v3336_v56 = vmax.f32 %v3258_v10, %v3304_v53  ;;  %7550 = vmatpush3.bf16.msra.mxu1 %v7956_v21 }
 0x6e8   :  { %v3334_v57 = vmax.f32 %v3250_v46, %v3302_v63  ;;  %7551 = vmatprep.subr.bf16.mxu1 %v7957_v35 }
 0x6e9   :  { %v3354_v34 = vpack.c.bf16 %v3336_v56, %v3335_v13 }
 0x6ea   :  { %v3353_v61 = vpack.c.bf16 %v3334_v57, %v3333_v23 }
 0x6eb   :  { %7552 = vmatpush3.bf16.msra.mxu1 %v7957_v35 }
 0x6ec   :  { %7485 = vmatprep.mubr.bf16.mxu1 %v3353_v61  ;;  %7553 = vmatprep.subr.bf16.mxu1 %v7958_v45 }
 0x6ed   :  { %7486 = vmatmul.mubr.bf16.gmra.mrb[248].mxu1 %v3354_v34 }
 0x6ef   :  { %7554 = vmatpush3.bf16.msra.mxu1 %v7958_v45 }
 0x6f0   :  { %v7443_v62 = vpop.f32.mrb[124].mxu0 }
 0x6f1   :  { %v3271_v2 = vadd.f32 %v7443_v62, %v9092_v39  ;;  %v3262_v1 = vpop.f32.mrb[125].mxu0 }
 0x6f2   :  { %v3263_v51 = vadd.f32 %v3262_v1, %v9092_v39  ;;  %v7444_v25 = vpop.f32.mrb[126].mxu0 }
 0x6f3   :  { %v3307_v60 = vmul.f32 0.01, %v3271_v2  ;;  %v3274_v5 = vadd.f32 %v7444_v25, %v9092_v39  ;;  %v3265_v59 = vpop.f32.mrb[127].mxu0 }
 0x6f4   :  { %v3305_v8 = vmul.f32 0.01, %v3263_v51  ;;  %v3266_v38 = vadd.f32 %v3265_v59, %v9092_v39 }
 0x6f5   :  { %v3308_v52 = vmul.f32 0.01, %v3274_v5  ;;  %v3339_v6 = vmax.f32 %v3271_v2, %v3307_v60 }
 0x6f6   :  { %v3306_v9 = vmul.f32 0.01, %v3266_v38  ;;  %v3337_v58 = vmax.f32 %v3263_v51, %v3305_v8 }
 0x6f7   :  { %v3340_v22 = vmax.f32 %v3274_v5, %v3308_v52 }
 0x6f8   :  { %v3338_v18 = vmax.f32 %v3266_v38, %v3306_v9 }
 0x6f9   :  { %v3356_v54 = vpack.c.bf16 %v3340_v22, %v3339_v6 }
 0x6fa   :  { %v3355_v16 = vpack.c.bf16 %v3338_v18, %v3337_v58 }
 0x6fc   :  { %7489 = vmatprep.mubr.bf16.mxu1 %v3355_v16 }
 0x6fd   :  { %7490 = vmatmul.mubr.bf16.gmra.mrb[252].mxu1 %v3356_v54 }
 0x760   :  { %v7463_v43 = vpop.f32.mrb[224].mxu1 }
 0x761   :  { %v3466_v42 = vadd.f32 %v7463_v43, %v9126_v14  ;;  %v3457_v39 = vpop.f32.mrb[225].mxu1 }
 0x762   :  { %v3458_v3 = vadd.f32 %v3457_v39, %v9126_v14  ;;  %v7464_v7 = vpop.f32.mrb[226].mxu1 }
 0x763   :  { %v3586_v12 = vmul.f32 0.01, %v3466_v42  ;;  %v3469_v19 = vadd.f32 %v7464_v7, %v9126_v14  ;;  %v3460_v40 = vpop.f32.mrb[227].mxu1 }
 0x764   :  { %v3584_v30 = vmul.f32 0.01, %v3458_v3  ;;  %v3461_v20 = vadd.f32 %v3460_v40, %v9126_v14 }
 0x765   :  { %v3587_v27 = vmul.f32 0.01, %v3469_v19  ;;  %v3618_v47 = vmax.f32 %v3466_v42, %v3586_v12 }
 0x766   :  { %v3585_v28 = vmul.f32 0.01, %v3461_v20  ;;  %v3616_v29 = vmax.f32 %v3458_v3, %v3584_v30 }
 0x767   :  { %v3619_v44 = vmax.f32 %v3469_v19, %v3587_v27 }
 0x768   :  { %v3617_v31 = vmax.f32 %v3461_v20, %v3585_v28 }
 0x769   :  { %v3649_v33 = vpack.c.bf16 %v3619_v44, %v3618_v47 }
 0x76a   :  { %v3648_v17 = vpack.c.bf16 %v3617_v31, %v3616_v29 }
 0x76c   :  { %7509 = vmatprep.mubr.bf16.mxu0 %v3648_v17 }
 0x76d   :  { %7510 = vmatmul.mubr.bf16.vlgmr.msra.gmra.mrb[128].mxu0 %v3649_v33 }
 0x770   :  { %v7467_v41 = vpop.f32.mrb[228].mxu1 }
 0x771   :  { %v3482_v37 = vadd.f32 %v7467_v41, %v9126_v14  ;;  %v3473_v10 = vpop.f32.mrb[229].mxu1 }
 0x772   :  { %v3474_v32 = vadd.f32 %v3473_v10, %v9126_v14  ;;  %v7468_v46 = vpop.f32.mrb[230].mxu1 }
 0x773   :  { %v3590_v53 = vmul.f32 0.01, %v3482_v37  ;;  %v3485_v63 = vadd.f32 %v7468_v46, %v9126_v14  ;;  %v3476_v13 = vpop.f32.mrb[231].mxu1 }
 0x774   :  { %v3588_v56 = vmul.f32 0.01, %v3474_v32  ;;  %v3477_v49 = vadd.f32 %v3476_v13, %v9126_v14 }
 0x775   :  { %v3591_v23 = vmul.f32 0.01, %v3485_v63  ;;  %v3622_v34 = vmax.f32 %v3482_v37, %v3590_v53 }
 0x776   :  { %v3589_v57 = vmul.f32 0.01, %v3477_v49  ;;  %v3620_v62 = vmax.f32 %v3474_v32, %v3588_v56 }
 0x777   :  { %v3623_v61 = vmax.f32 %v3485_v63, %v3591_v23 }
 0x778   :  { %v3621_v2 = vmax.f32 %v3477_v49, %v3589_v57 }
 0x779   :  { %v3651_v1 = vpack.c.bf16 %v3623_v61, %v3622_v34 }
 0x77a   :  { %v3650_v51 = vpack.c.bf16 %v3621_v2, %v3620_v62 }
 0x77c   :  { %7513 = vmatprep.mubr.bf16.mxu0 %v3650_v51 }
 0x77d   :  { %7514 = vmatmul.mubr.bf16.gmra.mrb[132].mxu0 %v3651_v1 }
 0x780   :  { %v7471_v25 = vpop.f32.mrb[232].mxu1 }
 0x781   :  { %v3498_v60 = vadd.f32 %v7471_v25, %v9126_v14  ;;  %v3489_v5 = vpop.f32.mrb[233].mxu1 }
 0x782   :  { %v3490_v59 = vadd.f32 %v3489_v5, %v9126_v14  ;;  %v7472_v8 = vpop.f32.mrb[234].mxu1 }
 0x783   :  { %v3594_v38 = vmul.f32 0.01, %v3498_v60  ;;  %v3501_v52 = vadd.f32 %v7472_v8, %v9126_v14  ;;  %v3492_v9 = vpop.f32.mrb[235].mxu1 }
 0x784   :  { %v3592_v6 = vmul.f32 0.01, %v3490_v59  ;;  %v3493_v22 = vadd.f32 %v3492_v9, %v9126_v14 }
 0x785   :  { %v3595_v58 = vmul.f32 0.01, %v3501_v52  ;;  %v3626_v54 = vmax.f32 %v3498_v60, %v3594_v38 }
 0x786   :  { %v3593_v18 = vmul.f32 0.01, %v3493_v22  ;;  %v3624_v48 = vmax.f32 %v3490_v59, %v3592_v6 }
 0x787   :  { %v3627_v16 = vmax.f32 %v3501_v52, %v3595_v58 }
 0x788   :  { %v3625_v15 = vmax.f32 %v3493_v22, %v3593_v18 }
 0x789   :  { %v3653_v43 = vpack.c.bf16 %v3627_v16, %v3626_v54 }
 0x78a   :  { %v3652_v42 = vpack.c.bf16 %v3625_v15, %v3624_v48 }
 0x78c   :  { %7517 = vmatprep.mubr.bf16.mxu0 %v3652_v42 }
 0x78d   :  { %7518 = vmatmul.mubr.bf16.gmra.mrb[136].mxu0 %v3653_v43 }
 0x790   :  { %v7475_v39 = vpop.f32.mrb[236].mxu1 }
 0x791   :  { %v3514_v24 = vadd.f32 %v7475_v39, %v9126_v14  ;;  %v3505_v3 = vpop.f32.mrb[237].mxu1 }
 0x792   :  { %v3506_v7 = vadd.f32 %v3505_v3, %v9126_v14  ;;  %v7476_v12 = vpop.f32.mrb[238].mxu1 }
 0x793   :  { %v3598_v19 = vmul.f32 0.01, %v3514_v24  ;;  %v3517_v40 = vadd.f32 %v7476_v12, %v9126_v14  ;;  %v3508_v30 = vpop.f32.mrb[239].mxu1 }
 0x794   :  { %v3596_v20 = vmul.f32 0.01, %v3506_v7  ;;  %v3509_v27 = vadd.f32 %v3508_v30, %v9126_v14 }
 0x795   :  { %v3599_v26 = vmul.f32 0.01, %v3517_v40  ;;  %v3630_v47 = vmax.f32 %v3514_v24, %v3598_v19 }
 0x796   :  { %v3597_v28 = vmul.f32 0.01, %v3509_v27  ;;  %v3628_v29 = vmax.f32 %v3506_v7, %v3596_v20 }
 0x797   :  { %v3631_v44 = vmax.f32 %v3517_v40, %v3599_v26 }
 0x798   :  { %v3629_v31 = vmax.f32 %v3509_v27, %v3597_v28  ;;  %v7959_v28 = vld [vmem:[#allocation14 + $0x178] sm:$0xff]  }
 0x799   :  { %v3655_v33 = vpack.c.bf16 %v3631_v44, %v3630_v47  ;;  %7555 = vmatprep.subr.bf16.mxu1 %v7959_v28 }
 0x79a   :  { %v3654_v21 = vpack.c.bf16 %v3629_v31, %v3628_v29  ;;  %7556 = vmatpush3.bf16.msra.mxu1 %v7959_v28 }
 0x79c   :  { %7521 = vmatprep.mubr.bf16.mxu0 %v3654_v21 }
 0x79d   :  { %7522 = vmatmul.mubr.bf16.gmra.mrb[140].mxu0 %v3655_v33 }
 0x7a0   :  { %v7479_v17 = vpop.f32.mrb[240].mxu1 }
 0x7a1   :  { %v3530_v35 = vadd.f32 %v7479_v17, %v9126_v14  ;;  %v3521_v41 = vpop.f32.mrb[241].mxu1 }
 0x7a2   :  { %v3522_v37 = vadd.f32 %v3521_v41, %v9126_v14  ;;  %v7480_v10 = vpop.f32.mrb[242].mxu1 }
 0x7a3   :  { %v3602_v45 = vmul.f32 0.01, %v3530_v35  ;;  %v3533_v32 = vadd.f32 %v7480_v10, %v9126_v14  ;;  %v3524_v46 = vpop.f32.mrb[243].mxu1 }
 0x7a4   :  { %v3600_v53 = vmul.f32 0.01, %v3522_v37  ;;  %v3525_v63 = vadd.f32 %v3524_v46, %v9126_v14 }
 0x7a5   :  { %v3603_v13 = vmul.f32 0.01, %v3533_v32  ;;  %v3634_v49 = vmax.f32 %v3530_v35, %v3602_v45 }
 0x7a6   :  { %v3601_v56 = vmul.f32 0.01, %v3525_v63  ;;  %v3632_v57 = vmax.f32 %v3522_v37, %v3600_v53 }
 0x7a7   :  { %v3635_v23 = vmax.f32 %v3533_v32, %v3603_v13 }
 0x7a8   :  { %v3633_v34 = vmax.f32 %v3525_v63, %v3601_v56 }
 0x7a9   :  { %v3657_v61 = vpack.c.bf16 %v3635_v23, %v3634_v49 }
 0x7aa   :  { %v3656_v62 = vpack.c.bf16 %v3633_v34, %v3632_v57 }
 0x7ac   :  { %7525 = vmatprep.mubr.bf16.mxu0 %v3656_v62  ;;  %v7962_v62 = vld [vmem:[#allocation10 + $0x4] ss:$8 sps:$4 sm:$0xff]  }
 0x7ad   :  { %7526 = vmatmul.mubr.bf16.gmra.mrb[144].mxu0 %v3657_v61  ;;  %v7960_v61 = vld [vmem:[#allocation10] ss:$8 sps:$4 sm:$0xff]   ;;  %4387 = vmatprep.subr.bf16.mxu0 %v7962_v62 }
 0x7ae   :  { %4388 = vmatpush1.bf16.msra.mxu0 %v7960_v61 }
 0x7b0   :  { %v7483_v2 = vpop.f32.mrb[244].mxu1 }
 0x7b1   :  { %v3546_v1 = vadd.f32 %v7483_v2, %v9126_v14  ;;  %v3537_v51 = vpop.f32.mrb[245].mxu1  ;;  %v9161_v2 = vld [vmem:[#allocation16 + $0x7] ss:$0 sm:$0xff] }
 0x7b2   :  { %v3538_v25 = vadd.f32 %v3537_v51, %v9126_v14  ;;  %v7484_v60 = vpop.f32.mrb[246].mxu1 }
 0x7b3   :  { %v3606_v5 = vmul.f32 0.01, %v3546_v1  ;;  %v3549_v59 = vadd.f32 %v7484_v60, %v9126_v14  ;;  %v3540_v8 = vpop.f32.mrb[247].mxu1 }
 0x7b4   :  { %v3604_v38 = vmul.f32 0.01, %v3538_v25  ;;  %v3541_v52 = vadd.f32 %v3540_v8, %v9126_v14 }
 0x7b5   :  { %v3607_v9 = vmul.f32 0.01, %v3549_v59  ;;  %v3638_v22 = vmax.f32 %v3546_v1, %v3606_v5  ;;  %v7965_v1 = vld [vmem:[#allocation10 + $0x14] ss:$8 sps:$4 sm:$0xff]   ;;  %v7968_v5 = vld [vmem:[#allocation10 + $0x24] ss:$8 sps:$4 sm:$0xff]  }
 0x7b6   :  { %v3605_v6 = vmul.f32 0.01, %v3541_v52  ;;  %v3636_v18 = vmax.f32 %v3538_v25, %v3604_v38  ;;  %4389 = vmatprep.subr.bf16.mxu0 %v7965_v1 }
 0x7b7   :  { %v3639_v58 = vmax.f32 %v3549_v59, %v3607_v9 }
 0x7b8   :  { %v3637_v54 = vmax.f32 %v3541_v52, %v3605_v6 }
 0x7b9   :  { %v3659_v16 = vpack.c.bf16 %v3639_v58, %v3638_v22  ;;  %v7966_v58 = vld [vmem:[#allocation10 + $0x20] ss:$8 sps:$4 sm:$0xff]  }
 0x7ba   :  { %v3658_v48 = vpack.c.bf16 %v3637_v54, %v3636_v18  ;;  %v7971_v54 = vld [vmem:[#allocation10 + $0x34] ss:$8 sps:$4 sm:$0xff]  }
 0x7bc   :  { %7529 = vmatprep.mubr.bf16.mxu0 %v3658_v48 }
 0x7bd   :  { %7530 = vmatmul.mubr.bf16.gmra.mrb[148].mxu0 %v3659_v16 }
 0x7c0   :  { %v7487_v15 = vpop.f32.mrb[248].mxu1 }
 0x7c1   :  { %v3562_v43 = vadd.f32 %v7487_v15, %v9126_v14  ;;  %v3553_v42 = vpop.f32.mrb[249].mxu1 }
 0x7c2   :  { %v3554_v39 = vadd.f32 %v3553_v42, %v9126_v14  ;;  %v7488_v24 = vpop.f32.mrb[250].mxu1 }
 0x7c3   :  { %v3610_v3 = vmul.f32 0.01, %v3562_v43  ;;  %v3565_v7 = vadd.f32 %v7488_v24, %v9126_v14  ;;  %v3556_v12 = vpop.f32.mrb[251].mxu1 }
 0x7c4   :  { %v3608_v19 = vmul.f32 0.01, %v3554_v39  ;;  %v3557_v40 = vadd.f32 %v3556_v12, %v9126_v14  ;;  %v7972_v12 = vld [vmem:[#allocation10 + $0x40] ss:$8 sps:$4 sm:$0xff]  }
 0x7c5   :  { %v3611_v30 = vmul.f32 0.01, %v3565_v7  ;;  %v3642_v27 = vmax.f32 %v3562_v43, %v3610_v3  ;;  %v7974_v3 = vld [vmem:[#allocation10 + $0x44] ss:$8 sps:$4 sm:$0xff]  }
 0x7c6   :  { %v3609_v20 = vmul.f32 0.01, %v3557_v40  ;;  %v3640_v47 = vmax.f32 %v3554_v39, %v3608_v19  ;;  %v7969_v39 = vld [vmem:[#allocation10 + $0x30] ss:$8 sps:$4 sm:$0xff]   ;;  %v7977_v19 = vld [vmem:[#allocation10 + $0x54] ss:$8 sps:$4 sm:$0xff]  }
 0x7c7   :  { %v3643_v26 = vmax.f32 %v3565_v7, %v3611_v30  ;;  %v7975_v30 = vld [vmem:[#allocation10 + $0x50] ss:$8 sps:$4 sm:$0xff]  }
 0x7c8   :  { %v3641_v44 = vmax.f32 %v3557_v40, %v3609_v20 }
 0x7c9   :  { %v3661_v29 = vpack.c.bf16 %v3643_v26, %v3642_v27  ;;  %v7980_v26 = vld [vmem:[#allocation10 + $0x64] ss:$8 sps:$4 sm:$0xff]  }
 0x7ca   :  { %v3660_v31 = vpack.c.bf16 %v3641_v44, %v3640_v47 }
 0x7cc   :  { %7533 = vmatprep.mubr.bf16.mxu0 %v3660_v31 }
 0x7cd   :  { %7534 = vmatmul.mubr.bf16.gmra.mrb[152].mxu0 %v3661_v29 }
 0x7d0   :  { %v7491_v33 = vpop.f32.mrb[252].mxu1 }
 0x7d1   :  { %v3578_v21 = vadd.f32 %v7491_v33, %v9126_v14  ;;  %v3569_v17 = vpop.f32.mrb[253].mxu1 }
 0x7d2   :  { %v3570_v35 = vadd.f32 %v3569_v17, %v9126_v14  ;;  %v7492_v41 = vpop.f32.mrb[254].mxu1  ;;  %v7978_v17 = vld [vmem:[#allocation10 + $0x60] ss:$8 sps:$4 sm:$0xff]  }
 0x7d3   :  { %v3614_v37 = vmul.f32 0.01, %v3578_v21  ;;  %v3581_v10 = vadd.f32 %v7492_v41, %v9126_v14  ;;  %v3572_v45 = vpop.f32.mrb[255].mxu1 }
 0x7d4   :  { %v3612_v32 = vmul.f32 0.01, %v3570_v35  ;;  %v3573_v46 = vadd.f32 %v3572_v45, %v9126_v14  ;;  %v7963_v14 = vld [vmem:[#allocation10 + $0x10] ss:$8 sps:$4 sm:$0xff]  }
 0x7d5   :  { %v3615_v53 = vmul.f32 0.01, %v3581_v10  ;;  %v3646_v13 = vmax.f32 %v3578_v21, %v3614_v37  ;;  %4390 = vmatpush1.bf16.msra.mxu0 %v7963_v14 }
 0x7d6   :  { %v3613_v63 = vmul.f32 0.01, %v3573_v46  ;;  %v3644_v49 = vmax.f32 %v3570_v35, %v3612_v32  ;;  %4391 = vmatprep.subr.bf16.mxu0 %v7968_v5 }
 0x7d7   :  { %v3647_v56 = vmax.f32 %v3581_v10, %v3615_v53 }
 0x7d8   :  { %v3645_v23 = vmax.f32 %v3573_v46, %v3613_v63 }
 0x7d9   :  { %v3663_v57 = vpack.c.bf16 %v3647_v56, %v3646_v13  ;;  %4392 = vmatpush1.bf16.msra.mxu0 %v7966_v58 }
 0x7da   :  { %v3662_v34 = vpack.c.bf16 %v3645_v23, %v3644_v49  ;;  %4393 = vmatprep.subr.bf16.mxu0 %v7971_v54 }
 0x7dc   :  { %7537 = vmatprep.mubr.bf16.mxu0 %v3662_v34 }
 0x7dd   :  { %7538 = vmatmul.mubr.bf16.gmra.mrb[156].mxu0 %v3663_v57 }
 0x7de   :  { %4419 = vmatprep.mubr.bf16.mxu0 %v8361_v0  ;;  %4394 = vmatpush1.bf16.msra.mxu0 %v7969_v39 }
 0x7df   :  { %4395 = vmatprep.subr.bf16.mxu0 %v7974_v3 }
 0x7e2   :  { %4396 = vmatpush1.bf16.msra.mxu0 %v7972_v12 }
 0x7e3   :  { %4397 = vmatprep.subr.bf16.mxu0 %v7977_v19 }
 0x7e6   :  { %4398 = vmatpush1.bf16.msra.mxu0 %v7975_v30 }
 0x7e7   :  { %4399 = vmatprep.subr.bf16.mxu0 %v7980_v26 }
 0x7ea   :  { %4400 = vmatpush1.bf16.msra.mxu0 %v7978_v17 }
 0x840   :  { %v7511_v51 = vpop.f32.mrb[128].mxu0 }
 0x841   :  { %v3773_v25 = vadd.f32 %v7511_v51, %v9161_v2  ;;  %v3764_v60 = vpop.f32.mrb[129].mxu0 }
 0x842   :  { %v3765_v59 = vadd.f32 %v3764_v60, %v9161_v2  ;;  %v7512_v8 = vpop.f32.mrb[130].mxu0 }
 0x843   :  { %v3893_v38 = vmul.f32 0.01, %v3773_v25  ;;  %v3776_v52 = vadd.f32 %v7512_v8, %v9161_v2  ;;  %v3767_v9 = vpop.f32.mrb[131].mxu0 }
 0x844   :  { %v3891_v6 = vmul.f32 0.01, %v3765_v59  ;;  %v3768_v22 = vadd.f32 %v3767_v9, %v9161_v2 }
 0x845   :  { %v3894_v18 = vmul.f32 0.01, %v3776_v52  ;;  %v3925_v48 = vmax.f32 %v3773_v25, %v3893_v38 }
 0x846   :  { %v3892_v16 = vmul.f32 0.01, %v3768_v22  ;;  %v3923_v43 = vmax.f32 %v3765_v59, %v3891_v6 }
 0x847   :  { %v3926_v15 = vmax.f32 %v3776_v52, %v3894_v18 }
 0x848   :  { %v3924_v42 = vmax.f32 %v3768_v22, %v3892_v16 }
 0x849   :  { %v3956_v24 = vpack.c.bf16 %v3926_v15, %v3925_v48 }
 0x84a   :  { %v3955_v7 = vpack.c.bf16 %v3924_v42, %v3923_v43 }
 0x84c   :  { %7557 = vmatprep.mubr.bf16.mxu1 %v3955_v7 }
 0x84d   :  { %7558 = vmatmul.mubr.bf16.vlgmr.msra.gmra.mrb[0].mxu1 %v3956_v24 }
 0x850   :  { %v7515_v40 = vpop.f32.mrb[132].mxu0 }
 0x851   :  { %v3789_v20 = vadd.f32 %v7515_v40, %v9161_v2  ;;  %v3780_v27 = vpop.f32.mrb[133].mxu0 }
 0x852   :  { %v3781_v28 = vadd.f32 %v3780_v27, %v9161_v2  ;;  %v7516_v47 = vpop.f32.mrb[134].mxu0 }
 0x853   :  { %v3897_v44 = vmul.f32 0.01, %v3789_v20  ;;  %v3792_v29 = vadd.f32 %v7516_v47, %v9161_v2  ;;  %v3783_v31 = vpop.f32.mrb[135].mxu0 }
 0x854   :  { %v3895_v33 = vmul.f32 0.01, %v3781_v28  ;;  %v3784_v21 = vadd.f32 %v3783_v31, %v9161_v2 }
 0x855   :  { %v3898_v35 = vmul.f32 0.01, %v3792_v29  ;;  %v3929_v37 = vmax.f32 %v3789_v20, %v3897_v44 }
 0x856   :  { %v3896_v41 = vmul.f32 0.01, %v3784_v21  ;;  %v3927_v45 = vmax.f32 %v3781_v28, %v3895_v33 }
 0x857   :  { %v3930_v10 = vmax.f32 %v3792_v29, %v3898_v35 }
 0x858   :  { %v3928_v32 = vmax.f32 %v3784_v21, %v3896_v41 }
 0x859   :  { %v3958_v46 = vpack.c.bf16 %v3930_v10, %v3929_v37 }
 0x85a   :  { %v3957_v53 = vpack.c.bf16 %v3928_v32, %v3927_v45 }
 0x85c   :  { %7561 = vmatprep.mubr.bf16.mxu1 %v3957_v53 }
 0x85d   :  { %7562 = vmatmul.mubr.bf16.gmra.mrb[4].mxu1 %v3958_v46 }
 0x860   :  { %v7519_v63 = vpop.f32.mrb[136].mxu0 }
 0x861   :  { %v3805_v13 = vadd.f32 %v7519_v63, %v9161_v2  ;;  %v3796_v56 = vpop.f32.mrb[137].mxu0 }
 0x862   :  { %v3797_v49 = vadd.f32 %v3796_v56, %v9161_v2  ;;  %v7520_v23 = vpop.f32.mrb[138].mxu0 }
 0x863   :  { %v3901_v57 = vmul.f32 0.01, %v3805_v13  ;;  %v3808_v34 = vadd.f32 %v7520_v23, %v9161_v2  ;;  %v3799_v61 = vpop.f32.mrb[139].mxu0 }
 0x864   :  { %v3899_v62 = vmul.f32 0.01, %v3797_v49  ;;  %v3800_v1 = vadd.f32 %v3799_v61, %v9161_v2 }
 0x865   :  { %v3902_v51 = vmul.f32 0.01, %v3808_v34  ;;  %v3933_v25 = vmax.f32 %v3805_v13, %v3901_v57 }
 0x866   :  { %v3900_v14 = vmul.f32 0.01, %v3800_v1  ;;  %v3931_v5 = vmax.f32 %v3797_v49, %v3899_v62 }
 0x867   :  { %v3934_v60 = vmax.f32 %v3808_v34, %v3902_v51 }
 0x868   :  { %v3932_v59 = vmax.f32 %v3800_v1, %v3900_v14 }
 0x869   :  { %v3960_v8 = vpack.c.bf16 %v3934_v60, %v3933_v25 }
 0x86a   :  { %v3959_v38 = vpack.c.bf16 %v3932_v59, %v3931_v5 }
 0x86c   :  { %7565 = vmatprep.mubr.bf16.mxu1 %v3959_v38 }
 0x86d   :  { %7566 = vmatmul.mubr.bf16.gmra.mrb[8].mxu1 %v3960_v8 }
 0x870   :  { %v7523_v52 = vpop.f32.mrb[140].mxu0 }
 0x871   :  { %v3821_v9 = vadd.f32 %v7523_v52, %v9161_v2  ;;  %v3812_v6 = vpop.f32.mrb[141].mxu0 }
 0x872   :  { %v3813_v22 = vadd.f32 %v3812_v6, %v9161_v2  ;;  %v7524_v58 = vpop.f32.mrb[142].mxu0 }
 0x873   :  { %v3905_v18 = vmul.f32 0.01, %v3821_v9  ;;  %v3824_v54 = vadd.f32 %v7524_v58, %v9161_v2  ;;  %v3815_v16 = vpop.f32.mrb[143].mxu0 }
 0x874   :  { %v3903_v48 = vmul.f32 0.01, %v3813_v22  ;;  %v3816_v15 = vadd.f32 %v3815_v16, %v9161_v2 }
 0x875   :  { %v3906_v43 = vmul.f32 0.01, %v3824_v54  ;;  %v3937_v39 = vmax.f32 %v3821_v9, %v3905_v18 }
 0x876   :  { %v3904_v42 = vmul.f32 0.01, %v3816_v15  ;;  %v3935_v3 = vmax.f32 %v3813_v22, %v3903_v48 }
 0x877   :  { %v3938_v24 = vmax.f32 %v3824_v54, %v3906_v43 }
 0x878   :  { %v3936_v7 = vmax.f32 %v3816_v15, %v3904_v42  ;;  %v7983_v15 = vld [vmem:[#allocation10 + $0x74] ss:$8 sps:$4 sm:$0xff]  }
 0x879   :  { %v3962_v12 = vpack.c.bf16 %v3938_v24, %v3937_v39  ;;  %v7981_v39 = vld [vmem:[#allocation10 + $0x70] ss:$8 sps:$4 sm:$0xff]   ;;  %4401 = vmatprep.subr.bf16.mxu0 %v7983_v15 }
 0x87a   :  { %v3961_v19 = vpack.c.bf16 %v3936_v7, %v3935_v3  ;;  %4402 = vmatpush1.bf16.msra.mxu0 %v7981_v39 }
 0x87c   :  { %7569 = vmatprep.mubr.bf16.mxu1 %v3961_v19 }
 0x87d   :  { %7570 = vmatmul.mubr.bf16.gmra.mrb[12].mxu1 %v3962_v12 }
 0x880   :  { %v7527_v40 = vpop.f32.mrb[144].mxu0 }
 0x881   :  { %v3837_v30 = vadd.f32 %v7527_v40, %v9161_v2  ;;  %v3828_v20 = vpop.f32.mrb[145].mxu0 }
 0x882   :  { %v3829_v27 = vadd.f32 %v3828_v20, %v9161_v2  ;;  %v7528_v26 = vpop.f32.mrb[146].mxu0 }
 0x883   :  { %v3909_v28 = vmul.f32 0.01, %v3837_v30  ;;  %v3840_v47 = vadd.f32 %v7528_v26, %v9161_v2  ;;  %v3831_v44 = vpop.f32.mrb[147].mxu0 }
 0x884   :  { %v3907_v29 = vmul.f32 0.01, %v3829_v27  ;;  %v3832_v31 = vadd.f32 %v3831_v44, %v9161_v2 }
 0x885   :  { %v3910_v33 = vmul.f32 0.01, %v3840_v47  ;;  %v3941_v17 = vmax.f32 %v3837_v30, %v3909_v28 }
 0x886   :  { %v3908_v21 = vmul.f32 0.01, %v3832_v31  ;;  %v3939_v41 = vmax.f32 %v3829_v27, %v3907_v29 }
 0x887   :  { %v3942_v35 = vmax.f32 %v3840_v47, %v3910_v33 }
 0x888   :  { %v3940_v37 = vmax.f32 %v3832_v31, %v3908_v21 }
 0x889   :  { %v3964_v10 = vpack.c.bf16 %v3942_v35, %v3941_v17 }
 0x88a   :  { %v3963_v45 = vpack.c.bf16 %v3940_v37, %v3939_v41 }
 0x88c   :  { %7573 = vmatprep.mubr.bf16.mxu1 %v3963_v45  ;;  %v7986_v45 = vld [vmem:[#allocation11 + $0xc] ss:$16 sps:$4 sm:$0xff]  }
 0x88d   :  { %7574 = vmatmul.mubr.bf16.gmra.mrb[16].mxu1 %v3964_v10  ;;  %5340 = vmatprep.subr.bf16.mxu0 %v7986_v45  ;;  %v8001_v45 = vld [vmem:[#allocation11 + $0xac] ss:$16 sps:$4 sm:$0xff]  }
 0x890   :  { %v7531_v32 = vpop.f32.mrb[148].mxu0 }
 0x891   :  { %v3853_v46 = vadd.f32 %v7531_v32, %v9161_v2  ;;  %v3844_v53 = vpop.f32.mrb[149].mxu0  ;;  %v9195_v32 = vld [vmem:[#allocation16 + $0x20] ss:$0 sm:$0xff] }
 0x892   :  { %v3845_v63 = vadd.f32 %v3844_v53, %v9161_v2  ;;  %v7532_v13 = vpop.f32.mrb[150].mxu0 }
 0x893   :  { %v3913_v56 = vmul.f32 0.01, %v3853_v46  ;;  %v3856_v49 = vadd.f32 %v7532_v13, %v9161_v2  ;;  %v3847_v23 = vpop.f32.mrb[151].mxu0 }
 0x894   :  { %v3911_v57 = vmul.f32 0.01, %v3845_v63  ;;  %v3848_v34 = vadd.f32 %v3847_v23, %v9161_v2 }
 0x895   :  { %v3914_v61 = vmul.f32 0.01, %v3856_v49  ;;  %v3945_v1 = vmax.f32 %v3853_v46, %v3913_v56 }
 0x896   :  { %v3912_v62 = vmul.f32 0.01, %v3848_v34  ;;  %v3943_v14 = vmax.f32 %v3845_v63, %v3911_v57 }
 0x897   :  { %v3946_v51 = vmax.f32 %v3856_v49, %v3914_v61 }
 0x898   :  { %v3944_v25 = vmax.f32 %v3848_v34, %v3912_v62 }
 0x899   :  { %v3966_v60 = vpack.c.bf16 %v3946_v51, %v3945_v1 }
 0x89a   :  { %v3965_v5 = vpack.c.bf16 %v3944_v25, %v3943_v14 }
 0x89c   :  { %7577 = vmatprep.mubr.bf16.mxu1 %v3965_v5  ;;  %v8010_v5 = vld [vmem:[#allocation11 + $0x4] ss:$16 sps:$4 sm:$0xff]  }
 0x89d   :  { %7578 = vmatmul.mubr.bf16.gmra.mrb[20].mxu1 %v3966_v60  ;;  %v8008_v60 = vld [vmem:[#allocation11] ss:$16 sps:$4 sm:$0xff]   ;;  %5147 = vmatprep.subr.bf16.mxu1 %v8010_v5 }
 0x89e   :  { %5148 = vmatpush1.bf16.msra.mxu1 %v8008_v60  ;;  %v8041_v60 = vld [vmem:[#allocation11 + $0xe0] ss:$16 sps:$4 sm:$0xff]  }
 0x8a0   :  { %v7535_v59 = vpop.f32.mrb[152].mxu0 }
 0x8a1   :  { %v3869_v8 = vadd.f32 %v7535_v59, %v9161_v2  ;;  %v3860_v38 = vpop.f32.mrb[153].mxu0 }
 0x8a2   :  { %v3861_v52 = vadd.f32 %v3860_v38, %v9161_v2  ;;  %v7536_v9 = vpop.f32.mrb[154].mxu0 }
 0x8a3   :  { %v3917_v6 = vmul.f32 0.01, %v3869_v8  ;;  %v3872_v22 = vadd.f32 %v7536_v9, %v9161_v2  ;;  %v3863_v58 = vpop.f32.mrb[155].mxu0  ;;  %v8016_v9 = vld [vmem:[#allocation11 + $0x24] ss:$16 sps:$4 sm:$0xff]  }
 0x8a4   :  { %v3915_v18 = vmul.f32 0.01, %v3861_v52  ;;  %v3864_v54 = vadd.f32 %v3863_v58, %v9161_v2  ;;  %5149 = vmatprep.subr.bf16.mxu1 %v8016_v9  ;;  %v7987_v58 = vld [vmem:[#allocation11 + $0x28] ss:$16 sps:$4 sm:$0xff]  }
 0x8a5   :  { %v3918_v16 = vmul.f32 0.01, %v3872_v22  ;;  %v3949_v43 = vmax.f32 %v3869_v8, %v3917_v6  ;;  %v7984_v8 = vld [vmem:[#allocation11 + $0x8] ss:$16 sps:$4 sm:$0xff]   ;;  %v8014_v6 = vld [vmem:[#allocation11 + $0x20] ss:$16 sps:$4 sm:$0xff]  }
 0x8a6   :  { %v3916_v48 = vmul.f32 0.01, %v3864_v54  ;;  %v3947_v24 = vmax.f32 %v3861_v52, %v3915_v18  ;;  %v7989_v52 = vld [vmem:[#allocation11 + $0x2c] ss:$16 sps:$4 sm:$0xff]   ;;  %5150 = vmatpush1.bf16.msra.mxu1 %v8014_v6 }
 0x8a7   :  { %v3950_v42 = vmax.f32 %v3872_v22, %v3918_v16  ;;  %v8019_v22 = vld [vmem:[#allocation11 + $0x44] ss:$16 sps:$4 sm:$0xff]   ;;  %v7992_v18 = vld [vmem:[#allocation11 + $0x4c] ss:$16 sps:$4 sm:$0xff]  }
 0x8a8   :  { %v3948_v3 = vmax.f32 %v3864_v54, %v3916_v48  ;;  %v8017_v54 = vld [vmem:[#allocation11 + $0x40] ss:$16 sps:$4 sm:$0xff]   ;;  %5151 = vmatprep.subr.bf16.mxu1 %v8019_v22  ;;  %v8025_v48 = vld [vmem:[#allocation11 + $0x64] ss:$16 sps:$4 sm:$0xff]   ;;  %v8013_v6 = vld [vmem:[#allocation11 + $0x10c] ss:$16 sps:$4 sm:$0xff]  }
 0x8a9   :  { %v3968_v7 = vpack.c.bf16 %v3950_v42, %v3949_v43  ;;  %v7990_v42 = vld [vmem:[#allocation11 + $0x48] ss:$16 sps:$4 sm:$0xff]  }
 0x8aa   :  { %v3967_v12 = vpack.c.bf16 %v3948_v3, %v3947_v24  ;;  %v7995_v3 = vld [vmem:[#allocation11 + $0x6c] ss:$16 sps:$4 sm:$0xff]   ;;  %5152 = vmatpush1.bf16.msra.mxu1 %v8017_v54 }
 0x8ab   :  { %5153 = vmatprep.subr.bf16.mxu1 %v8025_v48  ;;  %v8052_v48 = vld [vmem:[#allocation11 + $0x124] ss:$16 sps:$4 sm:$0xff]  }
 0x8ac   :  { %7581 = vmatprep.mubr.bf16.mxu1 %v3967_v12 }
 0x8ad   :  { %7582 = vmatmul.mubr.bf16.gmra.mrb[24].mxu1 %v3968_v7 }
 0x8b0   :  { %v7539_v19 = vpop.f32.mrb[156].mxu0 }
 0x8b1   :  { %v3885_v40 = vadd.f32 %v7539_v19, %v9161_v2  ;;  %v3876_v30 = vpop.f32.mrb[157].mxu0 }
 0x8b2   :  { %v3877_v20 = vadd.f32 %v3876_v30, %v9161_v2  ;;  %v7540_v27 = vpop.f32.mrb[158].mxu0 }
 0x8b3   :  { %v3921_v26 = vmul.f32 0.01, %v3885_v40  ;;  %v3888_v28 = vadd.f32 %v7540_v27, %v9161_v2  ;;  %v3879_v47 = vpop.f32.mrb[159].mxu0  ;;  %v8028_v27 = vld [vmem:[#allocation11 + $0x84] ss:$16 sps:$4 sm:$0xff]  }
 0x8b4   :  { %v3919_v44 = vmul.f32 0.01, %v3877_v20  ;;  %v3880_v29 = vadd.f32 %v3879_v47, %v9161_v2 }
 0x8b5   :  { %v3922_v31 = vmul.f32 0.01, %v3888_v28  ;;  %v3953_v21 = vmax.f32 %v3885_v40, %v3921_v26  ;;  %v8023_v40 = vld [vmem:[#allocation11 + $0x60] ss:$16 sps:$4 sm:$0xff]  }
 0x8b6   :  { %v3920_v33 = vmul.f32 0.01, %v3880_v29  ;;  %v3951_v35 = vmax.f32 %v3877_v20, %v3919_v44  ;;  %v7998_v44 = vld [vmem:[#allocation11 + $0x8c] ss:$16 sps:$4 sm:$0xff]   ;;  %5154 = vmatpush1.bf16.msra.mxu1 %v8023_v40 }
 0x8b7   :  { %v3954_v17 = vmax.f32 %v3888_v28, %v3922_v31  ;;  %v7993_v28 = vld [vmem:[#allocation11 + $0x68] ss:$16 sps:$4 sm:$0xff]   ;;  %5155 = vmatprep.subr.bf16.mxu1 %v8028_v27 }
 0x8b8   :  { %v3952_v41 = vmax.f32 %v3880_v29, %v3920_v33  ;;  %v8026_v33 = vld [vmem:[#allocation11 + $0x80] ss:$16 sps:$4 sm:$0xff]  }
 0x8b9   :  { %v3970_v37 = vpack.c.bf16 %v3954_v17, %v3953_v21 }
 0x8ba   :  { %v3969_v10 = vpack.c.bf16 %v3952_v41, %v3951_v35  ;;  %v8034_v35 = vld [vmem:[#allocation11 + $0xa4] ss:$16 sps:$4 sm:$0xff]   ;;  %5156 = vmatpush1.bf16.msra.mxu1 %v8026_v33 }
 0x8bb   :  { %5157 = vmatprep.subr.bf16.mxu1 %v8034_v35 }
 0x8bc   :  { %7585 = vmatprep.mubr.bf16.mxu1 %v3969_v10 }
 0x8bd   :  { %7586 = vmatmul.mubr.bf16.gmra.mrb[28].mxu1 %v3970_v37  ;;  %v7996_v37 = vld [vmem:[#allocation11 + $0x88] ss:$16 sps:$4 sm:$0xff]  }
 0x920   :  { %v7559_v46 = vpop.f32.mrb[0].mxu1 }
 0x921   :  { %v4080_v53 = vadd.f32 %v7559_v46, %v9195_v32  ;;  %v4071_v63 = vpop.f32.mrb[1].mxu1  ;;  %v8032_v46 = vld [vmem:[#allocation11 + $0xa0] ss:$16 sps:$4 sm:$0xff]  }
 0x922   :  { %v4072_v2 = vadd.f32 %v4071_v63, %v9195_v32  ;;  %v7560_v13 = vpop.f32.mrb[2].mxu1  ;;  %v7999_v63 = vld [vmem:[#allocation11 + $0xa8] ss:$16 sps:$4 sm:$0xff]   ;;  %5158 = vmatpush1.bf16.msra.mxu1 %v8032_v46  ;;  %v8049_v46 = vld [vmem:[#allocation11 + $0x18c] ss:$16 sps:$4 sm:$0xff]  }
 0x923   :  { %v4200_v56 = vmul.f32 0.01, %v4080_v53  ;;  %v4083_v49 = vadd.f32 %v7560_v13, %v9195_v32  ;;  %v4074_v23 = vpop.f32.mrb[3].mxu1  ;;  %v8035_v13 = vld [vmem:[#allocation11 + $0xc0] ss:$16 sps:$4 sm:$0xff]  }
 0x924   :  { %v4198_v57 = vmul.f32 0.01, %v4072_v2  ;;  %v4075_v34 = vadd.f32 %v4074_v23, %v9195_v32 }
 0x925   :  { %v4201_v61 = vmul.f32 0.01, %v4083_v49  ;;  %v4232_v1 = vmax.f32 %v4080_v53, %v4200_v56  ;;  %v8037_v53 = vld [vmem:[#allocation11 + $0xc4] ss:$16 sps:$4 sm:$0xff]  }
 0x926   :  { %v4199_v62 = vmul.f32 0.01, %v4075_v34  ;;  %v4230_v14 = vmax.f32 %v4072_v2, %v4198_v57  ;;  %v8004_v2 = vld [vmem:[#allocation11 + $0xcc] ss:$16 sps:$4 sm:$0xff]   ;;  %5159 = vmatprep.subr.bf16.mxu1 %v8037_v53 }
 0x927   :  { %v4233_v51 = vmax.f32 %v4083_v49, %v4201_v61  ;;  %v8043_v49 = vld [vmem:[#allocation11 + $0xe4] ss:$16 sps:$4 sm:$0xff]   ;;  %5160 = vmatpush1.bf16.msra.mxu1 %v8035_v13 }
 0x928   :  { %v4231_v25 = vmax.f32 %v4075_v34, %v4199_v62  ;;  %v8002_v34 = vld [vmem:[#allocation11 + $0xc8] ss:$16 sps:$4 sm:$0xff]   ;;  %5161 = vmatprep.subr.bf16.mxu1 %v8043_v49 }
 0x929   :  { %v4263_v59 = vpack.c.bf16 %v4233_v51, %v4232_v1  ;;  %v8007_v1 = vld [vmem:[#allocation11 + $0xec] ss:$16 sps:$4 sm:$0xff]  }
 0x92a   :  { %v4262_v38 = vpack.c.bf16 %v4231_v25, %v4230_v14 }
 0x92b   :  { %5162 = vmatpush1.bf16.msra.mxu1 %v8041_v60 }
 0x92c   :  { %4420 = vmatmul.mubr.bf16.vlgmr.msra.gmra.mrb[160].mxu0 %v4262_v38 }
 0x92d   :  { %4429 = vmatprep.mubr.bf16.mxu0 %v8361_v0  ;;  %5341 = vmatpush1.bf16.msra.mxu0 %v7984_v8  ;;  %v8046_v8 = vld [vmem:[#allocation11 + $0x104] ss:$16 sps:$4 sm:$0xff]  }
 0x92e   :  { %5342 = vmatprep.subr.bf16.mxu0 %v7989_v52  ;;  %v8005_v52 = vld [vmem:[#allocation11 + $0xe8] ss:$16 sps:$4 sm:$0xff]   ;;  %5163 = vmatprep.subr.bf16.mxu1 %v8046_v8 }
 0x930   :  { %v7563_v16 = vpop.f32.mrb[4].mxu1 }
 0x931   :  { %v4096_v15 = vadd.f32 %v7563_v16, %v9195_v32  ;;  %v4087_v43 = vpop.f32.mrb[5].mxu1  ;;  %5343 = vmatpush1.bf16.msra.mxu0 %v7987_v58 }
 0x932   :  { %v4088_v39 = vadd.f32 %v4087_v43, %v9195_v32  ;;  %v7564_v24 = vpop.f32.mrb[6].mxu1  ;;  %5344 = vmatprep.subr.bf16.mxu0 %v7992_v18  ;;  %v8044_v18 = vld [vmem:[#allocation11 + $0x100] ss:$16 sps:$4 sm:$0xff]   ;;  %v8011_v43 = vld [vmem:[#allocation11 + $0x108] ss:$16 sps:$4 sm:$0xff]  }
 0x933   :  { %v4204_v7 = vmul.f32 0.01, %v4096_v15  ;;  %v4099_v12 = vadd.f32 %v7564_v24, %v9195_v32  ;;  %v4090_v19 = vpop.f32.mrb[7].mxu1  ;;  %5164 = vmatpush1.bf16.msra.mxu1 %v8044_v18  ;;  %v8050_v24 = vld [vmem:[#allocation11 + $0x120] ss:$16 sps:$4 sm:$0xff]  }
 0x934   :  { %v4202_v30 = vmul.f32 0.01, %v4088_v39  ;;  %v4091_v20 = vadd.f32 %v4090_v19, %v9195_v32  ;;  %4430 = vmatmul.mubr.bf16.gmra.mrb[164].mxu0 %v4263_v59  ;;  %5165 = vmatprep.subr.bf16.mxu1 %v8052_v48  ;;  %v8053_v19 = vld [vmem:[#allocation11 + $0x140] ss:$16 sps:$4 sm:$0xff]  }
 0x935   :  { %v4205_v26 = vmul.f32 0.01, %v4099_v12  ;;  %4439 = vmatprep.mubr.bf16.mxu0 %v8361_v0  ;;  %5345 = vmatpush1.bf16.msra.mxu0 %v7990_v42  ;;  %v4236_v29 = vmax.f32 %v4096_v15, %v4204_v7  ;;  %v8020_v7 = vld [vmem:[#allocation11 + $0x128] ss:$16 sps:$4 sm:$0xff]  }
 0x936   :  { %v4203_v47 = vmul.f32 0.01, %v4091_v20  ;;  %5346 = vmatprep.subr.bf16.mxu0 %v7995_v3  ;;  %v4234_v21 = vmax.f32 %v4088_v39, %v4202_v30  ;;  %v8022_v39 = vld [vmem:[#allocation11 + $0x12c] ss:$16 sps:$4 sm:$0xff]   ;;  %v8055_v3 = vld [vmem:[#allocation11 + $0x144] ss:$16 sps:$4 sm:$0xff]  }
 0x937   :  { %v4237_v31 = vmax.f32 %v4099_v12, %v4205_v26  ;;  %v8031_v12 = vld [vmem:[#allocation11 + $0x14c] ss:$16 sps:$4 sm:$0xff]   ;;  %5166 = vmatpush1.bf16.msra.mxu1 %v8050_v24  ;;  %v8061_v30 = vld [vmem:[#allocation11 + $0x164] ss:$16 sps:$4 sm:$0xff]   ;;  %v8029_v26 = vld [vmem:[#allocation11 + $0x148] ss:$16 sps:$4 sm:$0xff]  }
 0x938   :  { %v4235_v17 = vmax.f32 %v4091_v20, %v4203_v47  ;;  %5167 = vmatprep.subr.bf16.mxu1 %v8055_v3 }
 0x939   :  { %v4265_v41 = vpack.c.bf16 %v4237_v31, %v4236_v29  ;;  %5347 = vmatpush1.bf16.msra.mxu0 %v7993_v28 }
 0x93a   :  { %v4264_v10 = vpack.c.bf16 %v4235_v17, %v4234_v21  ;;  %5348 = vmatprep.subr.bf16.mxu0 %v7998_v44  ;;  %v8040_v44 = vld [vmem:[#allocation11 + $0x16c] ss:$16 sps:$4 sm:$0xff]   ;;  %v8059_v21 = vld [vmem:[#allocation11 + $0x160] ss:$16 sps:$4 sm:$0xff]  }
 0x93b   :  { %5168 = vmatpush1.bf16.msra.mxu1 %v8053_v19 }
 0x93c   :  { %4440 = vmatmul.mubr.bf16.gmra.mrb[168].mxu0 %v4264_v10  ;;  %5169 = vmatprep.subr.bf16.mxu1 %v8061_v30  ;;  %v8038_v10 = vld [vmem:[#allocation11 + $0x168] ss:$16 sps:$4 sm:$0xff]  }
 0x93d   :  { %4449 = vmatprep.mubr.bf16.mxu0 %v8361_v0  ;;  %5349 = vmatpush1.bf16.msra.mxu0 %v7996_v37 }
 0x93e   :  { %5350 = vmatprep.subr.bf16.mxu0 %v8001_v45 }
 0x93f   :  { %5170 = vmatpush1.bf16.msra.mxu1 %v8059_v21  ;;  %v8068_v21 = vld [vmem:[#allocation11 + $0x1a0] ss:$16 sps:$4 sm:$0xff]  }
 0x940   :  { %v7567_v56 = vpop.f32.mrb[8].mxu1 }
 0x941   :  { %v4112_v23 = vadd.f32 %v7567_v56, %v9195_v32  ;;  %v4103_v57 = vpop.f32.mrb[9].mxu1  ;;  %5351 = vmatpush1.bf16.msra.mxu0 %v7999_v63 }
 0x942   :  { %v4104_v61 = vadd.f32 %v4103_v57, %v9195_v32  ;;  %v7568_v62 = vpop.f32.mrb[10].mxu1  ;;  %5352 = vmatprep.subr.bf16.mxu0 %v8004_v2  ;;  %v8062_v2 = vld [vmem:[#allocation11 + $0x180] ss:$16 sps:$4 sm:$0xff]  }
 0x943   :  { %v4208_v51 = vmul.f32 0.01, %v4112_v23  ;;  %v4115_v14 = vadd.f32 %v7568_v62, %v9195_v32  ;;  %v4106_v25 = vpop.f32.mrb[11].mxu1  ;;  %v8067_v62 = vld [vmem:[#allocation11 + $0x1cc] ss:$16 sps:$4 sm:$0xff]  }
 0x944   :  { %v4206_v5 = vmul.f32 0.01, %v4104_v61  ;;  %v4107_v59 = vadd.f32 %v4106_v25, %v9195_v32  ;;  %4450 = vmatmul.mubr.bf16.gmra.mrb[172].mxu0 %v4265_v41  ;;  %v8064_v41 = vld [vmem:[#allocation11 + $0x184] ss:$16 sps:$4 sm:$0xff]   ;;  %v8065_v25 = vld [vmem:[#allocation11 + $0x1c8] ss:$16 sps:$4 sm:$0xff]  }
 0x945   :  { %v4209_v38 = vmul.f32 0.01, %v4115_v14  ;;  %4459 = vmatprep.mubr.bf16.mxu0 %v8361_v0  ;;  %5353 = vmatpush1.bf16.msra.mxu0 %v8002_v34  ;;  %v4240_v22 = vmax.f32 %v4112_v23, %v4208_v51  ;;  %v8047_v23 = vld [vmem:[#allocation11 + $0x188] ss:$16 sps:$4 sm:$0xff]   ;;  %v8058_v34 = vld [vmem:[#allocation11 + $0x1ac] ss:$16 sps:$4 sm:$0xff]  }
 0x946   :  { %v4207_v9 = vmul.f32 0.01, %v4107_v59  ;;  %5354 = vmatprep.subr.bf16.mxu0 %v8007_v1  ;;  %v4238_v54 = vmax.f32 %v4104_v61, %v4206_v5  ;;  %5171 = vmatprep.subr.bf16.mxu1 %v8064_v41  ;;  %v8056_v61 = vld [vmem:[#allocation11 + $0x1a8] ss:$16 sps:$4 sm:$0xff]  }
 0x947   :  { %v4241_v58 = vmax.f32 %v4115_v14, %v4209_v38  ;;  %5172 = vmatpush1.bf16.msra.mxu1 %v8062_v2  ;;  %v8071_v2 = vld [vmem:[#allocation11 + $0x1c0] ss:$16 sps:$4 sm:$0xff]  }
 0x948   :  { %v4239_v16 = vmax.f32 %v4107_v59, %v4207_v9 }
 0x949   :  { %v4267_v15 = vpack.c.bf16 %v4241_v58, %v4240_v22  ;;  %5355 = vmatpush1.bf16.msra.mxu0 %v8005_v52 }
 0x94a   :  { %v4266_v42 = vpack.c.bf16 %v4239_v16, %v4238_v54  ;;  %5356 = vmatprep.subr.bf16.mxu0 %v8013_v6 }
 0x94c   :  { %4460 = vmatmul.mubr.bf16.gmra.mrb[176].mxu0 %v4266_v42 }
 0x94d   :  { %4469 = vmatprep.mubr.bf16.mxu0 %v8361_v0  ;;  %5357 = vmatpush1.bf16.msra.mxu0 %v8011_v43 }
 0x94e   :  { %5358 = vmatprep.subr.bf16.mxu0 %v8022_v39 }
 0x950   :  { %v7571_v40 = vpop.f32.mrb[12].mxu1 }
 0x951   :  { %v4128_v20 = vadd.f32 %v7571_v40, %v9195_v32  ;;  %v4119_v27 = vpop.f32.mrb[13].mxu1  ;;  %5359 = vmatpush1.bf16.msra.mxu0 %v8020_v7 }
 0x952   :  { %v4120_v28 = vadd.f32 %v4119_v27, %v9195_v32  ;;  %v7572_v47 = vpop.f32.mrb[14].mxu1  ;;  %5360 = vmatprep.subr.bf16.mxu0 %v8031_v12 }
 0x953   :  { %v4212_v29 = vmul.f32 0.01, %v4128_v20  ;;  %v4131_v31 = vadd.f32 %v7572_v47, %v9195_v32  ;;  %v4122_v33 = vpop.f32.mrb[15].mxu1 }
 0x954   :  { %v4210_v17 = vmul.f32 0.01, %v4120_v28  ;;  %v4123_v35 = vadd.f32 %v4122_v33, %v9195_v32  ;;  %4470 = vmatmul.mubr.bf16.gmra.mrb[180].mxu0 %v4267_v15  ;;  %v8070_v33 = vld [vmem:[#allocation11 + $0x1a4] ss:$16 sps:$4 sm:$0xff]  }
 0x955   :  { %v4213_v37 = vmul.f32 0.01, %v4131_v31  ;;  %4479 = vmatprep.mubr.bf16.mxu0 %v8361_v0  ;;  %5361 = vmatpush1.bf16.msra.mxu0 %v8029_v26  ;;  %v4244_v53 = vmax.f32 %v4128_v20, %v4212_v29 }
 0x956   :  { %v4211_v45 = vmul.f32 0.01, %v4123_v35  ;;  %5362 = vmatprep.subr.bf16.mxu0 %v8040_v44  ;;  %v4242_v13 = vmax.f32 %v4120_v28, %v4210_v17  ;;  %5173 = vmatprep.subr.bf16.mxu1 %v8070_v33 }
 0x957   :  { %v4245_v63 = vmax.f32 %v4131_v31, %v4213_v37  ;;  %5174 = vmatpush1.bf16.msra.mxu1 %v8068_v21 }
 0x958   :  { %v4243_v56 = vmax.f32 %v4123_v35, %v4211_v45  ;;  %v8073_v45 = vld [vmem:[#allocation11 + $0x1c4] ss:$16 sps:$4 sm:$0xff]  }
 0x959   :  { %v4269_v49 = vpack.c.bf16 %v4245_v63, %v4244_v53  ;;  %5363 = vmatpush1.bf16.msra.mxu0 %v8038_v10  ;;  %5175 = vmatprep.subr.bf16.mxu1 %v8073_v45 }
 0x95a   :  { %v4268_v57 = vpack.c.bf16 %v4243_v56, %v4242_v13  ;;  %5364 = vmatprep.subr.bf16.mxu0 %v8049_v46 }
 0x95b   :  { %5176 = vmatpush1.bf16.msra.mxu1 %v8071_v2 }
 0x95c   :  { %4480 = vmatmul.mubr.bf16.gmra.mrb[184].mxu0 %v4268_v57  ;;  %v8076_v57 = vld [vmem:[#allocation11 + $0x1ec] ss:$16 sps:$4 sm:$0xff]  }
 0x95d   :  { %4489 = vmatprep.mubr.bf16.mxu0 %v8361_v0  ;;  %5365 = vmatpush1.bf16.msra.mxu0 %v8047_v23 }
 0x95e   :  { %5366 = vmatprep.subr.bf16.mxu0 %v8058_v34  ;;  %v8079_v34 = vld [vmem:[#allocation11 + $0x1e4] ss:$16 sps:$4 sm:$0xff]  }
 0x95f   :  { %5177 = vmatprep.subr.bf16.mxu1 %v8079_v34 }
 0x960   :  { %v7575_v1 = vpop.f32.mrb[16].mxu1 }
 0x961   :  { %v4144_v51 = vadd.f32 %v7575_v1, %v9195_v32  ;;  %v4135_v14 = vpop.f32.mrb[17].mxu1  ;;  %5367 = vmatpush1.bf16.msra.mxu0 %v8056_v61  ;;  %v8074_v1 = vld [vmem:[#allocation11 + $0x1e8] ss:$16 sps:$4 sm:$0xff]  }
 0x962   :  { %v4136_v60 = vadd.f32 %v4135_v14, %v9195_v32  ;;  %v7576_v5 = vpop.f32.mrb[18].mxu1  ;;  %5368 = vmatprep.subr.bf16.mxu0 %v8067_v62 }
 0x963   :  { %v4216_v59 = vmul.f32 0.01, %v4144_v51  ;;  %v4147_v8 = vadd.f32 %v7576_v5, %v9195_v32  ;;  %v4138_v38 = vpop.f32.mrb[19].mxu1 }
 0x964   :  { %v4214_v52 = vmul.f32 0.01, %v4136_v60  ;;  %v4139_v9 = vadd.f32 %v4138_v38, %v9195_v32  ;;  %4490 = vmatmul.mubr.bf16.gmra.mrb[188].mxu0 %v4269_v49 }
 0x965   :  { %v4217_v6 = vmul.f32 0.01, %v4147_v8  ;;  %4499 = vmatprep.mubr.bf16.mxu0 %v8361_v0  ;;  %5369 = vmatpush1.bf16.msra.mxu0 %v8065_v25  ;;  %v4248_v58 = vmax.f32 %v4144_v51, %v4216_v59  ;;  %v8077_v51 = vld [vmem:[#allocation11 + $0x1e0] ss:$16 sps:$4 sm:$0xff]  }
 0x966   :  { %v4215_v22 = vmul.f32 0.01, %v4139_v9  ;;  %v4246_v54 = vmax.f32 %v4136_v60, %v4214_v52  ;;  %5370 = vmatprep.subr.bf16.mxu0 %v8076_v57  ;;  %5178 = vmatpush1.bf16.msra.mxu1 %v8077_v51 }
 0x967   :  { %v4249_v18 = vmax.f32 %v4147_v8, %v4217_v6 }
 0x968   :  { %v4247_v16 = vmax.f32 %v4139_v9, %v4215_v22 }
 0x969   :  { %v4271_v48 = vpack.c.bf16 %v4249_v18, %v4248_v58  ;;  %5371 = vmatpush1.bf16.msra.mxu0 %v8074_v1 }
 0x96a   :  { %v4270_v15 = vpack.c.bf16 %v4247_v16, %v4246_v54 }
 0x96c   :  { %4500 = vmatmul.mubr.bf16.gmra.mrb[192].mxu0 %v4270_v15 }
 0x96d   :  { %4509 = vmatprep.mubr.bf16.mxu0 %v8361_v0 }
 0x970   :  { %v7579_v43 = vpop.f32.mrb[20].mxu1 }
 0x971   :  { %v4160_v42 = vadd.f32 %v7579_v43, %v9195_v32  ;;  %v4151_v39 = vpop.f32.mrb[21].mxu1 }
 0x972   :  { %v4152_v24 = vadd.f32 %v4151_v39, %v9195_v32  ;;  %v7580_v3 = vpop.f32.mrb[22].mxu1 }
 0x973   :  { %v4220_v7 = vmul.f32 0.01, %v4160_v42  ;;  %v4163_v12 = vadd.f32 %v7580_v3, %v9195_v32  ;;  %v4154_v19 = vpop.f32.mrb[23].mxu1 }
 0x974   :  { %v4218_v40 = vmul.f32 0.01, %v4152_v24  ;;  %v4155_v30 = vadd.f32 %v4154_v19, %v9195_v32  ;;  %4510 = vmatmul.mubr.bf16.gmra.mrb[196].mxu0 %v4271_v48 }
 0x975   :  { %v4221_v20 = vmul.f32 0.01, %v4163_v12  ;;  %4519 = vmatprep.mubr.bf16.mxu0 %v8361_v0  ;;  %v4252_v26 = vmax.f32 %v4160_v42, %v4220_v7  ;;  %v8080_v7 = vld [vmem:[#allocation13 + $0x40] sm:$0xff]  }
 0x976   :  { %v4219_v27 = vmul.f32 0.01, %v4155_v30  ;;  %v4250_v47 = vmax.f32 %v4152_v24, %v4218_v40  ;;  %7077 = vmatprep.subr.bf16.mxu1 %v8080_v7  ;;  %v8092_v7 = vld [vmem:[#allocation13 + $0x58] sm:$0xff]  }
 0x977   :  { %v4253_v28 = vmax.f32 %v4163_v12, %v4221_v20  ;;  %v8082_v12 = vld [vmem:[#allocation13 + $0xc0] sm:$0xff]  }
 0x978   :  { %v4251_v44 = vmax.f32 %v4155_v30, %v4219_v27  ;;  %7189 = vmatprep.subr.bf16.mxu0 %v8082_v12  ;;  %v8094_v12 = vld [vmem:[#allocation13 + $0xd8] sm:$0xff]  }
 0x979   :  { %v4273_v29 = vpack.c.bf16 %v4253_v28, %v4252_v26 }
 0x97a   :  { %v4272_v31 = vpack.c.bf16 %v4251_v44, %v4250_v47 }
 0x97c   :  { %4520 = vmatmul.mubr.bf16.gmra.mrb[200].mxu0 %v4272_v31 }
 0x97d   :  { %4529 = vmatprep.mubr.bf16.mxu0 %v8361_v0 }
 0x980   :  { %v7583_v17 = vpop.f32.mrb[24].mxu1 }
 0x981   :  { %v4176_v35 = vadd.f32 %v7583_v17, %v9195_v32  ;;  %v4167_v41 = vpop.f32.mrb[25].mxu1 }
 0x982   :  { %v4168_v37 = vadd.f32 %v4167_v41, %v9195_v32  ;;  %v7584_v10 = vpop.f32.mrb[26].mxu1 }
 0x983   :  { %v4224_v46 = vmul.f32 0.01, %v4176_v35  ;;  %v4179_v53 = vadd.f32 %v7584_v10, %v9195_v32  ;;  %v4170_v63 = vpop.f32.mrb[27].mxu1 }
 0x984   :  { %v4222_v13 = vmul.f32 0.01, %v4168_v37  ;;  %v4171_v56 = vadd.f32 %v4170_v63, %v9195_v32  ;;  %4530 = vmatmul.mubr.bf16.gmra.mrb[204].mxu0 %v4273_v29 }
 0x985   :  { %v4225_v49 = vmul.f32 0.01, %v4179_v53  ;;  %4539 = vmatprep.mubr.bf16.mxu0 %v8361_v0  ;;  %v4256_v61 = vmax.f32 %v4176_v35, %v4224_v46 }
 0x986   :  { %v4223_v23 = vmul.f32 0.01, %v4171_v56  ;;  %v4254_v14 = vmax.f32 %v4168_v37, %v4222_v13 }
 0x987   :  { %v4257_v62 = vmax.f32 %v4179_v53, %v4225_v49  ;;  %v8083_v49 = vld [vmem:[#allocation13 + $0x80] sm:$0xff]  }
 0x988   :  { %v4255_v25 = vmax.f32 %v4171_v56, %v4223_v23  ;;  %v8081_v56 = vld [vmem:[#allocation13] sm:$0xff]  }
 0x989   :  { %v4275_v60 = vpack.c.bf16 %v4257_v62, %v4256_v61  ;;  %v8084_v61 = vld [vmem:[#allocation13 + $0x48] sm:$0xff]  }
 0x98a   :  { %v4274_v5 = vpack.c.bf16 %v4255_v25, %v4254_v14  ;;  %v8086_v62 = vld [vmem:[#allocation13 + $0xc8] sm:$0xff]  }
 0x98c   :  { %4540 = vmatmul.mubr.bf16.gmra.mrb[208].mxu0 %v4274_v5  ;;  %v8087_v5 = vld [vmem:[#allocation13 + $0x88] sm:$0xff]  }
 0x98d   :  { %4549 = vmatprep.mubr.bf16.mxu0 %v8361_v0 }
 0x990   :  { %v7587_v59 = vpop.f32.mrb[28].mxu1 }
 0x991   :  { %v4192_v8 = vadd.f32 %v7587_v59, %v9195_v32  ;;  %v4183_v38 = vpop.f32.mrb[29].mxu1 }
 0x992   :  { %v4184_v52 = vadd.f32 %v4183_v38, %v9195_v32  ;;  %v7588_v9 = vpop.f32.mrb[30].mxu1  ;;  %v8088_v38 = vld [vmem:[#allocation13 + $0x50] sm:$0xff]  }
 0x993   :  { %v4228_v6 = vmul.f32 0.01, %v4192_v8  ;;  %v4195_v22 = vadd.f32 %v7588_v9, %v9195_v32  ;;  %v4186_v58 = vpop.f32.mrb[31].mxu1 }
 0x994   :  { %v4226_v18 = vmul.f32 0.01, %v4184_v52  ;;  %v4187_v54 = vadd.f32 %v4186_v58, %v9195_v32  ;;  %4550 = vmatmul.mubr.bf16.gmra.mrb[212].mxu0 %v4275_v60  ;;  %v4295_v32 = vld [vmem:[#allocation16 + $0x21] ss:$8 sm:$0x3] }
 0x995   :  { %v4229_v16 = vmul.f32 0.01, %v4195_v22  ;;  %4559 = vmatprep.mubr.bf16.mxu0 %v8361_v0  ;;  %v4260_v15 = vmax.f32 %v4192_v8, %v4228_v6  ;;  %v9245_v19 = vrot.slane %v4295_v32, %v8639_v50  ;;  %v9248_v40 = vrot.slane %v4295_v32, %v8644_v55  ;;  %v8085_v60 = vld [vmem:[#allocation13 + $0x8] sm:$0xff]  }
 0x996   :  { %v4227_v48 = vmul.f32 0.01, %v4187_v54  ;;  %v4258_v42 = vmax.f32 %v4184_v52, %v4226_v18  ;;  %v8090_v52 = vld [vmem:[#allocation13 + $0xd0] sm:$0xff]  }
 0x997   :  { %v4261_v43 = vmax.f32 %v4195_v22, %v4229_v16 }
 0x998   :  { %v4259_v39 = vmax.f32 %v4187_v54, %v4227_v48 }
 0x999   :  { %v4277_v24 = vpack.c.bf16 %v4261_v43, %v4260_v15  ;;  %v8089_v43 = vld [vmem:[#allocation13 + $0x10] sm:$0xff]  }
 0x99a   :  { %v4276_v3 = vpack.c.bf16 %v4259_v39, %v4258_v42  ;;  %v8091_v42 = vld [vmem:[#allocation13 + $0x90] sm:$0xff]  }
 0x99c   :  { %4560 = vmatmul.mubr.bf16.gmra.mrb[216].mxu0 %v4276_v3 }
 0x99d   :  { %4569 = vmatprep.mubr.bf16.mxu0 %v8361_v0 }
 0x9a4   :  { %4570 = vmatmul.mubr.bf16.gmra.mrb[220].mxu0 %v4277_v24 }
 0x9ff   :  { %v4421_v30 = vpop.f32.mrb[160].mxu0 }
 0xa00   :  { %v4422_v20 = vadd.f32 %v4421_v30, %v9245_v19  ;;  %v4423_v27 = vpop.f32.mrb[161].mxu0 }
 0xa01   :  { %v4424_v26 = vadd.f32 %v4423_v27, %v9248_v40  ;;  %v4425_v28 = vpop.f32.mrb[162].mxu0 }
 0xa02   :  { %v4580_v0 = vmul.f32 0.01, %v4422_v20  ;;  %v4426_v47 = vadd.f32 %v4425_v28, %v9245_v19  ;;  %v4427_v44 = vpop.f32.mrb[163].mxu0  ;;  %v8095_v28 = vld [vmem:[#allocation13 + $0x98] sm:$0xff]  }
 0xa03   :  { %v4581_v29 = vmul.f32 0.01, %v4424_v26  ;;  %v4428_v31 = vadd.f32 %v4427_v44, %v9248_v40  ;;  %v8096_v44 = vld [vmem:[#allocation13 + $0x60] sm:$0xff]  }
 0xa04   :  { %v4582_v33 = vmul.f32 0.01, %v4426_v47  ;;  %v4644_v17 = vmax.f32 %v4422_v20, %v4580_v0 }
 0xa05   :  { %v4583_v21 = vmul.f32 0.01, %v4428_v31  ;;  %v4645_v41 = vmax.f32 %v4424_v26, %v4581_v29  ;;  %v8093_v26 = vld [vmem:[#allocation13 + $0x18] sm:$0xff]   ;;  %v8098_v29 = vld [vmem:[#allocation13 + $0xe0] sm:$0xff]  }
 0xa06   :  { %v4646_v35 = vmax.f32 %v4426_v47, %v4582_v33 }
 0xa07   :  { %v4647_v37 = vmax.f32 %v4428_v31, %v4583_v21  ;;  %v4431_v10 = vpop.f32.mrb[164].mxu0 }
 0xa08   :  { %v4708_v45 = vpack.c.bf16 %v4646_v35, %v4644_v17  ;;  %v4432_v46 = vadd.f32 %v4431_v10, %v9245_v19  ;;  %v4433_v53 = vpop.f32.mrb[165].mxu0 }
 0xa09   :  { %v4434_v63 = vadd.f32 %v4433_v53, %v9248_v40  ;;  %v4435_v2 = vpop.f32.mrb[166].mxu0  ;;  %v4709_v13 = vpack.c.bf16 %v4647_v37, %v4645_v41  ;;  %v8099_v53 = vld [vmem:[#allocation13 + $0xa0] sm:$0xff]  }
 0xa0a   :  { %v4584_v23 = vmul.f32 0.01, %v4432_v46  ;;  %v4436_v57 = vadd.f32 %v4435_v2, %v9245_v19  ;;  %v4437_v34 = vpop.f32.mrb[167].mxu0 }
 0xa0b   :  { %v4585_v1 = vmul.f32 0.01, %v4434_v63  ;;  %v4438_v51 = vadd.f32 %v4437_v34, %v9248_v40  ;;  %5179 = vmatprep.mubr.bf16.mxu1 %v4709_v13  ;;  %5372 = vmatprep.mubr.bf16.mxu0 %v4709_v13 }
 0xa0c   :  { %v4586_v14 = vmul.f32 0.01, %v4436_v57  ;;  %5180 = vmatmul.mubr.bf16.vlgmr.msra.gmra.mrb[32].mxu1 %v4708_v45  ;;  %5373 = vmatmul.mubr.bf16.vlgmr.msra.gmra.mrb[224].mxu0 %v4708_v45  ;;  %v4648_v59 = vmax.f32 %v4432_v46, %v4584_v23  ;;  %v8097_v46 = vld [vmem:[#allocation13 + $0x20] sm:$0xff]  }
 0xa0d   :  { %v4587_v25 = vmul.f32 0.01, %v4438_v51  ;;  %7078 = vmatpush3.bf16.msra.mxu1 %v8081_v56  ;;  %7190 = vmatpush3.bf16.msra.mxu0 %v8083_v49  ;;  %v4649_v9 = vmax.f32 %v4434_v63, %v4585_v1  ;;  %v8100_v56 = vld [vmem:[#allocation13 + $0x68] sm:$0xff]  }
 0xa0e   :  { %v4650_v8 = vmax.f32 %v4436_v57, %v4586_v14  ;;  %7079 = vmatprep.subr.bf16.mxu1 %v8084_v61  ;;  %7191 = vmatprep.subr.bf16.mxu0 %v8086_v62  ;;  %v8102_v49 = vld [vmem:[#allocation13 + $0xe8] sm:$0xff]  }
 0xa0f   :  { %v4651_v6 = vmax.f32 %v4438_v51, %v4587_v25  ;;  %v4441_v22 = vpop.f32.mrb[168].mxu0  ;;  %v8101_v62 = vld [vmem:[#allocation13 + $0x28] sm:$0xff]   ;;  %v8104_v25 = vld [vmem:[#allocation13 + $0x70] sm:$0xff]  }
 0xa10   :  { %v4710_v58 = vpack.c.bf16 %v4650_v8, %v4648_v59  ;;  %v4442_v18 = vadd.f32 %v4441_v22, %v9245_v19  ;;  %v4443_v54 = vpop.f32.mrb[169].mxu0  ;;  %v8103_v1 = vld [vmem:[#allocation13 + $0xa8] sm:$0xff]  }
 0xa11   :  { %v4444_v16 = vadd.f32 %v4443_v54, %v9248_v40  ;;  %v4445_v48 = vpop.f32.mrb[170].mxu0  ;;  %v4711_v15 = vpack.c.bf16 %v4651_v6, %v4649_v9  ;;  %7080 = vmatpush3.bf16.msra.mxu1 %v8085_v60  ;;  %7192 = vmatpush3.bf16.msra.mxu0 %v8087_v5  ;;  %v8106_v60 = vld [vmem:[#allocation13 + $0xf0] sm:$0xff]  }
 0xa12   :  { %v4588_v39 = vmul.f32 0.01, %v4442_v18  ;;  %v4446_v24 = vadd.f32 %v4445_v48, %v9245_v19  ;;  %v4447_v3 = vpop.f32.mrb[171].mxu0  ;;  %7081 = vmatprep.subr.bf16.mxu1 %v8088_v38  ;;  %7193 = vmatprep.subr.bf16.mxu0 %v8090_v52  ;;  %v8107_v54 = vld [vmem:[#allocation13 + $0xb0] sm:$0xff]  }
 0xa13   :  { %v4589_v32 = vmul.f32 0.01, %v4444_v16  ;;  %v4448_v30 = vadd.f32 %v4447_v3, %v9248_v40  ;;  %5189 = vmatprep.mubr.bf16.mxu1 %v4711_v15  ;;  %5382 = vmatprep.mubr.bf16.mxu0 %v4711_v15 }
 0xa14   :  { %v4590_v20 = vmul.f32 0.01, %v4446_v24  ;;  %5190 = vmatmul.mubr.bf16.gmra.mrb[36].mxu1 %v4710_v58  ;;  %5383 = vmatmul.mubr.bf16.gmra.mrb[228].mxu0 %v4710_v58  ;;  %v4652_v0 = vmax.f32 %v4442_v18, %v4588_v39  ;;  %v8105_v18 = vld [vmem:[#allocation13 + $0x30] sm:$0xff]  }
 0xa15   :  { %v4591_v27 = vmul.f32 0.01, %v4448_v30  ;;  %7082 = vmatpush3.bf16.msra.mxu1 %v8089_v43  ;;  %7194 = vmatpush3.bf16.msra.mxu0 %v8091_v42  ;;  %v4653_v31 = vmax.f32 %v4444_v16, %v4589_v32  ;;  %v8108_v43 = vld [vmem:[#allocation13 + $0x78] sm:$0xff]  }
 0xa16   :  { %v4654_v47 = vmax.f32 %v4446_v24, %v4590_v20  ;;  %7083 = vmatprep.subr.bf16.mxu1 %v8092_v7  ;;  %7195 = vmatprep.subr.bf16.mxu0 %v8094_v12  ;;  %v8110_v42 = vld [vmem:[#allocation13 + $0xf8] sm:$0xff]  }
 0xa17   :  { %v4655_v33 = vmax.f32 %v4448_v30, %v4591_v27  ;;  %v4451_v21 = vpop.f32.mrb[172].mxu0  ;;  %v8109_v12 = vld [vmem:[#allocation13 + $0x38] sm:$0xff]  }
 0xa18   :  { %v4712_v17 = vpack.c.bf16 %v4654_v47, %v4652_v0  ;;  %v4452_v35 = vadd.f32 %v4451_v21, %v9245_v19  ;;  %v4453_v41 = vpop.f32.mrb[173].mxu0  ;;  %v8111_v32 = vld [vmem:[#allocation13 + $0xb8] sm:$0xff]  }
 0xa19   :  { %v4454_v37 = vadd.f32 %v4453_v41, %v9248_v40  ;;  %v4455_v10 = vpop.f32.mrb[174].mxu0  ;;  %v4713_v45 = vpack.c.bf16 %v4655_v33, %v4653_v31  ;;  %7084 = vmatpush3.bf16.msra.mxu1 %v8093_v26  ;;  %7196 = vmatpush3.bf16.msra.mxu0 %v8095_v28 }
 0xa1a   :  { %v4592_v63 = vmul.f32 0.01, %v4452_v35  ;;  %v4456_v2 = vadd.f32 %v4455_v10, %v9245_v19  ;;  %v4457_v13 = vpop.f32.mrb[175].mxu0  ;;  %7085 = vmatprep.subr.bf16.mxu1 %v8096_v44  ;;  %7197 = vmatprep.subr.bf16.mxu0 %v8098_v29 }
 0xa1b   :  { %v4593_v23 = vmul.f32 0.01, %v4454_v37  ;;  %v4458_v57 = vadd.f32 %v4457_v13, %v9248_v40  ;;  %5199 = vmatprep.mubr.bf16.mxu1 %v4713_v45  ;;  %5392 = vmatprep.mubr.bf16.mxu0 %v4713_v45 }
 0xa1c   :  { %v4594_v34 = vmul.f32 0.01, %v4456_v2  ;;  %5200 = vmatmul.mubr.bf16.gmra.mrb[40].mxu1 %v4712_v17  ;;  %5393 = vmatmul.mubr.bf16.gmra.mrb[232].mxu0 %v4712_v17  ;;  %v4656_v51 = vmax.f32 %v4452_v35, %v4592_v63 }
 0xa1d   :  { %v4595_v61 = vmul.f32 0.01, %v4458_v57  ;;  %7086 = vmatpush3.bf16.msra.mxu1 %v8097_v46  ;;  %7198 = vmatpush3.bf16.msra.mxu0 %v8099_v53  ;;  %v4657_v5 = vmax.f32 %v4454_v37, %v4593_v23 }
 0xa1e   :  { %v4658_v14 = vmax.f32 %v4456_v2, %v4594_v34  ;;  %7087 = vmatprep.subr.bf16.mxu1 %v8100_v56  ;;  %7199 = vmatprep.subr.bf16.mxu0 %v8102_v49 }
 0xa1f   :  { %v4659_v59 = vmax.f32 %v4458_v57, %v4595_v61  ;;  %v4461_v8 = vpop.f32.mrb[176].mxu0 }
 0xa20   :  { %v4714_v38 = vpack.c.bf16 %v4658_v14, %v4656_v51  ;;  %v4462_v52 = vadd.f32 %v4461_v8, %v9245_v19  ;;  %v4463_v9 = vpop.f32.mrb[177].mxu0 }
 0xa21   :  { %v4464_v6 = vadd.f32 %v4463_v9, %v9248_v40  ;;  %v4465_v22 = vpop.f32.mrb[178].mxu0  ;;  %v4715_v58 = vpack.c.bf16 %v4659_v59, %v4657_v5  ;;  %7088 = vmatpush3.bf16.msra.mxu1 %v8101_v62  ;;  %7200 = vmatpush3.bf16.msra.mxu0 %v8103_v1 }
 0xa22   :  { %v4596_v16 = vmul.f32 0.01, %v4462_v52  ;;  %v4466_v48 = vadd.f32 %v4465_v22, %v9245_v19  ;;  %v4467_v15 = vpop.f32.mrb[179].mxu0  ;;  %7089 = vmatprep.subr.bf16.mxu1 %v8104_v25  ;;  %7201 = vmatprep.subr.bf16.mxu0 %v8106_v60 }
 0xa23   :  { %v4597_v39 = vmul.f32 0.01, %v4464_v6  ;;  %v4468_v24 = vadd.f32 %v4467_v15, %v9248_v40  ;;  %5209 = vmatprep.mubr.bf16.mxu1 %v4715_v58  ;;  %5402 = vmatprep.mubr.bf16.mxu0 %v4715_v58 }
 0xa24   :  { %v4598_v3 = vmul.f32 0.01, %v4466_v48  ;;  %5210 = vmatmul.mubr.bf16.gmra.mrb[44].mxu1 %v4714_v38  ;;  %5403 = vmatmul.mubr.bf16.gmra.mrb[236].mxu0 %v4714_v38  ;;  %v4660_v30 = vmax.f32 %v4462_v52, %v4596_v16 }
 0xa25   :  { %v4599_v7 = vmul.f32 0.01, %v4468_v24  ;;  %7090 = vmatpush3.bf16.msra.mxu1 %v8105_v18  ;;  %7202 = vmatpush3.bf16.msra.mxu0 %v8107_v54  ;;  %v4661_v27 = vmax.f32 %v4464_v6, %v4597_v39 }
 0xa26   :  { %v4662_v20 = vmax.f32 %v4466_v48, %v4598_v3  ;;  %7091 = vmatprep.subr.bf16.mxu1 %v8108_v43  ;;  %7203 = vmatprep.subr.bf16.mxu0 %v8110_v42 }
 0xa27   :  { %v4663_v26 = vmax.f32 %v4468_v24, %v4599_v7  ;;  %v4471_v28 = vpop.f32.mrb[180].mxu0 }
 0xa28   :  { %v4716_v0 = vpack.c.bf16 %v4662_v20, %v4660_v30  ;;  %v4472_v47 = vadd.f32 %v4471_v28, %v9245_v19  ;;  %v4473_v44 = vpop.f32.mrb[181].mxu0 }
 0xa29   :  { %v4474_v29 = vadd.f32 %v4473_v44, %v9248_v40  ;;  %v4475_v31 = vpop.f32.mrb[182].mxu0  ;;  %v4717_v33 = vpack.c.bf16 %v4663_v26, %v4661_v27  ;;  %7092 = vmatpush3.bf16.msra.mxu1 %v8109_v12  ;;  %7204 = vmatpush3.bf16.msra.mxu0 %v8111_v32 }
 0xa2a   :  { %v4600_v21 = vmul.f32 0.01, %v4472_v47  ;;  %v4476_v17 = vadd.f32 %v4475_v31, %v9245_v19  ;;  %v4477_v35 = vpop.f32.mrb[183].mxu0 }
 0xa2b   :  { %v4601_v41 = vmul.f32 0.01, %v4474_v29  ;;  %v4478_v37 = vadd.f32 %v4477_v35, %v9248_v40  ;;  %5219 = vmatprep.mubr.bf16.mxu1 %v4717_v33  ;;  %5412 = vmatprep.mubr.bf16.mxu0 %v4717_v33 }
 0xa2c   :  { %v4602_v10 = vmul.f32 0.01, %v4476_v17  ;;  %5220 = vmatmul.mubr.bf16.gmra.mrb[48].mxu1 %v4716_v0  ;;  %5413 = vmatmul.mubr.bf16.gmra.mrb[240].mxu0 %v4716_v0  ;;  %v4664_v46 = vmax.f32 %v4472_v47, %v4600_v21 }
 0xa2d   :  { %v4603_v45 = vmul.f32 0.01, %v4478_v37  ;;  %v4665_v63 = vmax.f32 %v4474_v29, %v4601_v41 }
 0xa2e   :  { %v4666_v53 = vmax.f32 %v4476_v17, %v4602_v10 }
 0xa2f   :  { %v4667_v2 = vmax.f32 %v4478_v37, %v4603_v45  ;;  %v4481_v13 = vpop.f32.mrb[184].mxu0 }
 0xa30   :  { %v4718_v56 = vpack.c.bf16 %v4666_v53, %v4664_v46  ;;  %v4482_v49 = vadd.f32 %v4481_v13, %v9245_v19  ;;  %v4483_v23 = vpop.f32.mrb[185].mxu0 }
 0xa31   :  { %v4484_v57 = vadd.f32 %v4483_v23, %v9248_v40  ;;  %v4485_v34 = vpop.f32.mrb[186].mxu0  ;;  %v4719_v61 = vpack.c.bf16 %v4667_v2, %v4665_v63 }
 0xa32   :  { %v4604_v62 = vmul.f32 0.01, %v4482_v49  ;;  %v4486_v1 = vadd.f32 %v4485_v34, %v9245_v19  ;;  %v4487_v51 = vpop.f32.mrb[187].mxu0 }
 0xa33   :  { %v4605_v14 = vmul.f32 0.01, %v4484_v57  ;;  %v4488_v25 = vadd.f32 %v4487_v51, %v9248_v40  ;;  %5229 = vmatprep.mubr.bf16.mxu1 %v4719_v61  ;;  %5422 = vmatprep.mubr.bf16.mxu0 %v4719_v61 }
 0xa34   :  { %v4606_v60 = vmul.f32 0.01, %v4486_v1  ;;  %5230 = vmatmul.mubr.bf16.gmra.mrb[52].mxu1 %v4718_v56  ;;  %5423 = vmatmul.mubr.bf16.gmra.mrb[244].mxu0 %v4718_v56  ;;  %v4668_v59 = vmax.f32 %v4482_v49, %v4604_v62 }
 0xa35   :  { %v4607_v5 = vmul.f32 0.01, %v4488_v25  ;;  %v4669_v38 = vmax.f32 %v4484_v57, %v4605_v14 }
 0xa36   :  { %v4670_v8 = vmax.f32 %v4486_v1, %v4606_v60 }
 0xa37   :  { %v4671_v52 = vmax.f32 %v4488_v25, %v4607_v5  ;;  %v4491_v9 = vpop.f32.mrb[188].mxu0 }
 0xa38   :  { %v4720_v6 = vpack.c.bf16 %v4670_v8, %v4668_v59  ;;  %v4492_v22 = vadd.f32 %v4491_v9, %v9245_v19  ;;  %v4493_v58 = vpop.f32.mrb[189].mxu0 }
 0xa39   :  { %v4494_v18 = vadd.f32 %v4493_v58, %v9248_v40  ;;  %v4495_v54 = vpop.f32.mrb[190].mxu0  ;;  %v4721_v16 = vpack.c.bf16 %v4671_v52, %v4669_v38 }
 0xa3a   :  { %v4608_v48 = vmul.f32 0.01, %v4492_v22  ;;  %v4496_v15 = vadd.f32 %v4495_v54, %v9245_v19  ;;  %v4497_v43 = vpop.f32.mrb[191].mxu0 }
 0xa3b   :  { %v4609_v42 = vmul.f32 0.01, %v4494_v18  ;;  %v4498_v39 = vadd.f32 %v4497_v43, %v9248_v40  ;;  %5239 = vmatprep.mubr.bf16.mxu1 %v4721_v16  ;;  %5432 = vmatprep.mubr.bf16.mxu0 %v4721_v16 }
 0xa3c   :  { %v4610_v24 = vmul.f32 0.01, %v4496_v15  ;;  %5240 = vmatmul.mubr.bf16.gmra.mrb[56].mxu1 %v4720_v6  ;;  %5433 = vmatmul.mubr.bf16.gmra.mrb[248].mxu0 %v4720_v6  ;;  %v4672_v7 = vmax.f32 %v4492_v22, %v4608_v48 }
 0xa3d   :  { %v4611_v3 = vmul.f32 0.01, %v4498_v39  ;;  %v4673_v32 = vmax.f32 %v4494_v18, %v4609_v42 }
 0xa3e   :  { %v4674_v12 = vmax.f32 %v4496_v15, %v4610_v24 }
 0xa3f   :  { %v4675_v30 = vmax.f32 %v4498_v39, %v4611_v3  ;;  %v4501_v20 = vpop.f32.mrb[192].mxu0 }
 0xa40   :  { %v4722_v27 = vpack.c.bf16 %v4674_v12, %v4672_v7  ;;  %v4502_v26 = vadd.f32 %v4501_v20, %v9245_v19  ;;  %v4503_v28 = vpop.f32.mrb[193].mxu0 }
 0xa41   :  { %v4504_v0 = vadd.f32 %v4503_v28, %v9248_v40  ;;  %v4505_v47 = vpop.f32.mrb[194].mxu0  ;;  %v4723_v44 = vpack.c.bf16 %v4675_v30, %v4673_v32 }
 0xa42   :  { %v4612_v29 = vmul.f32 0.01, %v4502_v26  ;;  %v4506_v31 = vadd.f32 %v4505_v47, %v9245_v19  ;;  %v4507_v33 = vpop.f32.mrb[195].mxu0 }
 0xa43   :  { %v4613_v21 = vmul.f32 0.01, %v4504_v0  ;;  %v4508_v17 = vadd.f32 %v4507_v33, %v9248_v40  ;;  %5249 = vmatprep.mubr.bf16.mxu1 %v4723_v44  ;;  %5442 = vmatprep.mubr.bf16.mxu0 %v4723_v44 }
 0xa44   :  { %v4614_v35 = vmul.f32 0.01, %v4506_v31  ;;  %5250 = vmatmul.mubr.bf16.gmra.mrb[60].mxu1 %v4722_v27  ;;  %5443 = vmatmul.mubr.bf16.gmra.mrb[252].mxu0 %v4722_v27  ;;  %v4676_v37 = vmax.f32 %v4502_v26, %v4612_v29 }
 0xa45   :  { %v4615_v41 = vmul.f32 0.01, %v4508_v17  ;;  %v4677_v45 = vmax.f32 %v4504_v0, %v4613_v21 }
 0xa46   :  { %v4678_v10 = vmax.f32 %v4506_v31, %v4614_v35 }
 0xa47   :  { %v4679_v46 = vmax.f32 %v4508_v17, %v4615_v41  ;;  %v4511_v53 = vpop.f32.mrb[196].mxu0 }
 0xa48   :  { %v4724_v63 = vpack.c.bf16 %v4678_v10, %v4676_v37  ;;  %v4512_v2 = vadd.f32 %v4511_v53, %v9245_v19  ;;  %v4513_v13 = vpop.f32.mrb[197].mxu0 }
 0xa49   :  { %v4514_v56 = vadd.f32 %v4513_v13, %v9248_v40  ;;  %v4515_v49 = vpop.f32.mrb[198].mxu0  ;;  %v4725_v23 = vpack.c.bf16 %v4679_v46, %v4677_v45 }
 0xa4a   :  { %v4616_v57 = vmul.f32 0.01, %v4512_v2  ;;  %v4516_v34 = vadd.f32 %v4515_v49, %v9245_v19  ;;  %v4517_v61 = vpop.f32.mrb[199].mxu0 }
 0xa4b   :  { %v4617_v62 = vmul.f32 0.01, %v4514_v56  ;;  %v4518_v1 = vadd.f32 %v4517_v61, %v9248_v40  ;;  %5259 = vmatprep.mubr.bf16.mxu1 %v4725_v23  ;;  %5452 = vmatprep.mubr.bf16.mxu0 %v4725_v23 }
 0xa4c   :  { %v4618_v51 = vmul.f32 0.01, %v4516_v34  ;;  %5260 = vmatmul.mubr.bf16.gmra.mrb[64].mxu1 %v4724_v63  ;;  %5453 = vmatmul.mubr.bf16.gmra.mrb[0].mxu0 %v4724_v63  ;;  %v4680_v25 = vmax.f32 %v4512_v2, %v4616_v57 }
 0xa4d   :  { %v4619_v14 = vmul.f32 0.01, %v4518_v1  ;;  %v4681_v5 = vmax.f32 %v4514_v56, %v4617_v62 }
 0xa4e   :  { %v4682_v60 = vmax.f32 %v4516_v34, %v4618_v51 }
 0xa4f   :  { %v4683_v59 = vmax.f32 %v4518_v1, %v4619_v14  ;;  %v4521_v8 = vpop.f32.mrb[200].mxu0 }
 0xa50   :  { %v4726_v38 = vpack.c.bf16 %v4682_v60, %v4680_v25  ;;  %v4522_v52 = vadd.f32 %v4521_v8, %v9245_v19  ;;  %v4523_v9 = vpop.f32.mrb[201].mxu0 }
 0xa51   :  { %v4524_v6 = vadd.f32 %v4523_v9, %v9248_v40  ;;  %v4525_v22 = vpop.f32.mrb[202].mxu0  ;;  %v4727_v58 = vpack.c.bf16 %v4683_v59, %v4681_v5 }
 0xa52   :  { %v4620_v18 = vmul.f32 0.01, %v4522_v52  ;;  %v4526_v54 = vadd.f32 %v4525_v22, %v9245_v19  ;;  %v4527_v16 = vpop.f32.mrb[203].mxu0 }
 0xa53   :  { %v4621_v48 = vmul.f32 0.01, %v4524_v6  ;;  %v4528_v15 = vadd.f32 %v4527_v16, %v9248_v40  ;;  %5269 = vmatprep.mubr.bf16.mxu1 %v4727_v58  ;;  %5462 = vmatprep.mubr.bf16.mxu0 %v4727_v58 }
 0xa54   :  { %v4622_v43 = vmul.f32 0.01, %v4526_v54  ;;  %5270 = vmatmul.mubr.bf16.gmra.mrb[68].mxu1 %v4726_v38  ;;  %5463 = vmatmul.mubr.bf16.gmra.mrb[4].mxu0 %v4726_v38  ;;  %v4684_v39 = vmax.f32 %v4522_v52, %v4620_v18 }
 0xa55   :  { %v4623_v42 = vmul.f32 0.01, %v4528_v15  ;;  %v4685_v3 = vmax.f32 %v4524_v6, %v4621_v48 }
 0xa56   :  { %v4686_v24 = vmax.f32 %v4526_v54, %v4622_v43 }
 0xa57   :  { %v4687_v7 = vmax.f32 %v4528_v15, %v4623_v42  ;;  %v4531_v12 = vpop.f32.mrb[204].mxu0 }
 0xa58   :  { %v4728_v32 = vpack.c.bf16 %v4686_v24, %v4684_v39  ;;  %v4532_v30 = vadd.f32 %v4531_v12, %v9245_v19  ;;  %v4533_v20 = vpop.f32.mrb[205].mxu0 }
 0xa59   :  { %v4534_v27 = vadd.f32 %v4533_v20, %v9248_v40  ;;  %v4535_v26 = vpop.f32.mrb[206].mxu0  ;;  %v4729_v28 = vpack.c.bf16 %v4687_v7, %v4685_v3 }
 0xa5a   :  { %v4624_v0 = vmul.f32 0.01, %v4532_v30  ;;  %v4536_v47 = vadd.f32 %v4535_v26, %v9245_v19  ;;  %v4537_v44 = vpop.f32.mrb[207].mxu0 }
 0xa5b   :  { %v4625_v29 = vmul.f32 0.01, %v4534_v27  ;;  %v4538_v31 = vadd.f32 %v4537_v44, %v9248_v40  ;;  %5279 = vmatprep.mubr.bf16.mxu1 %v4729_v28  ;;  %5472 = vmatprep.mubr.bf16.mxu0 %v4729_v28 }
 0xa5c   :  { %v4626_v33 = vmul.f32 0.01, %v4536_v47  ;;  %5280 = vmatmul.mubr.bf16.gmra.mrb[72].mxu1 %v4728_v32  ;;  %5473 = vmatmul.mubr.bf16.gmra.mrb[8].mxu0 %v4728_v32  ;;  %v4688_v17 = vmax.f32 %v4532_v30, %v4624_v0 }
 0xa5d   :  { %v4627_v21 = vmul.f32 0.01, %v4538_v31  ;;  %v4689_v41 = vmax.f32 %v4534_v27, %v4625_v29 }
 0xa5e   :  { %v4690_v35 = vmax.f32 %v4536_v47, %v4626_v33 }
 0xa5f   :  { %v4691_v37 = vmax.f32 %v4538_v31, %v4627_v21  ;;  %v4541_v10 = vpop.f32.mrb[208].mxu0 }
 0xa60   :  { %v4730_v45 = vpack.c.bf16 %v4690_v35, %v4688_v17  ;;  %v4542_v46 = vadd.f32 %v4541_v10, %v9245_v19  ;;  %v4543_v53 = vpop.f32.mrb[209].mxu0 }
 0xa61   :  { %v4544_v63 = vadd.f32 %v4543_v53, %v9248_v40  ;;  %v4545_v2 = vpop.f32.mrb[210].mxu0  ;;  %v4731_v13 = vpack.c.bf16 %v4691_v37, %v4689_v41 }
 0xa62   :  { %v4628_v56 = vmul.f32 0.01, %v4542_v46  ;;  %v4546_v49 = vadd.f32 %v4545_v2, %v9245_v19  ;;  %v4547_v23 = vpop.f32.mrb[211].mxu0 }
 0xa63   :  { %v4629_v57 = vmul.f32 0.01, %v4544_v63  ;;  %v4548_v34 = vadd.f32 %v4547_v23, %v9248_v40  ;;  %5289 = vmatprep.mubr.bf16.mxu1 %v4731_v13  ;;  %5482 = vmatprep.mubr.bf16.mxu0 %v4731_v13 }
 0xa64   :  { %v4630_v61 = vmul.f32 0.01, %v4546_v49  ;;  %5290 = vmatmul.mubr.bf16.gmra.mrb[76].mxu1 %v4730_v45  ;;  %5483 = vmatmul.mubr.bf16.gmra.mrb[12].mxu0 %v4730_v45  ;;  %v4692_v1 = vmax.f32 %v4542_v46, %v4628_v56 }
 0xa65   :  { %v4631_v62 = vmul.f32 0.01, %v4548_v34  ;;  %v4693_v14 = vmax.f32 %v4544_v63, %v4629_v57 }
 0xa66   :  { %v4694_v51 = vmax.f32 %v4546_v49, %v4630_v61 }
 0xa67   :  { %v4695_v25 = vmax.f32 %v4548_v34, %v4631_v62  ;;  %v4551_v60 = vpop.f32.mrb[212].mxu0 }
 0xa68   :  { %v4732_v5 = vpack.c.bf16 %v4694_v51, %v4692_v1  ;;  %v4552_v59 = vadd.f32 %v4551_v60, %v9245_v19  ;;  %v4553_v8 = vpop.f32.mrb[213].mxu0 }
 0xa69   :  { %v4554_v38 = vadd.f32 %v4553_v8, %v9248_v40  ;;  %v4555_v52 = vpop.f32.mrb[214].mxu0  ;;  %v4733_v9 = vpack.c.bf16 %v4695_v25, %v4693_v14 }
 0xa6a   :  { %v4632_v6 = vmul.f32 0.01, %v4552_v59  ;;  %v4556_v22 = vadd.f32 %v4555_v52, %v9245_v19  ;;  %v4557_v58 = vpop.f32.mrb[215].mxu0 }
 0xa6b   :  { %v4633_v18 = vmul.f32 0.01, %v4554_v38  ;;  %v4558_v54 = vadd.f32 %v4557_v58, %v9248_v40  ;;  %5299 = vmatprep.mubr.bf16.mxu1 %v4733_v9  ;;  %5492 = vmatprep.mubr.bf16.mxu0 %v4733_v9 }
 0xa6c   :  { %v4634_v16 = vmul.f32 0.01, %v4556_v22  ;;  %5300 = vmatmul.mubr.bf16.gmra.mrb[80].mxu1 %v4732_v5  ;;  %5493 = vmatmul.mubr.bf16.gmra.mrb[16].mxu0 %v4732_v5  ;;  %v4696_v15 = vmax.f32 %v4552_v59, %v4632_v6 }
 0xa6d   :  { %v4635_v48 = vmul.f32 0.01, %v4558_v54  ;;  %v4697_v42 = vmax.f32 %v4554_v38, %v4633_v18 }
 0xa6e   :  { %v4698_v43 = vmax.f32 %v4556_v22, %v4634_v16 }
 0xa6f   :  { %v4699_v39 = vmax.f32 %v4558_v54, %v4635_v48  ;;  %v4561_v24 = vpop.f32.mrb[216].mxu0 }
 0xa70   :  { %v4734_v3 = vpack.c.bf16 %v4698_v43, %v4696_v15  ;;  %v4562_v7 = vadd.f32 %v4561_v24, %v9245_v19  ;;  %v4563_v12 = vpop.f32.mrb[217].mxu0 }
 0xa71   :  { %v4564_v32 = vadd.f32 %v4563_v12, %v9248_v40  ;;  %v4565_v30 = vpop.f32.mrb[218].mxu0  ;;  %v4735_v20 = vpack.c.bf16 %v4699_v39, %v4697_v42 }
 0xa72   :  { %v4636_v27 = vmul.f32 0.01, %v4562_v7  ;;  %v4566_v26 = vadd.f32 %v4565_v30, %v9245_v19  ;;  %v4567_v28 = vpop.f32.mrb[219].mxu0 }
 0xa73   :  { %v4637_v0 = vmul.f32 0.01, %v4564_v32  ;;  %v4568_v47 = vadd.f32 %v4567_v28, %v9248_v40  ;;  %5309 = vmatprep.mubr.bf16.mxu1 %v4735_v20  ;;  %5502 = vmatprep.mubr.bf16.mxu0 %v4735_v20 }
 0xa74   :  { %v4638_v44 = vmul.f32 0.01, %v4566_v26  ;;  %5310 = vmatmul.mubr.bf16.gmra.mrb[84].mxu1 %v4734_v3  ;;  %5503 = vmatmul.mubr.bf16.gmra.mrb[20].mxu0 %v4734_v3  ;;  %v4700_v31 = vmax.f32 %v4562_v7, %v4636_v27 }
 0xa75   :  { %v4639_v29 = vmul.f32 0.01, %v4568_v47  ;;  %v4701_v21 = vmax.f32 %v4564_v32, %v4637_v0 }
 0xa76   :  { %v4702_v33 = vmax.f32 %v4566_v26, %v4638_v44 }
 0xa77   :  { %v4703_v17 = vmax.f32 %v4568_v47, %v4639_v29  ;;  %v4571_v35 = vpop.f32.mrb[220].mxu0 }
 0xa78   :  { %v4736_v41 = vpack.c.bf16 %v4702_v33, %v4700_v31  ;;  %v4572_v37 = vadd.f32 %v4571_v35, %v9245_v19  ;;  %v4573_v10 = vpop.f32.mrb[221].mxu0 }
 0xa79   :  { %v4574_v45 = vadd.f32 %v4573_v10, %v9248_v40  ;;  %v4575_v46 = vpop.f32.mrb[222].mxu0  ;;  %v4737_v53 = vpack.c.bf16 %v4703_v17, %v4701_v21 }
 0xa7a   :  { %v4640_v63 = vmul.f32 0.01, %v4572_v37  ;;  %v4576_v2 = vadd.f32 %v4575_v46, %v9245_v19  ;;  %v4577_v13 = vpop.f32.mrb[223].mxu0  ;;  %v4805_v19 = vld [vmem:[#allocation16 + $0x22] ss:$8 sm:$0xf] }
 0xa7b   :  { %v4641_v56 = vmul.f32 0.01, %v4574_v45  ;;  %v4578_v49 = vadd.f32 %v4577_v13, %v9248_v40  ;;  %5319 = vmatprep.mubr.bf16.mxu1 %v4737_v53  ;;  %5512 = vmatprep.mubr.bf16.mxu0 %v4737_v53  ;;  %v9315_v25 = vrot.slane %v4805_v19, %v8639_v50  ;;  %v9319_v40 = vrot.slane %v4805_v19, %v248_v4 }
 0xa7c   :  { %v4642_v23 = vmul.f32 0.01, %v4576_v2  ;;  %5320 = vmatmul.mubr.bf16.gmra.mrb[88].mxu1 %v4736_v41  ;;  %5513 = vmatmul.mubr.bf16.gmra.mrb[24].mxu0 %v4736_v41  ;;  %v4704_v34 = vmax.f32 %v4572_v37, %v4640_v63  ;;  %v9322_v60 = vrot.slane %v4805_v19, %v8644_v55  ;;  %v9326_v5 = vrot.slane %v4805_v19, %v252_v11 }
 0xa7d   :  { %v4643_v57 = vmul.f32 0.01, %v4578_v49  ;;  %v4705_v62 = vmax.f32 %v4574_v45, %v4641_v56 }
 0xa7e   :  { %v4706_v61 = vmax.f32 %v4576_v2, %v4642_v23 }
 0xa7f   :  { %v4707_v1 = vmax.f32 %v4578_v49, %v4643_v57 }
 0xa80   :  { %v4738_v51 = vpack.c.bf16 %v4706_v61, %v4704_v34 }
 0xa81   :  { %v4739_v14 = vpack.c.bf16 %v4707_v1, %v4705_v62 }
 0xa83   :  { %5329 = vmatprep.mubr.bf16.mxu1 %v4739_v14  ;;  %5522 = vmatprep.mubr.bf16.mxu0 %v4739_v14 }
 0xa84   :  { %5330 = vmatmul.mubr.bf16.gmra.mrb[92].mxu1 %v4738_v51  ;;  %5523 = vmatmul.mubr.bf16.gmra.mrb[28].mxu0 %v4738_v51 }
 0xadf   :  { %v5181_v59 = vpop.f32.mrb[32].mxu1  ;;  %v5374_v8 = vpop.f32.mrb[224].mxu0 }
 0xae0   :  { %v5182_v38 = vadd.f32 %v5181_v59, %v9315_v25  ;;  %v5375_v52 = vadd.f32 %v5374_v8, %v9319_v40  ;;  %v5183_v9 = vpop.f32.mrb[33].mxu1  ;;  %v5376_v50 = vpop.f32.mrb[225].mxu0 }
 0xae1   :  { %v5184_v6 = vadd.f32 %v5183_v9, %v9322_v60  ;;  %v5377_v4 = vadd.f32 %v5376_v50, %v9326_v5  ;;  %v5185_v22 = vpop.f32.mrb[34].mxu1  ;;  %v5378_v58 = vpop.f32.mrb[226].mxu0 }
 0xae2   :  { %v5533_v55 = vmul.f32 0.01, %v5182_v38  ;;  %v5535_v18 = vmul.f32 0.01, %v5375_v52  ;;  %v5186_v36 = vadd.f32 %v5185_v22, %v9315_v25  ;;  %v5379_v11 = vadd.f32 %v5378_v58, %v9319_v40  ;;  %v5187_v54 = vpop.f32.mrb[35].mxu1  ;;  %v5380_v16 = vpop.f32.mrb[227].mxu0 }
 0xae3   :  { %v5534_v48 = vmul.f32 0.01, %v5184_v6  ;;  %v5536_v15 = vmul.f32 0.01, %v5377_v4  ;;  %v5188_v43 = vadd.f32 %v5187_v54, %v9322_v60  ;;  %v5381_v42 = vadd.f32 %v5380_v16, %v9326_v5 }
 0xae4   :  { %v5537_v39 = vmul.f32 0.01, %v5186_v36  ;;  %v5539_v24 = vmul.f32 0.01, %v5379_v11  ;;  %v5661_v12 = vmax.f32 %v5182_v38, %v5533_v55  ;;  %v5663_v32 = vmax.f32 %v5375_v52, %v5535_v18 }
 0xae5   :  { %v5538_v3 = vmul.f32 0.01, %v5188_v43  ;;  %v5540_v7 = vmul.f32 0.01, %v5381_v42  ;;  %v5662_v27 = vmax.f32 %v5184_v6, %v5534_v48  ;;  %v5664_v26 = vmax.f32 %v5377_v4, %v5536_v15 }
 0xae6   :  { %v5665_v30 = vmax.f32 %v5186_v36, %v5537_v39  ;;  %v5667_v20 = vmax.f32 %v5379_v11, %v5539_v24 }
 0xae7   :  { %v5666_v28 = vmax.f32 %v5188_v43, %v5538_v3  ;;  %v5668_v0 = vmax.f32 %v5381_v42, %v5540_v7  ;;  %v5191_v47 = vpop.f32.mrb[36].mxu1  ;;  %v5384_v44 = vpop.f32.mrb[228].mxu0 }
 0xae8   :  { %v5789_v29 = vpack.c.bf16 %v5665_v30, %v5661_v12  ;;  %v5791_v31 = vpack.c.bf16 %v5667_v20, %v5663_v32  ;;  %v5192_v33 = vadd.f32 %v5191_v47, %v9315_v25  ;;  %v5385_v21 = vadd.f32 %v5384_v44, %v9319_v40  ;;  %v5193_v17 = vpop.f32.mrb[37].mxu1  ;;  %v5386_v35 = vpop.f32.mrb[229].mxu0 }
 0xae9   :  { %v5194_v41 = vadd.f32 %v5193_v17, %v9322_v60  ;;  %v5387_v37 = vadd.f32 %v5386_v35, %v9326_v5  ;;  %v5195_v10 = vpop.f32.mrb[38].mxu1  ;;  %v5388_v45 = vpop.f32.mrb[230].mxu0  ;;  %v5790_v46 = vpack.c.bf16 %v5666_v28, %v5662_v27  ;;  %v5792_v53 = vpack.c.bf16 %v5668_v0, %v5664_v26 }
 0xaea   :  { %v5541_v63 = vmul.f32 0.01, %v5192_v33  ;;  %v5543_v2 = vmul.f32 0.01, %v5385_v21  ;;  %v5196_v13 = vadd.f32 %v5195_v10, %v9315_v25  ;;  %v5389_v56 = vadd.f32 %v5388_v45, %v9319_v40  ;;  %v5197_v49 = vpop.f32.mrb[39].mxu1  ;;  %v5390_v23 = vpop.f32.mrb[231].mxu0 }
 0xaeb   :  { %v5542_v57 = vmul.f32 0.01, %v5194_v41  ;;  %v5544_v34 = vmul.f32 0.01, %v5387_v37  ;;  %v5198_v61 = vadd.f32 %v5197_v49, %v9322_v60  ;;  %v5391_v62 = vadd.f32 %v5390_v23, %v9326_v5  ;;  %6142 = vmatprep.mubr.bf16.mxu1 %v5790_v46  ;;  %6303 = vmatprep.mubr.bf16.mxu0 %v5792_v53 }
 0xaec   :  { %v5545_v1 = vmul.f32 0.01, %v5196_v13  ;;  %v5547_v51 = vmul.f32 0.01, %v5389_v56  ;;  %6143 = vmatmul.mubr.bf16.vlgmr.msra.gmra.mrb[96].mxu1 %v5789_v29  ;;  %6304 = vmatmul.mubr.bf16.vlgmr.msra.gmra.mrb[32].mxu0 %v5791_v31  ;;  %v5669_v59 = vmax.f32 %v5192_v33, %v5541_v63  ;;  %v5671_v8 = vmax.f32 %v5385_v21, %v5543_v2 }
 0xaed   :  { %v5546_v14 = vmul.f32 0.01, %v5198_v61  ;;  %v5548_v19 = vmul.f32 0.01, %v5391_v62  ;;  %v5670_v9 = vmax.f32 %v5194_v41, %v5542_v57  ;;  %v5672_v50 = vmax.f32 %v5387_v37, %v5544_v34 }
 0xaee   :  { %v5673_v38 = vmax.f32 %v5196_v13, %v5545_v1  ;;  %v5675_v52 = vmax.f32 %v5389_v56, %v5547_v51 }
 0xaef   :  { %v5674_v6 = vmax.f32 %v5198_v61, %v5546_v14  ;;  %v5676_v4 = vmax.f32 %v5391_v62, %v5548_v19  ;;  %v5201_v22 = vpop.f32.mrb[40].mxu1  ;;  %v5394_v58 = vpop.f32.mrb[232].mxu0 }
 0xaf0   :  { %v5793_v55 = vpack.c.bf16 %v5673_v38, %v5669_v59  ;;  %v5795_v18 = vpack.c.bf16 %v5675_v52, %v5671_v8  ;;  %v5202_v36 = vadd.f32 %v5201_v22, %v9315_v25  ;;  %v5395_v11 = vadd.f32 %v5394_v58, %v9319_v40  ;;  %v5203_v54 = vpop.f32.mrb[41].mxu1  ;;  %v5396_v16 = vpop.f32.mrb[233].mxu0 }
 0xaf1   :  { %v5204_v48 = vadd.f32 %v5203_v54, %v9322_v60  ;;  %v5397_v15 = vadd.f32 %v5396_v16, %v9326_v5  ;;  %v5205_v43 = vpop.f32.mrb[42].mxu1  ;;  %v5398_v42 = vpop.f32.mrb[234].mxu0  ;;  %v5794_v39 = vpack.c.bf16 %v5674_v6, %v5670_v9  ;;  %v5796_v24 = vpack.c.bf16 %v5676_v4, %v5672_v50 }
 0xaf2   :  { %v5549_v3 = vmul.f32 0.01, %v5202_v36  ;;  %v5551_v7 = vmul.f32 0.01, %v5395_v11  ;;  %v5206_v12 = vadd.f32 %v5205_v43, %v9315_v25  ;;  %v5399_v32 = vadd.f32 %v5398_v42, %v9319_v40  ;;  %v5207_v30 = vpop.f32.mrb[43].mxu1  ;;  %v5400_v20 = vpop.f32.mrb[235].mxu0 }
 0xaf3   :  { %v5550_v27 = vmul.f32 0.01, %v5204_v48  ;;  %v5552_v26 = vmul.f32 0.01, %v5397_v15  ;;  %v5208_v28 = vadd.f32 %v5207_v30, %v9322_v60  ;;  %v5401_v0 = vadd.f32 %v5400_v20, %v9326_v5  ;;  %6150 = vmatprep.mubr.bf16.mxu1 %v5794_v39  ;;  %6311 = vmatprep.mubr.bf16.mxu0 %v5796_v24 }
 0xaf4   :  { %v5553_v47 = vmul.f32 0.01, %v5206_v12  ;;  %v5555_v44 = vmul.f32 0.01, %v5399_v32  ;;  %6151 = vmatmul.mubr.bf16.gmra.mrb[100].mxu1 %v5793_v55  ;;  %6312 = vmatmul.mubr.bf16.gmra.mrb[36].mxu0 %v5795_v18  ;;  %v5677_v33 = vmax.f32 %v5202_v36, %v5549_v3  ;;  %v5679_v21 = vmax.f32 %v5395_v11, %v5551_v7 }
 0xaf5   :  { %v5554_v29 = vmul.f32 0.01, %v5208_v28  ;;  %v5556_v31 = vmul.f32 0.01, %v5401_v0  ;;  %v5678_v41 = vmax.f32 %v5204_v48, %v5550_v27  ;;  %v5680_v37 = vmax.f32 %v5397_v15, %v5552_v26 }
 0xaf6   :  { %v5681_v17 = vmax.f32 %v5206_v12, %v5553_v47  ;;  %v5683_v35 = vmax.f32 %v5399_v32, %v5555_v44 }
 0xaf7   :  { %v5682_v10 = vmax.f32 %v5208_v28, %v5554_v29  ;;  %v5684_v45 = vmax.f32 %v5401_v0, %v5556_v31  ;;  %v5211_v46 = vpop.f32.mrb[44].mxu1  ;;  %v5404_v53 = vpop.f32.mrb[236].mxu0 }
 0xaf8   :  { %v5797_v63 = vpack.c.bf16 %v5681_v17, %v5677_v33  ;;  %v5799_v2 = vpack.c.bf16 %v5683_v35, %v5679_v21  ;;  %v5212_v13 = vadd.f32 %v5211_v46, %v9315_v25  ;;  %v5405_v56 = vadd.f32 %v5404_v53, %v9319_v40  ;;  %v5213_v49 = vpop.f32.mrb[45].mxu1  ;;  %v5406_v23 = vpop.f32.mrb[237].mxu0 }
 0xaf9   :  { %v5214_v57 = vadd.f32 %v5213_v49, %v9322_v60  ;;  %v5407_v34 = vadd.f32 %v5406_v23, %v9326_v5  ;;  %v5215_v61 = vpop.f32.mrb[46].mxu1  ;;  %v5408_v62 = vpop.f32.mrb[238].mxu0  ;;  %v5798_v1 = vpack.c.bf16 %v5682_v10, %v5678_v41  ;;  %v5800_v51 = vpack.c.bf16 %v5684_v45, %v5680_v37 }
 0xafa   :  { %v5557_v14 = vmul.f32 0.01, %v5212_v13  ;;  %v5559_v19 = vmul.f32 0.01, %v5405_v56  ;;  %v5216_v59 = vadd.f32 %v5215_v61, %v9315_v25  ;;  %v5409_v8 = vadd.f32 %v5408_v62, %v9319_v40  ;;  %v5217_v38 = vpop.f32.mrb[47].mxu1  ;;  %v5410_v52 = vpop.f32.mrb[239].mxu0 }
 0xafb   :  { %v5558_v9 = vmul.f32 0.01, %v5214_v57  ;;  %v5560_v50 = vmul.f32 0.01, %v5407_v34  ;;  %v5218_v6 = vadd.f32 %v5217_v38, %v9322_v60  ;;  %v5411_v4 = vadd.f32 %v5410_v52, %v9326_v5  ;;  %6158 = vmatprep.mubr.bf16.mxu1 %v5798_v1  ;;  %6319 = vmatprep.mubr.bf16.mxu0 %v5800_v51 }
 0xafc   :  { %v5561_v22 = vmul.f32 0.01, %v5216_v59  ;;  %v5563_v58 = vmul.f32 0.01, %v5409_v8  ;;  %6159 = vmatmul.mubr.bf16.gmra.mrb[104].mxu1 %v5797_v63  ;;  %6320 = vmatmul.mubr.bf16.gmra.mrb[40].mxu0 %v5799_v2  ;;  %v5685_v36 = vmax.f32 %v5212_v13, %v5557_v14  ;;  %v5687_v11 = vmax.f32 %v5405_v56, %v5559_v19 }
 0xafd   :  { %v5562_v55 = vmul.f32 0.01, %v5218_v6  ;;  %v5564_v18 = vmul.f32 0.01, %v5411_v4  ;;  %v5686_v48 = vmax.f32 %v5214_v57, %v5558_v9  ;;  %v5688_v15 = vmax.f32 %v5407_v34, %v5560_v50 }
 0xafe   :  { %v5689_v54 = vmax.f32 %v5216_v59, %v5561_v22  ;;  %v5691_v16 = vmax.f32 %v5409_v8, %v5563_v58 }
 0xaff   :  { %v5690_v43 = vmax.f32 %v5218_v6, %v5562_v55  ;;  %v5692_v42 = vmax.f32 %v5411_v4, %v5564_v18  ;;  %v5221_v39 = vpop.f32.mrb[48].mxu1  ;;  %v5414_v24 = vpop.f32.mrb[240].mxu0 }
 0xb00   :  { %v5801_v3 = vpack.c.bf16 %v5689_v54, %v5685_v36  ;;  %v5803_v7 = vpack.c.bf16 %v5691_v16, %v5687_v11  ;;  %v5222_v12 = vadd.f32 %v5221_v39, %v9315_v25  ;;  %v5415_v32 = vadd.f32 %v5414_v24, %v9319_v40  ;;  %v5223_v30 = vpop.f32.mrb[49].mxu1  ;;  %v5416_v20 = vpop.f32.mrb[241].mxu0 }
 0xb01   :  { %v5224_v27 = vadd.f32 %v5223_v30, %v9322_v60  ;;  %v5417_v26 = vadd.f32 %v5416_v20, %v9326_v5  ;;  %v5225_v28 = vpop.f32.mrb[50].mxu1  ;;  %v5418_v0 = vpop.f32.mrb[242].mxu0  ;;  %v5802_v47 = vpack.c.bf16 %v5690_v43, %v5686_v48  ;;  %v5804_v44 = vpack.c.bf16 %v5692_v42, %v5688_v15 }
 0xb02   :  { %v5565_v29 = vmul.f32 0.01, %v5222_v12  ;;  %v5567_v31 = vmul.f32 0.01, %v5415_v32  ;;  %v5226_v33 = vadd.f32 %v5225_v28, %v9315_v25  ;;  %v5419_v21 = vadd.f32 %v5418_v0, %v9319_v40  ;;  %v5227_v17 = vpop.f32.mrb[51].mxu1  ;;  %v5420_v35 = vpop.f32.mrb[243].mxu0 }
 0xb03   :  { %v5566_v41 = vmul.f32 0.01, %v5224_v27  ;;  %v5568_v37 = vmul.f32 0.01, %v5417_v26  ;;  %v5228_v10 = vadd.f32 %v5227_v17, %v9322_v60  ;;  %v5421_v45 = vadd.f32 %v5420_v35, %v9326_v5  ;;  %6166 = vmatprep.mubr.bf16.mxu1 %v5802_v47  ;;  %6327 = vmatprep.mubr.bf16.mxu0 %v5804_v44 }
 0xb04   :  { %v5569_v46 = vmul.f32 0.01, %v5226_v33  ;;  %v5571_v53 = vmul.f32 0.01, %v5419_v21  ;;  %6167 = vmatmul.mubr.bf16.gmra.mrb[108].mxu1 %v5801_v3  ;;  %6328 = vmatmul.mubr.bf16.gmra.mrb[44].mxu0 %v5803_v7  ;;  %v5693_v13 = vmax.f32 %v5222_v12, %v5565_v29  ;;  %v5695_v56 = vmax.f32 %v5415_v32, %v5567_v31 }
 0xb05   :  { %v5570_v63 = vmul.f32 0.01, %v5228_v10  ;;  %v5572_v2 = vmul.f32 0.01, %v5421_v45  ;;  %v5694_v57 = vmax.f32 %v5224_v27, %v5566_v41  ;;  %v5696_v34 = vmax.f32 %v5417_v26, %v5568_v37 }
 0xb06   :  { %v5697_v49 = vmax.f32 %v5226_v33, %v5569_v46  ;;  %v5699_v23 = vmax.f32 %v5419_v21, %v5571_v53 }
 0xb07   :  { %v5698_v61 = vmax.f32 %v5228_v10, %v5570_v63  ;;  %v5700_v62 = vmax.f32 %v5421_v45, %v5572_v2  ;;  %v5231_v1 = vpop.f32.mrb[52].mxu1  ;;  %v5424_v51 = vpop.f32.mrb[244].mxu0 }
 0xb08   :  { %v5805_v14 = vpack.c.bf16 %v5697_v49, %v5693_v13  ;;  %v5807_v19 = vpack.c.bf16 %v5699_v23, %v5695_v56  ;;  %v5232_v59 = vadd.f32 %v5231_v1, %v9315_v25  ;;  %v5425_v8 = vadd.f32 %v5424_v51, %v9319_v40  ;;  %v5233_v38 = vpop.f32.mrb[53].mxu1  ;;  %v5426_v52 = vpop.f32.mrb[245].mxu0 }
 0xb09   :  { %v5234_v9 = vadd.f32 %v5233_v38, %v9322_v60  ;;  %v5427_v50 = vadd.f32 %v5426_v52, %v9326_v5  ;;  %v5235_v6 = vpop.f32.mrb[54].mxu1  ;;  %v5428_v4 = vpop.f32.mrb[246].mxu0  ;;  %v5806_v22 = vpack.c.bf16 %v5698_v61, %v5694_v57  ;;  %v5808_v58 = vpack.c.bf16 %v5700_v62, %v5696_v34 }
 0xb0a   :  { %v5573_v55 = vmul.f32 0.01, %v5232_v59  ;;  %v5575_v18 = vmul.f32 0.01, %v5425_v8  ;;  %v5236_v36 = vadd.f32 %v5235_v6, %v9315_v25  ;;  %v5429_v11 = vadd.f32 %v5428_v4, %v9319_v40  ;;  %v5237_v54 = vpop.f32.mrb[55].mxu1  ;;  %v5430_v16 = vpop.f32.mrb[247].mxu0 }
 0xb0b   :  { %v5574_v48 = vmul.f32 0.01, %v5234_v9  ;;  %v5576_v15 = vmul.f32 0.01, %v5427_v50  ;;  %v5238_v43 = vadd.f32 %v5237_v54, %v9322_v60  ;;  %v5431_v42 = vadd.f32 %v5430_v16, %v9326_v5  ;;  %6174 = vmatprep.mubr.bf16.mxu1 %v5806_v22  ;;  %6335 = vmatprep.mubr.bf16.mxu0 %v5808_v58 }
 0xb0c   :  { %v5577_v39 = vmul.f32 0.01, %v5236_v36  ;;  %v5579_v24 = vmul.f32 0.01, %v5429_v11  ;;  %6175 = vmatmul.mubr.bf16.gmra.mrb[112].mxu1 %v5805_v14  ;;  %6336 = vmatmul.mubr.bf16.gmra.mrb[48].mxu0 %v5807_v19  ;;  %v5701_v12 = vmax.f32 %v5232_v59, %v5573_v55  ;;  %v5703_v32 = vmax.f32 %v5425_v8, %v5575_v18 }
 0xb0d   :  { %v5578_v3 = vmul.f32 0.01, %v5238_v43  ;;  %v5580_v7 = vmul.f32 0.01, %v5431_v42  ;;  %v5702_v27 = vmax.f32 %v5234_v9, %v5574_v48  ;;  %v5704_v26 = vmax.f32 %v5427_v50, %v5576_v15 }
 0xb0e   :  { %v5705_v30 = vmax.f32 %v5236_v36, %v5577_v39  ;;  %v5707_v20 = vmax.f32 %v5429_v11, %v5579_v24 }
 0xb0f   :  { %v5706_v28 = vmax.f32 %v5238_v43, %v5578_v3  ;;  %v5708_v0 = vmax.f32 %v5431_v42, %v5580_v7  ;;  %v5241_v47 = vpop.f32.mrb[56].mxu1  ;;  %v5434_v44 = vpop.f32.mrb[248].mxu0 }
 0xb10   :  { %v5809_v29 = vpack.c.bf16 %v5705_v30, %v5701_v12  ;;  %v5811_v31 = vpack.c.bf16 %v5707_v20, %v5703_v32  ;;  %v5242_v33 = vadd.f32 %v5241_v47, %v9315_v25  ;;  %v5435_v21 = vadd.f32 %v5434_v44, %v9319_v40  ;;  %v5243_v17 = vpop.f32.mrb[57].mxu1  ;;  %v5436_v35 = vpop.f32.mrb[249].mxu0 }
 0xb11   :  { %v5244_v41 = vadd.f32 %v5243_v17, %v9322_v60  ;;  %v5437_v37 = vadd.f32 %v5436_v35, %v9326_v5  ;;  %v5245_v10 = vpop.f32.mrb[58].mxu1  ;;  %v5438_v45 = vpop.f32.mrb[250].mxu0  ;;  %v5810_v46 = vpack.c.bf16 %v5706_v28, %v5702_v27  ;;  %v5812_v53 = vpack.c.bf16 %v5708_v0, %v5704_v26 }
 0xb12   :  { %v5581_v63 = vmul.f32 0.01, %v5242_v33  ;;  %v5583_v2 = vmul.f32 0.01, %v5435_v21  ;;  %v5246_v13 = vadd.f32 %v5245_v10, %v9315_v25  ;;  %v5439_v56 = vadd.f32 %v5438_v45, %v9319_v40  ;;  %v5247_v49 = vpop.f32.mrb[59].mxu1  ;;  %v5440_v23 = vpop.f32.mrb[251].mxu0 }
 0xb13   :  { %v5582_v57 = vmul.f32 0.01, %v5244_v41  ;;  %v5584_v34 = vmul.f32 0.01, %v5437_v37  ;;  %v5248_v61 = vadd.f32 %v5247_v49, %v9322_v60  ;;  %v5441_v62 = vadd.f32 %v5440_v23, %v9326_v5  ;;  %6182 = vmatprep.mubr.bf16.mxu1 %v5810_v46  ;;  %6343 = vmatprep.mubr.bf16.mxu0 %v5812_v53 }
 0xb14   :  { %v5585_v1 = vmul.f32 0.01, %v5246_v13  ;;  %v5587_v51 = vmul.f32 0.01, %v5439_v56  ;;  %6183 = vmatmul.mubr.bf16.gmra.mrb[116].mxu1 %v5809_v29  ;;  %6344 = vmatmul.mubr.bf16.gmra.mrb[52].mxu0 %v5811_v31  ;;  %v5709_v59 = vmax.f32 %v5242_v33, %v5581_v63  ;;  %v5711_v8 = vmax.f32 %v5435_v21, %v5583_v2 }
 0xb15   :  { %v5586_v14 = vmul.f32 0.01, %v5248_v61  ;;  %v5588_v19 = vmul.f32 0.01, %v5441_v62  ;;  %v5710_v9 = vmax.f32 %v5244_v41, %v5582_v57  ;;  %v5712_v50 = vmax.f32 %v5437_v37, %v5584_v34 }
 0xb16   :  { %v5713_v38 = vmax.f32 %v5246_v13, %v5585_v1  ;;  %v5715_v52 = vmax.f32 %v5439_v56, %v5587_v51 }
 0xb17   :  { %v5714_v6 = vmax.f32 %v5248_v61, %v5586_v14  ;;  %v5716_v4 = vmax.f32 %v5441_v62, %v5588_v19  ;;  %v5251_v22 = vpop.f32.mrb[60].mxu1  ;;  %v5444_v58 = vpop.f32.mrb[252].mxu0 }
 0xb18   :  { %v5813_v55 = vpack.c.bf16 %v5713_v38, %v5709_v59  ;;  %v5815_v18 = vpack.c.bf16 %v5715_v52, %v5711_v8  ;;  %v5252_v36 = vadd.f32 %v5251_v22, %v9315_v25  ;;  %v5445_v11 = vadd.f32 %v5444_v58, %v9319_v40  ;;  %v5253_v54 = vpop.f32.mrb[61].mxu1  ;;  %v5446_v16 = vpop.f32.mrb[253].mxu0 }
 0xb19   :  { %v5254_v48 = vadd.f32 %v5253_v54, %v9322_v60  ;;  %v5447_v15 = vadd.f32 %v5446_v16, %v9326_v5  ;;  %v5255_v43 = vpop.f32.mrb[62].mxu1  ;;  %v5448_v42 = vpop.f32.mrb[254].mxu0  ;;  %v5814_v39 = vpack.c.bf16 %v5714_v6, %v5710_v9  ;;  %v5816_v24 = vpack.c.bf16 %v5716_v4, %v5712_v50 }
 0xb1a   :  { %v5589_v3 = vmul.f32 0.01, %v5252_v36  ;;  %v5591_v7 = vmul.f32 0.01, %v5445_v11  ;;  %v5256_v12 = vadd.f32 %v5255_v43, %v9315_v25  ;;  %v5449_v32 = vadd.f32 %v5448_v42, %v9319_v40  ;;  %v5257_v30 = vpop.f32.mrb[63].mxu1  ;;  %v5450_v20 = vpop.f32.mrb[255].mxu0 }
 0xb1b   :  { %v5590_v27 = vmul.f32 0.01, %v5254_v48  ;;  %v5592_v26 = vmul.f32 0.01, %v5447_v15  ;;  %v5258_v28 = vadd.f32 %v5257_v30, %v9322_v60  ;;  %v5451_v0 = vadd.f32 %v5450_v20, %v9326_v5  ;;  %6190 = vmatprep.mubr.bf16.mxu1 %v5814_v39  ;;  %6351 = vmatprep.mubr.bf16.mxu0 %v5816_v24 }
 0xb1c   :  { %v5593_v47 = vmul.f32 0.01, %v5256_v12  ;;  %v5595_v44 = vmul.f32 0.01, %v5449_v32  ;;  %6191 = vmatmul.mubr.bf16.gmra.mrb[120].mxu1 %v5813_v55  ;;  %6352 = vmatmul.mubr.bf16.gmra.mrb[56].mxu0 %v5815_v18  ;;  %v5717_v33 = vmax.f32 %v5252_v36, %v5589_v3  ;;  %v5719_v21 = vmax.f32 %v5445_v11, %v5591_v7 }
 0xb1d   :  { %v5594_v29 = vmul.f32 0.01, %v5258_v28  ;;  %v5596_v31 = vmul.f32 0.01, %v5451_v0  ;;  %v5718_v41 = vmax.f32 %v5254_v48, %v5590_v27  ;;  %v5720_v37 = vmax.f32 %v5447_v15, %v5592_v26 }
 0xb1e   :  { %v5721_v17 = vmax.f32 %v5256_v12, %v5593_v47  ;;  %v5723_v35 = vmax.f32 %v5449_v32, %v5595_v44 }
 0xb1f   :  { %v5722_v10 = vmax.f32 %v5258_v28, %v5594_v29  ;;  %v5724_v45 = vmax.f32 %v5451_v0, %v5596_v31  ;;  %v5261_v46 = vpop.f32.mrb[64].mxu1  ;;  %v5454_v53 = vpop.f32.mrb[0].mxu0 }
 0xb20   :  { %v5817_v63 = vpack.c.bf16 %v5721_v17, %v5717_v33  ;;  %v5819_v2 = vpack.c.bf16 %v5723_v35, %v5719_v21  ;;  %v5262_v13 = vadd.f32 %v5261_v46, %v9315_v25  ;;  %v5455_v56 = vadd.f32 %v5454_v53, %v9319_v40  ;;  %v5263_v49 = vpop.f32.mrb[65].mxu1  ;;  %v5456_v23 = vpop.f32.mrb[1].mxu0 }
 0xb21   :  { %v5264_v57 = vadd.f32 %v5263_v49, %v9322_v60  ;;  %v5457_v34 = vadd.f32 %v5456_v23, %v9326_v5  ;;  %v5265_v61 = vpop.f32.mrb[66].mxu1  ;;  %v5458_v62 = vpop.f32.mrb[2].mxu0  ;;  %v5818_v1 = vpack.c.bf16 %v5722_v10, %v5718_v41  ;;  %v5820_v51 = vpack.c.bf16 %v5724_v45, %v5720_v37 }
 0xb22   :  { %v5597_v14 = vmul.f32 0.01, %v5262_v13  ;;  %v5599_v19 = vmul.f32 0.01, %v5455_v56  ;;  %v5266_v59 = vadd.f32 %v5265_v61, %v9315_v25  ;;  %v5459_v8 = vadd.f32 %v5458_v62, %v9319_v40  ;;  %v5267_v38 = vpop.f32.mrb[67].mxu1  ;;  %v5460_v52 = vpop.f32.mrb[3].mxu0 }
 0xb23   :  { %v5598_v9 = vmul.f32 0.01, %v5264_v57  ;;  %v5600_v50 = vmul.f32 0.01, %v5457_v34  ;;  %v5268_v6 = vadd.f32 %v5267_v38, %v9322_v60  ;;  %v5461_v4 = vadd.f32 %v5460_v52, %v9326_v5  ;;  %6198 = vmatprep.mubr.bf16.mxu1 %v5818_v1  ;;  %6359 = vmatprep.mubr.bf16.mxu0 %v5820_v51 }
 0xb24   :  { %v5601_v22 = vmul.f32 0.01, %v5266_v59  ;;  %v5603_v58 = vmul.f32 0.01, %v5459_v8  ;;  %6199 = vmatmul.mubr.bf16.gmra.mrb[124].mxu1 %v5817_v63  ;;  %6360 = vmatmul.mubr.bf16.gmra.mrb[60].mxu0 %v5819_v2  ;;  %v5725_v36 = vmax.f32 %v5262_v13, %v5597_v14  ;;  %v5727_v11 = vmax.f32 %v5455_v56, %v5599_v19 }
 0xb25   :  { %v5602_v55 = vmul.f32 0.01, %v5268_v6  ;;  %v5604_v18 = vmul.f32 0.01, %v5461_v4  ;;  %v5726_v48 = vmax.f32 %v5264_v57, %v5598_v9  ;;  %v5728_v15 = vmax.f32 %v5457_v34, %v5600_v50 }
 0xb26   :  { %v5729_v54 = vmax.f32 %v5266_v59, %v5601_v22  ;;  %v5731_v16 = vmax.f32 %v5459_v8, %v5603_v58 }
 0xb27   :  { %v5730_v43 = vmax.f32 %v5268_v6, %v5602_v55  ;;  %v5732_v42 = vmax.f32 %v5461_v4, %v5604_v18  ;;  %v5271_v39 = vpop.f32.mrb[68].mxu1  ;;  %v5464_v24 = vpop.f32.mrb[4].mxu0 }
 0xb28   :  { %v5821_v3 = vpack.c.bf16 %v5729_v54, %v5725_v36  ;;  %v5823_v7 = vpack.c.bf16 %v5731_v16, %v5727_v11  ;;  %v5272_v12 = vadd.f32 %v5271_v39, %v9315_v25  ;;  %v5465_v32 = vadd.f32 %v5464_v24, %v9319_v40  ;;  %v5273_v30 = vpop.f32.mrb[69].mxu1  ;;  %v5466_v20 = vpop.f32.mrb[5].mxu0 }
 0xb29   :  { %v5274_v27 = vadd.f32 %v5273_v30, %v9322_v60  ;;  %v5467_v26 = vadd.f32 %v5466_v20, %v9326_v5  ;;  %v5275_v28 = vpop.f32.mrb[70].mxu1  ;;  %v5468_v0 = vpop.f32.mrb[6].mxu0  ;;  %v5822_v47 = vpack.c.bf16 %v5730_v43, %v5726_v48  ;;  %v5824_v44 = vpack.c.bf16 %v5732_v42, %v5728_v15 }
 0xb2a   :  { %v5605_v29 = vmul.f32 0.01, %v5272_v12  ;;  %v5607_v31 = vmul.f32 0.01, %v5465_v32  ;;  %v5276_v33 = vadd.f32 %v5275_v28, %v9315_v25  ;;  %v5469_v21 = vadd.f32 %v5468_v0, %v9319_v40  ;;  %v5277_v17 = vpop.f32.mrb[71].mxu1  ;;  %v5470_v35 = vpop.f32.mrb[7].mxu0 }
 0xb2b   :  { %v5606_v41 = vmul.f32 0.01, %v5274_v27  ;;  %v5608_v37 = vmul.f32 0.01, %v5467_v26  ;;  %v5278_v10 = vadd.f32 %v5277_v17, %v9322_v60  ;;  %v5471_v45 = vadd.f32 %v5470_v35, %v9326_v5  ;;  %6206 = vmatprep.mubr.bf16.mxu1 %v5822_v47  ;;  %6367 = vmatprep.mubr.bf16.mxu0 %v5824_v44 }
 0xb2c   :  { %v5609_v46 = vmul.f32 0.01, %v5276_v33  ;;  %v5611_v53 = vmul.f32 0.01, %v5469_v21  ;;  %6207 = vmatmul.mubr.bf16.gmra.mrb[128].mxu1 %v5821_v3  ;;  %6368 = vmatmul.mubr.bf16.gmra.mrb[64].mxu0 %v5823_v7  ;;  %v5733_v13 = vmax.f32 %v5272_v12, %v5605_v29  ;;  %v5735_v56 = vmax.f32 %v5465_v32, %v5607_v31 }
 0xb2d   :  { %v5610_v63 = vmul.f32 0.01, %v5278_v10  ;;  %v5612_v2 = vmul.f32 0.01, %v5471_v45  ;;  %v5734_v57 = vmax.f32 %v5274_v27, %v5606_v41  ;;  %v5736_v34 = vmax.f32 %v5467_v26, %v5608_v37 }
 0xb2e   :  { %v5737_v49 = vmax.f32 %v5276_v33, %v5609_v46  ;;  %v5739_v23 = vmax.f32 %v5469_v21, %v5611_v53 }
 0xb2f   :  { %v5738_v61 = vmax.f32 %v5278_v10, %v5610_v63  ;;  %v5740_v62 = vmax.f32 %v5471_v45, %v5612_v2  ;;  %v5281_v1 = vpop.f32.mrb[72].mxu1  ;;  %v5474_v51 = vpop.f32.mrb[8].mxu0 }
 0xb30   :  { %v5825_v14 = vpack.c.bf16 %v5737_v49, %v5733_v13  ;;  %v5827_v19 = vpack.c.bf16 %v5739_v23, %v5735_v56  ;;  %v5282_v59 = vadd.f32 %v5281_v1, %v9315_v25  ;;  %v5475_v8 = vadd.f32 %v5474_v51, %v9319_v40  ;;  %v5283_v38 = vpop.f32.mrb[73].mxu1  ;;  %v5476_v52 = vpop.f32.mrb[9].mxu0 }
 0xb31   :  { %v5284_v9 = vadd.f32 %v5283_v38, %v9322_v60  ;;  %v5477_v50 = vadd.f32 %v5476_v52, %v9326_v5  ;;  %v5285_v6 = vpop.f32.mrb[74].mxu1  ;;  %v5478_v4 = vpop.f32.mrb[10].mxu0  ;;  %v5826_v22 = vpack.c.bf16 %v5738_v61, %v5734_v57  ;;  %v5828_v58 = vpack.c.bf16 %v5740_v62, %v5736_v34 }
 0xb32   :  { %v5613_v55 = vmul.f32 0.01, %v5282_v59  ;;  %v5615_v18 = vmul.f32 0.01, %v5475_v8  ;;  %v5286_v36 = vadd.f32 %v5285_v6, %v9315_v25  ;;  %v5479_v11 = vadd.f32 %v5478_v4, %v9319_v40  ;;  %v5287_v54 = vpop.f32.mrb[75].mxu1  ;;  %v5480_v16 = vpop.f32.mrb[11].mxu0 }
 0xb33   :  { %v5614_v48 = vmul.f32 0.01, %v5284_v9  ;;  %v5616_v15 = vmul.f32 0.01, %v5477_v50  ;;  %v5288_v43 = vadd.f32 %v5287_v54, %v9322_v60  ;;  %v5481_v42 = vadd.f32 %v5480_v16, %v9326_v5  ;;  %6214 = vmatprep.mubr.bf16.mxu1 %v5826_v22  ;;  %6375 = vmatprep.mubr.bf16.mxu0 %v5828_v58 }
 0xb34   :  { %v5617_v39 = vmul.f32 0.01, %v5286_v36  ;;  %v5619_v24 = vmul.f32 0.01, %v5479_v11  ;;  %6215 = vmatmul.mubr.bf16.gmra.mrb[132].mxu1 %v5825_v14  ;;  %6376 = vmatmul.mubr.bf16.gmra.mrb[68].mxu0 %v5827_v19  ;;  %v5741_v12 = vmax.f32 %v5282_v59, %v5613_v55  ;;  %v5743_v32 = vmax.f32 %v5475_v8, %v5615_v18 }
 0xb35   :  { %v5618_v3 = vmul.f32 0.01, %v5288_v43  ;;  %v5620_v7 = vmul.f32 0.01, %v5481_v42  ;;  %v5742_v27 = vmax.f32 %v5284_v9, %v5614_v48  ;;  %v5744_v26 = vmax.f32 %v5477_v50, %v5616_v15 }
 0xb36   :  { %v5745_v30 = vmax.f32 %v5286_v36, %v5617_v39  ;;  %v5747_v20 = vmax.f32 %v5479_v11, %v5619_v24 }
 0xb37   :  { %v5746_v28 = vmax.f32 %v5288_v43, %v5618_v3  ;;  %v5748_v0 = vmax.f32 %v5481_v42, %v5620_v7  ;;  %v5291_v47 = vpop.f32.mrb[76].mxu1  ;;  %v5484_v44 = vpop.f32.mrb[12].mxu0 }
 0xb38   :  { %v5829_v29 = vpack.c.bf16 %v5745_v30, %v5741_v12  ;;  %v5831_v31 = vpack.c.bf16 %v5747_v20, %v5743_v32  ;;  %v5292_v33 = vadd.f32 %v5291_v47, %v9315_v25  ;;  %v5485_v21 = vadd.f32 %v5484_v44, %v9319_v40  ;;  %v5293_v17 = vpop.f32.mrb[77].mxu1  ;;  %v5486_v35 = vpop.f32.mrb[13].mxu0 }
 0xb39   :  { %v5294_v41 = vadd.f32 %v5293_v17, %v9322_v60  ;;  %v5487_v37 = vadd.f32 %v5486_v35, %v9326_v5  ;;  %v5295_v10 = vpop.f32.mrb[78].mxu1  ;;  %v5488_v45 = vpop.f32.mrb[14].mxu0  ;;  %v5830_v46 = vpack.c.bf16 %v5746_v28, %v5742_v27  ;;  %v5832_v53 = vpack.c.bf16 %v5748_v0, %v5744_v26 }
 0xb3a   :  { %v5621_v63 = vmul.f32 0.01, %v5292_v33  ;;  %v5623_v2 = vmul.f32 0.01, %v5485_v21  ;;  %v5296_v13 = vadd.f32 %v5295_v10, %v9315_v25  ;;  %v5489_v56 = vadd.f32 %v5488_v45, %v9319_v40  ;;  %v5297_v49 = vpop.f32.mrb[79].mxu1  ;;  %v5490_v23 = vpop.f32.mrb[15].mxu0 }
 0xb3b   :  { %v5622_v57 = vmul.f32 0.01, %v5294_v41  ;;  %v5624_v34 = vmul.f32 0.01, %v5487_v37  ;;  %v5298_v61 = vadd.f32 %v5297_v49, %v9322_v60  ;;  %v5491_v62 = vadd.f32 %v5490_v23, %v9326_v5  ;;  %6222 = vmatprep.mubr.bf16.mxu1 %v5830_v46  ;;  %6383 = vmatprep.mubr.bf16.mxu0 %v5832_v53 }
 0xb3c   :  { %v5625_v1 = vmul.f32 0.01, %v5296_v13  ;;  %v5627_v51 = vmul.f32 0.01, %v5489_v56  ;;  %6223 = vmatmul.mubr.bf16.gmra.mrb[136].mxu1 %v5829_v29  ;;  %6384 = vmatmul.mubr.bf16.gmra.mrb[72].mxu0 %v5831_v31  ;;  %v5749_v59 = vmax.f32 %v5292_v33, %v5621_v63  ;;  %v5751_v8 = vmax.f32 %v5485_v21, %v5623_v2 }
 0xb3d   :  { %v5626_v14 = vmul.f32 0.01, %v5298_v61  ;;  %v5628_v19 = vmul.f32 0.01, %v5491_v62  ;;  %v5750_v9 = vmax.f32 %v5294_v41, %v5622_v57  ;;  %v5752_v50 = vmax.f32 %v5487_v37, %v5624_v34 }
 0xb3e   :  { %v5753_v38 = vmax.f32 %v5296_v13, %v5625_v1  ;;  %v5755_v52 = vmax.f32 %v5489_v56, %v5627_v51 }
 0xb3f   :  { %v5754_v6 = vmax.f32 %v5298_v61, %v5626_v14  ;;  %v5756_v4 = vmax.f32 %v5491_v62, %v5628_v19  ;;  %v5301_v22 = vpop.f32.mrb[80].mxu1  ;;  %v5494_v58 = vpop.f32.mrb[16].mxu0 }
 0xb40   :  { %v5833_v55 = vpack.c.bf16 %v5753_v38, %v5749_v59  ;;  %v5835_v18 = vpack.c.bf16 %v5755_v52, %v5751_v8  ;;  %v5302_v36 = vadd.f32 %v5301_v22, %v9315_v25  ;;  %v5495_v11 = vadd.f32 %v5494_v58, %v9319_v40  ;;  %v5303_v54 = vpop.f32.mrb[81].mxu1  ;;  %v5496_v16 = vpop.f32.mrb[17].mxu0 }
 0xb41   :  { %v5304_v48 = vadd.f32 %v5303_v54, %v9322_v60  ;;  %v5497_v15 = vadd.f32 %v5496_v16, %v9326_v5  ;;  %v5305_v43 = vpop.f32.mrb[82].mxu1  ;;  %v5498_v42 = vpop.f32.mrb[18].mxu0  ;;  %v5834_v39 = vpack.c.bf16 %v5754_v6, %v5750_v9  ;;  %v5836_v24 = vpack.c.bf16 %v5756_v4, %v5752_v50 }
 0xb42   :  { %v5629_v3 = vmul.f32 0.01, %v5302_v36  ;;  %v5631_v7 = vmul.f32 0.01, %v5495_v11  ;;  %v5306_v12 = vadd.f32 %v5305_v43, %v9315_v25  ;;  %v5499_v32 = vadd.f32 %v5498_v42, %v9319_v40  ;;  %v5307_v30 = vpop.f32.mrb[83].mxu1  ;;  %v5500_v20 = vpop.f32.mrb[19].mxu0 }
 0xb43   :  { %v5630_v27 = vmul.f32 0.01, %v5304_v48  ;;  %v5632_v26 = vmul.f32 0.01, %v5497_v15  ;;  %v5308_v28 = vadd.f32 %v5307_v30, %v9322_v60  ;;  %v5501_v0 = vadd.f32 %v5500_v20, %v9326_v5  ;;  %6230 = vmatprep.mubr.bf16.mxu1 %v5834_v39  ;;  %6391 = vmatprep.mubr.bf16.mxu0 %v5836_v24 }
 0xb44   :  { %v5633_v47 = vmul.f32 0.01, %v5306_v12  ;;  %v5635_v44 = vmul.f32 0.01, %v5499_v32  ;;  %6231 = vmatmul.mubr.bf16.gmra.mrb[140].mxu1 %v5833_v55  ;;  %6392 = vmatmul.mubr.bf16.gmra.mrb[76].mxu0 %v5835_v18  ;;  %v5757_v33 = vmax.f32 %v5302_v36, %v5629_v3  ;;  %v5759_v21 = vmax.f32 %v5495_v11, %v5631_v7 }
 0xb45   :  { %v5634_v29 = vmul.f32 0.01, %v5308_v28  ;;  %v5636_v31 = vmul.f32 0.01, %v5501_v0  ;;  %v5758_v41 = vmax.f32 %v5304_v48, %v5630_v27  ;;  %v5760_v37 = vmax.f32 %v5497_v15, %v5632_v26 }
 0xb46   :  { %v5761_v17 = vmax.f32 %v5306_v12, %v5633_v47  ;;  %v5763_v35 = vmax.f32 %v5499_v32, %v5635_v44 }
 0xb47   :  { %v5762_v10 = vmax.f32 %v5308_v28, %v5634_v29  ;;  %v5764_v45 = vmax.f32 %v5501_v0, %v5636_v31  ;;  %v5311_v46 = vpop.f32.mrb[84].mxu1  ;;  %v5504_v53 = vpop.f32.mrb[20].mxu0 }
 0xb48   :  { %v5837_v63 = vpack.c.bf16 %v5761_v17, %v5757_v33  ;;  %v5839_v2 = vpack.c.bf16 %v5763_v35, %v5759_v21  ;;  %v5312_v13 = vadd.f32 %v5311_v46, %v9315_v25  ;;  %v5505_v56 = vadd.f32 %v5504_v53, %v9319_v40  ;;  %v5313_v49 = vpop.f32.mrb[85].mxu1  ;;  %v5506_v23 = vpop.f32.mrb[21].mxu0 }
 0xb49   :  { %v5314_v57 = vadd.f32 %v5313_v49, %v9322_v60  ;;  %v5507_v34 = vadd.f32 %v5506_v23, %v9326_v5  ;;  %v5315_v61 = vpop.f32.mrb[86].mxu1  ;;  %v5508_v62 = vpop.f32.mrb[22].mxu0  ;;  %v5838_v1 = vpack.c.bf16 %v5762_v10, %v5758_v41  ;;  %v5840_v51 = vpack.c.bf16 %v5764_v45, %v5760_v37 }
 0xb4a   :  { %v5637_v14 = vmul.f32 0.01, %v5312_v13  ;;  %v5639_v19 = vmul.f32 0.01, %v5505_v56  ;;  %v5316_v59 = vadd.f32 %v5315_v61, %v9315_v25  ;;  %v5509_v8 = vadd.f32 %v5508_v62, %v9319_v40  ;;  %v5317_v38 = vpop.f32.mrb[87].mxu1  ;;  %v5510_v52 = vpop.f32.mrb[23].mxu0 }
 0xb4b   :  { %v5638_v9 = vmul.f32 0.01, %v5314_v57  ;;  %v5640_v50 = vmul.f32 0.01, %v5507_v34  ;;  %v5318_v6 = vadd.f32 %v5317_v38, %v9322_v60  ;;  %v5511_v4 = vadd.f32 %v5510_v52, %v9326_v5  ;;  %6238 = vmatprep.mubr.bf16.mxu1 %v5838_v1  ;;  %6399 = vmatprep.mubr.bf16.mxu0 %v5840_v51 }
 0xb4c   :  { %v5641_v22 = vmul.f32 0.01, %v5316_v59  ;;  %v5643_v58 = vmul.f32 0.01, %v5509_v8  ;;  %6239 = vmatmul.mubr.bf16.gmra.mrb[144].mxu1 %v5837_v63  ;;  %6400 = vmatmul.mubr.bf16.gmra.mrb[80].mxu0 %v5839_v2  ;;  %v5765_v36 = vmax.f32 %v5312_v13, %v5637_v14  ;;  %v5767_v11 = vmax.f32 %v5505_v56, %v5639_v19 }
 0xb4d   :  { %v5642_v55 = vmul.f32 0.01, %v5318_v6  ;;  %v5644_v18 = vmul.f32 0.01, %v5511_v4  ;;  %v5766_v48 = vmax.f32 %v5314_v57, %v5638_v9  ;;  %v5768_v15 = vmax.f32 %v5507_v34, %v5640_v50 }
 0xb4e   :  { %v5769_v54 = vmax.f32 %v5316_v59, %v5641_v22  ;;  %v5771_v16 = vmax.f32 %v5509_v8, %v5643_v58 }
 0xb4f   :  { %v5770_v43 = vmax.f32 %v5318_v6, %v5642_v55  ;;  %v5772_v42 = vmax.f32 %v5511_v4, %v5644_v18  ;;  %v5321_v39 = vpop.f32.mrb[88].mxu1  ;;  %v5514_v24 = vpop.f32.mrb[24].mxu0 }
 0xb50   :  { %v5841_v3 = vpack.c.bf16 %v5769_v54, %v5765_v36  ;;  %v5843_v7 = vpack.c.bf16 %v5771_v16, %v5767_v11  ;;  %v5322_v12 = vadd.f32 %v5321_v39, %v9315_v25  ;;  %v5515_v32 = vadd.f32 %v5514_v24, %v9319_v40  ;;  %v5323_v30 = vpop.f32.mrb[89].mxu1  ;;  %v5516_v20 = vpop.f32.mrb[25].mxu0 }
 0xb51   :  { %v5324_v27 = vadd.f32 %v5323_v30, %v9322_v60  ;;  %v5517_v26 = vadd.f32 %v5516_v20, %v9326_v5  ;;  %v5325_v28 = vpop.f32.mrb[90].mxu1  ;;  %v5518_v0 = vpop.f32.mrb[26].mxu0  ;;  %v5842_v47 = vpack.c.bf16 %v5770_v43, %v5766_v48  ;;  %v5844_v44 = vpack.c.bf16 %v5772_v42, %v5768_v15 }
 0xb52   :  { %v5645_v29 = vmul.f32 0.01, %v5322_v12  ;;  %v5647_v31 = vmul.f32 0.01, %v5515_v32  ;;  %v5326_v33 = vadd.f32 %v5325_v28, %v9315_v25  ;;  %v5519_v21 = vadd.f32 %v5518_v0, %v9319_v40  ;;  %v5327_v17 = vpop.f32.mrb[91].mxu1  ;;  %v5520_v35 = vpop.f32.mrb[27].mxu0 }
 0xb53   :  { %v5646_v41 = vmul.f32 0.01, %v5324_v27  ;;  %v5648_v37 = vmul.f32 0.01, %v5517_v26  ;;  %v5328_v10 = vadd.f32 %v5327_v17, %v9322_v60  ;;  %v5521_v45 = vadd.f32 %v5520_v35, %v9326_v5  ;;  %6246 = vmatprep.mubr.bf16.mxu1 %v5842_v47  ;;  %6407 = vmatprep.mubr.bf16.mxu0 %v5844_v44 }
 0xb54   :  { %v5649_v46 = vmul.f32 0.01, %v5326_v33  ;;  %v5651_v53 = vmul.f32 0.01, %v5519_v21  ;;  %6247 = vmatmul.mubr.bf16.gmra.mrb[148].mxu1 %v5841_v3  ;;  %6408 = vmatmul.mubr.bf16.gmra.mrb[84].mxu0 %v5843_v7  ;;  %v5773_v13 = vmax.f32 %v5322_v12, %v5645_v29  ;;  %v5775_v56 = vmax.f32 %v5515_v32, %v5647_v31  ;;  %v9456_v29 = vld [vmem:[#allocation16 + $0x23] ss:$0 sm:$0xff] }
 0xb55   :  { %v5650_v63 = vmul.f32 0.01, %v5328_v10  ;;  %v5652_v2 = vmul.f32 0.01, %v5521_v45  ;;  %v5774_v57 = vmax.f32 %v5324_v27, %v5646_v41  ;;  %v5776_v34 = vmax.f32 %v5517_v26, %v5648_v37 }
 0xb56   :  { %v5777_v49 = vmax.f32 %v5326_v33, %v5649_v46  ;;  %v5779_v23 = vmax.f32 %v5519_v21, %v5651_v53 }
 0xb57   :  { %v5778_v61 = vmax.f32 %v5328_v10, %v5650_v63  ;;  %v5780_v62 = vmax.f32 %v5521_v45, %v5652_v2  ;;  %v5331_v1 = vpop.f32.mrb[92].mxu1  ;;  %v5524_v51 = vpop.f32.mrb[28].mxu0 }
 0xb58   :  { %v5845_v14 = vpack.c.bf16 %v5777_v49, %v5773_v13  ;;  %v5847_v19 = vpack.c.bf16 %v5779_v23, %v5775_v56  ;;  %v5332_v59 = vadd.f32 %v5331_v1, %v9315_v25  ;;  %v5525_v8 = vadd.f32 %v5524_v51, %v9319_v40  ;;  %v5333_v38 = vpop.f32.mrb[93].mxu1  ;;  %v5526_v52 = vpop.f32.mrb[29].mxu0 }
 0xb59   :  { %v5334_v9 = vadd.f32 %v5333_v38, %v9322_v60  ;;  %v5527_v50 = vadd.f32 %v5526_v52, %v9326_v5  ;;  %v5335_v6 = vpop.f32.mrb[94].mxu1  ;;  %v5528_v4 = vpop.f32.mrb[30].mxu0  ;;  %v5846_v22 = vpack.c.bf16 %v5778_v61, %v5774_v57  ;;  %v5848_v58 = vpack.c.bf16 %v5780_v62, %v5776_v34 }
 0xb5a   :  { %v5653_v55 = vmul.f32 0.01, %v5332_v59  ;;  %v5655_v18 = vmul.f32 0.01, %v5525_v8  ;;  %v5336_v36 = vadd.f32 %v5335_v6, %v9315_v25  ;;  %v5529_v11 = vadd.f32 %v5528_v4, %v9319_v40  ;;  %v5337_v54 = vpop.f32.mrb[95].mxu1  ;;  %v5530_v16 = vpop.f32.mrb[31].mxu0 }
 0xb5b   :  { %v5654_v48 = vmul.f32 0.01, %v5334_v9  ;;  %v5656_v15 = vmul.f32 0.01, %v5527_v50  ;;  %v5338_v43 = vadd.f32 %v5337_v54, %v9322_v60  ;;  %v5531_v42 = vadd.f32 %v5530_v16, %v9326_v5  ;;  %6254 = vmatprep.mubr.bf16.mxu1 %v5846_v22  ;;  %6415 = vmatprep.mubr.bf16.mxu0 %v5848_v58 }
 0xb5c   :  { %v5657_v39 = vmul.f32 0.01, %v5336_v36  ;;  %v5659_v24 = vmul.f32 0.01, %v5529_v11  ;;  %6255 = vmatmul.mubr.bf16.gmra.mrb[152].mxu1 %v5845_v14  ;;  %6416 = vmatmul.mubr.bf16.gmra.mrb[88].mxu0 %v5847_v19  ;;  %v5781_v12 = vmax.f32 %v5332_v59, %v5653_v55  ;;  %v5783_v25 = vmax.f32 %v5525_v8, %v5655_v18 }
 0xb5d   :  { %v5658_v3 = vmul.f32 0.01, %v5338_v43  ;;  %v5660_v7 = vmul.f32 0.01, %v5531_v42  ;;  %v5782_v30 = vmax.f32 %v5334_v9, %v5654_v48  ;;  %v5784_v20 = vmax.f32 %v5527_v50, %v5656_v15 }
 0xb5e   :  { %v5785_v32 = vmax.f32 %v5336_v36, %v5657_v39  ;;  %v5787_v40 = vmax.f32 %v5529_v11, %v5659_v24 }
 0xb5f   :  { %v5786_v27 = vmax.f32 %v5338_v43, %v5658_v3  ;;  %v5788_v26 = vmax.f32 %v5531_v42, %v5660_v7 }
 0xb60   :  { %v5849_v28 = vpack.c.bf16 %v5785_v32, %v5781_v12  ;;  %v5851_v60 = vpack.c.bf16 %v5787_v40, %v5783_v25 }
 0xb61   :  { %v5850_v0 = vpack.c.bf16 %v5786_v27, %v5782_v30  ;;  %v5852_v5 = vpack.c.bf16 %v5788_v26, %v5784_v20 }
 0xb63   :  { %6262 = vmatprep.mubr.bf16.mxu1 %v5850_v0  ;;  %6423 = vmatprep.mubr.bf16.mxu0 %v5852_v5 }
 0xb64   :  { %6263 = vmatmul.mubr.bf16.gmra.mrb[156].mxu1 %v5849_v28  ;;  %6424 = vmatmul.mubr.bf16.gmra.mrb[92].mxu0 %v5851_v60 }
 0xbbf   :  { %v7093_v47 = vpop.f32.mrb[96].mxu1  ;;  %v7205_v44 = vpop.f32.mrb[32].mxu0 }
 0xbc0   :  { %v7094_v31 = vpop.f32.mrb[97].mxu1  ;;  %v7206_v33 = vpop.f32.mrb[33].mxu0 }
 0xbc1   :  { %v7095_v21 = vadd.f32 %v7094_v31, %v7093_v47  ;;  %v7207_v17 = vadd.f32 %v7206_v33, %v7205_v44  ;;  %v7096_v35 = vpop.f32.mrb[98].mxu1  ;;  %v7208_v41 = vpop.f32.mrb[34].mxu0 }
 0xbc2   :  { %v7097_v37 = vpop.f32.mrb[99].mxu1  ;;  %v7209_v10 = vpop.f32.mrb[35].mxu0 }
 0xbc3   :  { %v6145_v45 = vadd.f32 %v7095_v21, %v9456_v29  ;;  %v7098_v46 = vadd.f32 %v7097_v37, %v7096_v35  ;;  %v7210_v53 = vadd.f32 %v7209_v10, %v7208_v41 }
 0xbc5   :  { %v6306_v63 = vadd.f32 %v7207_v17, %v6145_v45  ;;  %v6148_v2 = vadd.f32 %v7098_v46, %v9456_v29 }
 0xbc7   :  { %v6432_v13 = vmul.f32 0.01, %v6306_v63  ;;  %v6309_v56 = vadd.f32 %v7210_v53, %v6148_v2  ;;  %v7099_v49 = vpop.f32.mrb[100].mxu1  ;;  %v7211_v23 = vpop.f32.mrb[36].mxu0 }
 0xbc8   :  { %v7100_v57 = vpop.f32.mrb[101].mxu1  ;;  %v7212_v34 = vpop.f32.mrb[37].mxu0 }
 0xbc9   :  { %v6464_v61 = vmax.f32 %v6306_v63, %v6432_v13  ;;  %v6433_v62 = vmul.f32 0.01, %v6309_v56  ;;  %v7101_v1 = vadd.f32 %v7100_v57, %v7099_v49  ;;  %v7213_v51 = vadd.f32 %v7212_v34, %v7211_v23  ;;  %v7102_v14 = vpop.f32.mrb[102].mxu1  ;;  %v7214_v19 = vpop.f32.mrb[38].mxu0 }
 0xbca   :  { %v7103_v59 = vpop.f32.mrb[103].mxu1  ;;  %v7215_v8 = vpop.f32.mrb[39].mxu0 }
 0xbcb   :  { %6496 = vst [vmem:[#allocation17] sm:$0xff] %v6464_v61  ;;  %v6465_v38 = vmax.f32 %v6309_v56, %v6433_v62  ;;  %v6153_v52 = vadd.f32 %v7101_v1, %v9456_v29  ;;  %v7104_v9 = vadd.f32 %v7103_v59, %v7102_v14  ;;  %v7216_v50 = vadd.f32 %v7215_v8, %v7214_v19 }
 0xbcd   :  { %6497 = vst [vmem:[#allocation17 + $0x8] sm:$0xff] %v6465_v38  ;;  %v6314_v6 = vadd.f32 %v7213_v51, %v6153_v52  ;;  %v6156_v4 = vadd.f32 %v7104_v9, %v9456_v29 }
 0xbcf   :  { %v6434_v22 = vmul.f32 0.01, %v6314_v6  ;;  %v6317_v58 = vadd.f32 %v7216_v50, %v6156_v4  ;;  %v7105_v55 = vpop.f32.mrb[104].mxu1  ;;  %v7217_v18 = vpop.f32.mrb[40].mxu0 }
 0xbd0   :  { %v7106_v36 = vpop.f32.mrb[105].mxu1  ;;  %v7218_v11 = vpop.f32.mrb[41].mxu0 }
 0xbd1   :  { %v6466_v54 = vmax.f32 %v6314_v6, %v6434_v22  ;;  %v6435_v16 = vmul.f32 0.01, %v6317_v58  ;;  %v7107_v48 = vadd.f32 %v7106_v36, %v7105_v55  ;;  %v7219_v15 = vadd.f32 %v7218_v11, %v7217_v18  ;;  %v7108_v43 = vpop.f32.mrb[106].mxu1  ;;  %v7220_v42 = vpop.f32.mrb[42].mxu0 }
 0xbd2   :  { %v7109_v39 = vpop.f32.mrb[107].mxu1  ;;  %v7221_v24 = vpop.f32.mrb[43].mxu0 }
 0xbd3   :  { %6498 = vst [vmem:[#allocation17 + $0x10] sm:$0xff] %v6466_v54  ;;  %v6467_v3 = vmax.f32 %v6317_v58, %v6435_v16  ;;  %v6161_v7 = vadd.f32 %v7107_v48, %v9456_v29  ;;  %v7110_v12 = vadd.f32 %v7109_v39, %v7108_v43  ;;  %v7222_v25 = vadd.f32 %v7221_v24, %v7220_v42 }
 0xbd5   :  { %6499 = vst [vmem:[#allocation17 + $0x18] sm:$0xff] %v6467_v3  ;;  %v6322_v32 = vadd.f32 %v7219_v15, %v6161_v7  ;;  %v6164_v40 = vadd.f32 %v7110_v12, %v9456_v29 }
 0xbd7   :  { %v6436_v30 = vmul.f32 0.01, %v6322_v32  ;;  %v6325_v20 = vadd.f32 %v7222_v25, %v6164_v40  ;;  %v7111_v27 = vpop.f32.mrb[108].mxu1  ;;  %v7223_v26 = vpop.f32.mrb[44].mxu0 }
 0xbd8   :  { %v7112_v28 = vpop.f32.mrb[109].mxu1  ;;  %v7224_v60 = vpop.f32.mrb[45].mxu0 }
 0xbd9   :  { %v6468_v0 = vmax.f32 %v6322_v32, %v6436_v30  ;;  %v6437_v5 = vmul.f32 0.01, %v6325_v20  ;;  %v7113_v47 = vadd.f32 %v7112_v28, %v7111_v27  ;;  %v7225_v44 = vadd.f32 %v7224_v60, %v7223_v26  ;;  %v7114_v31 = vpop.f32.mrb[110].mxu1  ;;  %v7226_v33 = vpop.f32.mrb[46].mxu0 }
 0xbda   :  { %v7115_v21 = vpop.f32.mrb[111].mxu1  ;;  %v7227_v17 = vpop.f32.mrb[47].mxu0 }
 0xbdb   :  { %6500 = vst [vmem:[#allocation17 + $0x20] sm:$0xff] %v6468_v0  ;;  %v6469_v35 = vmax.f32 %v6325_v20, %v6437_v5  ;;  %v6169_v41 = vadd.f32 %v7113_v47, %v9456_v29  ;;  %v7116_v37 = vadd.f32 %v7115_v21, %v7114_v31  ;;  %v7228_v10 = vadd.f32 %v7227_v17, %v7226_v33 }
 0xbdd   :  { %6501 = vst [vmem:[#allocation17 + $0x28] sm:$0xff] %v6469_v35  ;;  %v6330_v45 = vadd.f32 %v7225_v44, %v6169_v41  ;;  %v6172_v46 = vadd.f32 %v7116_v37, %v9456_v29 }
 0xbdf   :  { %v6438_v53 = vmul.f32 0.01, %v6330_v45  ;;  %v6333_v63 = vadd.f32 %v7228_v10, %v6172_v46  ;;  %v7117_v2 = vpop.f32.mrb[112].mxu1  ;;  %v7229_v13 = vpop.f32.mrb[48].mxu0 }
 0xbe0   :  { %v7118_v56 = vpop.f32.mrb[113].mxu1  ;;  %v7230_v49 = vpop.f32.mrb[49].mxu0 }
 0xbe1   :  { %v6470_v23 = vmax.f32 %v6330_v45, %v6438_v53  ;;  %v6439_v57 = vmul.f32 0.01, %v6333_v63  ;;  %v7119_v34 = vadd.f32 %v7118_v56, %v7117_v2  ;;  %v7231_v61 = vadd.f32 %v7230_v49, %v7229_v13  ;;  %v7120_v62 = vpop.f32.mrb[114].mxu1  ;;  %v7232_v1 = vpop.f32.mrb[50].mxu0 }
 0xbe2   :  { %v7121_v51 = vpop.f32.mrb[115].mxu1  ;;  %v7233_v14 = vpop.f32.mrb[51].mxu0 }
 0xbe3   :  { %6502 = vst [vmem:[#allocation17 + $0x30] sm:$0xff] %v6470_v23  ;;  %v6471_v19 = vmax.f32 %v6333_v63, %v6439_v57  ;;  %v6177_v59 = vadd.f32 %v7119_v34, %v9456_v29  ;;  %v7122_v8 = vadd.f32 %v7121_v51, %v7120_v62  ;;  %v7234_v38 = vadd.f32 %v7233_v14, %v7232_v1 }
 0xbe5   :  { %6503 = vst [vmem:[#allocation17 + $0x38] sm:$0xff] %v6471_v19  ;;  %v6338_v52 = vadd.f32 %v7231_v61, %v6177_v59  ;;  %v6180_v9 = vadd.f32 %v7122_v8, %v9456_v29 }
 0xbe7   :  { %v6440_v50 = vmul.f32 0.01, %v6338_v52  ;;  %v6341_v6 = vadd.f32 %v7234_v38, %v6180_v9  ;;  %v7123_v4 = vpop.f32.mrb[116].mxu1  ;;  %v7235_v22 = vpop.f32.mrb[52].mxu0 }
 0xbe8   :  { %v7124_v58 = vpop.f32.mrb[117].mxu1  ;;  %v7236_v55 = vpop.f32.mrb[53].mxu0 }
 0xbe9   :  { %v6472_v18 = vmax.f32 %v6338_v52, %v6440_v50  ;;  %v6441_v36 = vmul.f32 0.01, %v6341_v6  ;;  %v7125_v11 = vadd.f32 %v7124_v58, %v7123_v4  ;;  %v7237_v54 = vadd.f32 %v7236_v55, %v7235_v22  ;;  %v7126_v16 = vpop.f32.mrb[118].mxu1  ;;  %v7238_v48 = vpop.f32.mrb[54].mxu0 }
 0xbea   :  { %v7127_v15 = vpop.f32.mrb[119].mxu1  ;;  %v7239_v43 = vpop.f32.mrb[55].mxu0 }
 0xbeb   :  { %6504 = vst [vmem:[#allocation17 + $0x40] sm:$0xff] %v6472_v18  ;;  %v6473_v42 = vmax.f32 %v6341_v6, %v6441_v36  ;;  %v6185_v39 = vadd.f32 %v7125_v11, %v9456_v29  ;;  %v7128_v24 = vadd.f32 %v7127_v15, %v7126_v16  ;;  %v7240_v3 = vadd.f32 %v7239_v43, %v7238_v48 }
 0xbed   :  { %6505 = vst [vmem:[#allocation17 + $0x48] sm:$0xff] %v6473_v42  ;;  %v6346_v7 = vadd.f32 %v7237_v54, %v6185_v39  ;;  %v6188_v12 = vadd.f32 %v7128_v24, %v9456_v29 }
 0xbef   :  { %v6442_v25 = vmul.f32 0.01, %v6346_v7  ;;  %v6349_v32 = vadd.f32 %v7240_v3, %v6188_v12  ;;  %v7129_v40 = vpop.f32.mrb[120].mxu1  ;;  %v7241_v30 = vpop.f32.mrb[56].mxu0 }
 0xbf0   :  { %v7130_v20 = vpop.f32.mrb[121].mxu1  ;;  %v7242_v27 = vpop.f32.mrb[57].mxu0 }
 0xbf1   :  { %v6474_v26 = vmax.f32 %v6346_v7, %v6442_v25  ;;  %v6443_v28 = vmul.f32 0.01, %v6349_v32  ;;  %v7131_v60 = vadd.f32 %v7130_v20, %v7129_v40  ;;  %v7243_v0 = vadd.f32 %v7242_v27, %v7241_v30  ;;  %v7132_v5 = vpop.f32.mrb[122].mxu1  ;;  %v7244_v47 = vpop.f32.mrb[58].mxu0 }
 0xbf2   :  { %v7133_v44 = vpop.f32.mrb[123].mxu1  ;;  %v7245_v31 = vpop.f32.mrb[59].mxu0 }
 0xbf3   :  { %6506 = vst [vmem:[#allocation17 + $0x50] sm:$0xff] %v6474_v26  ;;  %v6475_v33 = vmax.f32 %v6349_v32, %v6443_v28  ;;  %v6193_v21 = vadd.f32 %v7131_v60, %v9456_v29  ;;  %v7134_v17 = vadd.f32 %v7133_v44, %v7132_v5  ;;  %v7246_v35 = vadd.f32 %v7245_v31, %v7244_v47 }
 0xbf5   :  { %6507 = vst [vmem:[#allocation17 + $0x58] sm:$0xff] %v6475_v33  ;;  %v6354_v41 = vadd.f32 %v7243_v0, %v6193_v21  ;;  %v6196_v37 = vadd.f32 %v7134_v17, %v9456_v29 }
 0xbf7   :  { %v6444_v10 = vmul.f32 0.01, %v6354_v41  ;;  %v6357_v45 = vadd.f32 %v7246_v35, %v6196_v37  ;;  %v7135_v46 = vpop.f32.mrb[124].mxu1  ;;  %v7247_v53 = vpop.f32.mrb[60].mxu0 }
 0xbf8   :  { %v7136_v63 = vpop.f32.mrb[125].mxu1  ;;  %v7248_v2 = vpop.f32.mrb[61].mxu0 }
 0xbf9   :  { %v6476_v13 = vmax.f32 %v6354_v41, %v6444_v10  ;;  %v6445_v56 = vmul.f32 0.01, %v6357_v45  ;;  %v7137_v49 = vadd.f32 %v7136_v63, %v7135_v46  ;;  %v7249_v23 = vadd.f32 %v7248_v2, %v7247_v53  ;;  %v7138_v57 = vpop.f32.mrb[126].mxu1  ;;  %v7250_v34 = vpop.f32.mrb[62].mxu0 }
 0xbfa   :  { %v7139_v61 = vpop.f32.mrb[127].mxu1  ;;  %v7251_v62 = vpop.f32.mrb[63].mxu0 }
 0xbfb   :  { %6508 = vst [vmem:[#allocation17 + $0x60] sm:$0xff] %v6476_v13  ;;  %v6477_v1 = vmax.f32 %v6357_v45, %v6445_v56  ;;  %v6201_v51 = vadd.f32 %v7137_v49, %v9456_v29  ;;  %v7140_v14 = vadd.f32 %v7139_v61, %v7138_v57  ;;  %v7252_v19 = vadd.f32 %v7251_v62, %v7250_v34 }
 0xbfd   :  { %6509 = vst [vmem:[#allocation17 + $0x68] sm:$0xff] %v6477_v1  ;;  %v6362_v59 = vadd.f32 %v7249_v23, %v6201_v51  ;;  %v6204_v8 = vadd.f32 %v7140_v14, %v9456_v29 }
 0xbff   :  { %v6446_v38 = vmul.f32 0.01, %v6362_v59  ;;  %v6365_v52 = vadd.f32 %v7252_v19, %v6204_v8  ;;  %v7141_v9 = vpop.f32.mrb[128].mxu1  ;;  %v7253_v50 = vpop.f32.mrb[64].mxu0 }
 0xc00   :  { %v7142_v6 = vpop.f32.mrb[129].mxu1  ;;  %v7254_v4 = vpop.f32.mrb[65].mxu0 }
 0xc01   :  { %v6478_v22 = vmax.f32 %v6362_v59, %v6446_v38  ;;  %v6447_v58 = vmul.f32 0.01, %v6365_v52  ;;  %v7143_v55 = vadd.f32 %v7142_v6, %v7141_v9  ;;  %v7255_v18 = vadd.f32 %v7254_v4, %v7253_v50  ;;  %v7144_v36 = vpop.f32.mrb[130].mxu1  ;;  %v7256_v11 = vpop.f32.mrb[66].mxu0 }
 0xc02   :  { %v7145_v54 = vpop.f32.mrb[131].mxu1  ;;  %v7257_v16 = vpop.f32.mrb[67].mxu0 }
 0xc03   :  { %6510 = vst [vmem:[#allocation17 + $0x70] sm:$0xff] %v6478_v22  ;;  %v6479_v48 = vmax.f32 %v6365_v52, %v6447_v58  ;;  %v6209_v15 = vadd.f32 %v7143_v55, %v9456_v29  ;;  %v7146_v43 = vadd.f32 %v7145_v54, %v7144_v36  ;;  %v7258_v42 = vadd.f32 %v7257_v16, %v7256_v11 }
 0xc05   :  { %6511 = vst [vmem:[#allocation17 + $0x78] sm:$0xff] %v6479_v48  ;;  %v6370_v39 = vadd.f32 %v7255_v18, %v6209_v15  ;;  %v6212_v24 = vadd.f32 %v7146_v43, %v9456_v29 }
 0xc07   :  { %v6448_v3 = vmul.f32 0.01, %v6370_v39  ;;  %v6373_v7 = vadd.f32 %v7258_v42, %v6212_v24  ;;  %v7147_v12 = vpop.f32.mrb[132].mxu1  ;;  %v7259_v25 = vpop.f32.mrb[68].mxu0 }
 0xc08   :  { %v7148_v32 = vpop.f32.mrb[133].mxu1  ;;  %v7260_v40 = vpop.f32.mrb[69].mxu0 }
 0xc09   :  { %v6480_v30 = vmax.f32 %v6370_v39, %v6448_v3  ;;  %v6449_v20 = vmul.f32 0.01, %v6373_v7  ;;  %v7149_v27 = vadd.f32 %v7148_v32, %v7147_v12  ;;  %v7261_v26 = vadd.f32 %v7260_v40, %v7259_v25  ;;  %v7150_v28 = vpop.f32.mrb[134].mxu1  ;;  %v7262_v60 = vpop.f32.mrb[70].mxu0 }
 0xc0a   :  { %v7151_v0 = vpop.f32.mrb[135].mxu1  ;;  %v7263_v5 = vpop.f32.mrb[71].mxu0 }
 0xc0b   :  { %6512 = vst [vmem:[#allocation17 + $0x80] sm:$0xff] %v6480_v30  ;;  %v6481_v47 = vmax.f32 %v6373_v7, %v6449_v20  ;;  %v6217_v44 = vadd.f32 %v7149_v27, %v9456_v29  ;;  %v7152_v31 = vadd.f32 %v7151_v0, %v7150_v28  ;;  %v7264_v33 = vadd.f32 %v7263_v5, %v7262_v60 }
 0xc0d   :  { %6513 = vst [vmem:[#allocation17 + $0x88] sm:$0xff] %v6481_v47  ;;  %v6378_v21 = vadd.f32 %v7261_v26, %v6217_v44  ;;  %v6220_v17 = vadd.f32 %v7152_v31, %v9456_v29 }
 0xc0f   :  { %v6450_v35 = vmul.f32 0.01, %v6378_v21  ;;  %v6381_v41 = vadd.f32 %v7264_v33, %v6220_v17  ;;  %v7153_v37 = vpop.f32.mrb[136].mxu1  ;;  %v7265_v10 = vpop.f32.mrb[72].mxu0 }
 0xc10   :  { %v7154_v45 = vpop.f32.mrb[137].mxu1  ;;  %v7266_v46 = vpop.f32.mrb[73].mxu0 }
 0xc11   :  { %v6482_v53 = vmax.f32 %v6378_v21, %v6450_v35  ;;  %v6451_v63 = vmul.f32 0.01, %v6381_v41  ;;  %v7155_v2 = vadd.f32 %v7154_v45, %v7153_v37  ;;  %v7267_v13 = vadd.f32 %v7266_v46, %v7265_v10  ;;  %v7156_v56 = vpop.f32.mrb[138].mxu1  ;;  %v7268_v49 = vpop.f32.mrb[74].mxu0 }
 0xc12   :  { %v7157_v23 = vpop.f32.mrb[139].mxu1  ;;  %v7269_v57 = vpop.f32.mrb[75].mxu0 }
 0xc13   :  { %6514 = vst [vmem:[#allocation17 + $0x90] sm:$0xff] %v6482_v53  ;;  %v6483_v34 = vmax.f32 %v6381_v41, %v6451_v63  ;;  %v6225_v61 = vadd.f32 %v7155_v2, %v9456_v29  ;;  %v7158_v62 = vadd.f32 %v7157_v23, %v7156_v56  ;;  %v7270_v1 = vadd.f32 %v7269_v57, %v7268_v49 }
 0xc15   :  { %6515 = vst [vmem:[#allocation17 + $0x98] sm:$0xff] %v6483_v34  ;;  %v6386_v51 = vadd.f32 %v7267_v13, %v6225_v61  ;;  %v6228_v14 = vadd.f32 %v7158_v62, %v9456_v29 }
 0xc17   :  { %v6452_v19 = vmul.f32 0.01, %v6386_v51  ;;  %v6389_v59 = vadd.f32 %v7270_v1, %v6228_v14  ;;  %v7159_v8 = vpop.f32.mrb[140].mxu1  ;;  %v7271_v38 = vpop.f32.mrb[76].mxu0 }
 0xc18   :  { %v7160_v52 = vpop.f32.mrb[141].mxu1  ;;  %v7272_v9 = vpop.f32.mrb[77].mxu0 }
 0xc19   :  { %v6484_v50 = vmax.f32 %v6386_v51, %v6452_v19  ;;  %v6453_v6 = vmul.f32 0.01, %v6389_v59  ;;  %v7161_v4 = vadd.f32 %v7160_v52, %v7159_v8  ;;  %v7273_v22 = vadd.f32 %v7272_v9, %v7271_v38  ;;  %v7162_v58 = vpop.f32.mrb[142].mxu1  ;;  %v7274_v55 = vpop.f32.mrb[78].mxu0 }
 0xc1a   :  { %v7163_v18 = vpop.f32.mrb[143].mxu1  ;;  %v7275_v36 = vpop.f32.mrb[79].mxu0 }
 0xc1b   :  { %6516 = vst [vmem:[#allocation17 + $0xa0] sm:$0xff] %v6484_v50  ;;  %v6485_v11 = vmax.f32 %v6389_v59, %v6453_v6  ;;  %v6233_v54 = vadd.f32 %v7161_v4, %v9456_v29  ;;  %v7164_v16 = vadd.f32 %v7163_v18, %v7162_v58  ;;  %v7276_v48 = vadd.f32 %v7275_v36, %v7274_v55 }
 0xc1d   :  { %6517 = vst [vmem:[#allocation17 + $0xa8] sm:$0xff] %v6485_v11  ;;  %v6394_v15 = vadd.f32 %v7273_v22, %v6233_v54  ;;  %v6236_v43 = vadd.f32 %v7164_v16, %v9456_v29 }
 0xc1f   :  { %v6454_v42 = vmul.f32 0.01, %v6394_v15  ;;  %v6397_v39 = vadd.f32 %v7276_v48, %v6236_v43  ;;  %v7165_v24 = vpop.f32.mrb[144].mxu1  ;;  %v7277_v3 = vpop.f32.mrb[80].mxu0 }
 0xc20   :  { %v7166_v7 = vpop.f32.mrb[145].mxu1  ;;  %v7278_v12 = vpop.f32.mrb[81].mxu0 }
 0xc21   :  { %v6486_v25 = vmax.f32 %v6394_v15, %v6454_v42  ;;  %v6455_v32 = vmul.f32 0.01, %v6397_v39  ;;  %v7167_v40 = vadd.f32 %v7166_v7, %v7165_v24  ;;  %v7279_v30 = vadd.f32 %v7278_v12, %v7277_v3  ;;  %v7168_v20 = vpop.f32.mrb[146].mxu1  ;;  %v7280_v27 = vpop.f32.mrb[82].mxu0 }
 0xc22   :  { %v7169_v26 = vpop.f32.mrb[147].mxu1  ;;  %v7281_v28 = vpop.f32.mrb[83].mxu0 }
 0xc23   :  { %6518 = vst [vmem:[#allocation17 + $0xb0] sm:$0xff] %v6486_v25  ;;  %v6487_v60 = vmax.f32 %v6397_v39, %v6455_v32  ;;  %v6241_v0 = vadd.f32 %v7167_v40, %v9456_v29  ;;  %v7170_v5 = vadd.f32 %v7169_v26, %v7168_v20  ;;  %v7282_v47 = vadd.f32 %v7281_v28, %v7280_v27 }
 0xc25   :  { %6519 = vst [vmem:[#allocation17 + $0xb8] sm:$0xff] %v6487_v60  ;;  %v6402_v44 = vadd.f32 %v7279_v30, %v6241_v0  ;;  %v6244_v31 = vadd.f32 %v7170_v5, %v9456_v29 }
 0xc27   :  { %v6456_v33 = vmul.f32 0.01, %v6402_v44  ;;  %v6405_v21 = vadd.f32 %v7282_v47, %v6244_v31  ;;  %v7171_v17 = vpop.f32.mrb[148].mxu1  ;;  %v7283_v35 = vpop.f32.mrb[84].mxu0 }
 0xc28   :  { %v7172_v41 = vpop.f32.mrb[149].mxu1  ;;  %v7284_v37 = vpop.f32.mrb[85].mxu0 }
 0xc29   :  { %v6488_v10 = vmax.f32 %v6402_v44, %v6456_v33  ;;  %v6457_v45 = vmul.f32 0.01, %v6405_v21  ;;  %v7173_v46 = vadd.f32 %v7172_v41, %v7171_v17  ;;  %v7285_v53 = vadd.f32 %v7284_v37, %v7283_v35  ;;  %v7174_v63 = vpop.f32.mrb[150].mxu1  ;;  %v7286_v2 = vpop.f32.mrb[86].mxu0 }
 0xc2a   :  { %v7175_v13 = vpop.f32.mrb[151].mxu1  ;;  %v7287_v56 = vpop.f32.mrb[87].mxu0 }
 0xc2b   :  { %6520 = vst [vmem:[#allocation17 + $0xc0] sm:$0xff] %v6488_v10  ;;  %v6489_v49 = vmax.f32 %v6405_v21, %v6457_v45  ;;  %v6249_v23 = vadd.f32 %v7173_v46, %v9456_v29  ;;  %v7176_v57 = vadd.f32 %v7175_v13, %v7174_v63  ;;  %v7288_v34 = vadd.f32 %v7287_v56, %v7286_v2 }
 0xc2d   :  { %6521 = vst [vmem:[#allocation17 + $0xc8] sm:$0xff] %v6489_v49  ;;  %v6410_v61 = vadd.f32 %v7285_v53, %v6249_v23  ;;  %v6252_v62 = vadd.f32 %v7176_v57, %v9456_v29 }
 0xc2f   :  { %v6458_v1 = vmul.f32 0.01, %v6410_v61  ;;  %v6413_v51 = vadd.f32 %v7288_v34, %v6252_v62  ;;  %v7177_v14 = vpop.f32.mrb[152].mxu1  ;;  %v7289_v19 = vpop.f32.mrb[88].mxu0 }
 0xc30   :  { %v7178_v59 = vpop.f32.mrb[153].mxu1  ;;  %v7290_v8 = vpop.f32.mrb[89].mxu0 }
 0xc31   :  { %v6490_v38 = vmax.f32 %v6410_v61, %v6458_v1  ;;  %v6459_v52 = vmul.f32 0.01, %v6413_v51  ;;  %v7179_v9 = vadd.f32 %v7178_v59, %v7177_v14  ;;  %v7291_v50 = vadd.f32 %v7290_v8, %v7289_v19  ;;  %v7180_v6 = vpop.f32.mrb[154].mxu1  ;;  %v7292_v4 = vpop.f32.mrb[90].mxu0 }
 0xc32   :  { %v7181_v22 = vpop.f32.mrb[155].mxu1  ;;  %v7293_v58 = vpop.f32.mrb[91].mxu0 }
 0xc33   :  { %6522 = vst [vmem:[#allocation17 + $0xd0] sm:$0xff] %v6490_v38  ;;  %v6491_v55 = vmax.f32 %v6413_v51, %v6459_v52  ;;  %v6257_v18 = vadd.f32 %v7179_v9, %v9456_v29  ;;  %v7182_v36 = vadd.f32 %v7181_v22, %v7180_v6  ;;  %v7294_v11 = vadd.f32 %v7293_v58, %v7292_v4 }
 0xc35   :  { %6523 = vst [vmem:[#allocation17 + $0xd8] sm:$0xff] %v6491_v55  ;;  %v6418_v54 = vadd.f32 %v7291_v50, %v6257_v18  ;;  %v6260_v16 = vadd.f32 %v7182_v36, %v9456_v29 }
 0xc37   :  { %v6460_v48 = vmul.f32 0.01, %v6418_v54  ;;  %v6421_v15 = vadd.f32 %v7294_v11, %v6260_v16  ;;  %v7183_v43 = vpop.f32.mrb[156].mxu1  ;;  %v7295_v42 = vpop.f32.mrb[92].mxu0 }
 0xc38   :  { %v7184_v39 = vpop.f32.mrb[157].mxu1  ;;  %v7296_v24 = vpop.f32.mrb[93].mxu0 }
 0xc39   :  { %v6492_v3 = vmax.f32 %v6418_v54, %v6460_v48  ;;  %v6461_v7 = vmul.f32 0.01, %v6421_v15  ;;  %v7185_v12 = vadd.f32 %v7184_v39, %v7183_v43  ;;  %v7297_v25 = vadd.f32 %v7296_v24, %v7295_v42  ;;  %v7186_v32 = vpop.f32.mrb[158].mxu1  ;;  %v7298_v40 = vpop.f32.mrb[94].mxu0 }
 0xc3a   :  { %v7187_v30 = vpop.f32.mrb[159].mxu1  ;;  %v7299_v20 = vpop.f32.mrb[95].mxu0 }
 0xc3b   :  { %6524 = vst [vmem:[#allocation17 + $0xe0] sm:$0xff] %v6492_v3  ;;  %v6493_v27 = vmax.f32 %v6421_v15, %v6461_v7  ;;  %v6265_v26 = vadd.f32 %v7185_v12, %v9456_v29  ;;  %v7188_v28 = vadd.f32 %v7187_v30, %v7186_v32  ;;  %v7300_v60 = vadd.f32 %v7299_v20, %v7298_v40 }
 0xc3d   :  { %6525 = vst [vmem:[#allocation17 + $0xe8] sm:$0xff] %v6493_v27  ;;  %v6426_v0 = vadd.f32 %v7297_v25, %v6265_v26  ;;  %v6268_v5 = vadd.f32 %v7188_v28, %v9456_v29 }
 0xc3f   :  { %v6462_v47 = vmul.f32 0.01, %v6426_v0  ;;  %v6429_v44 = vadd.f32 %v7300_v60, %v6268_v5 }
 0xc41   :  { %v6494_v31 = vmax.f32 %v6426_v0, %v6462_v47  ;;  %v6463_v33 = vmul.f32 0.01, %v6429_v44 }
 0xc43   :  { %6526 = vst [vmem:[#allocation17 + $0xf0] sm:$0xff] %v6494_v31  ;;  %v6495_v21 = vmax.f32 %v6429_v44, %v6463_v33 }
 0xc45   :  { %6527 = vst [vmem:[#allocation17 + $0xf8] sm:$0xff] %v6495_v21 }
 0xc46   :  { %8321 = shalt.err (!%p8318_p6)
}
 0xc47   :  { %s8322_s17 = scalar_lea.hbm %s9514_s9, 4096 }
 0xc48   :  { %p8323_p7 = scmp.ne.s32.totalorder %s9514_s9, %s8322_s17  ;;  %p8326_p8 = scmp.lt.u32.totalorder %s8322_s17, %s9514_s9 }
 0xc4a   :  { %p8328_p9 = pnand %p8326_p8, %p8323_p7 }
 0xc4c   :  { %8331 = shalt.err (!%p8328_p9)
}
 0xc4d   :  { %6539 = dma.vmem_to_hbm [thread:$0]  %s6534_s11, 4096, %s9514_s9, [#allocation4], %s8353_s7, %s8353_s7, %s8354_s18  }
 0xc4e   :  { %8342 = dma.done.wait [#allocation4], 4096  }
 0xc4f   :  { %8343 = vsyncadd [#allocation4], 4294963200 }
 0xc50   :  { %6543 = vsyncpa [#allocation3], 1 }
 0xc51   :  { %6544 = vsyncpa [#allocation6], 1 }
 0xc52   :  { %6545 = vsyncpa [#allocation9], 1 }
 0xc53   :  { %6546 = vsyncpa [#allocation12], 1 }
 0xc54   :  { %6547 = vsyncpa [#allocation15], 1 }
 0xc55   :  { %6548 = vsyncpa [#allocation4], 1 }

</bundles_post_ra>
